<compile_context>
chip_gen: v6e
topology: v6e:2x2x1
jax: 0.10.0
libtpu: 0.0.40
codegen_flags: <defaults>
</compile_context>

<pallas_src>
import functools
import math

import numpy as np
import jax
import jax.numpy as jnp
from jax.experimental import pallas as pl
from jax.experimental.pallas import tpu as pltpu

PAD = 128                      # lane width: hidden / filters / gaussians padded to this
LOG2 = math.log(2.0)


def _ssp(x):
    """ShiftedSoftplus: softplus(x) - log(2), numerically stable; ssp(0) == 0."""
    return jnp.maximum(x, 0.0) + jnp.log(1.0 + jnp.exp(-jnp.abs(x))) - LOG2


def _layout(n_blocks):
    """Static, 128-aligned column offsets of the packed parameter slabs."""
    W0 = 0
    CL1 = PAD
    CL2 = CL1 + n_blocks * PAD
    LIN = CL2 + n_blocks * PAD
    RW1 = LIN + n_blocks * PAD
    RW2 = RW1 + PAD
    W128_COLS = RW2 + 2 * PAD
    OFFS = 0
    B0 = PAD
    B2 = 2 * PAD
    RB1 = 3 * PAD
    RB2 = 4 * PAD
    CL2B = 6 * PAD
    LINB = CL2B + n_blocks * PAD
    VEC_COLS = LINB + n_blocks * PAD
    return dict(W0=W0, CL1=CL1, CL2=CL2, LIN=LIN, RW1=RW1, RW2=RW2,
                W128_COLS=W128_COLS, OFFS=OFFS, B0=B0, B2=B2, RB1=RB1,
                RB2=RB2, CL2B=CL2B, LINB=LINB, VEC_COLS=VEC_COLS)


def schnet_group_kernel(h_ref, pei_ref, pej_ref, pool_ref, vecs_ref,
                        w128_ref, m2bd_ref, out_ref, *,
                        coeff, cutoff, n_blocks):
    """One graph group: geometry + all interaction blocks + head + 'add' readout."""
    f32 = jnp.float32
    bf16 = jnp.bfloat16
    L = _layout(n_blocks)
    A = h_ref.shape[0]                                  # padded atoms in this group

    # ---- geometry: edge-major, no (A, A, 128) diff tensor, no relayouts ----
    diff = pei_ref[...] - pej_ref[...]                  # (A*A, 8), 3 real lanes
    d2 = jnp.sum(diff * diff, axis=1, keepdims=True)    # (A*A, 1)
    dist = jnp.sqrt(d2)
    # Adjacency (same molecule, i != j, valid atoms) is encoded by the wrapper:
    # disallowed pairs were given dist == 2*cutoff, so `dist < cutoff` drops them.
    # TODO(synk): radius_graph's max_num_neighbors truncation is not modeled.
    gate = jnp.where(dist < cutoff,
                     0.5 * (jnp.cos(dist * (math.pi / cutoff)) + 1.0),
                     0.0)                               # (A*A, 1) cosine cutoff

    offs = vecs_ref[:, L['OFFS']:L['OFFS'] + PAD]       # (1, PAD)
    attr = jnp.exp(coeff * (dist - offs) ** 2)          # (A*A, PAD) GaussianSmearing

    # ---- filter bank of ALL blocks, densely packed (block k -> lanes k*F..) ----
    w0 = w128_ref[:, L['W0']:L['W0'] + PAD]             # (PAD, PAD) bf16
    b0 = vecs_ref[:, L['B0']:L['B0'] + PAD]             # (1, PAD)  f32
    b2 = vecs_ref[:, L['B2']:L['B2'] + PAD]
    t = _ssp(jnp.dot(attr.astype(bf16), w0, preferred_element_type=f32) + b0)
    W_all = jnp.dot(t.astype(bf16), m2bd_ref[...], preferred_element_type=f32) + b2
    W_all = W_all * gate                                # (A*A, PAD)
    W3 = W_all.reshape(A, A, PAD)                       # hoisted out of the block loop

    # ---- interaction blocks (h resident on-chip) ----
    h = h_ref[...]                                      # (A, PAD) f32
    for k in range(n_blocks):   # static unroll; fine for small n_blocks
        cl1 = w128_ref[:, L['CL1'] + k * PAD:L['CL1'] + (k + 1) * PAD]
        cl2 = w128_ref[:, L['CL2'] + k * PAD:L['CL2'] + (k + 1) * PAD]
        lin = w128_ref[:, L['LIN'] + k * PAD:L['LIN'] + (k + 1) * PAD]
        cl2b = vecs_ref[:, L['CL2B'] + k * PAD:L['CL2B'] + (k + 1) * PAD]
        linb = vecs_ref[:, L['LINB'] + k * PAD:L['LINB'] + (k + 1) * PAD]

        # CFConv: lin1(h)_j lands on block k's filter lanes (cl1 columns are
        # offset-packed); every other block's lane of W3 is multiplied by zero,
        # so no unaligned lane slices of W3 are needed.
        xf = jnp.dot(h.astype(bf16), cl1, preferred_element_type=f32)    # (A, PAD)
        agg = jnp.sum(W3 * xf[None, :, :], axis=1)                       # (A, PAD)
        y = jnp.dot(agg.astype(bf16), cl2, preferred_element_type=f32) + cl2b
        y = _ssp(y)
        y = jnp.dot(y.astype(bf16), lin, preferred_element_type=f32) + linb
        h = h + y                                                        # residual

    # ---- output head + 'add' readout over each graph in the group ----
    rw1 = w128_ref[:, L['RW1']:L['RW1'] + PAD]
    rw2 = w128_ref[:, L['RW2']:L['RW2'] + 2 * PAD]
    rb1 = vecs_ref[:, L['RB1']:L['RB1'] + PAD]
    rb2 = vecs_ref[:, L['RB2']:L['RB2'] + 2 * PAD]
    y = _ssp(jnp.dot(h.astype(bf16), rw1, preferred_element_type=f32) + rb1)
    y = jnp.dot(y.astype(bf16), rw2, preferred_element_type=f32) + rb2   # (A, 256)
    out_ref[...] = jnp.dot(pool_ref[...], y, preferred_element_type=f32)  # (GP, 256)


def init_params(key, *, hidden, filters, interactions, gaussians, cutoff):
    assert hidden <= PAD and gaussians <= PAD
    # TODO(synk): the dense filter bank assumes num_interactions*num_filters <= 128;
    # larger configs would need multiple 128-lane filter groups.
    assert interactions * filters <= PAD
    L = _layout(interactions)

    def xavier(k, shape):
        lim = math.sqrt(6.0 / (shape[0] + shape[1]))
        return jax.random.uniform(k, shape, jnp.float32, -lim, lim)

    keys = jax.random.split(key, 4 + interactions)

    # Embedding(100, hidden, padding_idx=0), padded to PAD lanes.
    emb = jax.random.normal(keys[0], (100, hidden), jnp.float32).at[0].set(0.0)
    emb_pad = jnp.zeros((100, PAD), jnp.float32).at[:, :hidden].set(emb)

    w128 = jnp.zeros((PAD, L['W128_COLS']), jnp.float32)
    m2bd = jnp.zeros((PAD, PAD), jnp.float32)
    vecs = jnp.zeros((1, L['VEC_COLS']), jnp.float32)
    vecs = vecs.at[0, L['OFFS']:L['OFFS'] + gaussians].set(
        jnp.linspace(0.0, cutoff, gaussians, dtype=jnp.float32))
    # All biases are zero at init (matches SchNet.reset_parameters); slots are
    # kept in `vecs` so trained parameters can be dropped in (re-zero padding!).

    for i in range(interactions):
        ks = jax.random.split(keys[4 + i], 5)
        f0 = i * filters
        w128 = w128.at[:gaussians, L['W0'] + f0:L['W0'] + f0 + filters].set(
            xavier(ks[0], (gaussians, filters)))                     # mlp[0]
        m2bd = m2bd.at[f0:f0 + filters, f0:f0 + filters].set(
            xavier(ks[1], (filters, filters)))                       # mlp[2]
        w128 = w128.at[:hidden,
                       L['CL1'] + i * PAD + f0:
                       L['CL1'] + i * PAD + f0 + filters].set(
            xavier(ks[2], (hidden, filters)))                        # conv.lin1
        w128 = w128.at[f0:f0 + filters,
                       L['CL2'] + i * PAD:L['CL2'] + i * PAD + hidden].set(
            xavier(ks[3], (filters, hidden)))                        # conv.lin2
        w128 = w128.at[:hidden,
                       L['LIN'] + i * PAD:L['LIN'] + i * PAD + hidden].set(
            xavier(ks[4], (hidden, hidden)))                         # interaction.lin

    w128 = w128.at[:hidden, L['RW1']:L['RW1'] + hidden].set(
        xavier(keys[1], (hidden, hidden)))                           # lin1
    w128 = w128.at[:hidden, L['RW2']:L['RW2'] + 200].set(
        xavier(keys[2], (hidden, 200)))                              # lin2

    delta = cutoff / (gaussians - 1)
    return dict(
        embedding=emb_pad,
        w128=w128.astype(jnp.bfloat16),     # bf16 weights, f32 accumulation
        mlp2_bd=m2bd.astype(jnp.bfloat16),
        vecs=vecs,
        coeff=-0.5 / (delta * delta),
        cutoff=float(cutoff),
        num_interactions=interactions,
    )


def xasnet_schnet_forward(z, pos, batch, params, num_graphs,
                          max_atoms_per_group=64):
    """SchNet forward: graphs packed into fixed-size groups, one grid step per
    group (block-diagonal; parallel across TensorCores on v7x)."""
    nblk = params['num_interactions']
    cutoff = params['cutoff']
    L = _layout(nblk)

    z_np = np.asarray(jax.device_get(z))
    batch_np = np.asarray(jax.device_get(batch))
    pos_np = np.asarray(jax.device_get(pos), dtype=np.float32)
    emb_np = np.asarray(jax.device_get(params['embedding']), dtype=np.float32)

    graphs = [np.nonzero(batch_np == g)[0] for g in range(num_graphs)]

    # Greedy block-diagonal grouping of whole graphs.
    # TODO(synk): a single molecule larger than max_atoms_per_group grows the
    # block; tiling the A*A edge axis in-kernel would remove that ceiling.
    groups, cur, cur_atoms = [], [], 0
    for g in range(num_graphs):
        na = int(graphs[g].size)
        if cur and cur_atoms + na > max_atoms_per_group:
            groups.append(cur)
            cur, cur_atoms = [], 0
        cur.append(g)
        cur_atoms += na
    if cur:
        groups.append(cur)

    n_groups = len(groups)
    max_atoms = max(sum(int(graphs[g].size) for g in grp) for grp in groups)
    A = max(8, -(-max_atoms // 8) * 8)                     # sublane-padded atoms/group
    GP = max(8, -(-max(len(grp) for grp in groups) // 8) * 8)
    E = A * A

    h0 = np.zeros((n_groups, A, PAD), np.float32)
    pei = np.zeros((n_groups, E, 8), np.float32)
    pej = np.zeros((n_groups, E, 8), np.float32)
    pool = np.zeros((n_groups, GP, A), np.float32)
    loc = np.zeros((num_graphs, 2), np.int32)

    for gi, grp in enumerate(groups):
        coords = np.zeros((A, 3), np.float32)
        gid = np.full((A,), -1, np.int64)
        a0 = 0
        for slot, g in enumerate(grp):
            idx = graphs[g]
            na = int(idx.size)
            coords[a0:a0 + na] = pos_np[idx]
            gid[a0:a0 + na] = g
            h0[gi, a0:a0 + na] = emb_np[z_np[idx]]
            pool[gi, slot, a0:a0 + na] = 1.0
            loc[g] = (gi, slot)
            a0 += na
        allowed = (gid[:, None] == gid[None, :]) & (gid[:, None] >= 0)
        np.fill_diagonal(allowed, False)
        pi = np.repeat(coords, A, axis=0)                  # row i*A+j -> atom i
        pj = np.tile(coords, (A, 1))                       # row i*A+j -> atom j
        far = ~allowed.reshape(E)
        # Encode the adjacency mask in the coordinates: disallowed pairs are
        # placed 2*cutoff apart so the in-kernel `dist < cutoff` removes them.
        pi[far] = 0.0
        pj[far] = 0.0
        pj[far, 0] = 2.0 * cutoff
        pei[gi, :, :3] = pi
        pej[gi, :, :3] = pj

    # Rough advisory cost for the whole call.
    flops = n_groups * (4 * E * PAD * PAD
                        + nblk * (6 * A * PAD * PAD + 3 * E * PAD)
                        + 6 * A * PAD * PAD + 4 * GP * A * PAD)
    transc = n_groups * (3 * E * PAD + 2 * E + (nblk + 1) * 2 * A * PAD)
    bytes_accessed = (h0.nbytes + pei.nbytes + pej.nbytes + pool.nbytes
                      + 4 * L['VEC_COLS'] + 2 * PAD * L['W128_COLS']
                      + 2 * PAD * PAD + n_groups * GP * 2 * PAD * 4)

    kernel = functools.partial(schnet_group_kernel,
                               coeff=float(params['coeff']),
                               cutoff=float(cutoff),
                               n_blocks=nblk)

    out = pl.pallas_call(
        kernel,
        out_shape=jax.ShapeDtypeStruct((n_groups, GP, 2 * PAD), jnp.float32),
        grid=(n_groups,),
        in_specs=[
            pl.BlockSpec((None, A, PAD), lambda g: (g, 0, 0)),       # h0
            pl.BlockSpec((None, E, 8), lambda g: (g, 0, 0)),         # pos_i per edge
            pl.BlockSpec((None, E, 8), lambda g: (g, 0, 0)),         # pos_j per edge
            pl.BlockSpec((None, GP, A), lambda g: (g, 0, 0)),        # readout pool
            pl.BlockSpec((1, L['VEC_COLS']), lambda g: (0, 0)),      # offsets / biases
            pl.BlockSpec((PAD, L['W128_COLS']), lambda g: (0, 0)),   # weight slab (bf16)
            pl.BlockSpec((PAD, PAD), lambda g: (0, 0)),              # mlp[2] block-diag
        ],
        out_specs=pl.BlockSpec((None, GP, 2 * PAD), lambda g: (g, 0, 0)),
        compiler_params=pltpu.CompilerParams(
            dimension_semantics=("parallel",),
            vmem_limit_bytes=64 * 1024 * 1024),
        cost_estimate=pl.CostEstimate(flops=int(flops),
                                      transcendentals=int(transc),
                                      bytes_accessed=int(bytes_accessed)),
    )(jnp.asarray(h0), jnp.asarray(pei), jnp.asarray(pej), jnp.asarray(pool),
      params['vecs'], params['w128'], params['mlp2_bd'])

    loc_j = jnp.asarray(loc)
    return out[loc_j[:, 0], loc_j[:, 1], :200]


if __name__ == "__main__":
    hidden = 32
    filters = 32
    num_interactions = 3
    num_gaussians = 16
    cutoff = 10.0
    num_graphs = 4
    atoms_per_graph = 6
    N = num_graphs * atoms_per_graph

    key = jax.random.PRNGKey(0)
    kp, kz, kpos = jax.random.split(key, 3)

    params = init_params(kp, hidden=hidden, filters=filters,
                         interactions=num_interactions,
                         gaussians=num_gaussians, cutoff=cutoff)

    z = jax.random.randint(kz, (N,), 1, 10, dtype=jnp.int32)      # atomic numbers
    pos = jax.random.uniform(kpos, (N, 3), jnp.float32, 0.0, 3.0)
    batch = jnp.repeat(jnp.arange(num_graphs, dtype=jnp.int32), atoms_per_graph)

    out = xasnet_schnet_forward(z, pos, batch, params, num_graphs,
                                max_atoms_per_group=12)
    out = jax.block_until_ready(out)

    assert out.shape == (num_graphs, 200), out.shape
    assert bool(jnp.all(jnp.isfinite(out)))
    print("KERNEL_OK")
</pallas_src>

<mosaic_0001>
module attributes {stable_mosaic.version = 11 : i64} {
  func.func @schnet_group_kernel(%arg0: i32, %arg1: memref<1x16x128xf32, #tpu.memory_space<vmem>>, %arg2: memref<1x256x8xf32, #tpu.memory_space<vmem>>, %arg3: memref<1x256x8xf32, #tpu.memory_space<vmem>>, %arg4: memref<1x8x16xf32, #tpu.memory_space<vmem>>, %arg5: memref<1x1536xf32, #tpu.memory_space<vmem>>, %arg6: memref<128x1664xbf16, #tpu.memory_space<vmem>>, %arg7: memref<128x128xbf16, #tpu.memory_space<vmem>>, %arg8: memref<1x8x256xf32, #tpu.memory_space<vmem>>) attributes {dimension_semantics = [#tpu.dimension_semantics<parallel>], iteration_bounds = array<i64: 2>, scalar_prefetch = 0 : i64, scratch_operands = 0 : i64, tpu.core_type = #tpu.core_type<tc>, window_params = [{transform_indices = @transform_0, window_bounds = array<i64: 1, 16, 128>}, {transform_indices = @transform_1, window_bounds = array<i64: 1, 256, 8>}, {transform_indices = @transform_2, window_bounds = array<i64: 1, 256, 8>}, {transform_indices = @transform_3, window_bounds = array<i64: 1, 8, 16>}, {pipeline_mode = #tpu.pipeline_mode<synchronous>, transform_indices = @transform_4, window_bounds = array<i64: 1, 1536>}, {pipeline_mode = #tpu.pipeline_mode<synchronous>, transform_indices = @transform_5, window_bounds = array<i64: 128, 1664>}, {pipeline_mode = #tpu.pipeline_mode<synchronous>, transform_indices = @transform_6, window_bounds = array<i64: 128, 128>}, {transform_indices = @transform_7, window_bounds = array<i64: 1, 8, 256>}]} {
    %c0 = arith.constant 0 : index
    %c0_0 = arith.constant 0 : index
    %c0_1 = arith.constant 0 : index
    %0 = vector.load %arg2[%c0, %c0_0, %c0_1] : memref<1x256x8xf32, #tpu.memory_space<vmem>>, vector<1x256x8xf32>
    %1 = vector.shape_cast %0 : vector<1x256x8xf32> to vector<256x8xf32>
    %c0_2 = arith.constant 0 : index
    %c0_3 = arith.constant 0 : index
    %c0_4 = arith.constant 0 : index
    %2 = vector.load %arg3[%c0_2, %c0_3, %c0_4] : memref<1x256x8xf32, #tpu.memory_space<vmem>>, vector<1x256x8xf32>
    %3 = vector.shape_cast %2 : vector<1x256x8xf32> to vector<256x8xf32>
    %4 = arith.subf %1, %3 : vector<256x8xf32>
    %5 = arith.mulf %4, %4 : vector<256x8xf32>
    %cst = arith.constant dense<0.000000e+00> : vector<256xf32>
    %6 = vector.multi_reduction <add>, %5, %cst [1] : vector<256x8xf32> to vector<256xf32>
    %7 = vector.shape_cast %6 : vector<256xf32> to vector<256x1xf32>
    %8 = math.sqrt %7 : vector<256x1xf32>
    %cst_5 = arith.constant 1.000000e+01 : f32
    %9 = vector.broadcast %cst_5 : f32 to vector<256x1xf32>
    %10 = arith.cmpf olt, %8, %9 : vector<256x1xf32>
    %cst_6 = arith.constant 0.314159274 : f32
    %11 = vector.broadcast %cst_6 : f32 to vector<256x1xf32>
    %12 = arith.mulf %8, %11 : vector<256x1xf32>
    %13 = math.cos %12 : vector<256x1xf32>
    %cst_7 = arith.constant 1.000000e+00 : f32
    %14 = vector.broadcast %cst_7 : f32 to vector<256x1xf32>
    %15 = arith.addf %13, %14 : vector<256x1xf32>
    %cst_8 = arith.constant 5.000000e-01 : f32
    %16 = vector.broadcast %cst_8 : f32 to vector<256x1xf32>
    %17 = arith.mulf %16, %15 : vector<256x1xf32>
    %cst_9 = arith.constant 0.000000e+00 : f32
    %18 = vector.broadcast %cst_9 : f32 to vector<256x1xf32>
    %19 = arith.select %10, %17, %18 : vector<256x1xi1>, vector<256x1xf32>
    %c0_10 = arith.constant 0 : index
    %c0_11 = arith.constant 0 : index
    %20 = vector.load %arg5[%c0_10, %c0_11] : memref<1x1536xf32, #tpu.memory_space<vmem>>, vector<1x128xf32>
    %21 = vector.broadcast %8 : vector<256x1xf32> to vector<256x128xf32>
    %22 = vector.broadcast %20 : vector<1x128xf32> to vector<256x128xf32>
    %23 = arith.subf %21, %22 : vector<256x128xf32>
    %24 = arith.mulf %23, %23 : vector<256x128xf32>
    %cst_12 = arith.constant -1.125000e+00 : f32
    %25 = vector.broadcast %cst_12 : f32 to vector<256x128xf32>
    %26 = arith.mulf %25, %24 : vector<256x128xf32>
    %27 = math.exp %26 : vector<256x128xf32>
    %c0_13 = arith.constant 0 : index
    %c0_14 = arith.constant 0 : index
    %28 = vector.load %arg6[%c0_13, %c0_14] : memref<128x1664xbf16, #tpu.memory_space<vmem>>, vector<128x128xbf16>
    %c0_15 = arith.constant 0 : index
    %c128 = arith.constant 128 : index
    %29 = vector.load %arg5[%c0_15, %c128] : memref<1x1536xf32, #tpu.memory_space<vmem>>, vector<1x128xf32>
    %c0_16 = arith.constant 0 : index
    %c256 = arith.constant 256 : index
    %30 = vector.load %arg5[%c0_16, %c256] : memref<1x1536xf32, #tpu.memory_space<vmem>>, vector<1x128xf32>
    %31 = arith.truncf %27 : vector<256x128xf32> to vector<256x128xbf16>
    %cst_17 = arith.constant dense<0.000000e+00> : vector<256x128xf32>
    %32 = tpu.matmul %31, %28, %cst_17 {dimension_numbers = #tpu.dot_dimension_numbers<[1], [0], [0], [1], [0, 0, 1, 1], [], []>} : vector<256x128xbf16>, vector<128x128xbf16>, vector<256x128xf32> -> vector<256x128xf32>
    %33 = vector.broadcast %29 : vector<1x128xf32> to vector<256x128xf32>
    %34 = arith.addf %32, %33 : vector<256x128xf32>
    %cst_18 = arith.constant 0.000000e+00 : f32
    %35 = vector.broadcast %cst_18 : f32 to vector<256x128xf32>
    %36 = arith.maximumf %34, %35 : vector<256x128xf32>
    %37 = math.absf %34 : vector<256x128xf32>
    %cst_19 = arith.constant 0.000000e+00 : f32
    %38 = vector.broadcast %cst_19 : f32 to vector<256x128xf32>
    %39 = arith.subf %38, %37 : vector<256x128xf32>
    %40 = math.exp %39 : vector<256x128xf32>
    %cst_20 = arith.constant 1.000000e+00 : f32
    %41 = vector.broadcast %cst_20 : f32 to vector<256x128xf32>
    %42 = arith.addf %41, %40 : vector<256x128xf32>
    %43 = math.log %42 : vector<256x128xf32>
    %44 = arith.addf %36, %43 : vector<256x128xf32>
    %cst_21 = arith.constant 0.693147182 : f32
    %45 = vector.broadcast %cst_21 : f32 to vector<256x128xf32>
    %46 = arith.subf %44, %45 : vector<256x128xf32>
    %47 = arith.truncf %46 : vector<256x128xf32> to vector<256x128xbf16>
    %c0_22 = arith.constant 0 : index
    %c0_23 = arith.constant 0 : index
    %48 = vector.load %arg7[%c0_22, %c0_23] : memref<128x128xbf16, #tpu.memory_space<vmem>>, vector<128x128xbf16>
    %cst_24 = arith.constant dense<0.000000e+00> : vector<256x128xf32>
    %49 = tpu.matmul %47, %48, %cst_24 {dimension_numbers = #tpu.dot_dimension_numbers<[1], [0], [0], [1], [0, 0, 1, 1], [], []>} : vector<256x128xbf16>, vector<128x128xbf16>, vector<256x128xf32> -> vector<256x128xf32>
    %50 = vector.broadcast %30 : vector<1x128xf32> to vector<256x128xf32>
    %51 = arith.addf %49, %50 : vector<256x128xf32>
    %52 = vector.broadcast %19 : vector<256x1xf32> to vector<256x128xf32>
    %53 = arith.mulf %51, %52 : vector<256x128xf32>
    %54 = vector.shape_cast %53 : vector<256x128xf32> to vector<16x16x128xf32>
    %c0_25 = arith.constant 0 : index
    %c0_26 = arith.constant 0 : index
    %c0_27 = arith.constant 0 : index
    %55 = vector.load %arg1[%c0_25, %c0_26, %c0_27] : memref<1x16x128xf32, #tpu.memory_space<vmem>>, vector<1x16x128xf32>
    %56 = vector.shape_cast %55 : vector<1x16x128xf32> to vector<16x128xf32>
    %c0_28 = arith.constant 0 : index
    %c128_29 = arith.constant 128 : index
    %57 = vector.load %arg6[%c0_28, %c128_29] : memref<128x1664xbf16, #tpu.memory_space<vmem>>, vector<128x128xbf16>
    %c0_30 = arith.constant 0 : index
    %c512 = arith.constant 512 : index
    %58 = vector.load %arg6[%c0_30, %c512] : memref<128x1664xbf16, #tpu.memory_space<vmem>>, vector<128x128xbf16>
    %c0_31 = arith.constant 0 : index
    %c896 = arith.constant 896 : index
    %59 = vector.load %arg6[%c0_31, %c896] : memref<128x1664xbf16, #tpu.memory_space<vmem>>, vector<128x128xbf16>
    %c0_32 = arith.constant 0 : index
    %c768 = arith.constant 768 : index
    %60 = vector.load %arg5[%c0_32, %c768] : memref<1x1536xf32, #tpu.memory_space<vmem>>, vector<1x128xf32>
    %c0_33 = arith.constant 0 : index
    %c1152 = arith.constant 1152 : index
    %61 = vector.load %arg5[%c0_33, %c1152] : memref<1x1536xf32, #tpu.memory_space<vmem>>, vector<1x128xf32>
    %62 = arith.truncf %56 : vector<16x128xf32> to vector<16x128xbf16>
    %cst_34 = arith.constant dense<0.000000e+00> : vector<16x128xf32>
    %63 = tpu.matmul %62, %57, %cst_34 {dimension_numbers = #tpu.dot_dimension_numbers<[1], [0], [0], [1], [0, 0, 1, 1], [], []>} : vector<16x128xbf16>, vector<128x128xbf16>, vector<16x128xf32> -> vector<16x128xf32>
    %64 = vector.shape_cast %63 : vector<16x128xf32> to vector<1x16x128xf32>
    %65 = vector.broadcast %64 : vector<1x16x128xf32> to vector<16x16x128xf32>
    %66 = arith.mulf %54, %65 : vector<16x16x128xf32>
    %cst_35 = arith.constant dense<0.000000e+00> : vector<16x128xf32>
    %67 = vector.multi_reduction <add>, %66, %cst_35 [1] : vector<16x16x128xf32> to vector<16x128xf32>
    %68 = arith.truncf %67 : vector<16x128xf32> to vector<16x128xbf16>
    %cst_36 = arith.constant dense<0.000000e+00> : vector<16x128xf32>
    %69 = tpu.matmul %68, %58, %cst_36 {dimension_numbers = #tpu.dot_dimension_numbers<[1], [0], [0], [1], [0, 0, 1, 1], [], []>} : vector<16x128xbf16>, vector<128x128xbf16>, vector<16x128xf32> -> vector<16x128xf32>
    %70 = vector.broadcast %60 : vector<1x128xf32> to vector<16x128xf32>
    %71 = arith.addf %69, %70 : vector<16x128xf32>
    %cst_37 = arith.constant 0.000000e+00 : f32
    %72 = vector.broadcast %cst_37 : f32 to vector<16x128xf32>
    %73 = arith.maximumf %71, %72 : vector<16x128xf32>
    %74 = math.absf %71 : vector<16x128xf32>
    %cst_38 = arith.constant 0.000000e+00 : f32
    %75 = vector.broadcast %cst_38 : f32 to vector<16x128xf32>
    %76 = arith.subf %75, %74 : vector<16x128xf32>
    %77 = math.exp %76 : vector<16x128xf32>
    %cst_39 = arith.constant 1.000000e+00 : f32
    %78 = vector.broadcast %cst_39 : f32 to vector<16x128xf32>
    %79 = arith.addf %78, %77 : vector<16x128xf32>
    %80 = math.log %79 : vector<16x128xf32>
    %81 = arith.addf %73, %80 : vector<16x128xf32>
    %cst_40 = arith.constant 0.693147182 : f32
    %82 = vector.broadcast %cst_40 : f32 to vector<16x128xf32>
    %83 = arith.subf %81, %82 : vector<16x128xf32>
    %84 = arith.truncf %83 : vector<16x128xf32> to vector<16x128xbf16>
    %cst_41 = arith.constant dense<0.000000e+00> : vector<16x128xf32>
    %85 = tpu.matmul %84, %59, %cst_41 {dimension_numbers = #tpu.dot_dimension_numbers<[1], [0], [0], [1], [0, 0, 1, 1], [], []>} : vector<16x128xbf16>, vector<128x128xbf16>, vector<16x128xf32> -> vector<16x128xf32>
    %86 = vector.broadcast %61 : vector<1x128xf32> to vector<16x128xf32>
    %87 = arith.addf %85, %86 : vector<16x128xf32>
    %88 = arith.addf %56, %87 : vector<16x128xf32>
    %c0_42 = arith.constant 0 : index
    %c256_43 = arith.constant 256 : index
    %89 = vector.load %arg6[%c0_42, %c256_43] : memref<128x1664xbf16, #tpu.memory_space<vmem>>, vector<128x128xbf16>
    %c0_44 = arith.constant 0 : index
    %c640 = arith.constant 640 : index
    %90 = vector.load %arg6[%c0_44, %c640] : memref<128x1664xbf16, #tpu.memory_space<vmem>>, vector<128x128xbf16>
    %c0_45 = arith.constant 0 : index
    %c1024 = arith.constant 1024 : index
    %91 = vector.load %arg6[%c0_45, %c1024] : memref<128x1664xbf16, #tpu.memory_space<vmem>>, vector<128x128xbf16>
    %c0_46 = arith.constant 0 : index
    %c896_47 = arith.constant 896 : index
    %92 = vector.load %arg5[%c0_46, %c896_47] : memref<1x1536xf32, #tpu.memory_space<vmem>>, vector<1x128xf32>
    %c0_48 = arith.constant 0 : index
    %c1280 = arith.constant 1280 : index
    %93 = vector.load %arg5[%c0_48, %c1280] : memref<1x1536xf32, #tpu.memory_space<vmem>>, vector<1x128xf32>
    %94 = arith.truncf %88 : vector<16x128xf32> to vector<16x128xbf16>
    %cst_49 = arith.constant dense<0.000000e+00> : vector<16x128xf32>
    %95 = tpu.matmul %94, %89, %cst_49 {dimension_numbers = #tpu.dot_dimension_numbers<[1], [0], [0], [1], [0, 0, 1, 1], [], []>} : vector<16x128xbf16>, vector<128x128xbf16>, vector<16x128xf32> -> vector<16x128xf32>
    %96 = vector.shape_cast %95 : vector<16x128xf32> to vector<1x16x128xf32>
    %97 = vector.broadcast %96 : vector<1x16x128xf32> to vector<16x16x128xf32>
    %98 = arith.mulf %54, %97 : vector<16x16x128xf32>
    %cst_50 = arith.constant dense<0.000000e+00> : vector<16x128xf32>
    %99 = vector.multi_reduction <add>, %98, %cst_50 [1] : vector<16x16x128xf32> to vector<16x128xf32>
    %100 = arith.truncf %99 : vector<16x128xf32> to vector<16x128xbf16>
    %cst_51 = arith.constant dense<0.000000e+00> : vector<16x128xf32>
    %101 = tpu.matmul %100, %90, %cst_51 {dimension_numbers = #tpu.dot_dimension_numbers<[1], [0], [0], [1], [0, 0, 1, 1], [], []>} : vector<16x128xbf16>, vector<128x128xbf16>, vector<16x128xf32> -> vector<16x128xf32>
    %102 = vector.broadcast %92 : vector<1x128xf32> to vector<16x128xf32>
    %103 = arith.addf %101, %102 : vector<16x128xf32>
    %cst_52 = arith.constant 0.000000e+00 : f32
    %104 = vector.broadcast %cst_52 : f32 to vector<16x128xf32>
    %105 = arith.maximumf %103, %104 : vector<16x128xf32>
    %106 = math.absf %103 : vector<16x128xf32>
    %cst_53 = arith.constant 0.000000e+00 : f32
    %107 = vector.broadcast %cst_53 : f32 to vector<16x128xf32>
    %108 = arith.subf %107, %106 : vector<16x128xf32>
    %109 = math.exp %108 : vector<16x128xf32>
    %cst_54 = arith.constant 1.000000e+00 : f32
    %110 = vector.broadcast %cst_54 : f32 to vector<16x128xf32>
    %111 = arith.addf %110, %109 : vector<16x128xf32>
    %112 = math.log %111 : vector<16x128xf32>
    %113 = arith.addf %105, %112 : vector<16x128xf32>
    %cst_55 = arith.constant 0.693147182 : f32
    %114 = vector.broadcast %cst_55 : f32 to vector<16x128xf32>
    %115 = arith.subf %113, %114 : vector<16x128xf32>
    %116 = arith.truncf %115 : vector<16x128xf32> to vector<16x128xbf16>
    %cst_56 = arith.constant dense<0.000000e+00> : vector<16x128xf32>
    %117 = tpu.matmul %116, %91, %cst_56 {dimension_numbers = #tpu.dot_dimension_numbers<[1], [0], [0], [1], [0, 0, 1, 1], [], []>} : vector<16x128xbf16>, vector<128x128xbf16>, vector<16x128xf32> -> vector<16x128xf32>
    %118 = vector.broadcast %93 : vector<1x128xf32> to vector<16x128xf32>
    %119 = arith.addf %117, %118 : vector<16x128xf32>
    %120 = arith.addf %88, %119 : vector<16x128xf32>
    %c0_57 = arith.constant 0 : index
    %c384 = arith.constant 384 : index
    %121 = vector.load %arg6[%c0_57, %c384] : memref<128x1664xbf16, #tpu.memory_space<vmem>>, vector<128x128xbf16>
    %c0_58 = arith.constant 0 : index
    %c768_59 = arith.constant 768 : index
    %122 = vector.load %arg6[%c0_58, %c768_59] : memref<128x1664xbf16, #tpu.memory_space<vmem>>, vector<128x128xbf16>
    %c0_60 = arith.constant 0 : index
    %c1152_61 = arith.constant 1152 : index
    %123 = vector.load %arg6[%c0_60, %c1152_61] : memref<128x1664xbf16, #tpu.memory_space<vmem>>, vector<128x128xbf16>
    %c0_62 = arith.constant 0 : index
    %c1024_63 = arith.constant 1024 : index
    %124 = vector.load %arg5[%c0_62, %c1024_63] : memref<1x1536xf32, #tpu.memory_space<vmem>>, vector<1x128xf32>
    %c0_64 = arith.constant 0 : index
    %c1408 = arith.constant 1408 : index
    %125 = vector.load %arg5[%c0_64, %c1408] : memref<1x1536xf32, #tpu.memory_space<vmem>>, vector<1x128xf32>
    %126 = arith.truncf %120 : vector<16x128xf32> to vector<16x128xbf16>
    %cst_65 = arith.constant dense<0.000000e+00> : vector<16x128xf32>
    %127 = tpu.matmul %126, %121, %cst_65 {dimension_numbers = #tpu.dot_dimension_numbers<[1], [0], [0], [1], [0, 0, 1, 1], [], []>} : vector<16x128xbf16>, vector<128x128xbf16>, vector<16x128xf32> -> vector<16x128xf32>
    %128 = vector.shape_cast %127 : vector<16x128xf32> to vector<1x16x128xf32>
    %129 = vector.broadcast %128 : vector<1x16x128xf32> to vector<16x16x128xf32>
    %130 = arith.mulf %54, %129 : vector<16x16x128xf32>
    %cst_66 = arith.constant dense<0.000000e+00> : vector<16x128xf32>
    %131 = vector.multi_reduction <add>, %130, %cst_66 [1] : vector<16x16x128xf32> to vector<16x128xf32>
    %132 = arith.truncf %131 : vector<16x128xf32> to vector<16x128xbf16>
    %cst_67 = arith.constant dense<0.000000e+00> : vector<16x128xf32>
    %133 = tpu.matmul %132, %122, %cst_67 {dimension_numbers = #tpu.dot_dimension_numbers<[1], [0], [0], [1], [0, 0, 1, 1], [], []>} : vector<16x128xbf16>, vector<128x128xbf16>, vector<16x128xf32> -> vector<16x128xf32>
    %134 = vector.broadcast %124 : vector<1x128xf32> to vector<16x128xf32>
    %135 = arith.addf %133, %134 : vector<16x128xf32>
    %cst_68 = arith.constant 0.000000e+00 : f32
    %136 = vector.broadcast %cst_68 : f32 to vector<16x128xf32>
    %137 = arith.maximumf %135, %136 : vector<16x128xf32>
    %138 = math.absf %135 : vector<16x128xf32>
    %cst_69 = arith.constant 0.000000e+00 : f32
    %139 = vector.broadcast %cst_69 : f32 to vector<16x128xf32>
    %140 = arith.subf %139, %138 : vector<16x128xf32>
    %141 = math.exp %140 : vector<16x128xf32>
    %cst_70 = arith.constant 1.000000e+00 : f32
    %142 = vector.broadcast %cst_70 : f32 to vector<16x128xf32>
    %143 = arith.addf %142, %141 : vector<16x128xf32>
    %144 = math.log %143 : vector<16x128xf32>
    %145 = arith.addf %137, %144 : vector<16x128xf32>
    %cst_71 = arith.constant 0.693147182 : f32
    %146 = vector.broadcast %cst_71 : f32 to vector<16x128xf32>
    %147 = arith.subf %145, %146 : vector<16x128xf32>
    %148 = arith.truncf %147 : vector<16x128xf32> to vector<16x128xbf16>
    %cst_72 = arith.constant dense<0.000000e+00> : vector<16x128xf32>
    %149 = tpu.matmul %148, %123, %cst_72 {dimension_numbers = #tpu.dot_dimension_numbers<[1], [0], [0], [1], [0, 0, 1, 1], [], []>} : vector<16x128xbf16>, vector<128x128xbf16>, vector<16x128xf32> -> vector<16x128xf32>
    %150 = vector.broadcast %125 : vector<1x128xf32> to vector<16x128xf32>
    %151 = arith.addf %149, %150 : vector<16x128xf32>
    %152 = arith.addf %120, %151 : vector<16x128xf32>
    %c0_73 = arith.constant 0 : index
    %c1280_74 = arith.constant 1280 : index
    %153 = vector.load %arg6[%c0_73, %c1280_74] : memref<128x1664xbf16, #tpu.memory_space<vmem>>, vector<128x128xbf16>
    %c0_75 = arith.constant 0 : index
    %c1408_76 = arith.constant 1408 : index
    %154 = vector.load %arg6[%c0_75, %c1408_76] : memref<128x1664xbf16, #tpu.memory_space<vmem>>, vector<128x256xbf16>
    %c0_77 = arith.constant 0 : index
    %c384_78 = arith.constant 384 : index
    %155 = vector.load %arg5[%c0_77, %c384_78] : memref<1x1536xf32, #tpu.memory_space<vmem>>, vector<1x128xf32>
    %c0_79 = arith.constant 0 : index
    %c512_80 = arith.constant 512 : index
    %156 = vector.load %arg5[%c0_79, %c512_80] : memref<1x1536xf32, #tpu.memory_space<vmem>>, vector<1x256xf32>
    %157 = arith.truncf %152 : vector<16x128xf32> to vector<16x128xbf16>
    %cst_81 = arith.constant dense<0.000000e+00> : vector<16x128xf32>
    %158 = tpu.matmul %157, %153, %cst_81 {dimension_numbers = #tpu.dot_dimension_numbers<[1], [0], [0], [1], [0, 0, 1, 1], [], []>} : vector<16x128xbf16>, vector<128x128xbf16>, vector<16x128xf32> -> vector<16x128xf32>
    %159 = vector.broadcast %155 : vector<1x128xf32> to vector<16x128xf32>
    %160 = arith.addf %158, %159 : vector<16x128xf32>
    %cst_82 = arith.constant 0.000000e+00 : f32
    %161 = vector.broadcast %cst_82 : f32 to vector<16x128xf32>
    %162 = arith.maximumf %160, %161 : vector<16x128xf32>
    %163 = math.absf %160 : vector<16x128xf32>
    %cst_83 = arith.constant 0.000000e+00 : f32
    %164 = vector.broadcast %cst_83 : f32 to vector<16x128xf32>
    %165 = arith.subf %164, %163 : vector<16x128xf32>
    %166 = math.exp %165 : vector<16x128xf32>
    %cst_84 = arith.constant 1.000000e+00 : f32
    %167 = vector.broadcast %cst_84 : f32 to vector<16x128xf32>
    %168 = arith.addf %167, %166 : vector<16x128xf32>
    %169 = math.log %168 : vector<16x128xf32>
    %170 = arith.addf %162, %169 : vector<16x128xf32>
    %cst_85 = arith.constant 0.693147182 : f32
    %171 = vector.broadcast %cst_85 : f32 to vector<16x128xf32>
    %172 = arith.subf %170, %171 : vector<16x128xf32>
    %173 = arith.truncf %172 : vector<16x128xf32> to vector<16x128xbf16>
    %cst_86 = arith.constant dense<0.000000e+00> : vector<16x256xf32>
    %174 = tpu.matmul %173, %154, %cst_86 {dimension_numbers = #tpu.dot_dimension_numbers<[1], [0], [0], [1], [0, 0, 1, 1], [], []>} : vector<16x128xbf16>, vector<128x256xbf16>, vector<16x256xf32> -> vector<16x256xf32>
    %175 = vector.broadcast %156 : vector<1x256xf32> to vector<16x256xf32>
    %176 = arith.addf %174, %175 : vector<16x256xf32>
    %c0_87 = arith.constant 0 : index
    %c0_88 = arith.constant 0 : index
    %c0_89 = arith.constant 0 : index
    %177 = vector.load %arg4[%c0_87, %c0_88, %c0_89] : memref<1x8x16xf32, #tpu.memory_space<vmem>>, vector<1x8x16xf32>
    %178 = vector.shape_cast %177 : vector<1x8x16xf32> to vector<8x16xf32>
    %cst_90 = arith.constant dense<0.000000e+00> : vector<8x256xf32>
    %179 = tpu.matmul %178, %176, %cst_90 {dimension_numbers = #tpu.dot_dimension_numbers<[1], [0], [0], [1], [0, 0, 1, 1], [], []>} : vector<8x16xf32>, vector<16x256xf32>, vector<8x256xf32> -> vector<8x256xf32>
    %c0_91 = arith.constant 0 : index
    %c0_92 = arith.constant 0 : index
    %c0_93 = arith.constant 0 : index
    %180 = vector.load %arg8[%c0_91, %c0_92, %c0_93] : memref<1x8x256xf32, #tpu.memory_space<vmem>>, vector<1x8x256xf32>
    %181 = vector.shape_cast %180 : vector<1x8x256xf32> to vector<8x256xf32>
    %182 = vector.shape_cast %179 : vector<8x256xf32> to vector<1x8x256xf32>
    tpu.vector_store %arg8[%c0_91, %c0_92, %c0_93], %182 {strides = array<i32>} : memref<1x8x256xf32, #tpu.memory_space<vmem>>, vector<1x8x256xf32>,
    return
  }
  func.func @transform_0(%arg0: i32) -> (i32, i32, i32) {
    %c0_i32 = arith.constant 0 : i32
    %c0_i32_0 = arith.constant 0 : i32
    %c0_i32_1 = arith.constant 0 : i32
    return %arg0, %c0_i32, %c0_i32_0 : i32, i32, i32
  }
  func.func @transform_1(%arg0: i32) -> (i32, i32, i32) {
    %c0_i32 = arith.constant 0 : i32
    %c0_i32_0 = arith.constant 0 : i32
    %c0_i32_1 = arith.constant 0 : i32
    return %arg0, %c0_i32, %c0_i32_0 : i32, i32, i32
  }
  func.func @transform_2(%arg0: i32) -> (i32, i32, i32) {
    %c0_i32 = arith.constant 0 : i32
    %c0_i32_0 = arith.constant 0 : i32
    %c0_i32_1 = arith.constant 0 : i32
    return %arg0, %c0_i32, %c0_i32_0 : i32, i32, i32
  }
  func.func @transform_3(%arg0: i32) -> (i32, i32, i32) {
    %c0_i32 = arith.constant 0 : i32
    %c0_i32_0 = arith.constant 0 : i32
    %c0_i32_1 = arith.constant 0 : i32
    return %arg0, %c0_i32, %c0_i32_0 : i32, i32, i32
  }
  func.func @transform_4(%arg0: i32) -> (i32, i32) {
    %c0_i32 = arith.constant 0 : i32
    %c0_i32_0 = arith.constant 0 : i32
    %c0_i32_1 = arith.constant 0 : i32
    return %c0_i32, %c0_i32_0 : i32, i32
  }
  func.func @transform_5(%arg0: i32) -> (i32, i32) {
    %c0_i32 = arith.constant 0 : i32
    %c0_i32_0 = arith.constant 0 : i32
    %c0_i32_1 = arith.constant 0 : i32
    return %c0_i32, %c0_i32_0 : i32, i32
  }
  func.func @transform_6(%arg0: i32) -> (i32, i32) {
    %c0_i32 = arith.constant 0 : i32
    %c0_i32_0 = arith.constant 0 : i32
    %c0_i32_1 = arith.constant 0 : i32
    return %c0_i32, %c0_i32_0 : i32, i32
  }
  func.func @transform_7(%arg0: i32) -> (i32, i32, i32) {
    %c0_i32 = arith.constant 0 : i32
    %c0_i32_0 = arith.constant 0 : i32
    %c0_i32_1 = arith.constant 0 : i32
    return %arg0, %c0_i32, %c0_i32_0 : i32, i32, i32
  }
}

</mosaic_0001>

<bundles_post_ra>
// kernel: tpu_custom_call.1
= control target key start
LH: loop header
LB: loop body
LE: loop exit
PB: predicated region body
PF: predicated region fallthrough
CT: control target
= control target key end

     0   :  { %12 = vsyncpa [#allocation3], 0  ;;  %s15631_s0 = inlined_call_operand.vmem [shape: f32[2,16,128], index: 0, kind: input, shape index: {}]   ;;  %s15632_s1 = inlined_call_operand.vmem [shape: f32[2,256,8], index: 1, kind: input, shape index: {}]   ;;  %s15633_s2 = inlined_call_operand.vmem [shape: f32[2,256,8], index: 2, kind: input, shape index: {}]   ;;  %s15634_s3 = inlined_call_operand.vmem [shape: f32[2,8,16], index: 3, kind: input, shape index: {}]   ;;  %s15635_s4 = inlined_call_operand.vmem [shape: f32[1,1536], index: 4, kind: input, shape index: {}]   ;;  %s15636_s5 = inlined_call_operand.vmem [shape: bf16[128,1664], index: 5, kind: input, shape index: {}]   ;;  %s15637_s6 = inlined_call_operand.vmem [shape: bf16[128,128], index: 6, kind: input, shape index: {}]   ;;  %s15638_s7 = inlined_call_operand.hbm [shape: f32[2,8,256], index: 7, kind: output, shape index: {}]  }
   0x1   :  { %14 = vsyncpa [#allocation3 + $0x1], 0  ;;  %s8995_s24 = smov 0   ;;  %s8997_s25 = smov 0  }
   0x2   :  { %s8999_s26 = smov 0   ;;  %s9001_s27 = smov 0  }
   0x3 LB: > { %s9016_s28 = sadd.s32 4294967295, %s8943_s27   ;;  %s7420_s29 = sadd.s32 4294967294, %s8943_s27   ;;  %s8943_s27 = sphi %s9001_s27, %s16599_s27   ;;  %s8939_s26 = sphi %s8999_s26, %s16598_s26   ;;  %s8935_s25 = sphi %s8997_s25, %s16597_s25   ;;  %s8931_s24 = sphi %s8995_s24, %s16596_s24  }
   0x4   : > { %s9020_s30 = sadd.s32 1, %s8943_s27   ;;  %s194_s8 = sadd.s32 1, %s8939_s26 }
   0x5   : > { %s191_s9 = ssub.s32 %s8943_s27, %s9020_s30  ;;  %p204_p0 = scmp.ne.s32.totalorder %s8939_s26, %s8935_s25 }
   0x6   : > { %p192_p1 = scmp.eq.s32.totalorder %s191_s9, 0  ;;  %p205_p2 = scmp.eq.s32.totalorder %s9016_s28, 1 }
   0x7   : > { %p210_p3 = scmp.ne.s32.totalorder %s8935_s25, %s8931_s24  ;;  %p211_p4 = scmp.eq.s32.totalorder %s7420_s29, 1 }
   0x8   : > { %s9031_s10 = scalar_select %p192_p1, %s8939_s26, %s194_s8  }
   0x9   : > { %p9033_p5 = por %p205_p2, %p204_p0  ;;  %p9037_p6 = por %p211_p4, %p210_p3 }
   0xa   : > { %p7423_p7 = scmp.ge.s32.totalorder %s8943_s27, 1  ;;  %p269_p8 = scmp.lt.s32.totalorder %s8943_s27, 3 }
   0xc   : > { %p270_p9 = pnand %p7423_p7, %p269_p8 }
   0xe   : > { %273 = sbr.rel (%p270_p9) target bundleno = 3760 (0xeb0), region = 48 }
  0x13   : > { %p315_p10 = scmp.lt.s32.totalorder %s9016_s28, 1  ;;  %vm463_vm0 = vcmask 64512  }
  0x15   : > { %s9045_s13 = scalar_select %p315_p10, %s9016_s28, 1 }
  0x17   : > { %s7729_s14 = sshll.u32 %s9045_s13, 8  ;;  %s7728_s19 = sshll.u32 %s9045_s13, 4 }
  0x18   : > { %s9051_s17 = scalar_lea.vmem %s15632_s1, %s7729_s14  ;;  %s9056_s20 = scalar_lea.vmem %s15633_s2, %s7729_s14 }
  0x19   : > { %v337_v0 = vld [vmem:[%s9051_s17 + $0x10] sm:$0xff]  ;;  %v335_v2 = vld [vmem:[%s9051_s17] sm:$0xff]  ;;  %v338_v5 = vld [vmem:[%s9051_s17 + $0x18] sm:$0xff]  ;;  %s10306_s22 = scalar_lea.vmem %s15631_s0, %s7728_s19  ;;  %s7431_s21 = sshll.u32 %s9045_s13, 3 }
  0x1a   : > { %v369_v1 = vld [vmem:[%s9056_s20 + $0x10] sm:$0xff]  ;;  %v367_v4 = vld [vmem:[%s9056_s20] sm:$0xff]  ;;  %v370_v6 = vld [vmem:[%s9056_s20 + $0x18] sm:$0xff]  ;;  %s333_s8 = scalar_lea.vmem %s15634_s3, %s7431_s21  ;;  %s312_s13 = sand.u32 1, %s8935_s25  }
  0x1b   : > { %v401_v3 = vsub.f32 %v337_v0, %v369_v1  ;;  %v399_v7 = vsub.f32 %v335_v2, %v367_v4  ;;  %v402_v8 = vsub.f32 %v338_v5, %v370_v6  ;;  %v336_v9 = vld [vmem:[%s9051_s17 + $0x8] sm:$0xff]  ;;  %v339_v15 = vld [vmem:[%s9051_s17 + $0x20] sm:$0xff]  ;;  %v342_v21 = vld [vmem:[%s9051_s17 + $0x38] sm:$0xff]  ;;  %s7424_s9 = sshll.u32 %s312_s13, 4  ;;  %s7311_s19 = scalar_lea.sflag [#allocation3], %s312_s13 }
  0x1c   : > { %v368_v10 = vld [vmem:[%s9056_s20 + $0x8] sm:$0xff]  ;;  %v371_v16 = vld [vmem:[%s9056_s20 + $0x20] sm:$0xff]  ;;  %v374_v22 = vld [vmem:[%s9056_s20 + $0x38] sm:$0xff]  ;;  %s314_s14 = scalar_lea.vmem [#allocation2], %s7424_s9 }
  0x1d   : > { %v340_v11 = vld [vmem:[%s9051_s17 + $0x28] sm:$0xff]  ;;  %v433_v12 = vmul.f32 %v401_v3, %v401_v3  ;;  %v400_v13 = vsub.f32 %v336_v9, %v368_v10  ;;  %v431_v17 = vmul.f32 %v399_v7, %v399_v7  ;;  %v434_v18 = vmul.f32 %v402_v8, %v402_v8  ;;  %v341_v23 = vld [vmem:[%s9051_s17 + $0x30] sm:$0xff]  ;;  %v343_v34 = vld [vmem:[%s9051_s17 + $0x40] sm:$0xff]  ;;  %s7325_s15 = sshll.u32 %s314_s14, 4  ;;  %s15593_s15 = int_to_ptr.vmem [resolvable:$true] %s7325_s15 }
  0x1e   : > { %v372_v14 = vld [vmem:[%s9056_s20 + $0x28] sm:$0xff]  ;;  %v403_v20 = vsub.f32 %v339_v15, %v371_v16  ;;  %v406_v26 = vsub.f32 %v342_v21, %v374_v22  ;;  %v373_v27 = vld [vmem:[%s9056_s20 + $0x30] sm:$0xff]  ;;  %v375_v35 = vld [vmem:[%s9056_s20 + $0x40] sm:$0xff] }
  0x1f   : > { %v404_v19 = vsub.f32 %v340_v11, %v372_v14  ;;  %v470_v24 = vsel %vm463_vm0, %v433_v12, 0.0  ;;  %v432_v25 = vmul.f32 %v400_v13, %v400_v13  ;;  %v344_v28 = vld [vmem:[%s9051_s17 + $0x48] sm:$0xff]  ;;  %v464_v30 = vsel %vm463_vm0, %v431_v17, 0.0  ;;  %v346_v36 = vld [vmem:[%s9051_s17 + $0x58] sm:$0xff]  ;;  %v345_v42 = vld [vmem:[%s9051_s17 + $0x50] sm:$0xff] }
  0x20   : > { %v376_v29 = vld [vmem:[%s9056_s20 + $0x48] sm:$0xff]  ;;  %471 = vadd.xlane.f32.xlu1 %v470_v24  ;;  %v473_v31 = vsel %vm463_vm0, %v434_v18, 0.0  ;;  %v435_v33 = vmul.f32 %v403_v20, %v403_v20  ;;  %465 = vadd.xlane.f32.xlu0 %v464_v30  ;;  %v438_v38 = vmul.f32 %v406_v26, %v406_v26  ;;  %v405_v39 = vsub.f32 %v341_v23, %v373_v27  ;;  %v378_v41 = vld [vmem:[%s9056_s20 + $0x58] sm:$0xff]  ;;  %v377_v43 = vld [vmem:[%s9056_s20 + $0x50] sm:$0xff] }
  0x21   : > { %v436_v32 = vmul.f32 %v404_v19, %v404_v19  ;;  %v467_v37 = vsel %vm463_vm0, %v432_v25, 0.0  ;;  %v408_v40 = vsub.f32 %v344_v28, %v376_v29  ;;  %v407_v46 = vsub.f32 %v343_v34, %v375_v35  ;;  %v348_v48 = vld [vmem:[%s9051_s17 + $0x68] sm:$0xff]  ;;  %v347_v50 = vld [vmem:[%s9051_s17 + $0x60] sm:$0xff]  ;;  %v350_v56 = vld [vmem:[%s9051_s17 + $0x78] sm:$0xff] }
  0x22   : > { %v476_v45 = vsel %vm463_vm0, %v435_v33, 0.0  ;;  %v410_v47 = vsub.f32 %v346_v36, %v378_v41  ;;  %v380_v49 = vld [vmem:[%s9056_s20 + $0x68] sm:$0xff]  ;;  %v9092_v51 = vsel %vm463_vm0, %v438_v38, 0.0  ;;  %v437_v52 = vmul.f32 %v405_v39, %v405_v39  ;;  %v379_v55 = vld [vmem:[%s9056_s20 + $0x60] sm:$0xff]  ;;  %v382_v57 = vld [vmem:[%s9056_s20 + $0x78] sm:$0xff] }
  0x23   : > { %v479_v44 = vsel %vm463_vm0, %v436_v32, 0.0  ;;  %v440_v53 = vmul.f32 %v408_v40, %v408_v40  ;;  %v409_v54 = vsub.f32 %v345_v42, %v377_v43  ;;  %v439_v58 = vmul.f32 %v407_v46, %v407_v46  ;;  %v349_v62 = vld [vmem:[%s9051_s17 + $0x70] sm:$0xff]  ;;  %v352_v0 = vld [vmem:[%s9051_s17 + $0x88] sm:$0xff]  ;;  %v351_v6 = vld [vmem:[%s9051_s17 + $0x80] sm:$0xff] }
  0x24   : > { %474 = vadd.xlane.f32.xlu1 %v473_v31  ;;  %v442_v59 = vmul.f32 %v410_v47, %v410_v47  ;;  %v412_v60 = vsub.f32 %v348_v48, %v380_v49  ;;  %v411_v61 = vsub.f32 %v347_v50, %v379_v55  ;;  %v381_v63 = vld [vmem:[%s9056_s20 + $0x70] sm:$0xff]  ;;  %468 = vadd.xlane.f32.xlu0 %v467_v37  ;;  %v482_v1 = vsel %vm463_vm0, %v437_v52, 0.0  ;;  %v384_v5 = vld [vmem:[%s9056_s20 + $0x88] sm:$0xff]  ;;  %v383_v7 = vld [vmem:[%s9056_s20 + $0x80] sm:$0xff] }
  0x25   : > { %v9102_v2 = vsel %vm463_vm0, %v440_v53, 0.0  ;;  %v441_v3 = vmul.f32 %v409_v54, %v409_v54  ;;  %v414_v4 = vsub.f32 %v350_v56, %v382_v57  ;;  %v9108_v8 = vsel %vm463_vm0, %v439_v58, 0.0  ;;  %v354_v12 = vld [vmem:[%s9051_s17 + $0x98] sm:$0xff]  ;;  %v353_v14 = vld [vmem:[%s9051_s17 + $0x90] sm:$0xff]  ;;  %v356_v20 = vld [vmem:[%s9051_s17 + $0xa8] sm:$0xff] }
  0x26   : > { %v9111_v9 = vsel %vm463_vm0, %v442_v59, 0.0  ;;  %v444_v10 = vmul.f32 %v412_v60, %v412_v60  ;;  %v443_v11 = vmul.f32 %v411_v61, %v411_v61  ;;  %v386_v13 = vld [vmem:[%s9056_s20 + $0x98] sm:$0xff]  ;;  %v413_v17 = vsub.f32 %v349_v62, %v381_v63  ;;  %v385_v19 = vld [vmem:[%s9056_s20 + $0x90] sm:$0xff]  ;;  %v388_v21 = vld [vmem:[%s9056_s20 + $0xa8] sm:$0xff] }
  0x27   : > { %v9117_v15 = vsel %vm463_vm0, %v441_v3, 0.0  ;;  %v446_v16 = vmul.f32 %v414_v4, %v414_v4  ;;  %v416_v18 = vsub.f32 %v352_v0, %v384_v5  ;;  %v415_v24 = vsub.f32 %v351_v6, %v383_v7  ;;  %v355_v26 = vld [vmem:[%s9051_s17 + $0xa0] sm:$0xff]  ;;  %v358_v28 = vld [vmem:[%s9051_s17 + $0xb8] sm:$0xff]  ;;  %v357_v34 = vld [vmem:[%s9051_s17 + $0xb0] sm:$0xff] }
  0x28   : > { %480 = vadd.xlane.f32.xlu1 %v479_v44  ;;  %v9123_v22 = vsel %vm463_vm0, %v444_v10, 0.0  ;;  %v9126_v23 = vsel %vm463_vm0, %v443_v11, 0.0  ;;  %v418_v25 = vsub.f32 %v354_v12, %v386_v13  ;;  %v387_v27 = vld [vmem:[%s9056_s20 + $0xa0] sm:$0xff]  ;;  %477 = vadd.xlane.f32.xlu0 %v476_v45  ;;  %v445_v30 = vmul.f32 %v413_v17, %v413_v17  ;;  %v390_v33 = vld [vmem:[%s9056_s20 + $0xb8] sm:$0xff]  ;;  %v389_v35 = vld [vmem:[%s9056_s20 + $0xb0] sm:$0xff] }
  0x29   : > { %v9132_v29 = vsel %vm463_vm0, %v446_v16, 0.0  ;;  %v448_v31 = vmul.f32 %v416_v18, %v416_v18  ;;  %v417_v32 = vsub.f32 %v353_v14, %v385_v19  ;;  %v447_v36 = vmul.f32 %v415_v24, %v415_v24  ;;  %v360_v40 = vld [vmem:[%s9051_s17 + $0xc8] sm:$0xff]  ;;  %v359_v42 = vld [vmem:[%s9051_s17 + $0xc0] sm:$0xff]  ;;  %v362_v48 = vld [vmem:[%s9051_s17 + $0xd8] sm:$0xff] }
  0x2a   : > { %v450_v37 = vmul.f32 %v418_v25, %v418_v25  ;;  %v420_v38 = vsub.f32 %v356_v20, %v388_v21  ;;  %v419_v39 = vsub.f32 %v355_v26, %v387_v27  ;;  %v392_v41 = vld [vmem:[%s9056_s20 + $0xc8] sm:$0xff]  ;;  %v506_v43 = vsel %vm463_vm0, %v445_v30, 0.0  ;;  %v391_v47 = vld [vmem:[%s9056_s20 + $0xc0] sm:$0xff]  ;;  %v394_v49 = vld [vmem:[%s9056_s20 + $0xd8] sm:$0xff] }
  0x2b   : > { %v515_v44 = vsel %vm463_vm0, %v448_v31, 0.0  ;;  %v449_v45 = vmul.f32 %v417_v32, %v417_v32  ;;  %v422_v46 = vsub.f32 %v358_v28, %v390_v33  ;;  %v512_v50 = vsel %vm463_vm0, %v447_v36, 0.0  ;;  %v361_v55 = vld [vmem:[%s9051_s17 + $0xd0] sm:$0xff]  ;;  %v364_v57 = vld [vmem:[%s9051_s17 + $0xe8] sm:$0xff]  ;;  %v363_v62 = vld [vmem:[%s9051_s17 + $0xe0] sm:$0xff] }
  0x2c   : > { %486 = vadd.xlane.f32.xlu1 %v9092_v51  ;;  %v521_v52 = vsel %vm463_vm0, %v450_v37, 0.0  ;;  %v452_v53 = vmul.f32 %v420_v38, %v420_v38  ;;  %v451_v54 = vmul.f32 %v419_v39, %v419_v39  ;;  %v393_v56 = vld [vmem:[%s9056_s20 + $0xd0] sm:$0xff]  ;;  %483 = vadd.xlane.f32.xlu0 %v482_v1  ;;  %v421_v60 = vsub.f32 %v357_v34, %v389_v35  ;;  %v396_v51 = vld [vmem:[%s9056_s20 + $0xe8] sm:$0xff]  ;;  %v395_v63 = vld [vmem:[%s9056_s20 + $0xe0] sm:$0xff] }
  0x2d   : > { %v518_v58 = vsel %vm463_vm0, %v449_v45, 0.0  ;;  %v454_v59 = vmul.f32 %v422_v46, %v422_v46  ;;  %v424_v61 = vsub.f32 %v360_v40, %v392_v41  ;;  %v423_v4 = vsub.f32 %v359_v42, %v391_v47  ;;  %v366_v6 = vld [vmem:[%s9051_s17 + $0xf8] sm:$0xff]  ;;  %v365_v10 = vld [vmem:[%s9051_s17 + $0xf0] sm:$0xff] }
  0x2e   : > { %v527_v0 = vsel %vm463_vm0, %v452_v53, 0.0  ;;  %v524_v3 = vsel %vm463_vm0, %v451_v54, 0.0  ;;  %v426_v5 = vsub.f32 %v362_v48, %v394_v49  ;;  %v398_v7 = vld [vmem:[%s9056_s20 + $0xf8] sm:$0xff]  ;;  %v453_v11 = vmul.f32 %v421_v60, %v421_v60  ;;  %v397_v14 = vld [vmem:[%s9056_s20 + $0xf0] sm:$0xff]  ;;  %s8883_s20 = scalar_lea.vmem %s15593_s15, 256 }
  0x2f   : > { %v533_v1 = vsel %vm463_vm0, %v454_v59, 0.0  ;;  %v456_v12 = vmul.f32 %v424_v61, %v424_v61  ;;  %v425_v13 = vsub.f32 %v361_v55, %v393_v56  ;;  %v455_v16 = vmul.f32 %v423_v4, %v423_v4  ;;  %v8347_v37 = vld [vmem:[%s15636_s5 + $0xd0] ss:$52 sps:$4 sm:$0xff]   ;;  %v8348_v38 = vld [vmem:[%s15636_s5 + $0x68] ss:$52 sps:$4 sm:$0xff]   ;;  %p8884_p11 = scmp.ne.s32.totalorder %s15593_s15, %s8883_s20 }
  0x30   : > { %492 = vadd.xlane.f32.xlu1 %v9102_v2  ;;  %v458_v17 = vmul.f32 %v426_v5, %v426_v5  ;;  %v428_v18 = vsub.f32 %v364_v57, %v396_v51  ;;  %v427_v19 = vsub.f32 %v363_v62, %v395_v63  ;;  %489 = vadd.xlane.f32.xlu0 %v9108_v8  ;;  %v530_v20 = vsel %vm463_vm0, %v453_v11, 0.0  ;;  %v8349_v39 = vld [vmem:[%s15636_s5] ss:$52 sps:$4 sm:$0xff]  }
  0x31   : > { %v539_v21 = vsel %vm463_vm0, %v456_v12, 0.0  ;;  %v457_v24 = vmul.f32 %v425_v13, %v425_v13  ;;  %v430_v25 = vsub.f32 %v366_v6, %v398_v7  ;;  %v536_v26 = vsel %vm463_vm0, %v455_v16, 0.0  ;;  %p8885_p12 = pnand %p8884_p11, %p9033_p5 }
  0x32   : > { %v545_v27 = vsel %vm463_vm0, %v458_v17, 0.0  ;;  %v460_v28 = vmul.f32 %v428_v18, %v428_v18  ;;  %v459_v30 = vmul.f32 %v427_v19, %v427_v19  ;;  %v429_v32 = vsub.f32 %v365_v10, %v397_v14  ;;  %v9264_v17 = vld [vmem:[%s15635_s4] ss:$0 sm:$0xff] }
  0x33   : > { %v542_v2 = vsel %vm463_vm0, %v457_v24, 0.0  ;;  %v462_v31 = vmul.f32 %v430_v25, %v430_v25  ;;  %p8886_p13 = pneg %p8885_p12 }
  0x34   : > { %498 = vadd.xlane.f32.xlu1 %v9111_v9  ;;  %v551_v8 = vsel %vm463_vm0, %v460_v28, 0.0  ;;  %v548_v33 = vsel %vm463_vm0, %v459_v30, 0.0  ;;  %495 = vadd.xlane.f32.xlu0 %v9117_v15  ;;  %v461_v35 = vmul.f32 %v429_v32, %v429_v32  ;;  %v8342_v9 = vld [vmem:[%s15636_s5 + $0x2d8] ss:$52 sps:$4 sm:$0xff]   ;;  %v8343_v15 = vld [vmem:[%s15636_s5 + $0x270] ss:$52 sps:$4 sm:$0xff]  }
  0x35   : > { %v557_v34 = vsel %vm463_vm0, %v462_v31, 0.0  ;;  %7870 = vmatprep.subr.bf16.mxu0 %v8342_v9 }
  0x36   : > { %v554_v36 = vsel %vm463_vm0, %v461_v35, 0.0  ;;  %7871 = vmatpush3.bf16.msra.mxu0 %v8342_v9 }
  0x37   : > { %7872 = vmatprep.subr.bf16.mxu0 %v8343_v15 }
  0x38   : > { %504 = vadd.xlane.f32.xlu1 %v9123_v22  ;;  %501 = vadd.xlane.f32.xlu0 %v9126_v23  ;;  %v8344_v22 = vld [vmem:[%s15636_s5 + $0x208] ss:$52 sps:$4 sm:$0xff]   ;;  %v8345_v23 = vld [vmem:[%s15636_s5 + $0x1a0] ss:$52 sps:$4 sm:$0xff]  }
  0x3a   : > { %7873 = vmatpush3.bf16.msra.mxu0 %v8343_v15 }
  0x3b   : > { %7874 = vmatprep.subr.bf16.mxu0 %v8344_v22 }
  0x3c   : > { %510 = vadd.xlane.f32.xlu1 %v9132_v29  ;;  %507 = vadd.xlane.f32.xlu0 %v506_v43  ;;  %v8346_v29 = vld [vmem:[%s15636_s5 + $0x138] ss:$52 sps:$4 sm:$0xff]  }
  0x3e   : > { %7875 = vmatpush3.bf16.msra.mxu0 %v8344_v22 }
  0x3f   : > { %7876 = vmatprep.subr.bf16.mxu0 %v8345_v23 }
  0x40   : > { %516 = vadd.xlane.f32.xlu1 %v515_v44  ;;  %513 = vadd.xlane.f32.xlu0 %v512_v50 }
  0x42   : > { %7877 = vmatpush3.bf16.msra.mxu0 %v8345_v23 }
  0x43   : > { %7878 = vmatprep.subr.bf16.mxu0 %v8346_v29 }
  0x44   : > { %522 = vadd.xlane.f32.xlu1 %v521_v52  ;;  %519 = vadd.xlane.f32.xlu0 %v518_v58 }
  0x46   : > { %7879 = vmatpush3.bf16.msra.mxu0 %v8346_v29 }
  0x47   : > { %7880 = vmatprep.subr.bf16.mxu0 %v8347_v37 }
  0x48   : > { %528 = vadd.xlane.f32.xlu1 %v527_v0  ;;  %525 = vadd.xlane.f32.xlu0 %v524_v3 }
  0x4a   : > { %7881 = vmatpush3.bf16.msra.mxu0 %v8347_v37 }
  0x4b   : > { %7882 = vmatprep.subr.bf16.mxu0 %v8348_v38 }
  0x4c   : > { %534 = vadd.xlane.f32.xlu1 %v533_v1  ;;  %531 = vadd.xlane.f32.xlu0 %v530_v20 }
  0x4e   : > { %7883 = vmatpush3.bf16.msra.mxu0 %v8348_v38 }
  0x4f   : > { %7884 = vmatprep.subr.bf16.mxu0 %v8349_v39 }
  0x50   : > { %540 = vadd.xlane.f32.xlu1 %v539_v21  ;;  %537 = vadd.xlane.f32.xlu0 %v536_v26 }
  0x52   : > { %7885 = vmatpush3.bf16.msra.mxu0 %v8349_v39 }
  0x54   : > { %546 = vadd.xlane.f32.xlu1 %v545_v27  ;;  %543 = vadd.xlane.f32.xlu0 %v542_v2 }
  0x58   : > { %552 = vadd.xlane.f32.xlu1 %v551_v8  ;;  %549 = vadd.xlane.f32.xlu0 %v548_v33 }
  0x5c   : > { %558 = vadd.xlane.f32.xlu1 %v557_v34  ;;  %555 = vadd.xlane.f32.xlu0 %v554_v36 }
  0xa9   : > { %v472_v40 = vpop.xlane.xlu1 %471  ;;  %v9202_v41 = vpop.xlane.xlu0 %465 }
  0xaa   : > { %8462 = vrsqrt.f32 %v472_v40  ;;  %vm576_vm1 = vcmp.eq.f32.partialorder %v472_v40, inf  ;;  %vm578_vm2 = vcmp.eq.f32.partialorder %v472_v40, 0.0  ;;  %v579_v60 = vand.u32 2147483648, %v472_v40 }
  0xab   : > { %v565_v61 = vand.u32 2147483648, %v9202_v41  ;;  %vm562_vm9 = vcmp.eq.f32.partialorder %v9202_v41, inf  ;;  %vm564_vm14 = vcmp.eq.f32.partialorder %v9202_v41, 0.0 }
  0xad   : > { %v9204_v42 = vpop.xlane.xlu1 %474  ;;  %v9206_v43 = vpop.xlane.xlu0 %468 }
  0xae   : > { %8464 = vrsqrt.f32 %v9204_v42  ;;  %vm583_vm3 = vcmp.eq.f32.partialorder %v9204_v42, inf  ;;  %vm585_vm4 = vcmp.eq.f32.partialorder %v9204_v42, 0.0  ;;  %v586_v63 = vand.u32 2147483648, %v9204_v42 }
  0xaf   : > { %vm569_vm15 = vcmp.eq.f32.partialorder %v9206_v43, inf }
  0xb1   : > { %v9208_v44 = vpop.xlane.xlu1 %480  ;;  %v9210_v45 = vpop.xlane.xlu0 %477 }
  0xb2   : > { %8466 = vrsqrt.f32 %v9208_v44  ;;  %vm597_vm5 = vcmp.eq.f32.partialorder %v9208_v44, inf  ;;  %vm599_vm6 = vcmp.eq.f32.partialorder %v9208_v44, 0.0  ;;  %v600_v10 = vand.u32 2147483648, %v9208_v44 }
  0xb3   : > { %8468 = vrsqrt.f32 %v9210_v45  ;;  %vm590_vm7 = vcmp.eq.f32.partialorder %v9210_v45, inf  ;;  %vm592_vm8 = vcmp.eq.f32.partialorder %v9210_v45, 0.0  ;;  %v593_v1 = vand.u32 2147483648, %v9210_v45 }
  0xb5   : > { %v9212_v46 = vpop.xlane.xlu1 %486  ;;  %v9214_v47 = vpop.xlane.xlu0 %483 }
  0xb6   : > { %8470 = vrsqrt.f32 %v9212_v46  ;;  %vm611_vm10 = vcmp.eq.f32.partialorder %v9212_v46, inf  ;;  %vm613_vm11 = vcmp.eq.f32.partialorder %v9212_v46, 0.0  ;;  %v614_v14 = vand.u32 2147483648, %v9212_v46 }
  0xb7   : > { %8472 = vrsqrt.f32 %v9214_v47  ;;  %v8463_v52 = vpop.eup %8462  ;;  %vm604_vm12 = vcmp.eq.f32.partialorder %v9214_v47, inf  ;;  %vm606_vm13 = vcmp.eq.f32.partialorder %v9214_v47, 0.0  ;;  %v607_v27 = vand.u32 2147483648, %v9214_v47 }
  0xb8   : > { %v575_v58 = vmul.f32 %v8463_v52, %v472_v40 }
  0xb9   : > { %v9219_v48 = vpop.xlane.xlu1 %492  ;;  %v9223_v49 = vpop.xlane.xlu0 %489 }
  0xba   : > { %8474 = vrsqrt.f32 %v9219_v48  ;;  %v577_v5 = vsel %vm576_vm1, %v472_v40, %v575_v58  ;;  %vm625_vm0 = vcmp.eq.f32.partialorder %v9219_v48, inf  ;;  %vm627_vm1 = vcmp.eq.f32.partialorder %v9219_v48, 0.0 }
  0xbb   : > { %8476 = vrsqrt.f32 %v9223_v49  ;;  %v8465_v54 = vpop.eup %8464  ;;  %v9267_v18 = vsel %vm578_vm2, %v579_v60, %v577_v5  ;;  %v628_v23 = vand.u32 2147483648, %v9219_v48  ;;  %vm618_vm2 = vcmp.eq.f32.partialorder %v9223_v49, inf }
  0xbc   : > { %8478 = vrsqrt.f32 %v9202_v41  ;;  %v582_v51 = vmul.f32 %v8465_v54, %v9204_v42  ;;  %15982 = vst [vmem:[#allocation5_spill] sm:$0xff] %v9267_v18  ;;  %v4249_v31 = vsub.f32 %v9267_v18, %v9264_v17  ;;  %v621_v38 = vand.u32 2147483648, %v9223_v49 }
  0xbd   : > { %v9227_v50 = vpop.xlane.xlu1 %498  ;;  %v9231_v53 = vpop.xlane.xlu0 %495 }
  0xbe   : > { %8480 = vrsqrt.f32 %v9227_v50  ;;  %v584_v13 = vsel %vm583_vm3, %v9204_v42, %v582_v51  ;;  %vm620_vm3 = vcmp.eq.f32.partialorder %v9223_v49, 0.0 }
  0xbf   : > { %v8467_v55 = vpop.eup %8466  ;;  %8482 = vrsqrt.f32 %v9206_v43  ;;  %v9282_v26 = vsel %vm585_vm4, %v586_v63, %v584_v13  ;;  %vm639_vm4 = vcmp.eq.f32.partialorder %v9227_v50, inf  ;;  %v642_v63 = vand.u32 2147483648, %v9227_v50 }
  0xc0   : > { %v8469_v57 = vpop.eup %8468  ;;  %v596_v0 = vmul.f32 %v8467_v55, %v9208_v44  ;;  %8484 = vrsqrt.f32 %v9231_v53  ;;  %15983 = vst [vmem:[#allocation6_spill] sm:$0xff] %v9282_v26  ;;  %v4250_v22 = vsub.f32 %v9282_v26, %v9264_v17 }
  0xc1   : > { %v9234_v56 = vpop.xlane.xlu1 %504  ;;  %v9243_v3 = vpop.xlane.xlu0 %501  ;;  %v589_v6 = vmul.f32 %v8469_v57, %v9210_v45 }
  0xc2   : > { %v598_v19 = vsel %vm597_vm5, %v9208_v44, %v596_v0  ;;  %v4282_v55 = vmul.f32 %v4250_v22, %v4250_v22  ;;  %8486 = vrsqrt.f32 %v9234_v56  ;;  %vm571_vm5 = vcmp.eq.f32.partialorder %v9206_v43, 0.0 }
  0xc3   : > { %v8471_v59 = vpop.eup %8470  ;;  %v591_v24 = vsel %vm590_vm7, %v9210_v45, %v589_v6  ;;  %v9296_v8 = vsel %vm599_vm6, %v600_v10, %v598_v19  ;;  %vm641_vm6 = vcmp.eq.f32.partialorder %v9227_v50, 0.0  ;;  %8488 = vrsqrt.f32 %v9243_v3 }
  0xc4   : > { %v8473_v62 = vpop.eup %8472  ;;  %v610_v7 = vmul.f32 %v8471_v59, %v9212_v46  ;;  %15984 = vst [vmem:[#allocation7_spill] sm:$0xff] %v9296_v8  ;;  %v9301_v33 = vsel %vm592_vm8, %v593_v1, %v591_v24  ;;  %v4252_v29 = vsub.f32 %v9296_v8, %v9264_v17  ;;  %vm632_vm7 = vcmp.eq.f32.partialorder %v9231_v53, inf }
  0xc5   : > { %v9252_v11 = vpop.xlane.xlu1 %510  ;;  %v603_v20 = vmul.f32 %v8473_v62, %v9214_v47  ;;  %v9287_v30 = vpop.xlane.xlu0 %507  ;;  %15985 = vst [vmem:[#allocation8_spill] sm:$0xff] %v9301_v33  ;;  %v4251_v40 = vsub.f32 %v9301_v33, %v9264_v17  ;;  %vm634_vm8 = vcmp.eq.f32.partialorder %v9231_v53, 0.0 }
  0xc6   : > { %v612_v25 = vsel %vm611_vm10, %v9212_v46, %v610_v7  ;;  %v4281_v46 = vmul.f32 %v4249_v31, %v4249_v31  ;;  %v4314_v7 = vmul.f32 -1.125, %v4282_v55  ;;  %8490 = vrsqrt.f32 %v9252_v11 }
  0xc7   : > { %v8475_v4 = vpop.eup %8474  ;;  %v9305_v34 = vsel %vm613_vm11, %v614_v14, %v612_v25  ;;  %v605_v35 = vsel %vm604_vm12, %v9214_v47, %v603_v20  ;;  %v4284_v47 = vmul.f32 %v4252_v29, %v4252_v29  ;;  %v572_v14 = vand.u32 2147483648, %v9206_v43 }
  0xc8   : > { %v8477_v12 = vpop.eup %8476  ;;  %v624_v21 = vmul.f32 %v8475_v4, %v9219_v48  ;;  %15986 = vst [vmem:[#allocation9_spill] sm:$0xff] %v9305_v34  ;;  %v4254_v42 = vsub.f32 %v9305_v34, %v9264_v17  ;;  %v9329_v44 = vsel %vm606_vm13, %v607_v27, %v605_v35  ;;  %v4313_v6 = vmul.f32 -1.125, %v4281_v46 }
  0xc9   : > { %v8479_v16 = vpop.eup %8478  ;;  %v617_v28 = vmul.f32 %v8477_v12, %v9223_v49  ;;  %v9311_v9 = vpop.xlane.xlu1 %516  ;;  %15987 = vst [vmem:[#allocation10_spill] sm:$0xff] %v9329_v44  ;;  %v4253_v58 = vsub.f32 %v9329_v44, %v9264_v17  ;;  %v4316_v12 = vmul.f32 -1.125, %v4284_v47  ;;  %8492 = vrsqrt.f32 %v9287_v30 }
  0xca   : > { %v561_v32 = vmul.f32 %v8479_v16, %v9202_v41  ;;  %v626_v36 = vsel %vm625_vm0, %v9219_v48, %v624_v21  ;;  %v9338_v54 = vpop.xlane.xlu0 %513  ;;  %v4286_v62 = vmul.f32 %v4254_v42, %v4254_v42  ;;  %v4347_v27 = vmul.f32 1.442695, %v4313_v6 }
  0xcb   : > { %v8481_v2 = vpop.eup %8480  ;;  %v619_v37 = vsel %vm618_vm2, %v9223_v49, %v617_v28  ;;  %v9331_v45 = vsel %vm627_vm1, %v628_v23, %v626_v36  ;;  %v4283_v49 = vmul.f32 %v4251_v40, %v4251_v40  ;;  %v4349_v28 = vmul.f32 1.442695, %v4314_v7 }
  0xcc   : > { %v8483_v15 = vpop.eup %8482  ;;  %v638_v39 = vmul.f32 %v8481_v2, %v9227_v50  ;;  %15988 = vst [vmem:[#allocation11_spill] sm:$0xff] %v9331_v45  ;;  %v563_v48 = vsel %vm562_vm9, %v9202_v41, %v561_v32  ;;  %v9340_v57 = vsel %vm620_vm3, %v621_v38, %v619_v37  ;;  %v4256_v59 = vsub.f32 %v9331_v45, %v9264_v17 }
  0xcd   : > { %v568_v52 = vmul.f32 %v8483_v15, %v9206_v43  ;;  %15989 = vst [vmem:[#allocation12_spill] sm:$0xff] %v9340_v57  ;;  %v9349_v51 = vpop.xlane.xlu1 %522  ;;  %v9357_v0 = vsel %vm564_vm14, %v565_v61, %v563_v48  ;;  %v4255_v5 = vsub.f32 %v9340_v57, %v9264_v17  ;;  %v8485_v1 = vpop.eup %8484  ;;  %v4285_v41 = vmul.f32 %v4253_v58, %v4253_v58 }
  0xce   : > { %v640_v60 = vsel %vm639_vm4, %v9227_v50, %v638_v39  ;;  %15990 = vst [vmem:[#allocation13_spill] sm:$0xff] %v9357_v0  ;;  %v4288_v61 = vmul.f32 %v4256_v59, %v4256_v59  ;;  %v9369_v13 = vpop.xlane.xlu0 %519  ;;  %v4315_v16 = vmul.f32 -1.125, %v4283_v49  ;;  %v4318_v19 = vmul.f32 -1.125, %v4286_v62 }
  0xcf   : > { %v570_v4 = vsel %vm569_vm15, %v9206_v43, %v568_v52  ;;  %v9365_v10 = vsel %vm641_vm6, %v642_v63, %v640_v60  ;;  %v9374_v50 = vmul.f32 0.31415927, %v9267_v18  ;;  %v9377_v20 = vmul.f32 0.31415927, %v9357_v0  ;;  %v8487_v42 = vpop.eup %8486 }
  0xd0   : > { %15991 = vst [vmem:[#allocation14_spill] sm:$0xff] %v9365_v10  ;;  %v4287_v21 = vmul.f32 %v4255_v5, %v4255_v5  ;;  %v4258_v24 = vsub.f32 %v9365_v10, %v9264_v17  ;;  %v9385_v2 = vsel %vm571_vm5, %v572_v14, %v570_v4  ;;  %v631_v31 = vmul.f32 %v8485_v1, %v9231_v53  ;;  %v8489_v4 = vpop.eup %8488 }
  0xd1   : > { %15992 = vst [vmem:[#allocation15_spill] sm:$0xff] %v9374_v50  ;;  %15993 = vst [vmem:[#allocation16_spill] sm:$0xff] %v9377_v20  ;;  %v9381_v25 = vpop.xlane.xlu1 %528  ;;  %v9388_v32 = vmul.f32 1.442695, %v4316_v12  ;;  %v4317_v35 = vmul.f32 -1.125, %v4285_v41  ;;  %v4320_v36 = vmul.f32 -1.125, %v4288_v61  ;;  %8494 = vrsqrt.f32 %v9311_v9 }
  0xd2   : > { %15994 = vst [vmem:[#allocation17_spill] sm:$0xff] %v9385_v2  ;;  %v4351_v15 = vmul.f32 1.442695, %v4315_v16  ;;  %v9391_v22 = vmul.f32 1.442695, %v4318_v19  ;;  %8496 = vrsqrt.f32 %v9338_v54  ;;  %v4247_v23 = vsub.f32 %v9357_v0, %v9264_v17  ;;  %v9398_v37 = vpop.xlane.xlu0 %525 }
  0xd3   : > { %v4319_v29 = vmul.f32 -1.125, %v4287_v21  ;;  %v4290_v43 = vmul.f32 %v4258_v24, %v4258_v24  ;;  %8498 = vrsqrt.f32 %v9349_v51  ;;  %v633_v38 = vsel %vm632_vm7, %v9231_v53, %v631_v31  ;;  %v8491_v6 = vpop.eup %8490 }
  0xd4   : > { %8500 = vrsqrt.f32 %v9369_v13  ;;  %v4248_v39 = vsub.f32 %v9385_v2, %v9264_v17  ;;  %v4279_v40 = vmul.f32 %v4247_v23, %v4247_v23  ;;  %v9404_v46 = vmul.f32 1.442695, %v4317_v35 }
  0xd5   : > { %v9406_v48 = vmul.f32 1.442695, %v4320_v36  ;;  %v635_v52 = vand.u32 2147483648, %v9231_v53  ;;  %8502 = vrsqrt.f32 %v9381_v25  ;;  %v9410_v55 = vpop.xlane.xlu1 %534  ;;  %v9414_v59 = vmul.f32 1.442695, %v4319_v29 }
  0xd6   : > { %8504 = vrsqrt.f32 %v9398_v37  ;;  %v4280_v47 = vmul.f32 %v4248_v39, %v4248_v39  ;;  %v4311_v58 = vmul.f32 -1.125, %v4279_v40  ;;  %vm653_vm9 = vcmp.eq.f32.partialorder %v9234_v56, inf  ;;  %v8493_v41 = vpop.eup %8492  ;;  %v9431_v14 = vpop.xlane.xlu0 %531 }
  0xd7   : > { %v9416_v60 = vsel %vm634_vm8, %v635_v52, %v633_v38  ;;  %vm655_vm10 = vcmp.eq.f32.partialorder %v9234_v56, 0.0  ;;  %v4322_v49 = vmul.f32 -1.125, %v4290_v43  ;;  %v652_v62 = vmul.f32 %v8487_v42, %v9234_v56 }
  0xd8   : > { %15995 = vst [vmem:[#allocation18_spill] sm:$0xff] %v9416_v60  ;;  %8506 = vrsqrt.f32 %v9410_v55  ;;  %v4312_v63 = vmul.f32 -1.125, %v4280_v47  ;;  %v656_v53 = vand.u32 2147483648, %v9234_v56  ;;  %vm646_vm11 = vcmp.eq.f32.partialorder %v9243_v3, inf }
  0xd9   : > { %v4343_v5 = vmul.f32 1.442695, %v4311_v58  ;;  %8508 = vpow2.f32 %v4349_v28  ;;  %v4257_v7 = vsub.f32 %v9416_v60, %v9264_v17  ;;  %vm648_vm12 = vcmp.eq.f32.partialorder %v9243_v3, 0.0 }
  0xda   : > { %v649_v1 = vand.u32 2147483648, %v9243_v3  ;;  %v4345_v12 = vmul.f32 1.442695, %v4312_v63  ;;  %8510 = vpow2.f32 %v4347_v27  ;;  %vm667_vm13 = vcmp.eq.f32.partialorder %v9252_v11, inf  ;;  %v9465_v42 = vpop.xlane.xlu0 %537  ;;  %v9475_v63 = vpop.xlane.xlu1 %540 }
  0xdb   : > { %vm669_vm14 = vcmp.eq.f32.partialorder %v9252_v11, 0.0  ;;  %v670_v61 = vand.u32 2147483648, %v9252_v11  ;;  %8512 = vpow2.f32 %v4343_v5  ;;  %v9433_v16 = vmul.f32 1.442695, %v4322_v49 }
  0xdc   : > { %v654_v19 = vsel %vm653_vm9, %v9234_v56, %v652_v62  ;;  %v645_v21 = vmul.f32 %v8489_v4, %v9243_v3  ;;  %8514 = vpow2.f32 %v4345_v12  ;;  %v666_v24 = vmul.f32 %v8491_v6, %v9252_v11 }
  0xdd   : > { %vm660_vm15 = vcmp.eq.f32.partialorder %v9287_v30, inf  ;;  %vm662_vm0 = vcmp.eq.f32.partialorder %v9287_v30, 0.0  ;;  %8516 = vpow2.f32 %v4351_v15  ;;  %v4289_v28 = vmul.f32 %v4257_v7, %v4257_v7 }
  0xde   : > { %v8495_v27 = vpop.eup %8494  ;;  %v659_v31 = vmul.f32 %v8493_v41, %v9287_v30  ;;  %v663_v35 = vand.u32 2147483648, %v9287_v30  ;;  %8518 = vpow2.f32 %v9388_v32  ;;  %v9447_v23 = vsel %vm655_vm10, %v656_v53, %v654_v19 }
  0xdf   : > { %v8497_v36 = vpop.eup %8496  ;;  %15996 = vst [vmem:[#allocation19_spill] sm:$0xff] %v9447_v23  ;;  %vm681_vm1 = vcmp.eq.f32.partialorder %v9311_v9, inf  ;;  %v684_v29 = vand.u32 2147483648, %v9311_v9  ;;  %vm674_vm2 = vcmp.eq.f32.partialorder %v9338_v54, inf  ;;  %v647_v43 = vsel %vm646_vm11, %v9243_v3, %v645_v21 }
  0xe0   : > { %v8499_v15 = vpop.eup %8498  ;;  %v677_v38 = vand.u32 2147483648, %v9338_v54  ;;  %vm695_vm3 = vcmp.eq.f32.partialorder %v9349_v51, inf  ;;  %v698_v32 = vand.u32 2147483648, %v9349_v51  ;;  %v668_v39 = vsel %vm667_vm13, %v9252_v11, %v666_v24 }
  0xe1   : > { %v8501_v56 = vpop.eup %8500  ;;  %vm683_vm4 = vcmp.eq.f32.partialorder %v9311_v9, 0.0  ;;  %vm688_vm5 = vcmp.eq.f32.partialorder %v9369_v13, inf  ;;  %v691_v40 = vand.u32 2147483648, %v9369_v13  ;;  %vm709_vm6 = vcmp.eq.f32.partialorder %v9381_v25, inf }
  0xe2   : > { %v8503_v52 = vpop.eup %8502  ;;  %v4321_v47 = vmul.f32 -1.125, %v4289_v28  ;;  %v4260_v58 = vsub.f32 %v9447_v23, %v9264_v17  ;;  %v661_v49 = vsel %vm660_vm15, %v9287_v30, %v659_v31  ;;  %vm676_vm7 = vcmp.eq.f32.partialorder %v9338_v54, 0.0 }
  0xe3   : > { %vm697_vm8 = vcmp.eq.f32.partialorder %v9349_v51, 0.0  ;;  %v712_v62 = vand.u32 2147483648, %v9381_v25  ;;  %v8505_v4 = vpop.eup %8504  ;;  %v9479_v53 = vsel %vm648_vm12, %v649_v1, %v647_v43  ;;  %v680_v5 = vmul.f32 %v8495_v27, %v9311_v9 }
  0xe4   : > { %15997 = vst [vmem:[#allocation20_spill] sm:$0xff] %v9479_v53  ;;  %vm690_vm9 = vcmp.eq.f32.partialorder %v9369_v13, 0.0  ;;  %vm711_vm10 = vcmp.eq.f32.partialorder %v9381_v25, 0.0  ;;  %vm702_vm11 = vcmp.eq.f32.partialorder %v9398_v37, inf  ;;  %v705_v6 = vand.u32 2147483648, %v9398_v37 }
  0xe5   : > { %v9488_v7 = vsel %vm669_vm14, %v670_v61, %v668_v39  ;;  %v673_v12 = vmul.f32 %v8497_v36, %v9338_v54  ;;  %v694_v3 = vmul.f32 %v8499_v15, %v9349_v51  ;;  %vm704_vm12 = vcmp.eq.f32.partialorder %v9398_v37, 0.0  ;;  %v8507_v1 = vpop.eup %8506 }
  0xe6   : > { %15998 = vst [vmem:[#allocation21_spill] sm:$0xff] %v9488_v7  ;;  %8520 = vrsqrt.f32 %v9431_v14  ;;  %v9496_v41 = vsel %vm662_vm0, %v663_v35, %v661_v49  ;;  %v687_v19 = vmul.f32 %v8501_v56, %v9369_v13  ;;  %v708_v21 = vmul.f32 %v8503_v52, %v9381_v25  ;;  %v8509_v11 = vpop.eup %8508  ;;  %v9514_v35 = vpop.xlane.xlu0 %543 }
  0xe7   : > { %15999 = vst [vmem:[#allocation22_spill] sm:$0xff] %v9496_v41  ;;  %8522 = vpow2.f32 %v9404_v46  ;;  %v9501_v61 = vmul.f32 1.442695, %v4321_v47  ;;  %v4292_v24 = vmul.f32 %v4260_v58, %v4260_v58  ;;  %v701_v27 = vmul.f32 %v8505_v4, %v9398_v37  ;;  %v8511_v28 = vpop.eup %8510  ;;  %v9525_v56 = vpop.xlane.xlu1 %546 }
  0xe8   : > { %vm723_vm13 = vcmp.eq.f32.partialorder %v9410_v55, inf  ;;  %8524 = vpow2.f32 %v9391_v22  ;;  %v4259_v30 = vsub.f32 %v9479_v53, %v9264_v17  ;;  %v4262_v31 = vsub.f32 %v9488_v7, %v9264_v17  ;;  %v8513_v36 = vpop.eup %8512 }
  0xe9   : > { %v682_v46 = vsel %vm681_vm1, %v9311_v9, %v680_v5  ;;  %8526 = vrsqrt.f32 %v9475_v63  ;;  %v4261_v15 = vsub.f32 %v9496_v41, %v9264_v17  ;;  %v675_v22 = vsel %vm674_vm2, %v9338_v54, %v673_v12  ;;  %v8515_v39 = vpop.eup %8514 }
  0xea   : > { %v696_v43 = vsel %vm695_vm3, %v9349_v51, %v694_v3  ;;  %8528 = vrsqrt.f32 %v9465_v42  ;;  %v689_v52 = vsel %vm688_vm5, %v9369_v13, %v687_v19  ;;  %v710_v47 = vsel %vm709_vm6, %v9381_v25, %v708_v21  ;;  %v8517_v49 = vpop.eup %8516 }
  0xeb   : > { %v4426_v58 = vpack.c.bf16 %v8509_v11, %v8511_v28  ;;  %8530 = vpow2.f32 %v9414_v59  ;;  %v9538_v4 = vsel %vm683_vm4, %v684_v29, %v682_v46  ;;  %v703_v5 = vsel %vm702_vm11, %v9398_v37, %v701_v27  ;;  %v8519_v3 = vpop.eup %8518  ;;  %v9574_v11 = vpop.xlane.xlu0 %549 }
  0xec   : > { %16000 = vst [vmem:[#allocation23_spill] sm:$0xff] %v9538_v4  ;;  %v4425_v12 = vpack.c.bf16 %v8515_v39, %v8513_v36  ;;  %8532 = vpow2.f32 %v9406_v48  ;;  %v9548_v59 = vsel %vm676_vm7, %v677_v38, %v675_v22  ;;  %v9554_v9 = vsel %vm697_vm8, %v698_v32, %v696_v43 }
  0xed   : > { %16001 = vst [vmem:[#allocation24_spill] sm:$0xff] %v9548_v59  ;;  %16002 = vst [vmem:[#allocation25_spill] sm:$0xff] %v9554_v9  ;;  %v722_v29 = vmul.f32 %v8507_v1, %v9410_v55  ;;  %vm725_vm14 = vcmp.eq.f32.partialorder %v9410_v55, 0.0  ;;  %v4291_v19 = vmul.f32 %v4259_v30, %v4259_v30  ;;  %v9562_v48 = vsel %vm690_vm9, %v691_v40, %v689_v52 }
  0xee   : > { %16003 = vst [vmem:[#allocation26_spill] sm:$0xff] %v9562_v48  ;;  %v9566_v54 = vsel %vm711_vm10, %v712_v62, %v710_v47  ;;  %7886 = vmatprep.mubr.bf16.mxu0 %v4425_v12  ;;  %v4427_v38 = vpack.c.bf16 %v8519_v3, %v8517_v49  ;;  %v4294_v51 = vmul.f32 %v4262_v31, %v4262_v31  ;;  %v4324_v13 = vmul.f32 -1.125, %v4292_v24  ;;  %v9581_v62 = vpop.xlane.xlu1 %552 }
  0xef   : > { %16004 = vst [vmem:[#allocation27_spill] sm:$0xff] %v9566_v54  ;;  %v4293_v32 = vmul.f32 %v4261_v15, %v4261_v15  ;;  %v4264_v1 = vsub.f32 %v9538_v4, %v9264_v17  ;;  %v9572_v21 = vsel %vm704_vm12, %v705_v6, %v703_v5  ;;  %7887 = vmatmul.mubr.bf16.vlgmr.msra.gmra.mxu0 %v4426_v58  ;;  %8534 = vrsqrt.f32 %v9514_v35 }
  0xf0   : > { %16005 = vst [vmem:[#allocation28_spill] sm:$0xff] %v9572_v21  ;;  %v4263_v25 = vsub.f32 %v9548_v59, %v9264_v17  ;;  %v4266_v40 = vsub.f32 %v9554_v9, %v9264_v17  ;;  %7890 = vmatprep.mubr.bf16.mxu0 %v4427_v38  ;;  %v4265_v37 = vsub.f32 %v9562_v48, %v9264_v17  ;;  %8536 = vrsqrt.f32 %v9525_v56 }
  0xf1   : > { %v4268_v6 = vsub.f32 %v9566_v54, %v9264_v17  ;;  %v724_v24 = vsel %vm723_vm13, %v9410_v55, %v722_v29  ;;  %v4323_v27 = vmul.f32 -1.125, %v4291_v19  ;;  %v4267_v28 = vsub.f32 %v9572_v21, %v9264_v17 }
  0xf2   : > { %v726_v30 = vand.u32 2147483648, %v9410_v55  ;;  %8538 = vrsqrt.f32 %v9574_v11  ;;  %v4326_v46 = vmul.f32 -1.125, %v4294_v51  ;;  %v4325_v36 = vmul.f32 -1.125, %v4293_v32  ;;  %v9607_v55 = vpop.xlane.xlu1 %558 }
  0xf3   : > { %v8521_v31 = vpop.eup %8520  ;;  %v4296_v15 = vmul.f32 %v4264_v1, %v4264_v1  ;;  %8540 = vrsqrt.f32 %v9581_v62  ;;  %v4295_v43 = vmul.f32 %v4263_v25, %v4263_v25  ;;  %v4298_v39 = vmul.f32 %v4266_v40, %v4266_v40 }
  0xf4   : > { %v8523_v22 = vpop.eup %8522  ;;  %v9598_v52 = vsel %vm725_vm14, %v726_v30, %v724_v24  ;;  %8542 = vpow2.f32 %v9501_v61  ;;  %v4297_v49 = vmul.f32 %v4265_v37, %v4265_v37  ;;  %v4300_v5 = vmul.f32 %v4268_v6, %v4268_v6 }
  0xf5   : > { %16006 = vst [vmem:[#allocation29_spill] sm:$0xff] %v9598_v52  ;;  %v8525_v47 = vpop.eup %8524  ;;  %8544 = vpow2.f32 %v9433_v16  ;;  %v9604_v29 = vmul.f32 1.442695, %v4324_v13  ;;  %v4299_v19 = vmul.f32 %v4267_v28, %v4267_v28  ;;  %v715_v38 = vmul.f32 %v8521_v31, %v9431_v14  ;;  %v9615_v16 = vpop.xlane.xlu0 %555 }
  0xf6   : > { %v8527_v12 = vpop.eup %8526  ;;  %v9609_v32 = vmul.f32 1.442695, %v4323_v27  ;;  %v9611_v61 = vmul.f32 1.442695, %v4326_v46  ;;  %v4328_v1 = vmul.f32 -1.125, %v4296_v15  ;;  %v4270_v25 = vsub.f32 %v9598_v52, %v9264_v17 }
  0xf7   : > { %v8529_v51 = vpop.eup %8528  ;;  %v9617_v37 = vmul.f32 1.442695, %v4325_v36  ;;  %v4327_v13 = vmul.f32 -1.125, %v4295_v43  ;;  %v4330_v6 = vmul.f32 -1.125, %v4298_v39  ;;  %v4428_v24 = vpack.c.bf16 %v8525_v47, %v8523_v22 }
  0xf8   : > { %v8531_v40 = vpop.eup %8530  ;;  %v4329_v30 = vmul.f32 -1.125, %v4297_v49  ;;  %v4332_v31 = vmul.f32 -1.125, %v4300_v5  ;;  %vm716_vm15 = vcmp.eq.f32.partialorder %v9431_v14, inf  ;;  %8546 = vrsqrt.f32 %v9607_v55 }
  0xf9   : > { %v8533_v28 = vpop.eup %8532  ;;  %v4331_v27 = vmul.f32 -1.125, %v4299_v19  ;;  %v717_v46 = vsel %vm716_vm15, %v9431_v14, %v715_v38  ;;  %v729_v15 = vmul.f32 %v8529_v51, %v9465_v42  ;;  %7891 = vmatmul.mubr.bf16.gmra.mxu0 %v4428_v24  ;;  %8548 = vrsqrt.f32 %v9615_v16 }
  0xfa   : > { %v9624_v36 = vmul.f32 1.442695, %v4328_v1  ;;  %v4302_v43 = vmul.f32 %v4270_v25, %v4270_v25  ;;  %v719_v22 = vand.u32 2147483648, %v9431_v14  ;;  %v736_v39 = vmul.f32 %v8527_v12, %v9475_v63 }
  0xfb   : > { %v9628_v47 = vmul.f32 1.442695, %v4327_v13  ;;  %v9630_v49 = vmul.f32 1.442695, %v4330_v6  ;;  %vm718_vm0 = vcmp.eq.f32.partialorder %v9431_v14, 0.0  ;;  %v4429_v5 = vpack.c.bf16 %v8533_v28, %v8531_v40 }
  0xfc   : > { %v8535_v19 = vpop.eup %8534  ;;  %v9633_v38 = vmul.f32 1.442695, %v4329_v30  ;;  %v9635_v51 = vmul.f32 1.442695, %v4332_v31  ;;  %v9637_v24 = vsel %vm718_vm0, %v719_v22, %v717_v46  ;;  %vm730_vm1 = vcmp.eq.f32.partialorder %v9465_v42, inf }
  0xfd   : > { %16007 = vst [vmem:[#allocation30_spill] sm:$0xff] %v9637_v24  ;;  %v8537_v1 = vpop.eup %8536  ;;  %v9640_v25 = vmul.f32 1.442695, %v4331_v27  ;;  %vm737_vm2 = vcmp.eq.f32.partialorder %v9475_v63, inf  ;;  %vm739_vm3 = vcmp.eq.f32.partialorder %v9475_v63, 0.0  ;;  %v731_v12 = vsel %vm730_vm1, %v9465_v42, %v729_v15  ;;  %7894 = vmatprep.mubr.bf16.mxu0 %v4429_v5 }
  0xfe   : > { %v4334_v40 = vmul.f32 -1.125, %v4302_v43  ;;  %v738_v13 = vsel %vm737_vm2, %v9475_v63, %v736_v39  ;;  %v740_v6 = vand.u32 2147483648, %v9475_v63  ;;  %v733_v28 = vand.u32 2147483648, %v9465_v42 }
  0xff   : > { %v8539_v14 = vpop.eup %8538  ;;  %v4269_v31 = vsub.f32 %v9637_v24, %v9264_v17  ;;  %vm732_vm4 = vcmp.eq.f32.partialorder %v9465_v42, 0.0  ;;  %vm751_vm5 = vcmp.eq.f32.partialorder %v9525_v56, inf  ;;  %v743_v27 = vmul.f32 %v8535_v19, %v9514_v35 }
 0x100   : > { %v8541_v30 = vpop.eup %8540  ;;  %v9653_v15 = vsel %vm732_vm4, %v733_v28, %v731_v12  ;;  %v750_v43 = vmul.f32 %v8537_v1, %v9525_v56  ;;  %vm753_vm6 = vcmp.eq.f32.partialorder %v9525_v56, 0.0  ;;  %v754_v22 = vand.u32 2147483648, %v9525_v56 }
 0x101   : > { %v8543_v46 = vpop.eup %8542  ;;  %16008 = vst [vmem:[#allocation31_spill] sm:$0xff] %v9653_v15  ;;  %v9660_v5 = vsel %vm739_vm3, %v740_v6, %v738_v13  ;;  %vm744_vm7 = vcmp.eq.f32.partialorder %v9514_v35, inf  ;;  %vm746_vm8 = vcmp.eq.f32.partialorder %v9514_v35, 0.0  ;;  %v757_v42 = vmul.f32 %v8539_v14, %v9574_v11 }
 0x102   : > { %v8545_v39 = vpop.eup %8544  ;;  %16009 = vst [vmem:[#allocation32_spill] sm:$0xff] %v9660_v5  ;;  %v747_v19 = vand.u32 2147483648, %v9514_v35  ;;  %v764_v12 = vmul.f32 %v8541_v30, %v9581_v62  ;;  %vm765_vm9 = vcmp.eq.f32.partialorder %v9581_v62, inf  ;;  %vm767_vm10 = vcmp.eq.f32.partialorder %v9581_v62, 0.0 }
 0x103   : > { %v4301_v1 = vmul.f32 %v4269_v31, %v4269_v31  ;;  %v4271_v63 = vsub.f32 %v9653_v15, %v9264_v17  ;;  %v745_v13 = vsel %vm744_vm7, %v9514_v35, %v743_v27  ;;  %8550 = vpow2.f32 %v9609_v32 }
 0x104   : > { %v4272_v6 = vsub.f32 %v9660_v5, %v9264_v17  ;;  %v752_v14 = vsel %vm751_vm5, %v9525_v56, %v750_v43  ;;  %vm758_vm11 = vcmp.eq.f32.partialorder %v9574_v11, inf  ;;  %v4430_v28 = vpack.c.bf16 %v8545_v39, %v8543_v46 }
 0x105   : > { %v8547_v30 = vpop.eup %8546  ;;  %v768_v31 = vand.u32 2147483648, %v9581_v62  ;;  %v759_v3 = vsel %vm758_vm11, %v9574_v11, %v757_v42  ;;  %vm760_vm12 = vcmp.eq.f32.partialorder %v9574_v11, 0.0  ;;  %8552 = vpow2.f32 %v9604_v29 }
 0x106   : > { %v8549_v32 = vpop.eup %8548  ;;  %v9685_v27 = vsel %vm746_vm8, %v747_v19, %v745_v13  ;;  %v766_v43 = vsel %vm765_vm9, %v9581_v62, %v764_v12  ;;  %v761_v46 = vand.u32 2147483648, %v9574_v11  ;;  %7895 = vmatmul.mubr.bf16.gmra.mxu0 %v4430_v28  ;;  %8554 = vpow2.f32 %v9617_v37 }
 0x107   : > { %16010 = vst [vmem:[#allocation33_spill] sm:$0xff] %v9685_v27  ;;  %v4333_v39 = vmul.f32 -1.125, %v4301_v1  ;;  %v4303_v42 = vmul.f32 %v4271_v63, %v4271_v63  ;;  %v9694_v58 = vsel %vm753_vm6, %v754_v22, %v752_v14  ;;  %8556 = vpow2.f32 %v9611_v61 }
 0x108   : > { %16011 = vst [vmem:[#allocation34_spill] sm:$0xff] %v9694_v58  ;;  %v4304_v35 = vmul.f32 %v4272_v6, %v4272_v6  ;;  %v9697_v29 = vsel %vm760_vm12, %v761_v46, %v759_v3  ;;  %v778_v19 = vmul.f32 %v8547_v30, %v9607_v55  ;;  %8558 = vpow2.f32 %v9628_v47 }
 0x109   : > { %16012 = vst [vmem:[#allocation35_spill] sm:$0xff] %v9697_v29  ;;  %v4273_v11 = vsub.f32 %v9685_v27, %v9264_v17  ;;  %v9705_v37 = vsel %vm767_vm10, %v768_v31, %v766_v43  ;;  %v771_v56 = vmul.f32 %v8549_v32, %v9615_v16  ;;  %8560 = vpow2.f32 %v9624_v36 }
 0x10a   : > { %16013 = vst [vmem:[#allocation36_spill] sm:$0xff] %v9705_v37  ;;  %v4389_v22 = vmul.f32 1.442695, %v4334_v40  ;;  %v4274_v3 = vsub.f32 %v9694_v58, %v9264_v17  ;;  %vm779_vm13 = vcmp.eq.f32.partialorder %v9607_v55, inf  ;;  %vm781_vm14 = vcmp.eq.f32.partialorder %v9607_v55, 0.0 }
 0x10b   : > { %v4335_v61 = vmul.f32 -1.125, %v4303_v42  ;;  %v4275_v47 = vsub.f32 %v9697_v29, %v9264_v17  ;;  %v782_v62 = vand.u32 2147483648, %v9607_v55  ;;  %8562 = vpow2.f32 %v9633_v38 }
 0x10c   : > { %v4336_v12 = vmul.f32 -1.125, %v4304_v35  ;;  %v4276_v36 = vsub.f32 %v9705_v37, %v9264_v17  ;;  %v780_v40 = vsel %vm779_vm13, %v9607_v55, %v778_v19  ;;  %vm772_vm15 = vcmp.eq.f32.partialorder %v9615_v16, inf }
 0x10d   : > { %v4387_v1 = vmul.f32 1.442695, %v4333_v39  ;;  %v4305_v63 = vmul.f32 %v4273_v11, %v4273_v11  ;;  %v773_v13 = vsel %vm772_vm15, %v9615_v16, %v771_v56  ;;  %8564 = vpow2.f32 %v9630_v49 }
 0x10e   : > { %v4306_v6 = vmul.f32 %v4274_v3, %v4274_v3  ;;  %vm774_vm0 = vcmp.eq.f32.partialorder %v9615_v16, 0.0  ;;  %v775_v14 = vand.u32 2147483648, %v9615_v16  ;;  %8566 = vpow2.f32 %v9640_v25 }
 0x10f   : > { %v4391_v38 = vmul.f32 1.442695, %v4335_v61  ;;  %v4307_v28 = vmul.f32 %v4275_v47, %v4275_v47  ;;  %v9728_v30 = vsel %vm781_vm14, %v782_v62, %v780_v40  ;;  %8568 = vpow2.f32 %v9635_v51 }
 0x110   : > { %16014 = vst [vmem:[#allocation37_spill] sm:$0xff] %v9728_v30  ;;  %v8551_v31 = vpop.eup %8550  ;;  %v9732_v32 = vmul.f32 0.31415927, %v9282_v26  ;;  %v4393_v49 = vmul.f32 1.442695, %v4336_v12  ;;  %v4308_v43 = vmul.f32 %v4276_v36, %v4276_v36  ;;  %v9734_v46 = vsel %vm774_vm0, %v775_v14, %v773_v13 }
 0x111   : > { %16016 = vst [vmem:[#allocation39_spill] sm:$0xff] %v9734_v46  ;;  %v9737_v16 = vmul.f32 0.31415927, %v9385_v2  ;;  %v4337_v25 = vmul.f32 -1.125, %v4305_v63  ;;  %8570 = vpow2.f32 %v4387_v1  ;;  %v16018_v55 = vand.u32 2139095040, %v9374_v50 }
 0x112   : > { %16015 = vst [vmem:[#allocation38_spill] sm:$0xff] %v9732_v32  ;;  %v8553_v39 = vpop.eup %8552  ;;  %v4338_v35 = vmul.f32 -1.125, %v4306_v6  ;;  %v4278_v51 = vsub.f32 %v9728_v30, %v9264_v17  ;;  %8572 = vpow2.f32 %v4389_v22  ;;  %v4339_v11 = vmul.f32 -1.125, %v4307_v28 }
 0x113   : > { %16017 = vst [vmem:[#allocation40_spill] sm:$0xff] %v9737_v16  ;;  %v1058_v42 = vshrl.u32 %v16018_v55, 23  ;;  %v8555_v19 = vpop.eup %8554  ;;  %v4277_v56 = vsub.f32 %v9734_v46, %v9264_v17  ;;  %v4431_v3 = vpack.c.bf16 %v8553_v39, %v8551_v31  ;;  %8574 = vpow2.f32 %v4391_v38 }
 0x114   : > { %v8557_v61 = vpop.eup %8556  ;;  %v16019_v47 = vand.u32 2139095040, %v9377_v20  ;;  %v1160_v12 = vand.u32 2139095040, %v9732_v32  ;;  %v4340_v36 = vmul.f32 -1.125, %v4308_v43  ;;  %8576 = vpow2.f32 %v4393_v49 }
 0x115   : > { %v8559_v40 = vpop.eup %8558  ;;  %v954_v1 = vand.u32 2139095040, %v9737_v16  ;;  %v9750_v22 = vmul.f32 0.31415927, %v9296_v8  ;;  %v4395_v63 = vmul.f32 1.442695, %v4337_v25  ;;  %7898 = vmatprep.mubr.bf16.mxu0 %v4431_v3  ;;  %v4432_v13 = vpack.c.bf16 %v8557_v61, %v8555_v19 }
 0x116   : > { %v852_v62 = vshrl.u32 %v16019_v47, 23  ;;  %v8561_v17 = vpop.eup %8560  ;;  %v9753_v6 = vmul.f32 0.31415927, %v9301_v33  ;;  %v9756_v14 = vmul.f32 0.31415927, %v9305_v34  ;;  %v4310_v28 = vmul.f32 %v4278_v51, %v4278_v51 }
 0x117   : > { %16020 = vst [vmem:[#allocation41_spill] sm:$0xff] %v9750_v22  ;;  %v4397_v38 = vmul.f32 1.442695, %v4338_v35  ;;  %v4399_v31 = vmul.f32 1.442695, %v4339_v11  ;;  %v4309_v49 = vmul.f32 %v4277_v56, %v4277_v56  ;;  %7899 = vmatmul.mubr.bf16.gmra.mxu0 %v4432_v13  ;;  %v4433_v43 = vpack.c.bf16 %v8561_v17, %v8559_v40 }
 0x118   : > { %16021 = vst [vmem:[#allocation42_spill] sm:$0xff] %v9753_v6  ;;  %16022 = vst [vmem:[#allocation43_spill] sm:$0xff] %v9756_v14  ;;  %v8563_v39 = vpop.eup %8562  ;;  %v7440_v55 = vadd.s32 4294967169, %v1058_v42  ;;  %v7432_v47 = vadd.s32 4294967169, %v852_v62  ;;  %v4401_v8 = vmul.f32 1.442695, %v4340_v36  ;;  %8578 = vpow2.f32 %v4395_v63 }
 0x119   : > { %v1161_v25 = vshrl.u32 %v1160_v12, 23  ;;  %v955_v3 = vshrl.u32 %v954_v1, 23  ;;  %v1366_v19 = vand.u32 2139095040, %v9750_v22  ;;  %7902 = vmatprep.mubr.bf16.mxu0 %v4433_v43  ;;  %v1263_v34 = vand.u32 2139095040, %v9753_v6 }
 0x11a   : > { %v8565_v61 = vpop.eup %8564  ;;  %v1572_v35 = vand.u32 2139095040, %v9756_v14  ;;  %v4342_v51 = vmul.f32 -1.125, %v4310_v28  ;;  %8580 = vpow2.f32 %v4397_v38  ;;  %v4341_v56 = vmul.f32 -1.125, %v4309_v49 }
 0x11b   : > { %v8567_v11 = vpop.eup %8566  ;;  %v4434_v40 = vpack.c.bf16 %v8565_v61, %v8563_v39  ;;  %8582 = vpow2.f32 %v4399_v31  ;;  %v1064_v62 = vadd.s32 1, %v7440_v55  ;;  %v858_v12 = vadd.s32 1, %v7432_v47 }
 0x11c   : > { %v8569_v42 = vpop.eup %8568  ;;  %8584 = vpow2.f32 %v4401_v8  ;;  %v7444_v36 = vadd.s32 4294967169, %v1161_v25  ;;  %v7436_v1 = vadd.s32 4294967169, %v955_v3  ;;  %v1367_v63 = vshrl.u32 %v1366_v19, 23 }
 0x11d   : > { %v4435_v13 = vpack.c.bf16 %v8569_v42, %v8567_v11  ;;  %v1264_v43 = vshrl.u32 %v1263_v34, 23  ;;  %v1573_v33 = vshrl.u32 %v1572_v35, 23  ;;  %v4405_v2 = vmul.f32 1.442695, %v4342_v51 }
 0x11e   : > { %v8571_v17 = vpop.eup %8570  ;;  %v9762_v28 = vmul.f32 0.31415927, %v9329_v44  ;;  %v4403_v38 = vmul.f32 1.442695, %v4341_v56  ;;  %vm1065_vm1 = vcmp.gt.s32.totalorder %v1064_v62, 0  ;;  %vm859_vm2 = vcmp.gt.s32.totalorder %v858_v12, 0 }
 0x11f   : > { %v8573_v26 = vpop.eup %8572  ;;  %7903 = vmatmul.mubr.bf16.gmra.mxu0 %v4434_v40  ;;  %v1167_v8 = vadd.s32 1, %v7444_v36  ;;  %v961_v39 = vadd.s32 1, %v7436_v1  ;;  %v7452_v55 = vadd.s32 4294967169, %v1367_v63  ;;  %v7448_v47 = vadd.s32 4294967169, %v1264_v43 }
 0x120   : > { %16023 = vst [vmem:[#allocation44_spill] sm:$0xff] %v9762_v28  ;;  %v8575_v49 = vpop.eup %8574  ;;  %7906 = vmatprep.mubr.bf16.mxu0 %v4435_v13  ;;  %v7460_v25 = vadd.s32 4294967169, %v1573_v33  ;;  %8586 = vpow2.f32 %v4405_v2  ;;  %v1469_v34 = vand.u32 2139095040, %v9762_v28  ;;  %v9766_v3 = vmul.f32 0.31415927, %v9331_v45  ;;  %v8353_v28 = vld [vmem:[%s15637_s6 + $0x28] sm:$0xff]  }
 0x121   : > { %v8577_v31 = vpop.eup %8576  ;;  %8588 = vpow2.f32 %v4403_v38  ;;  %v4436_v19 = vpack.c.bf16 %v8573_v26, %v8571_v17  ;;  %v9769_v61 = vmul.f32 0.31415927, %v9340_v57  ;;  %v1066_v51 = vsel %vm1065_vm1, %v1064_v62, 0 }
 0x122   : > { %16024 = vst [vmem:[#allocation45_spill] sm:$0xff] %v9766_v3  ;;  %v4437_v35 = vpack.c.bf16 %v8577_v31, %v8575_v49  ;;  %v860_v56 = vsel %vm859_vm2, %v858_v12, 0  ;;  %vm1168_vm3 = vcmp.gt.s32.totalorder %v1167_v8, 0  ;;  %v1373_v40 = vadd.s32 1, %v7452_v55 }
 0x123   : > { %16025 = vst [vmem:[#allocation46_spill] sm:$0xff] %v9769_v61  ;;  %v1270_v42 = vadd.s32 1, %v7448_v47  ;;  %vm962_vm4 = vcmp.gt.s32.totalorder %v961_v39, 0  ;;  %v1579_v33 = vadd.s32 1, %v7460_v25  ;;  %v1470_v2 = vshrl.u32 %v1469_v34, 23 }
 0x124   : > { %v1778_v1 = vand.u32 2139095040, %v9766_v3  ;;  %v1675_v26 = vand.u32 2139095040, %v9769_v61  ;;  %v9773_v63 = vshrl.u32 %v1066_v51, 5  ;;  %v9775_v62 = vand.u32 31, %v1066_v51 }
 0x125   : > { %v8579_v11 = vpop.eup %8578  ;;  %v9777_v12 = vshrl.u32 %v860_v56, 5  ;;  %v9779_v43 = vand.u32 31, %v860_v56  ;;  %v1169_v38 = vsel %vm1168_vm3, %v1167_v8, 0  ;;  %v963_v49 = vsel %vm962_vm4, %v961_v39, 0 }
 0x126   : > { %vm1374_vm5 = vcmp.gt.s32.totalorder %v1373_v40, 0  ;;  %vm1271_vm6 = vcmp.gt.s32.totalorder %v1270_v42, 0  ;;  %vm1580_vm7 = vcmp.gt.s32.totalorder %v1579_v33, 0  ;;  %v7456_v31 = vadd.s32 4294967169, %v1470_v2 }
 0x127   : > { %v8581_v36 = vpop.eup %8580  ;;  %7907 = vmatmul.mubr.bf16.gmra.mxu0 %v4436_v19  ;;  %v1779_v55 = vshrl.u32 %v1778_v1, 23  ;;  %v1676_v25 = vshrl.u32 %v1675_v26, 23  ;;  %v9783_v34 = vmul.f32 0.31415927, %v9365_v10  ;;  %v9786_v19 = vmul.f32 0.31415927, %v9416_v60 }
 0x128   : > { %v8583_v13 = vpop.eup %8582  ;;  %7910 = vmatprep.mubr.bf16.mxu0 %v4437_v35  ;;  %v4438_v47 = vpack.c.bf16 %v8581_v36, %v8579_v11  ;;  %v9788_v51 = vshrl.u32 %v1169_v38, 5  ;;  %v9790_v56 = vand.u32 31, %v1169_v38  ;;  %v1375_v8 = vsel %vm1374_vm5, %v1373_v40, 0 }
 0x129   : > { %v8585_v17 = vpop.eup %8584  ;;  %16026 = vst [vmem:[#allocation47_spill] sm:$0xff] %v9783_v34  ;;  %16027 = vst [vmem:[#allocation48_spill] sm:$0xff] %v9786_v19  ;;  %v1272_v39 = vsel %vm1271_vm6, %v1270_v42, 0  ;;  %v9793_v45 = vmul.f32 0.31415927, %v9447_v23  ;;  %v9801_v1 = vshrl.u32 %v963_v49, 5 }
 0x12a   : > { %v4439_v35 = vpack.c.bf16 %v8585_v17, %v8583_v13  ;;  %v9796_v2 = vmul.f32 0.31415927, %v9479_v53  ;;  %v9799_v11 = vmul.f32 0.31415927, %v9488_v7  ;;  %v9803_v26 = vand.u32 31, %v963_v49 }
 0x12b   : > { %16028 = vst [vmem:[#allocation49_spill] sm:$0xff] %v9793_v45  ;;  %v1581_v13 = vsel %vm1580_vm7, %v1579_v33, 0  ;;  %v1476_v17 = vadd.s32 1, %v7456_v31  ;;  %v7468_v42 = vadd.s32 4294967169, %v1779_v55  ;;  %v7464_v38 = vadd.s32 4294967169, %v1676_v25 }
 0x12c   : > { %16029 = vst [vmem:[#allocation50_spill] sm:$0xff] %v9796_v2  ;;  %16030 = vst [vmem:[#allocation51_spill] sm:$0xff] %v9799_v11  ;;  %v1984_v23 = vand.u32 2139095040, %v9783_v34  ;;  %v1881_v53 = vand.u32 2139095040, %v9786_v19  ;;  %v9808_v10 = vshrl.u32 %v1375_v8, 5  ;;  %v9810_v7 = vand.u32 31, %v1375_v8 }
 0x12d   : > { %v8587_v36 = vpop.eup %8586  ;;  %v9812_v57 = vshrl.u32 %v1272_v39, 5  ;;  %v9814_v49 = vand.u32 31, %v1272_v39  ;;  %v2190_v33 = vand.u32 2139095040, %v9793_v45  ;;  %v2087_v31 = vand.u32 2139095040, %v9796_v2 }
 0x12e   : > { %v8589_v40 = vpop.eup %8588  ;;  %16031 = vst [vmem:[#allocation52_spill] sm:$0xff] %v9808_v10  ;;  %16032 = vst [vmem:[#allocation53_spill] sm:$0xff] %v9810_v7  ;;  %v2396_v55 = vand.u32 2139095040, %v9799_v11  ;;  %v9822_v25 = vshrl.u32 %v1581_v13, 5  ;;  %vm1477_vm8 = vcmp.gt.s32.totalorder %v1476_v17, 0  ;;  %v1785_v60 = vadd.s32 1, %v7468_v42 }
 0x12f   : > { %7911 = vmatmul.mubr.bf16.gmra.mxu0 %v4438_v47  ;;  %16033 = vst [vmem:[#allocation54_spill] sm:$0xff] %v9812_v57  ;;  %16034 = vst [vmem:[#allocation55_spill] sm:$0xff] %v9814_v49  ;;  %v9820_v47 = vsub.s32 32, %v9775_v62  ;;  %v4440_v8 = vpack.c.bf16 %v8587_v36, %v8589_v40  ;;  %v1682_v44 = vadd.s32 1, %v7464_v38  ;;  %v1985_v3 = vshrl.u32 %v1984_v23, 23 }
 0x130   : > { %7914 = vmatprep.mubr.bf16.mxu0 %v4439_v35  ;;  %16035 = vst [vmem:[#allocation56_spill] sm:$0xff] %v9822_v25  ;;  %v9824_v35 = vand.u32 31, %v1581_v13  ;;  %v1882_v39 = vshrl.u32 %v1881_v53, 23  ;;  %v2191_v34 = vshrl.u32 %v2190_v33, 23  ;;  %v2088_v61 = vshrl.u32 %v2087_v31, 23 }
 0x131   : > { %v2397_v45 = vshrl.u32 %v2396_v55, 23  ;;  %v15679_v19 = vmov 920167782   ;;  %v9829_v2 = vmul.f32 0.31415927, %v9496_v41  ;;  %v7476_v53 = vadd.s32 4294967169, %v1985_v3 }
 0x132   : > { %16036 = vst [vmem:[#allocation57_spill] sm:$0xff] %v9824_v35  ;;  %v1081_v11 = vshrl.u32 %v15679_v19, %v9820_v47  ;;  %v15692_v0 = vmov 2102212464   ;;  %v15686_v40 = vmov 1326507024   ;;  %v7484_v13 = vadd.s32 4294967169, %v2191_v34 }
 0x133   : > { %16037 = vst [vmem:[#allocation58_spill] sm:$0xff] %v9829_v2  ;;  %v1080_v36 = vshll.u32 %v15692_v0, %v9775_v62  ;;  %v1084_v23 = vshrl.u32 %v15686_v40, %v9820_v47  ;;  %v15699_v42 = vmov 2475754826   ;;  %v15697_v33 = vmov 2131351028  }
 0x134   : > { %v1072_v38 = vshrl.u32 %v15699_v42, %v9820_v47  ;;  %v1075_v31 = vshrl.u32 %v15697_v33, %v9820_v47  ;;  %v1078_v55 = vshrl.u32 %v15692_v0, %v9820_v47  ;;  %v16038_v41 = vmov 920167782  }
 0x135   : > { %v1082_v19 = vor.u32 %v1081_v11, %v1080_v36  ;;  %v1083_v18 = vshll.u32 %v16038_v41, %v9775_v62  ;;  %v7480_v10 = vadd.s32 4294967169, %v2088_v61  ;;  %v15695_v40 = vmov 683565275  }
 0x136   : > { %v1071_v3 = vshll.u32 %v15695_v40, %v9775_v62  ;;  %v1074_v22 = vshll.u32 %v15699_v42, %v9775_v62  ;;  %v1077_v7 = vshll.u32 %v15697_v33, %v9775_v62  ;;  %v7492_v25 = vadd.s32 4294967169, %v2397_v45 }
 0x137   : > { %7915 = vmatmul.mubr.bf16.gmra.mxu0 %v4440_v8  ;;  %v7472_v8 = vadd.s32 4294967169, %v1882_v39  ;;  %v2293_v0 = vand.u32 2139095040, %v9829_v2  ;;  %v16039_v34 = vand.u32 2147483647, %v9374_v50  ;;  %v1085_v39 = vor.u32 %v1084_v23, %v1083_v18 }
 0x138   : > { %v9853_v36 = vor.u32 %v1072_v38, %v1071_v3  ;;  %v9855_v61 = vor.u32 %v1075_v31, %v1074_v22  ;;  %v1079_v35 = vor.u32 %v1078_v55, %v1077_v7  ;;  %vm1089_vm9 = vcmp.lt.s32.totalorder %v9773_v63, 4 }
 0x139   : > { %v1061_v11 = vand.u32 8388607, %v16039_v34  ;;  %v1478_v40 = vsel %vm1477_vm8, %v1476_v17, 0  ;;  %vm1786_vm10 = vcmp.gt.s32.totalorder %v1785_v60, 0  ;;  %vm1683_vm11 = vcmp.gt.s32.totalorder %v1682_v44, 0 }
 0x13a   : > { %v1095_v45 = vsel %vm1089_vm9, %v1082_v19, 920167782  ;;  %v1991_v62 = vadd.s32 1, %v7476_v53  ;;  %v1888_v33 = vadd.s32 1, %v7472_v8  ;;  %v2197_v42 = vadd.s32 1, %v7484_v13 }
 0x13b   : > { %v2094_v2 = vadd.s32 1, %v7480_v10  ;;  %v2403_v34 = vadd.s32 1, %v7492_v25  ;;  %vm1086_vm12 = vcmp.lt.s32.totalorder %v9773_v63, 1  ;;  %vm1088_vm13 = vcmp.lt.s32.totalorder %v9773_v63, 3 }
 0x13c   : > { %v1099_v18 = vsel %vm1089_vm9, %v1085_v39, 1326507024  ;;  %v2294_v7 = vshrl.u32 %v2293_v0, 23  ;;  %v1062_v22 = vor.u32 8388608, %v1061_v11  ;;  %v1094_v17 = vsel %vm1086_vm12, %v9853_v36, %v9855_v61 }
 0x13d   : > { %v1096_v23 = vsel %vm1088_vm13, %v1079_v35, %v1095_v45  ;;  %v9871_v13 = vshrl.u32 %v1478_v40, 5  ;;  %v9873_v10 = vand.u32 31, %v1478_v40  ;;  %v1787_v25 = vsel %vm1786_vm10, %v1785_v60, 0 }
 0x13e   : > { %v1684_v53 = vsel %vm1683_vm11, %v1682_v44, 0  ;;  %vm1992_vm14 = vcmp.gt.s32.totalorder %v1991_v62, 0  ;;  %vm1087_vm15 = vcmp.lt.s32.totalorder %v9773_v63, 2  ;;  %v1098_v0 = vsel %vm1086_vm12, %v9855_v61, %v1079_v35 }
 0x13f   : > { %16040 = vst [vmem:[#allocation59_spill] sm:$0xff] %v9871_v13  ;;  %v1100_v38 = vsel %vm1088_vm13, %v1082_v19, %v1099_v18  ;;  %vm1889_vm0 = vcmp.gt.s32.totalorder %v1888_v33, 0  ;;  %vm2198_vm1 = vcmp.gt.s32.totalorder %v2197_v42, 0  ;;  %vm2095_vm2 = vcmp.gt.s32.totalorder %v2094_v2, 0 }
 0x140   : > { %v1097_v40 = vsel %vm1087_vm15, %v1094_v17, %v1096_v23  ;;  %vm2404_vm3 = vcmp.gt.s32.totalorder %v2403_v34, 0  ;;  %v7488_v60 = vadd.s32 4294967169, %v2294_v7  ;;  %v9886_v44 = vmul.f32 0.31415927, %v9538_v4 }
 0x141   : > { %v9888_v31 = vshll.u32 %v1062_v22, 8  ;;  %v9890_v55 = vshrl.u32 %v1787_v25, 5  ;;  %v9892_v8 = vand.u32 31, %v1787_v25  ;;  %v9894_v3 = vshrl.u32 %v1684_v53, 5 }
 0x142   : > { %16041 = vst [vmem:[#allocation60_spill] sm:$0xff] %v9886_v44  ;;  %v1101_v19 = vsel %vm1087_vm15, %v1098_v0, %v1100_v38  ;;  %v1993_v11 = vsel %vm1992_vm14, %v1991_v62, 0  ;;  %v1890_v39 = vsel %vm1889_vm0, %v1888_v33, 0  ;;  %v9904_v7 = vand.u32 31, %v1684_v53 }
 0x143   : > { %16042 = vst [vmem:[#allocation61_spill] sm:$0xff] %v9890_v55  ;;  %16043 = vst [vmem:[#allocation62_spill] sm:$0xff] %v9892_v8  ;;  %v9900_v45 = vmul.u32.u64.low %v9888_v31, %v1097_v40  ;;  %v9901_v18 = vmul.u32.u64.high %v9888_v31, %v1097_v40, %v9900_v45  ;;  %v2199_v22 = vsel %vm2198_vm1, %v2197_v42, 0  ;;  %v2096_v17 = vsel %vm2095_vm2, %v2094_v2, 0 }
 0x144   : > { %16044 = vst [vmem:[#allocation63_spill] sm:$0xff] %v9894_v3  ;;  %16045 = vst [vmem:[#allocation64_spill] sm:$0xff] %v9904_v7  ;;  %v2405_v23 = vsel %vm2404_vm3, %v2403_v34, 0  ;;  %v2300_v25 = vadd.s32 1, %v7488_v60  ;;  %v2602_v4 = vand.u32 2139095040, %v9886_v44  ;;  %v9911_v0 = vshrl.u32 %v1993_v11, 5 }
 0x145   : > { %v9908_v55 = vmul.u32.u64.low %v9888_v31, %v1101_v19  ;;  %v9909_v8 = vmul.u32.u64.high %v9888_v31, %v1101_v19, %v9908_v55  ;;  %v9913_v33 = vand.u32 31, %v1993_v11  ;;  %v9915_v62 = vshrl.u32 %v1890_v39, 5 }
 0x146   : > { %16046 = vst [vmem:[#allocation65_spill] sm:$0xff] %v9911_v0  ;;  %v9918_v38 = vsub.s32 32, %v9779_v43  ;;  %v9920_v53 = vand.u32 31, %v1890_v39  ;;  %v9922_v2 = vshrl.u32 %v2199_v22, 5  ;;  %v9924_v42 = vand.u32 31, %v2199_v22 }
 0x147   : > { %16047 = vst [vmem:[#allocation66_spill] sm:$0xff] %v9913_v33  ;;  %16048 = vst [vmem:[#allocation67_spill] sm:$0xff] %v9915_v62  ;;  %v1091_v34 = vsel %vm1089_vm9, %v1079_v35, 2102212464  ;;  %v9928_v40 = vshrl.u32 %v2096_v17, 5  ;;  %v9930_v60 = vand.u32 31, %v2096_v17  ;;  %vm1111_vm5 = vc.u32 %v9909_v8, %v9900_v45 }
 0x148   : > { %16049 = vst [vmem:[#allocation68_spill] sm:$0xff] %v9920_v53  ;;  %16050 = vst [vmem:[#allocation69_spill] sm:$0xff] %v9922_v2  ;;  %v9932_v55 = vshrl.u32 %v2405_v23, 5  ;;  %v16055_v19 = vmov 683565275   ;;  %v9936_v44 = vand.u32 31, %v2405_v23  ;;  %v1092_v22 = vsel %vm1088_vm13, %v9855_v61, %v1091_v34 }
 0x149   : > { %16051 = vst [vmem:[#allocation70_spill] sm:$0xff] %v9924_v42  ;;  %16052 = vst [vmem:[#allocation71_spill] sm:$0xff] %v9928_v40  ;;  %v1070_v11 = vshrl.u32 %v16055_v19, %v9820_v47  ;;  %vm2301_vm4 = vcmp.gt.s32.totalorder %v2300_v25, 0  ;;  %v2603_v39 = vshrl.u32 %v2602_v4, 23  ;;  %v9939_v2 = vmul.f32 0.31415927, %v9548_v59 }
 0x14a   : > { %16053 = vst [vmem:[#allocation72_spill] sm:$0xff] %v9930_v60  ;;  %16054 = vst [vmem:[#allocation73_spill] sm:$0xff] %v9932_v55  ;;  %v875_v17 = vshrl.u32 %v16038_v41, %v9918_v38  ;;  %v16058_v47 = vmov 1326507024   ;;  %v9952_v42 = vmul.f32 0.31415927, %v9554_v9  ;;  %v877_v9 = vshll.u32 %v16038_v41, %v9779_v43 }
 0x14b   : > { %16056 = vst [vmem:[#allocation74_spill] sm:$0xff] %v9936_v44  ;;  %16057 = vst [vmem:[#allocation75_spill] sm:$0xff] %v9939_v2  ;;  %v1090_v35 = vsel %vm1086_vm12, %v1070_v11, %v9853_v36  ;;  %v878_v23 = vshrl.u32 %v16058_v47, %v9918_v38  ;;  %v1112_v4 = vadd.s32 1, %v9901_v18  ;;  %v16060_v55 = vmov 2102212464  }
 0x14c   : > { %16059 = vst [vmem:[#allocation76_spill] sm:$0xff] %v9952_v42  ;;  %v874_v36 = vshll.u32 %v16060_v55, %v9779_v43  ;;  %v16061_v11 = vmov 2475754826   ;;  %v16062_v61 = vmov 2131351028   ;;  %v872_v40 = vshrl.u32 %v16060_v55, %v9918_v38 }
 0x14d   : > { %v866_v44 = vshrl.u32 %v16061_v11, %v9918_v38  ;;  %v869_v34 = vshrl.u32 %v16062_v61, %v9918_v38  ;;  %v2499_v60 = vand.u32 2139095040, %v9939_v2  ;;  %v1093_v59 = vsel %vm1087_vm15, %v1090_v35, %v1092_v22 }
 0x14e   : > { %v865_v0 = vshll.u32 %v16055_v19, %v9779_v43  ;;  %v868_v3 = vshll.u32 %v16061_v11, %v9779_v43  ;;  %v871_v33 = vshll.u32 %v16062_v61, %v9779_v43  ;;  %v876_v7 = vor.u32 %v875_v17, %v874_v36  ;;  %v8351_v36 = vld [vmem:[%s15637_s6 + $0x30] sm:$0xff]  }
 0x14f   : > { %v879_v62 = vor.u32 %v878_v23, %v877_v9  ;;  %v9978_v53 = vsel %vm2301_vm4, %v2300_v25, 0  ;;  %v9980_v2 = vadd.s32 4294967169, %v2603_v39  ;;  %v16063_v63 = vand.u32 2147483647, %v9377_v20 }
 0x150   : > { %v9985_v22 = vsub.s32 32, %v9790_v56  ;;  %v1113_v14 = vsel %vm1111_vm5, %v1112_v4, %v9901_v18  ;;  %v9988_v57 = vor.u32 %v866_v44, %v865_v0  ;;  %v9990_v49 = vor.u32 %v869_v34, %v868_v3  ;;  %v8350_v44 = vld [vmem:[%s15637_s6 + $0x38] sm:$0xff]  }
 0x151   : > { %v855_v35 = vand.u32 8388607, %v16063_v63  ;;  %v9992_v43 = vor.u32 %v872_v40, %v871_v33  ;;  %v2808_v9 = vand.u32 2139095040, %v9952_v42  ;;  %v9996_v25 = vmul.f32 0.31415927, %v9562_v48  ;;  %7918 = vmatprep.subr.bf16.mxu1 %v8350_v44 }
 0x152   : > { %v1109_v39 = vmul.u32 %v9888_v31, %v1093_v59  ;;  %vm883_vm6 = vcmp.lt.s32.totalorder %v9777_v12, 4  ;;  %v10000_v17 = vshrl.u32 %v2499_v60, 23  ;;  %vm880_vm7 = vcmp.lt.s32.totalorder %v9777_v12, 1  ;;  %7919 = vmatpush3.bf16.msra.mxu1 %v8350_v44 }
 0x153   : > { %16064 = vst [vmem:[#allocation77_spill] sm:$0xff] %v9996_v25  ;;  %v889_v3 = vsel %vm883_vm6, %v876_v7, 920167782  ;;  %v893_v18 = vsel %vm883_vm6, %v879_v62, 1326507024  ;;  %v856_v33 = vor.u32 8388608, %v855_v35  ;;  %v1184_v59 = vshrl.u32 %v16038_v41, %v9985_v22  ;;  %7920 = vmatprep.subr.bf16.mxu1 %v8351_v36 }
 0x154   : > { %v10009_v0 = vadd.s32 %v1113_v14, %v1109_v39  ;;  %vm882_vm8 = vcmp.lt.s32.totalorder %v9777_v12, 3  ;;  %v888_v31 = vsel %vm880_vm7, %v9988_v57, %v9990_v49  ;;  %v892_v14 = vsel %vm880_vm7, %v9990_v49, %v9992_v43  ;;  %v8352_v39 = vld [vmem:[%s15636_s5 + $0x2dc] ss:$52 sps:$4 sm:$0xff]  }
 0x155   : > { %v1187_v62 = vshrl.u32 %v16058_v47, %v9985_v22  ;;  %v890_v40 = vsel %vm882_vm8, %v9992_v43, %v889_v3  ;;  %v894_v60 = vsel %vm882_vm8, %v876_v7, %v893_v18  ;;  %v1183_v4 = vshll.u32 %v16060_v55, %v9790_v56 }
 0x156   : > { %v1175_v34 = vshrl.u32 %v16061_v11, %v9985_v22  ;;  %v1178_v63 = vshrl.u32 %v16062_v61, %v9985_v22  ;;  %v1181_v35 = vshrl.u32 %v16060_v55, %v9985_v22  ;;  %v1186_v7 = vshll.u32 %v16038_v41, %v9790_v56  ;;  %7921 = vmatpush3.bf16.msra.mxu1 %v8351_v36 }
 0x157   : > { %v1115_v44 = vadd.s32 536870912, %v10009_v0  ;;  %v1174_v3 = vshll.u32 %v16055_v19, %v9790_v56  ;;  %v1185_v18 = vor.u32 %v1184_v59, %v1183_v4  ;;  %v15739_v23 = vmov 0.0   ;;  %7922 = vmatprep.subr.bf16.mxu1 %v8353_v28 }
 0x158   : > { %7966 = vmatprep.subr.bf16.mxu0 %v15739_v23  ;;  %vm881_vm9 = vcmp.lt.s32.totalorder %v9777_v12, 2  ;;  %v1177_v48 = vshll.u32 %v16061_v11, %v9790_v56  ;;  %v1180_v42 = vshll.u32 %v16062_v61, %v9790_v56  ;;  %v1188_v6 = vor.u32 %v1187_v62, %v1186_v7  ;;  %v8355_v7 = vld [vmem:[%s15637_s6 + $0x20] sm:$0xff]  }
 0x159   : > { %7967 = vmatpush3.bf16.msra.mxu0 %v8352_v39  ;;  %v891_v20 = vsel %vm881_vm9, %v888_v31, %v890_v40  ;;  %v895_v59 = vsel %vm881_vm9, %v892_v14, %v894_v60  ;;  %v10060_v4 = vshll.u32 %v856_v33, 8  ;;  %v16065_v23 = vand.u32 2147483647, %v9732_v32  ;;  %v8354_v31 = vld [vmem:[%s15636_s5 + $0x274] ss:$52 sps:$4 sm:$0xff]  }
 0x15a   : > { %v16066_v50 = vmov 0.0   ;;  %v10068_v56 = vor.u32 %v1175_v34, %v1174_v3  ;;  %v10070_v62 = vor.u32 %v1178_v63, %v1177_v48  ;;  %v10072_v36 = vor.u32 %v1181_v35, %v1180_v42  ;;  %7923 = vmatpush3.bf16.msra.mxu1 %v8353_v28 }
 0x15b   : > { %v1164_v13 = vand.u32 8388607, %v16065_v23  ;;  %7968 = vmatprep.subr.bf16.mxu0 %v16066_v50  ;;  %vm1192_vm10 = vcmp.lt.s32.totalorder %v9788_v51, 4  ;;  %v10076_v33 = vmul.f32 0.31415927, %v9566_v54  ;;  %v2809_v40 = vshrl.u32 %v2808_v9, 23  ;;  %7924 = vmatprep.subr.bf16.mxu1 %v8355_v7 }
 0x15c   : > { %v1198_v14 = vsel %vm1192_vm10, %v1185_v18, 920167782  ;;  %v10084_v60 = vmul.u32.u64.low %v10060_v4, %v891_v20  ;;  %v10085_v48 = vmul.u32.u64.high %v10060_v4, %v891_v20, %v10084_v60  ;;  %v1202_v42 = vsel %vm1192_vm10, %v1188_v6, 1326507024 }
 0x15d   : > { %16067 = vst [vmem:[#allocation78_spill] sm:$0xff] %v10076_v33  ;;  %7969 = vmatpush3.bf16.msra.mxu0 %v8354_v31  ;;  %v10091_v23 = vmul.u32.u64.low %v10060_v4, %v895_v59  ;;  %v10092_v34 = vmul.u32.u64.high %v10060_v4, %v895_v59, %v10091_v23  ;;  %vm1189_vm11 = vcmp.lt.s32.totalorder %v9788_v51, 1  ;;  %vm1191_vm12 = vcmp.lt.s32.totalorder %v9788_v51, 3  ;;  %v8356_v31 = vld [vmem:[%s15636_s5 + $0x20c] ss:$52 sps:$4 sm:$0xff]  }
 0x15e   : > { %7970 = vmatprep.subr.bf16.mxu0 %v16066_v50  ;;  %v10097_v9 = vshrl.u32 %v1115_v44, 30  ;;  %v1165_v20 = vor.u32 8388608, %v1164_v13  ;;  %v1197_v6 = vsel %vm1189_vm11, %v10068_v56, %v10070_v62  ;;  %v1199_v28 = vsel %vm1191_vm12, %v10072_v36, %v1198_v14  ;;  %7925 = vmatpush3.bf16.msra.mxu1 %v8355_v7 }
 0x15f   : > { %v2705_v63 = vand.u32 2139095040, %v9996_v25  ;;  %v3014_v35 = vand.u32 2139095040, %v10076_v33  ;;  %v1201_v13 = vsel %vm1189_vm11, %v10070_v62, %v10072_v36  ;;  %v1203_v39 = vsel %vm1191_vm12, %v1185_v18, %v1202_v42 }
 0x160   : > { %v10118_v44 = vshrl.u32 %v9978_v53, 5  ;;  %v2609_v3 = vadd.s32 1, %v9980_v2  ;;  %v7496_v59 = vadd.s32 4294967169, %v10000_v17  ;;  %vm1190_vm13 = vcmp.lt.s32.totalorder %v9788_v51, 2 }
 0x161   : > { %v10127_v14 = vmul.f32 0.31415927, %v9572_v21  ;;  %v10130_v23 = vmul.f32 0.31415927, %v9598_v52  ;;  %v885_v18 = vsel %vm883_vm6, %v9992_v43, 2102212464  ;;  %v1200_v2 = vsel %vm1190_vm13, %v1197_v6, %v1199_v28  ;;  %7971 = vmatpush3.bf16.msra.mxu0 %v8356_v31 }
 0x162   : > { %16068 = vst [vmem:[#allocation79_spill] sm:$0xff] %v10118_v44  ;;  %v1117_v17 = vshll.u32 %v10097_v9, 30  ;;  %v864_v42 = vshrl.u32 %v16055_v19, %v9918_v38  ;;  %v1204_v54 = vsel %vm1190_vm13, %v1201_v13, %v1203_v39  ;;  %v10142_v52 = vshll.u32 %v1165_v20, 8  ;;  %v8357_v6 = vld [vmem:[%s15637_s6 + $0x18] sm:$0xff]   ;;  %7972 = vmatprep.subr.bf16.mxu0 %v16066_v50 }
 0x163   : > { %16069 = vst [vmem:[#allocation80_spill] sm:$0xff] %v10127_v14  ;;  %16070 = vst [vmem:[#allocation81_spill] sm:$0xff] %v10130_v23  ;;  %v7508_v21 = vadd.s32 4294967169, %v2809_v40  ;;  %v2706_v33 = vshrl.u32 %v2705_v63, 23  ;;  %v3015_v25 = vshrl.u32 %v3014_v35, 23  ;;  %v886_v40 = vsel %vm882_vm8, %v9990_v49, %v885_v18  ;;  %7926 = vmatprep.subr.bf16.mxu1 %v8357_v6 }
 0x164   : > { %v10145_v43 = vmul.f32 0.31415927, %v9637_v24  ;;  %v8358_v38 = vld [vmem:[%s15636_s5 + $0x1a4] ss:$52 sps:$4 sm:$0xff]   ;;  %v884_v20 = vsel %vm880_vm7, %v864_v42, %v9988_v57  ;;  %v10161_v28 = vmul.u32.u64.low %v10142_v52, %v1200_v2  ;;  %v10162_v63 = vmul.u32.u64.high %v10142_v52, %v1200_v2, %v10161_v28  ;;  %7927 = vmatpush3.bf16.msra.mxu1 %v8357_v6 }
 0x165   : > { %v2911_v35 = vand.u32 2139095040, %v10127_v14  ;;  %v906_v7 = vadd.s32 1, %v10085_v48  ;;  %v10168_v13 = vmul.u32.u64.low %v10142_v52, %v1204_v54  ;;  %v10169_v39 = vmul.u32.u64.high %v10142_v52, %v1204_v54, %v10168_v13  ;;  %7973 = vmatpush3.bf16.msra.mxu0 %v8358_v38  ;;  %v8359_v54 = vld [vmem:[%s15637_s6 + $0x10] sm:$0xff]  }
 0x166   : > { %16071 = vst [vmem:[#allocation82_spill] sm:$0xff] %v10145_v43  ;;  %v3220_v57 = vand.u32 2139095040, %v10130_v23  ;;  %v10173_v31 = vmul.f32 0.31415927, %v9660_v5  ;;  %v10176_v49 = vsub.s32 %v10009_v0, %v1117_v17  ;;  %vm905_vm14 = vc.u32 %v10092_v34, %v10084_v60  ;;  %7974 = vmatprep.subr.bf16.mxu0 %v16066_v50  ;;  %v8360_v0 = vld [vmem:[%s15636_s5 + $0x13c] ss:$52 sps:$4 sm:$0xff]   ;;  %7928 = vmatprep.subr.bf16.mxu1 %v8359_v54 }
 0x167   : > { %vm2610_vm15 = vcmp.gt.s32.totalorder %v2609_v3, 0  ;;  %v2506_v18 = vadd.s32 1, %v7496_v59  ;;  %v2815_v2 = vadd.s32 1, %v7508_v21  ;;  %v887_v42 = vsel %vm881_vm9, %v884_v20, %v886_v40 }
 0x168   : > { %16072 = vst [vmem:[#allocation83_spill] sm:$0xff] %v10173_v31  ;;  %v7504_v6 = vadd.s32 4294967169, %v2706_v33  ;;  %v3117_v38 = vand.u32 2139095040, %v10145_v43  ;;  %v1194_v21 = vsel %vm1192_vm10, %v10072_v36, 2102212464  ;;  %v7516_v59 = vadd.s32 4294967169, %v3015_v25  ;;  %7929 = vmatpush3.bf16.msra.mxu1 %v8359_v54 }
 0x169   : > { %v2912_v17 = vshrl.u32 %v2911_v35, 23  ;;  %v907_v13 = vsel %vm905_vm14, %v906_v7, %v10085_v48  ;;  %v1173_v12 = vshrl.u32 %v16055_v19, %v9985_v22  ;;  %v3221_v20 = vshrl.u32 %v3220_v57, 23  ;;  %7975 = vmatpush3.bf16.msra.mxu0 %v8360_v0  ;;  %v8361_v25 = vld [vmem:[%s15637_s6 + $0x8] sm:$0xff]  }
 0x16a   : > { %v3426_v33 = vand.u32 2139095040, %v10173_v31  ;;  %v1120_v40 = vsub.s32 0, %v10176_v49  ;;  %v903_v5 = vmul.u32 %v10060_v4, %v887_v42  ;;  %v2611_v24 = vsel %vm2610_vm15, %v2609_v3, 0  ;;  %7976 = vmatprep.subr.bf16.mxu0 %v16066_v50  ;;  %v8362_v4 = vld [vmem:[%s15636_s5 + $0xd4] ss:$52 sps:$4 sm:$0xff]   ;;  %7930 = vmatprep.subr.bf16.mxu1 %v8361_v25 }
 0x16b   : > { %vm2507_vm0 = vcmp.gt.s32.totalorder %v2506_v18, 0  ;;  %v1193_v22 = vsel %vm1189_vm11, %v1173_v12, %v10068_v56  ;;  %v1195_v36 = vsel %vm1191_vm12, %v10070_v62, %v1194_v21  ;;  %vm2816_vm1 = vcmp.gt.s32.totalorder %v2815_v2, 0 }
 0x16c   : > { %v3118_v48 = vshrl.u32 %v3117_v38, 23  ;;  %v10213_v3 = vadd.s32 %v907_v13, %v903_v5  ;;  %v1215_v35 = vadd.s32 1, %v10162_v63  ;;  %v2712_v7 = vadd.s32 1, %v7504_v6  ;;  %7931 = vmatpush3.bf16.msra.mxu1 %v8361_v25 }
 0x16d   : > { %v3021_v57 = vadd.s32 1, %v7516_v59  ;;  %v7512_v54 = vadd.s32 4294967169, %v2912_v17  ;;  %vm1214_vm2 = vc.u32 %v10169_v39, %v10161_v28  ;;  %v7524_v56 = vadd.s32 4294967169, %v3221_v20  ;;  %7977 = vmatpush3.bf16.msra.mxu0 %v8362_v4 }
 0x16e   : > { %v3427_v42 = vshrl.u32 %v3426_v33, 23  ;;  %v7441_v62 = vmin.u32 %v1120_v40, %v10176_v49  ;;  %v1196_v38 = vsel %vm1190_vm13, %v1193_v22, %v1195_v36  ;;  %v10222_v5 = vand.u32 31, %v9978_v53  ;;  %7978 = vmatprep.subr.bf16.mxu0 %v16066_v50 }
 0x16f   : > { %v10224_v0 = vshrl.u32 %v2611_v24, 5  ;;  %v2508_v6 = vsel %vm2507_vm0, %v2506_v18, 0  ;;  %v10228_v21 = vmul.f32 0.31415927, %v9653_v15  ;;  %v2817_v59 = vsel %vm2816_vm1, %v2815_v2, 0 }
 0x170   : > { %16073 = vst [vmem:[#allocation84_spill] sm:$0xff] %v10222_v5  ;;  %v7520_v17 = vadd.s32 4294967169, %v3118_v48  ;;  %v909_v13 = vadd.s32 536870912, %v10213_v3  ;;  %v1216_v51 = vsel %vm1214_vm2, %v1215_v35, %v10162_v63  ;;  %vm2713_vm3 = vcmp.gt.s32.totalorder %v2712_v7, 0  ;;  %v8363_v63 = vld [vmem:[%s15637_s6] sm:$0xff]  }
 0x171   : > { %16074 = vst [vmem:[#allocation85_spill] sm:$0xff] %v10224_v0  ;;  %16075 = vst [vmem:[#allocation86_spill] sm:$0xff] %v10228_v21  ;;  %vm3022_vm4 = vcmp.gt.s32.totalorder %v3021_v57, 0  ;;  %v2918_v53 = vadd.s32 1, %v7512_v54  ;;  %v1212_v12 = vmul.u32 %v10142_v52, %v1196_v38  ;;  %v3227_v20 = vadd.s32 1, %v7524_v56  ;;  %7932 = vmatprep.subr.bf16.mxu1 %v8363_v63 }
 0x172   : > { %v7532_v33 = vadd.s32 4294967169, %v3427_v42  ;;  %v10236_v18 = vmul.f32 0.31415927, %v9694_v58  ;;  %v1122_v40 = vclz %v7441_v62  ;;  %v10238_v25 = vand.u32 31, %v2611_v24  ;;  %v8364_v35 = vld [vmem:[%s15636_s5 + $0x6c] ss:$52 sps:$4 sm:$0xff]   ;;  %7933 = vmatpush3.bf16.msra.mxu1 %v8363_v63 }
 0x173   : > { %v10240_v22 = vshrl.u32 %v2508_v6, 5  ;;  %v3323_v2 = vand.u32 2139095040, %v10228_v21  ;;  %v10246_v36 = vadd.s32 %v1216_v51, %v1212_v12  ;;  %v10248_v48 = vand.u32 31, %v2508_v6  ;;  %7979 = vmatpush3.bf16.msra.mxu0 %v8364_v35  ;;  %7986 = vmatprep.subr.bf16.mxu1 %v16066_v50  ;;  %v5256_v21 = vld [vmem:[%s10306_s22 + $0x8] sm:$0xff] }
 0x174   : > { %16076 = vst [vmem:[#allocation87_spill] sm:$0xff] %v10236_v18  ;;  %16077 = vst [vmem:[#allocation88_spill] sm:$0xff] %v10238_v25  ;;  %v2714_v52 = vsel %vm2713_vm3, %v2712_v7, 0  ;;  %v3124_v4 = vadd.s32 1, %v7520_v17  ;;  %v10253_v24 = vshrl.u32 %v909_v13, 30  ;;  %v10255_v54 = vshrl.u32 %v2817_v59, 5  ;;  %7980 = vmatprep.subr.bf16.mxu0 %v16066_v50 }
 0x175   : > { %16078 = vst [vmem:[#allocation89_spill] sm:$0xff] %v10240_v22  ;;  %16079 = vst [vmem:[#allocation90_spill] sm:$0xff] %v10248_v48  ;;  %v3023_v56 = vsel %vm3022_vm4, %v3021_v57, 0  ;;  %vm2919_vm5 = vcmp.gt.s32.totalorder %v2918_v53, 0  ;;  %v10259_v42 = vmul.f32 0.31415927, %v9685_v27  ;;  %v977_v23 = vshll.u32 %v16060_v55, %v9803_v26 }
 0x176   : > { %16080 = vst [vmem:[#allocation91_spill] sm:$0xff] %v10255_v54  ;;  %vm3228_vm6 = vcmp.gt.s32.totalorder %v3227_v20, 0  ;;  %v3433_v62 = vadd.s32 1, %v7532_v33  ;;  %v3632_v7 = vand.u32 2139095040, %v10236_v18  ;;  %v7442_v38 = vadd.s32 4294967294, %v1122_v40 }
 0x177   : > { %16081 = vst [vmem:[#allocation92_spill] sm:$0xff] %v10259_v42  ;;  %v10262_v6 = vand.u32 31, %v2817_v59  ;;  %v10264_v17 = vshrl.u32 %v2714_v52, 5  ;;  %v3324_v13 = vshrl.u32 %v3323_v2, 23  ;;  %v1218_v57 = vadd.s32 536870912, %v10246_v36 }
 0x178   : > { %v10269_v51 = vand.u32 31, %v2714_v52  ;;  %v2920_v12 = vsel %vm2919_vm5, %v2918_v53, 0  ;;  %vm3125_vm7 = vcmp.gt.s32.totalorder %v3124_v4, 0  ;;  %v911_v33 = vshll.u32 %v10253_v24, 30 }
 0x179   : > { %16082 = vst [vmem:[#allocation93_spill] sm:$0xff] %v10262_v6  ;;  %16083 = vst [vmem:[#allocation94_spill] sm:$0xff] %v10264_v17  ;;  %v10273_v40 = vshrl.u32 %v3023_v56, 5  ;;  %v3229_v59 = vsel %vm3228_vm6, %v3227_v20, 0  ;;  %v3529_v2 = vand.u32 2139095040, %v10259_v42  ;;  %v10280_v35 = vand.u32 31, %v3023_v56 }
 0x17a   : > { %16084 = vst [vmem:[#allocation95_spill] sm:$0xff] %v10269_v51  ;;  %v10278_v63 = vmul.f32 0.31415927, %v9705_v37  ;;  %vm3434_vm8 = vcmp.gt.s32.totalorder %v3433_v62, 0  ;;  %v3633_v52 = vshrl.u32 %v3632_v7, 23  ;;  %vm7443_vm9 = vcmp.lt.s32.totalorder %v7442_v38, 0 }
 0x17b   : > { %16085 = vst [vmem:[#allocation96_spill] sm:$0xff] %v10273_v40  ;;  %16087 = vst [vmem:[#allocation98_spill] sm:$0xff] %v10280_v35  ;;  %v10282_v58 = vshrl.u32 %v2920_v12, 5  ;;  %v3126_v53 = vsel %vm3125_vm7, %v3124_v4, 0  ;;  %v7528_v27 = vadd.s32 4294967169, %v3324_v13  ;;  %v10284_v15 = vshrl.u32 %v1218_v57, 30 }
 0x17c   : > { %16086 = vst [vmem:[#allocation97_spill] sm:$0xff] %v10278_v63  ;;  %v10286_v31 = vand.u32 31, %v2920_v12  ;;  %v10288_v18 = vshrl.u32 %v3229_v59, 5  ;;  %v8365_v20 = vld [vmem:[%s15636_s5 + $0x4] ss:$52 sps:$4 sm:$0xff]   ;;  %v10295_v56 = vsub.s32 %v10213_v3, %v911_v33  ;;  %v10298_v7 = vsub.s32 32, %v9803_v26 }
 0x17d   : > { %16088 = vst [vmem:[#allocation99_spill] sm:$0xff] %v10282_v58  ;;  %v10300_v37 = vsel %vm3434_vm8, %v3433_v62, 0  ;;  %v3530_v4 = vshrl.u32 %v3529_v2, 23  ;;  %v3838_v13 = vand.u32 2139095040, %v10278_v63  ;;  %v10308_v57 = vsel %vm7443_vm9, 0, %v7442_v38  ;;  %7981 = vmatpush3.bf16.msra.mxu0 %v8365_v20  ;;  %v5255_v2 = vld [vmem:[%s10306_s22] sm:$0xff] }
 0x17e   : > { %16089 = vst [vmem:[#allocation100_spill] sm:$0xff] %v10286_v31  ;;  %16090 = vst [vmem:[#allocation101_spill] sm:$0xff] %v10288_v18  ;;  %v10310_v12 = vand.u32 31, %v3229_v59  ;;  %v10312_v3 = vshrl.u32 %v3126_v53, 5  ;;  %v10314_v33 = vand.u32 31, %v3126_v53  ;;  %v7540_v62 = vadd.s32 4294967169, %v3633_v52  ;;  %8006 = vmatprep.subr.bf16.mxu0 %v16066_v50 }
 0x17f   : > { %v10318_v63 = vadd.s32 1, %v7528_v27  ;;  %v5307_v42 = vpack.c.bf16 %v5256_v21, %v5255_v2  ;;  %v1220_v40 = vshll.u32 %v10284_v15, 30  ;;  %v10323_v38 = vshrl.u32 %v10300_v37, 5 }
 0x180   : > { %16091 = vst [vmem:[#allocation102_spill] sm:$0xff] %v10310_v12  ;;  %16092 = vst [vmem:[#allocation103_spill] sm:$0xff] %v10312_v3  ;;  %vm8952_vm10 = vmmov 0   ;;  %v1130_v59 = vsub.s32 4294967266, %v10308_v57  ;;  %v914_v52 = vsub.s32 0, %v10295_v56  ;;  %v978_v27 = vshrl.u32 %v16038_v41, %v10298_v7 }
 0x181   : > { %16093 = vst [vmem:[#allocation104_spill] sm:$0xff] %v10314_v33  ;;  %16094 = vst [vmem:[#allocation105_spill] sm:$0xff] %v10323_v38  ;;  %7982 = vmatprep.mubr.msk.bf16.mxu0 %vm8952_vm10, %v16066_v50  ;;  %v7536_v53 = vadd.s32 4294967169, %v3530_v4  ;;  %v3839_v21 = vshrl.u32 %v3838_v13, 23  ;;  %v10332_v20 = vmul.f32 0.31415927, %v9697_v29  ;;  %v981_v2 = vshrl.u32 %v16058_v47, %v10298_v7 }
 0x182   : > { %7983 = vmatmul.mubr.bf16.vlgmr.msra.gmra.mxu0 %v5307_v42  ;;  %v3639_v38 = vadd.s32 1, %v7540_v62  ;;  %v969_v18 = vshrl.u32 %v16061_v11, %v10298_v7  ;;  %vm3331_vm11 = vcmp.gt.s32.totalorder %v10318_v63, 0  ;;  %v10345_v4 = vsub.s32 %v10246_v36, %v1220_v40 }
 0x183   : > { %16095 = vst [vmem:[#allocation106_spill] sm:$0xff] %v10332_v20  ;;  %8022 = vmatprep.mubr.msk.bf16.mxu0 %vm8952_vm10, %v16066_v50  ;;  %v972_v42 = vshrl.u32 %v16062_v61, %v10298_v7  ;;  %v975_v13 = vshrl.u32 %v16060_v55, %v10298_v7  ;;  %v980_v62 = vshll.u32 %v16038_v41, %v9803_v26  ;;  %v1131_v35 = vadd.s32 127, %v1130_v59 }
 0x184   : > { %v7433_v29 = vmin.u32 %v914_v52, %v10295_v56  ;;  %v968_v12 = vshll.u32 %v16055_v19, %v9803_v26  ;;  %v979_v58 = vor.u32 %v978_v27, %v977_v23  ;;  %v3735_v14 = vand.u32 2139095040, %v10332_v20 }
 0x185   : > { %v971_v36 = vshll.u32 %v16061_v11, %v9803_v26  ;;  %v974_v40 = vshll.u32 %v16062_v61, %v9803_v26  ;;  %v982_v31 = vor.u32 %v981_v2, %v980_v62  ;;  %v3536_v3 = vadd.s32 1, %v7536_v53 }
 0x186   : > { %v1126_v43 = vsub.s32 32, %v10308_v57  ;;  %v16096_v59 = vand.u32 2147483647, %v9737_v16  ;;  %v10364_v52 = vor.u32 %v969_v18, %v968_v12  ;;  %v1223_v0 = vsub.s32 0, %v10345_v4 }
 0x187   : > { %v10367_v23 = vor.u32 %v972_v42, %v971_v36  ;;  %v976_v27 = vor.u32 %v975_v13, %v974_v40  ;;  %vm986_vm12 = vcmp.lt.s32.totalorder %v9801_v1, 4  ;;  %v1110_v20 = vadd.s32 %v9900_v45, %v9909_v8 }
 0x188   : > { %v958_v33 = vand.u32 8388607, %v16096_v59  ;;  %v1132_v26 = vshll.u32 %v1131_v35, 23  ;;  %v916_v2 = vclz %v7433_v29  ;;  %v992_v53 = vsel %vm986_vm12, %v979_v58, 920167782 }
 0x189   : > { %v7548_v62 = vadd.s32 4294967169, %v3839_v21  ;;  %v3736_v25 = vshrl.u32 %v3735_v14, 23  ;;  %v10375_v18 = vmul.f32 0.31415927, %v9728_v30  ;;  %v996_v12 = vsel %vm986_vm12, %v982_v31, 1326507024 }
 0x18a   : > { %v1127_v42 = vshll.u32 %v10176_v49, %v10308_v57  ;;  %v1128_v13 = vshrl.u32 %v1110_v20, %v1126_v43  ;;  %vm983_vm13 = vcmp.lt.s32.totalorder %v9801_v1, 1  ;;  %vm985_vm14 = vcmp.lt.s32.totalorder %v9801_v1, 3 }
 0x18b   : > { %16097 = vst [vmem:[#allocation107_spill] sm:$0xff] %v10375_v18  ;;  %v7445_v29 = vmin.u32 %v1223_v0, %v10345_v4  ;;  %v959_v8 = vor.u32 8388608, %v958_v33  ;;  %v991_v45 = vsel %vm983_vm13, %v10364_v52, %v10367_v23  ;;  %v993_v14 = vsel %vm985_vm14, %v976_v27, %v992_v53 }
 0x18c   : > { %v1133_v31 = vor.u32 4788187, %v1132_v26  ;;  %v7434_v35 = vadd.s32 4294967294, %v916_v2  ;;  %v995_v43 = vsel %vm983_vm13, %v10367_v23, %v976_v27  ;;  %v997_v49 = vsel %vm985_vm14, %v979_v58, %v996_v12 }
 0x18d   : > { %vm3640_vm15 = vcmp.gt.s32.totalorder %v3639_v38, 0  ;;  %v3845_v0 = vadd.s32 1, %v7548_v62  ;;  %v10396_v57 = vmul.f32 0.31415927, %v9734_v46  ;;  %vm984_vm0 = vcmp.lt.s32.totalorder %v9801_v1, 2 }
 0x18e   : > { %v3332_v33 = vsel %vm3331_vm11, %v10318_v63, 0  ;;  %v7544_v21 = vadd.s32 4294967169, %v3736_v25  ;;  %v1129_v20 = vor.u32 %v1128_v13, %v1127_v42  ;;  %v994_v36 = vsel %vm984_vm0, %v991_v45, %v993_v14 }
 0x18f   : > { %16098 = vst [vmem:[#allocation108_spill] sm:$0xff] %v10396_v57  ;;  %v4044_v40 = vand.u32 2139095040, %v10375_v18  ;;  %v1225_v59 = vclz %v7445_v29  ;;  %v998_v58 = vsel %vm984_vm0, %v995_v43, %v997_v49  ;;  %v10407_v26 = vshll.u32 %v959_v8, 8 }
 0x190   : > { %v3641_v2 = vsel %vm3640_vm15, %v3639_v38, 0  ;;  %vm3537_vm1 = vcmp.gt.s32.totalorder %v3536_v3, 0  ;;  %v1134_v53 = vand.u32 2147483647, %v1133_v31  ;;  %vm7435_vm2 = vcmp.lt.s32.totalorder %v7434_v35, 0 }
 0x191   : > { %vm3846_vm3 = vcmp.gt.s32.totalorder %v3845_v0, 0  ;;  %v3941_v63 = vand.u32 2139095040, %v10396_v57  ;;  %v10411_v25 = vmul.u32.u64.low %v10407_v26, %v994_v36  ;;  %v10412_v62 = vmul.u32.u64.high %v10407_v26, %v994_v36, %v10411_v25 }
 0x192   : > { %v3742_v12 = vadd.s32 1, %v7544_v21  ;;  %v1136_v42 = vcvt.s32.f32 %v1129_v20  ;;  %v10416_v13 = vmul.u32.u64.low %v10407_v26, %v998_v58  ;;  %v10417_v29 = vmul.u32.u64.high %v10407_v26, %v998_v58, %v10416_v13 }
 0x193   : > { %v10420_v8 = vand.u32 31, %v10300_v37  ;;  %v4045_v38 = vshrl.u32 %v4044_v40, 23  ;;  %v919_v45 = vsel %vm7435_vm2, 0, %v7434_v35  ;;  %v7446_v14 = vadd.s32 4294967294, %v1225_v59 }
 0x194   : > { %v10422_v31 = vshrl.u32 %v3332_v33, 5  ;;  %v10424_v43 = vand.u32 31, %v3332_v33  ;;  %v3538_v49 = vsel %vm3537_vm1, %v3536_v3, 0  ;;  %v1137_v36 = vmul.f32 %v1136_v42, %v1134_v53 }
 0x195   : > { %16099 = vst [vmem:[#allocation109_spill] sm:$0xff] %v10420_v8  ;;  %v10426_v46 = vshrl.u32 %v3641_v2, 5  ;;  %v3847_v21 = vsel %vm3846_vm3, %v3845_v0, 0  ;;  %v3942_v20 = vshrl.u32 %v3941_v63, 23  ;;  %v988_v58 = vsel %vm986_vm12, %v976_v27, 2102212464 }
 0x196   : > { %16100 = vst [vmem:[#allocation110_spill] sm:$0xff] %v10422_v31  ;;  %16101 = vst [vmem:[#allocation111_spill] sm:$0xff] %v10424_v43  ;;  %v10430_v13 = vand.u32 31, %v3641_v2  ;;  %vm3743_vm4 = vcmp.gt.s32.totalorder %v3742_v12, 0  ;;  %v924_v37 = vsub.s32 4294967266, %v919_v45  ;;  %v967_v35 = vshrl.u32 %v16055_v19, %v10298_v7 }
 0x197   : > { %16102 = vst [vmem:[#allocation112_spill] sm:$0xff] %v10426_v46  ;;  %v10434_v40 = vshrl.u32 %v3538_v49, 5  ;;  %v10436_v33 = vand.u32 31, %v3538_v49  ;;  %v7556_v3 = vadd.s32 4294967169, %v4045_v38  ;;  %vm7447_vm5 = vcmp.lt.s32.totalorder %v7446_v14, 0  ;;  %v16116_v46 = vld [vmem:[#allocation59_spill] sm:$0xff] }
 0x198   : > { %16103 = vst [vmem:[#allocation113_spill] sm:$0xff] %v10430_v13  ;;  %v10438_v59 = vshrl.u32 %v3847_v21, 5  ;;  %v1138_v0 = vxor.u32 2147483648, %v1137_v36  ;;  %v987_v27 = vsel %vm983_vm13, %v967_v35, %v10364_v52  ;;  %v989_v2 = vsel %vm985_vm14, %v10367_v23, %v988_v58  ;;  %v16108_v35 = vld [vmem:[#allocation15_spill] sm:$0xff] }
 0x199   : > { %16104 = vst [vmem:[#allocation114_spill] sm:$0xff] %v10434_v40  ;;  %16105 = vst [vmem:[#allocation115_spill] sm:$0xff] %v10436_v33  ;;  %v3744_v53 = vsel %vm3743_vm4, %v3742_v12, 0  ;;  %v7552_v63 = vadd.s32 4294967169, %v3942_v20  ;;  %v920_v7 = vsub.s32 32, %v919_v45  ;;  %v1009_v42 = vadd.s32 1, %v10412_v62 }
 0x19a   : > { %16106 = vst [vmem:[#allocation116_spill] sm:$0xff] %v10438_v59  ;;  %v925_v49 = vadd.s32 127, %v924_v37  ;;  %v10447_v30 = vsel %vm7447_vm5, 0, %v7446_v14  ;;  %vm1008_vm6 = vc.u32 %v10417_v29, %v10411_v25  ;;  %v10452_v38 = vsub.s32 32, %v9873_v10 }
 0x19b   : > { %v10454_v59 = vand.u32 31, %v3847_v21  ;;  %v10456_v52 = vadd.s32 1, %v7556_v3  ;;  %vm1056_vm7 = vcmp.lt.s32.totalorder %v16108_v35, 0  ;;  %v990_v23 = vsel %vm984_vm0, %v987_v27, %v989_v2 }
 0x19c   : > { %v10461_v12 = vshrl.u32 %v3744_v53, 5  ;;  %v10463_v20 = vand.u32 31, %v3744_v53  ;;  %v1139_v14 = vsel %vm1056_vm7, %v1138_v0, %v1137_v36  ;;  %v904_v58 = vadd.s32 %v10084_v60, %v10092_v34 }
 0x19d   : > { %16107 = vst [vmem:[#allocation117_spill] sm:$0xff] %v10454_v59  ;;  %v10469_v37 = vadd.s32 1, %v7552_v63  ;;  %v16111_v21 = vand.u32 2147483647, %v16108_v35  ;;  %v1233_v1 = vsub.s32 4294967266, %v10447_v30  ;;  %v1010_v27 = vsel %vm1008_vm6, %v1009_v42, %v10412_v62  ;;  %v16114_v62 = vld [vmem:[#allocation44_spill] sm:$0xff] }
 0x19e   : > { %16109 = vst [vmem:[#allocation118_spill] sm:$0xff] %v10461_v12  ;;  %16110 = vst [vmem:[#allocation119_spill] sm:$0xff] %v10463_v20  ;;  %v922_v2 = vshrl.u32 %v904_v58, %v920_v7  ;;  %v926_v53 = vshll.u32 %v925_v49, 23  ;;  %v1006_v59 = vmul.u32 %v10407_v26, %v990_v23  ;;  %v1493_v36 = vshrl.u32 %v16038_v41, %v10452_v38 }
 0x19f   : > { %vm10473_vm8 = vcmp.le.f32.partialorder %v16111_v21, 0.7853982  ;;  %v1140_v60 = vsub.s32 4, %v10097_v9  ;;  %v921_v0 = vshll.u32 %v10295_v56, %v919_v45  ;;  %v1496_v63 = vshrl.u32 %v16058_v47, %v10452_v38 }
 0x1a0   : > { %v1142_v34 = vsel %vm10473_vm8, %v16108_v35, %v1139_v14  ;;  %v10489_v21 = vadd.s32 %v1010_v27, %v1006_v59  ;;  %v1484_v26 = vshrl.u32 %v16061_v11, %v10452_v38  ;;  %v1492_v42 = vshll.u32 %v16060_v55, %v9873_v10 }
 0x1a1   : > { %vm4052_vm9 = vcmp.gt.s32.totalorder %v10456_v52, 0  ;;  %v1234_v49 = vadd.s32 127, %v1233_v1  ;;  %v1487_v23 = vshrl.u32 %v16062_v61, %v10452_v38  ;;  %v1490_v56 = vshrl.u32 %v16060_v55, %v10452_v38 }
 0x1a2   : > { %v1495_v45 = vshll.u32 %v16038_v41, %v9873_v10  ;;  %v923_v59 = vor.u32 %v922_v2, %v921_v0  ;;  %v927_v14 = vor.u32 4788187, %v926_v53  ;;  %v1483_v58 = vshll.u32 %v16055_v19, %v9873_v10 }
 0x1a3   : > { %v1494_v27 = vor.u32 %v1493_v36, %v1492_v42  ;;  %v1229_v7 = vsub.s32 32, %v10447_v30  ;;  %v1486_v1 = vshll.u32 %v16061_v11, %v9873_v10  ;;  %v1489_v18 = vshll.u32 %v16062_v61, %v9873_v10 }
 0x1a4   : > { %v1497_v12 = vor.u32 %v1496_v63, %v1495_v45  ;;  %v1213_v20 = vadd.s32 %v10161_v28, %v10169_v39  ;;  %v1012_v57 = vadd.s32 536870912, %v10489_v21  ;;  %v16115_v2 = vand.u32 2147483647, %v16114_v62 }
 0x1a5   : > { %v10515_v0 = vor.u32 %v1484_v26, %v1483_v58  ;;  %v1235_v36 = vshll.u32 %v1234_v49, 23  ;;  %v10517_v42 = vor.u32 %v1487_v23, %v1486_v1  ;;  %v1491_v8 = vor.u32 %v1490_v56, %v1489_v18  ;;  %v10531_v18 = vld [vmem:[%s15635_s4 + $0x1] ss:$0 sm:$0xff]  ;;  %v16118_v1 = vld [vmem:[#allocation16_spill] sm:$0xff] }
 0x1a6   : > { %v1473_v53 = vand.u32 8388607, %v16115_v2  ;;  %vm1501_vm11 = vcmp.lt.s32.totalorder %v16116_v46, 4  ;;  %vm3949_vm12 = vcmp.gt.s32.totalorder %v10469_v37, 0  ;;  %v1141_v10 = vsel %vm1056_vm7, %v1140_v60, %v10097_v9 }
 0x1a7   : > { %8590 = vcosq.f32 %v1142_v34  ;;  %v1507_v28 = vsel %vm1501_vm11, %v1494_v27, 920167782  ;;  %v928_v39 = vand.u32 2147483647, %v927_v14  ;;  %v930_v63 = vcvt.s32.f32 %v923_v59 }
 0x1a8   : > { %v1231_v26 = vshrl.u32 %v1213_v20, %v1229_v7  ;;  %v1511_v49 = vsel %vm1501_vm11, %v1497_v12, 1326507024  ;;  %v1230_v23 = vshll.u32 %v10345_v4, %v10447_v30  ;;  %v10535_v56 = vshrl.u32 %v1012_v57, 30 }
 0x1a9   : > { %vm1498_vm13 = vcmp.lt.s32.totalorder %v16116_v46, 1  ;;  %vm1500_vm14 = vcmp.lt.s32.totalorder %v16116_v46, 3  ;;  %v1236_v9 = vor.u32 4788187, %v1235_v36  ;;  %v1474_v60 = vor.u32 8388608, %v1473_v53 }
 0x1aa   : > { %16117 = vst [vmem:[#allocation59_spill] sm:$0xff] %v10535_v56  ;;  %v1506_v12 = vsel %vm1498_vm13, %v10515_v0, %v10517_v42  ;;  %v1508_v20 = vsel %vm1500_vm14, %v1491_v8, %v1507_v28  ;;  %8592 = vsinq.f32 %v1142_v34  ;;  %v934_v30 = vsub.s32 4, %v10253_v24 }
 0x1ab   : > { %v1510_v4 = vsel %vm1498_vm13, %v10517_v42, %v1491_v8  ;;  %v1512_v57 = vsel %vm1500_vm14, %v1494_v27, %v1511_v49  ;;  %v931_v59 = vmul.f32 %v930_v63, %v928_v39  ;;  %v1232_v14 = vor.u32 %v1231_v26, %v1230_v23 }
 0x1ac   : > { %vm1499_vm15 = vcmp.lt.s32.totalorder %v16116_v46, 2  ;;  %v4053_v34 = vsel %vm4052_vm9, %v10456_v52, 0  ;;  %vm850_vm0 = vcmp.lt.s32.totalorder %v16118_v1, 0  ;;  %v1014_v2 = vshll.u32 %v10535_v56, 30 }
 0x1ad   : > { %v1509_v53 = vsel %vm1499_vm15, %v1506_v12, %v1508_v20  ;;  %v1237_v36 = vand.u32 2147483647, %v1236_v9  ;;  %v1513_v28 = vsel %vm1499_vm15, %v1510_v4, %v1512_v57  ;;  %v10565_v39 = vshll.u32 %v1474_v60, 8 }
 0x1ae   : > { %v10570_v52 = vsel %vm3949_vm12, %v10469_v37, 0  ;;  %v1143_v49 = vsel %vm10473_vm8, 0, %v1141_v10  ;;  %v935_v23 = vsel %vm850_vm0, %v934_v30, %v10253_v24  ;;  %v932_v9 = vxor.u32 2147483648, %v931_v59 }
 0x1af   : > { %v7888_v7 = vpop.f32.mrf.mxu0  ;;  %16119 = vst [vmem:[#allocation120_spill] sm:$0xff] %v10570_v52  ;;  %v1239_v12 = vcvt.s32.f32 %v1232_v14  ;;  %v10581_v60 = vmul.u32.u64.low %v10565_v39, %v1509_v53  ;;  %v10582_v20 = vmul.u32.u64.high %v10565_v39, %v1509_v53, %v10581_v60  ;;  %v10589_v4 = vsub.s32 %v10489_v21, %v1014_v2 }
 0x1b0   : > { %v10552_v45 = vadd.f32 %v7888_v7, %v10531_v18  ;;  %v10592_v3 = vmul.u32.u64.low %v10565_v39, %v1513_v28  ;;  %v10593_v10 = vmul.u32.u64.high %v10565_v39, %v1513_v28, %v10592_v3  ;;  %v10595_v57 = vshrl.u32 %v4053_v34, 5 }
 0x1b1   : > { %v4529_v58 = vpop.f32.mrf.mxu0  ;;  %16120 = vst [vmem:[#allocation121_spill] sm:$0xff] %v10581_v60  ;;  %16121 = vst [vmem:[#allocation122_spill] sm:$0xff] %v10589_v4  ;;  %v10597_v24 = vand.u32 31, %v4053_v34  ;;  %v1240_v14 = vmul.f32 %v1239_v12, %v1237_v36  ;;  %v16127_v21 = vand.u32 2147483647, %v16118_v1  ;;  %vm1159_vm2 = vcmp.lt.s32.totalorder %v9732_v32, 0 }
 0x1b2   : > { %v4690_v27 = vand.u32 2147483647, %v10552_v45  ;;  %v10573_v63 = vadd.f32 %v10531_v18, %v4529_v58  ;;  %16122 = vst [vmem:[#allocation123_spill] sm:$0xff] %v10593_v10  ;;  %16123 = vst [vmem:[#allocation124_spill] sm:$0xff] %v10595_v57  ;;  %v10600_v58 = vshrl.u32 %v10570_v52, 5  ;;  %v933_v12 = vsel %vm850_vm0, %v932_v9, %v931_v59 }
 0x1b3   : > { %v7889_v26 = vpop.f32.mrf.mxu0  ;;  %16124 = vst [vmem:[#allocation125_spill] sm:$0xff] %v10597_v24  ;;  %vm10607_vm1 = vcmp.le.f32.partialorder %v16127_v21, 0.7853982  ;;  %v1503_v36 = vsel %vm1501_vm11, %v1491_v8, 2102212464  ;;  %v1017_v3 = vsub.s32 0, %v10589_v4  ;;  %v1482_v21 = vshrl.u32 %v16055_v19, %v10452_v38 }
 0x1b4   : > { %v10586_v37 = vadd.f32 %v7889_v26, %v10531_v18  ;;  %v4722_v30 = vsub.f32 0.0, %v4690_v27  ;;  %16125 = vst [vmem:[#allocation126_spill] sm:$0xff] %v10600_v58  ;;  %v4688_v53 = vand.u32 2147483647, %v10573_v63  ;;  %v10603_v26 = vand.u32 3, %v1143_v49  ;;  %v10611_v28 = vpop.eup %8590 }
 0x1b5   : > { %v4532_v7 = vpop.f32.mrf.mxu0  ;;  %v937_v27 = vsel %vm10607_vm1, 0, %v935_v23  ;;  %v16130_v58 = vand.u32 2147483647, %v9732_v32  ;;  %v16131_v23 = vmov 0  ;;  %v1241_v31 = vxor.u32 2147483648, %v1240_v14 }
 0x1b6   : > { %16126 = vst [vmem:[#allocation127_spill] sm:$0xff] %v10603_v26  ;;  %v10614_v34 = vadd.f32 %v10531_v18, %v4532_v7  ;;  %v4691_v49 = vand.u32 2147483647, %v10586_v37  ;;  %v4756_v7 = vmul.f32 1.442695, %v4722_v30  ;;  %v1243_v8 = vsub.s32 4, %v10284_v15 }
 0x1b7   : > { %vm10629_vm3 = vcmp.le.f32.partialorder %v16130_v58, 0.7853982  ;;  %v4720_v13 = vsub.f32 0.0, %v4688_v53  ;;  %vm1152_vm4 = vcmp.eq.s32.totalorder %v10603_v26, 2  ;;  %v1502_v38 = vsel %vm1498_vm13, %v1482_v21, %v10515_v0  ;;  %v8593_v9 = vpop.eup %8592 }
 0x1b8   : > { %v16132_v23 = vsel %vm10629_vm3, 4294967295, %v16131_v23  ;;  %v1504_v59 = vsel %vm1500_vm14, %v10517_v42, %v1503_v36  ;;  %v4689_v30 = vand.u32 2147483647, %v10614_v34  ;;  %vm1149_vm5 = vcmp.eq.s32.totalorder %v10603_v26, 0 }
 0x1b9   : > { %v7892_v57 = vpop.f32.mrf.mxu0  ;;  %16133 = vst [vmem:[#allocation128_spill] sm:$0xff] %v16132_v23  ;;  %v10649_v53 = vand.u32 3, %v937_v27  ;;  %v1524_v40 = vadd.s32 1, %v10582_v20  ;;  %v4723_v33 = vsub.f32 0.0, %v4691_v49  ;;  %v7437_v42 = vmin.u32 %v1017_v3, %v10589_v4 }
 0x1ba   : > { %v10635_v43 = vadd.f32 %v7892_v57, %v10531_v18  ;;  %v936_v57 = vsel %vm10607_vm1, %v16118_v1, %v933_v12  ;;  %vm1523_vm6 = vc.u32 %v10593_v10, %v10581_v60  ;;  %8594 = vpow2.f32 %v4756_v7 }
 0x1bb   : > { %v4545_v58 = vpop.f32.mrf.mxu0  ;;  %16134 = vst [vmem:[#allocation129_spill] sm:$0xff] %v10649_v53  ;;  %v1242_v2 = vsel %vm1159_vm2, %v1241_v31, %v1240_v14  ;;  %v1505_v27 = vsel %vm1499_vm15, %v1502_v38, %v1504_v59  ;;  %v4752_v12 = vmul.f32 1.442695, %v4720_v13  ;;  %v10668_v3 = vsel %vm1159_vm2, %v1243_v8, %v10284_v15  ;;  %v16137_v13 = vld [vmem:[#allocation42_spill] sm:$0xff]  ;;  %v16138_v8 = vld [vmem:[#allocation55_spill] sm:$0xff] }
 0x1bc   : > { %v10653_v0 = vadd.f32 %v10531_v18, %v4545_v58  ;;  %v4694_v36 = vand.u32 2147483647, %v10635_v43  ;;  %v1153_v58 = vxor.u32 2147483648, %v10611_v28  ;;  %16135 = vst [vmem:[#allocation130_spill] sm:$0xff] %v10668_v3  ;;  %v4721_v7 = vsub.f32 0.0, %v4689_v30 }
 0x1bd   : > { %v7893_v21 = vpop.f32.mrf.mxu0  ;;  %v1150_v54 = vxor.u32 2147483648, %v8593_v9  ;;  %8596 = vcosq.f32 %v936_v57  ;;  %v1525_v6 = vsel %vm1523_vm6, %v1524_v40, %v10582_v20  ;;  %v4758_v22 = vmul.f32 1.442695, %v4723_v33 }
 0x1be   : > { %v4692_v49 = vand.u32 2147483647, %v10653_v0  ;;  %v10674_v46 = vsel %vm10629_vm3, %v9732_v32, %v1242_v2  ;;  %v1521_v31 = vmul.u32 %v10565_v39, %v1505_v27  ;;  %v15819_v14 = vand.u32 2147483647, %v16137_v13 }
 0x1bf   : > { %16136 = vst [vmem:[#allocation131_spill] sm:$0xff] %v10674_v46  ;;  %v4726_v38 = vsub.f32 0.0, %v4694_v36  ;;  %v4548_v59 = vpop.f32.mrf.mxu0  ;;  %8598 = vsinq.f32 %v936_v57  ;;  %v1019_v15 = vclz %v7437_v42  ;;  %v1275_v30 = vsub.s32 32, %v16138_v8 }
 0x1c0   : > { %8600 = vpow2.f32 %v4752_v12  ;;  %v4724_v48 = vsub.f32 0.0, %v4692_v49  ;;  %v10680_v40 = vadd.f32 %v7893_v21, %v10531_v18  ;;  %v10682_v33 = vadd.s32 %v1525_v6, %v1521_v31 }
 0x1c1   : > { %v4754_v20 = vmul.f32 1.442695, %v4721_v7  ;;  %v10686_v2 = vsel %vm1152_vm4, %v1153_v58, %v8593_v9  ;;  %8602 = vcosq.f32 %v10674_v46  ;;  %v10693_v57 = vadd.f32 %v10531_v18, %v4548_v59 }
 0x1c2   : > { %16139 = vst [vmem:[#allocation55_spill] sm:$0xff] %v10686_v2  ;;  %8604 = vpow2.f32 %v4758_v22  ;;  %v10698_v6 = vsel %vm1149_vm5, %v10611_v28, %v1150_v54  ;;  %v10702_v42 = vand.u32 8388607, %v15819_v14  ;;  %v4764_v9 = vmul.f32 1.442695, %v4726_v38 }
 0x1c3   : > { %16140 = vst [vmem:[#allocation132_spill] sm:$0xff] %v10698_v6  ;;  %v10704_v36 = vadd.s32 4294967294, %v1019_v15  ;;  %v1278_v21 = vshrl.u32 %v16061_v11, %v1275_v30  ;;  %v1287_v27 = vshrl.u32 %v16038_v41, %v1275_v30  ;;  %v4760_v22 = vmul.f32 1.442695, %v4724_v48 }
 0x1c4   : > { %v4695_v12 = vand.u32 2147483647, %v10680_v40  ;;  %v1527_v58 = vadd.s32 536870912, %v10682_v33  ;;  %v1281_v54 = vshrl.u32 %v16062_v61, %v1275_v30  ;;  %8606 = vpow2.f32 %v4754_v20 }
 0x1c5   : > { %v1284_v28 = vshrl.u32 %v16060_v55, %v1275_v30  ;;  %v1286_v7 = vshll.u32 %v16060_v55, %v16138_v8  ;;  %v1290_v31 = vshrl.u32 %v16058_v47, %v1275_v30  ;;  %v4693_v38 = vand.u32 2147483647, %v10693_v57 }
 0x1c6   : > { %v7896_v49 = vpop.f32.mrf.mxu0  ;;  %v1268_v48 = vor.u32 8388608, %v10702_v42  ;;  %v1277_v15 = vshll.u32 %v16055_v19, %v16138_v8  ;;  %v1280_v14 = vshll.u32 %v16061_v11, %v16138_v8  ;;  %8608 = vpow2.f32 %v4764_v9 }
 0x1c7   : > { %v1283_v20 = vshll.u32 %v16062_v61, %v16138_v8  ;;  %v1288_v39 = vor.u32 %v1287_v27, %v1286_v7  ;;  %v1289_v17 = vshll.u32 %v16038_v41, %v16138_v8  ;;  %v8595_v51 = vpop.eup %8594  ;;  %8610 = vpow2.f32 %v4760_v22  ;;  %v16143_v7 = vld [vmem:[#allocation54_spill] sm:$0xff] }
 0x1c8   : > { %v4561_v59 = vpop.f32.mrf.mxu0  ;;  %v4727_v44 = vsub.f32 0.0, %v4695_v12  ;;  %vm7439_vm7 = vcmp.lt.s32.totalorder %v10704_v36, 0  ;;  %v10729_v13 = vshrl.u32 %v1527_v58, 30  ;;  %v1279_v62 = vor.u32 %v1278_v21, %v1277_v15 }
 0x1c9   : > { %v10726_v5 = vadd.f32 %v10531_v18, %v4561_v59  ;;  %v1282_v9 = vor.u32 %v1281_v54, %v1280_v14  ;;  %v1285_v32 = vor.u32 %v1284_v28, %v1283_v20  ;;  %v1291_v1 = vor.u32 %v1290_v31, %v1289_v17 }
 0x1ca   : > { %v7897_v42 = vpop.f32.mrf.mxu0  ;;  %16141 = vst [vmem:[#allocation133_spill] sm:$0xff] %v10729_v13  ;;  %v10731_v52 = vpop.eup %8596  ;;  %v4725_v27 = vsub.f32 0.0, %v4693_v38  ;;  %v10734_v8 = vadd.f32 %v7896_v49, %v10531_v18  ;;  %vm1295_vm8 = vcmp.lt.s32.totalorder %v16143_v7, 4  ;;  %v4818_v59 = vadd.f32 1.0, %v8595_v51 }
 0x1cb   : > { %16142 = vst [vmem:[#allocation134_spill] sm:$0xff] %v10731_v52  ;;  %v4696_v22 = vand.u32 2147483647, %v10726_v5  ;;  %v1276_v21 = vshrl.u32 %v16055_v19, %v1275_v30  ;;  %v1301_v17 = vsel %vm1295_vm8, %v1288_v39, 920167782  ;;  %v1529_v49 = vshll.u32 %v10729_v13, 30 }
 0x1cc   : > { %v4564_v12 = vpop.f32.mrf.mxu0  ;;  %v10744_v14 = vpop.eup %8598  ;;  %v4766_v58 = vmul.f32 1.442695, %v4727_v44  ;;  %vm1292_vm9 = vcmp.lt.s32.totalorder %v16143_v7, 1  ;;  %vm1294_vm11 = vcmp.lt.s32.totalorder %v16143_v7, 3  ;;  %v10750_v51 = vadd.f32 %v7897_v42, %v10531_v18 }
 0x1cd   : > { %v10739_v24 = vadd.f32 %v10531_v18, %v4564_v12  ;;  %16144 = vst [vmem:[#allocation54_spill] sm:$0xff] %v10744_v14  ;;  %v8601_v54 = vpop.eup %8600  ;;  %v4728_v28 = vsub.f32 0.0, %v4696_v22  ;;  %v1300_v30 = vsel %vm1292_vm9, %v1279_v62, %v1282_v9  ;;  %v4762_v15 = vmul.f32 1.442695, %v4725_v27 }
 0x1ce   : > { %v10755_v38 = vpop.eup %8602  ;;  %v4698_v44 = vand.u32 2147483647, %v10734_v8  ;;  %v1302_v20 = vsel %vm1294_vm11, %v1285_v32, %v1301_v17  ;;  %v1305_v12 = vsel %vm1295_vm8, %v1291_v1, 1326507024  ;;  %8612 = vlog2.f32 %v4818_v59 }
 0x1cf   : > { %v4697_v31 = vand.u32 2147483647, %v10739_v24  ;;  %16145 = vst [vmem:[#allocation135_spill] sm:$0xff] %v10755_v38  ;;  %v8605_v22 = vpop.eup %8604  ;;  %vm1293_vm12 = vcmp.lt.s32.totalorder %v16143_v7, 2  ;;  %v1297_v13 = vsel %vm1295_vm8, %v1285_v32, 2102212464  ;;  %8614 = vpow2.f32 %v4766_v58 }
 0x1d0   : > { %v4816_v56 = vadd.f32 1.0, %v8601_v54  ;;  %v10766_v27 = vsub.s32 %v10682_v33, %v1529_v49  ;;  %v1304_v60 = vsel %vm1292_vm9, %v1282_v9, %v1285_v32  ;;  %v4768_v17 = vmul.f32 1.442695, %v4728_v28 }
 0x1d1   : > { %v4729_v42 = vsub.f32 0.0, %v4697_v31  ;;  %v4699_v10 = vand.u32 2147483647, %v10750_v51  ;;  %v1303_v1 = vsel %vm1293_vm12, %v1300_v30, %v1302_v20  ;;  %v1306_v59 = vsel %vm1294_vm11, %v1288_v39, %v1305_v12  ;;  %v8607_v31 = vpop.eup %8606 }
 0x1d2   : > { %16146 = vst [vmem:[#allocation136_spill] sm:$0xff] %v10766_v27  ;;  %v4819_v38 = vadd.f32 1.0, %v8605_v22  ;;  %8616 = vpow2.f32 %v4762_v15  ;;  %v4730_v54 = vsub.f32 0.0, %v4698_v44  ;;  %v10775_v58 = vshll.u32 %v1268_v48, 8 }
 0x1d3   : > { %v4770_v33 = vmul.f32 1.442695, %v4729_v42  ;;  %v10780_v32 = vsel %vm7439_vm7, 0, %v10704_v36  ;;  %v1296_v49 = vsel %vm1292_vm9, %v1276_v21, %v1279_v62  ;;  %v1298_v28 = vsel %vm1294_vm11, %v1282_v9, %v1297_v13  ;;  %v8609_v30 = vpop.eup %8608 }
 0x1d4   : > { %16147 = vst [vmem:[#allocation137_spill] sm:$0xff] %v10780_v32  ;;  %8618 = vlog2.f32 %v4816_v56  ;;  %v1532_v39 = vsub.s32 0, %v10766_v27  ;;  %v10788_v15 = vmul.u32.u64.low %v10775_v58, %v1303_v1  ;;  %v10789_v48 = vmul.u32.u64.high %v10775_v58, %v1303_v1, %v10788_v15  ;;  %v8611_v44 = vpop.eup %8610 }
 0x1d5   : > { %v4817_v20 = vadd.f32 1.0, %v8607_v31  ;;  %8620 = vpow2.f32 %v4768_v17  ;;  %v4731_v36 = vsub.f32 0.0, %v4699_v10  ;;  %v10794_v62 = vsel %vm1293_vm12, %v1304_v60, %v1306_v59 }
 0x1d6   : > { %8622 = vlog2.f32 %v4819_v38  ;;  %v4772_v13 = vmul.f32 1.442695, %v4730_v54  ;;  %v10798_v56 = vadd.s32 %v10411_v25, %v10417_v29  ;;  %v4822_v21 = vadd.f32 1.0, %v8609_v30  ;;  %v16150_v30 = vld [vmem:[#allocation43_spill] sm:$0xff] }
 0x1d7   : > { %v7900_v12 = vpop.f32.mrf.mxu0  ;;  %8624 = vpow2.f32 %v4770_v33  ;;  %v10806_v10 = vsel %vm1293_vm12, %v1296_v49, %v1298_v28  ;;  %v4820_v60 = vadd.f32 1.0, %v8611_v44  ;;  %v4774_v17 = vmul.f32 1.442695, %v4731_v36 }
 0x1d8   : > { %16148 = vst [vmem:[#allocation138_spill] sm:$0xff] %v10798_v56  ;;  %v10802_v22 = vadd.f32 %v7900_v12, %v10531_v18  ;;  %v10813_v25 = vmul.u32.u64.low %v10775_v58, %v10794_v62  ;;  %v10814_v29 = vmul.u32.u64.high %v10775_v58, %v10794_v62, %v10813_v25  ;;  %8626 = vlog2.f32 %v4817_v20  ;;  %v16151_v20 = vld [vmem:[#allocation57_spill] sm:$0xff] }
 0x1d9   : > { %v4577_v42 = vpop.f32.mrf.mxu0  ;;  %v10819_v31 = vmin.u32 %v1532_v39, %v10766_v27  ;;  %8628 = vpow2.f32 %v4772_v13  ;;  %v10830_v36 = vsub.s32 32, %v16151_v20  ;;  %v10834_v13 = vadd.s32 1, %v10789_v48 }
 0x1da   : > { %v10809_v38 = vadd.f32 %v10531_v18, %v4577_v42  ;;  %8630 = vlog2.f32 %v4822_v21  ;;  %v4702_v49 = vand.u32 2147483647, %v10802_v22  ;;  %v4658_v25 = vmax.f32 %v10552_v45, 0.0 }
 0x1db   : > { %v7901_v1 = vpop.f32.mrf.mxu0  ;;  %16149 = vst [vmem:[#allocation139_spill] sm:$0xff] %v10819_v31  ;;  %v8613_v39 = vpop.eup %8612  ;;  %8632 = vlog2.f32 %v4820_v60  ;;  %vm1317_vm13 = vc.u32 %v10814_v29, %v10788_v15 }
 0x1dc   : > { %v4700_v7 = vand.u32 2147483647, %v10809_v38  ;;  %v10823_v54 = vadd.f32 %v7901_v1, %v10531_v18  ;;  %v8615_v42 = vpop.eup %8614  ;;  %8634 = vpow2.f32 %v4774_v17  ;;  %v4734_v50 = vsub.f32 0.0, %v4702_v49 }
 0x1dd   : > { %v4580_v28 = vpop.f32.mrf.mxu0  ;;  %v4823_v52 = vadd.f32 1.0, %v8615_v42 }
 0x1de   : > { %v4732_v12 = vsub.f32 0.0, %v4700_v7  ;;  %v4703_v62 = vand.u32 2147483647, %v10823_v54  ;;  %v10839_v1 = vadd.f32 %v10531_v18, %v4580_v28  ;;  %v4853_v28 = vmul.f32 0.6931472, %v8613_v39 }
 0x1df   : > { %v7904_v9 = vpop.f32.mrf.mxu0  ;;  %v8617_v44 = vpop.eup %8616 }
 0x1e0   : > { %v4776_v33 = vmul.f32 1.442695, %v4732_v12  ;;  %v4701_v45 = vand.u32 2147483647, %v10839_v1  ;;  %v10847_v21 = vadd.f32 %v7904_v9, %v10531_v18  ;;  %v4735_v14 = vsub.f32 0.0, %v4703_v62 }
 0x1e1   : > { %v4593_v17 = vpop.f32.mrf.mxu0  ;;  %v8619_v59 = vpop.eup %8618  ;;  %v4821_v3 = vadd.f32 1.0, %v8617_v44 }
 0x1e2   : > { %8636 = vpow2.f32 %v4776_v33  ;;  %v4733_v16 = vsub.f32 0.0, %v4701_v45  ;;  %v8621_v49 = vpop.eup %8620  ;;  %v4780_v33 = vmul.f32 1.442695, %v4734_v50  ;;  %v4706_v53 = vand.u32 2147483647, %v10847_v21 }
 0x1e3   : > { %v7905_v27 = vpop.f32.mrf.mxu0  ;;  %v8623_v42 = vpop.eup %8622  ;;  %v10857_v60 = vadd.f32 %v10531_v18, %v4593_v17  ;;  %v4914_v45 = vadd.f32 %v4853_v28, %v4658_v25  ;;  %8638 = vlog2.f32 %v4823_v52  ;;  %v4782_v6 = vmul.f32 1.442695, %v4735_v14 }
 0x1e4   : > { %v4778_v62 = vmul.f32 1.442695, %v4733_v16  ;;  %v8625_v12 = vpop.eup %8624  ;;  %v10860_v44 = vadd.f32 %v7905_v27, %v10531_v18  ;;  %v4824_v23 = vadd.f32 1.0, %v8621_v49  ;;  %v4738_v9 = vsub.f32 0.0, %v4706_v53 }
 0x1e5   : > { %v4596_v7 = vpop.f32.mrf.mxu0  ;;  %v4849_v2 = vmul.f32 0.6931472, %v8619_v59  ;;  %v8627_v50 = vpop.eup %8626  ;;  %v4855_v16 = vmul.f32 0.6931472, %v8623_v42  ;;  %v4704_v35 = vand.u32 2147483647, %v10857_v60 }
 0x1e6   : > { %8640 = vpow2.f32 %v4778_v62  ;;  %v4707_v17 = vand.u32 2147483647, %v10860_v44  ;;  %v8629_v26 = vpop.eup %8628  ;;  %v4825_v56 = vadd.f32 1.0, %v8625_v12  ;;  %v4788_v52 = vmul.f32 1.442695, %v4738_v9 }
 0x1e7   : > { %v7908_v39 = vpop.f32.mrf.mxu0  ;;  %8642 = vlog2.f32 %v4821_v3  ;;  %v10865_v14 = vadd.f32 %v10531_v18, %v4596_v7  ;;  %v8631_v25 = vpop.eup %8630  ;;  %v4736_v53 = vsub.f32 0.0, %v4704_v35  ;;  %v16153_v9 = vmax.f32 %v10573_v63, 0.0 }
 0x1e8   : > { %8644 = vpow2.f32 %v4780_v33  ;;  %v4739_v28 = vsub.f32 0.0, %v4707_v17  ;;  %v8633_v3 = vpop.eup %8632  ;;  %v10872_v42 = vadd.f32 %v7908_v39, %v10531_v18  ;;  %v4826_v62 = vadd.f32 1.0, %v8629_v26 }
 0x1e9   : > { %v4609_v27 = vpop.f32.mrf.mxu0  ;;  %8646 = vpow2.f32 %v4782_v6  ;;  %v4705_v49 = vand.u32 2147483647, %v10865_v14  ;;  %v4912_v7 = vadd.f32 %v4849_v2, %v16153_v9  ;;  %v8635_v33 = vpop.eup %8634  ;;  %v4784_v6 = vmul.f32 1.442695, %v4736_v53 }
 0x1ea   : > { %v10868_v59 = vadd.f32 %v10531_v18, %v4609_v27  ;;  %8648 = vlog2.f32 %v4824_v23  ;;  %16152 = vst [vmem:[#allocation43_spill] sm:$0xff] %v10872_v42  ;;  %v4790_v35 = vmul.f32 1.442695, %v4739_v28  ;;  %v4861_v17 = vmul.f32 0.6931472, %v8631_v25 }
 0x1eb   : > { %v7909_v12 = vpop.f32.mrf.mxu0  ;;  %8650 = vpow2.f32 %v4788_v52  ;;  %v4737_v27 = vsub.f32 0.0, %v4705_v49  ;;  %v4851_v46 = vmul.f32 0.6931472, %v8627_v50  ;;  %v4857_v23 = vmul.f32 0.6931472, %v8633_v3 }
 0x1ec   : > { %8652 = vlog2.f32 %v4825_v56  ;;  %v4708_v31 = vand.u32 2147483647, %v10868_v59  ;;  %v10878_v39 = vadd.f32 %v7909_v12, %v10531_v18  ;;  %v16155_v63 = vmax.f32 %v10586_v37, 0.0 }
 0x1ed   : > { %v4612_v4 = vpop.f32.mrf.mxu0  ;;  %8654 = vpow2.f32 %v4784_v6  ;;  %v4827_v26 = vadd.f32 1.0, %v8635_v33  ;;  %v4786_v52 = vmul.f32 1.442695, %v4737_v27  ;;  %v4710_v53 = vand.u32 2147483647, %v10872_v42 }
 0x1ee   : > { %16154 = vst [vmem:[#allocation57_spill] sm:$0xff] %v10878_v39  ;;  %v4915_v2 = vadd.f32 %v4855_v16, %v16155_v63  ;;  %8656 = vpow2.f32 %v4790_v35  ;;  %v4740_v28 = vsub.f32 0.0, %v4708_v31  ;;  %v10884_v50 = vadd.f32 %v10531_v18, %v4612_v4 }
 0x1ef   : > { %v8637_v32 = vpop.eup %8636  ;;  %v7912_v25 = vpop.f32.mrf.mxu0  ;;  %v10886_v3 = vadd.f32 -0.6931472, %v4914_v45  ;;  %v16156_v49 = vmax.f32 %v10635_v43, 0.0  ;;  %8658 = vpow2.f32 %v4786_v52  ;;  %v16157_v16 = vmax.f32 %v10653_v0, 0.0 }
 0x1f0   : > { %v4828_v56 = vadd.f32 1.0, %v8637_v32  ;;  %8660 = vlog2.f32 %v4826_v62  ;;  %v4792_v6 = vmul.f32 1.442695, %v4740_v28  ;;  %v4711_v32 = vand.u32 2147483647, %v10878_v39  ;;  %v8639_v31 = vpop.eup %8638 }
 0x1f1   : > { %v4918_v12 = vadd.f32 %v4861_v17, %v16156_v49  ;;  %v4625_v37 = vpop.f32.mrf.mxu0  ;;  %v4916_v33 = vadd.f32 %v4857_v23, %v16157_v16  ;;  %v10894_v35 = vadd.f32 -0.6931472, %v4915_v2  ;;  %8662 = vlog2.f32 %v4827_v26 }
 0x1f2   : > { %v4742_v4 = vsub.f32 0.0, %v4710_v53  ;;  %v16158_v43 = vmax.f32 %v10614_v34, 0.0  ;;  %8664 = vlog2.f32 %v4828_v56  ;;  %v4743_v63 = vsub.f32 0.0, %v4711_v32 }
 0x1f3   : > { %v7913_v45 = vpop.f32.mrf.mxu0  ;;  %v8641_v27 = vpop.eup %8640  ;;  %v4709_v52 = vand.u32 2147483647, %v10884_v50  ;;  %v7570_v0 = vadd.f32 -0.6931472, %v4912_v7  ;;  %v10899_v62 = vadd.f32 -0.6931472, %v4918_v12  ;;  %8666 = vpow2.f32 %v4792_v6 }
 0x1f4   : > { %v4913_v17 = vadd.f32 %v4851_v46, %v16158_v43  ;;  %v8643_v23 = vpop.eup %8642  ;;  %v4829_v49 = vadd.f32 1.0, %v8641_v27  ;;  %v10902_v26 = vadd.f32 -0.6931472, %v4916_v33  ;;  %v4798_v53 = vmul.f32 1.442695, %v4743_v63 }
 0x1f5   : > { %v8645_v2 = vpop.eup %8644  ;;  %v4741_v16 = vsub.f32 0.0, %v4709_v52  ;;  %v10905_v34 = vadd.f32 %v7912_v25, %v10531_v18  ;;  %v4628_v46 = vpop.f32.mrf.mxu0  ;;  %v4796_v32 = vmul.f32 1.442695, %v4742_v4  ;;  %v10908_v7 = vadd.f32 %v10531_v18, %v4625_v37 }
 0x1f6   : > { %v8647_v56 = vpop.eup %8646  ;;  %8668 = vlog2.f32 %v4829_v49  ;;  %v10911_v12 = vadd.f32 %v7913_v45, %v10531_v18  ;;  %v4863_v6 = vmul.f32 0.6931472, %v8639_v31  ;;  %v4859_v27 = vmul.f32 0.6931472, %v8643_v23 }
 0x1f7   : > { %16159 = vst [vmem:[#allocation140_spill] sm:$0xff] %v10905_v34  ;;  %16160 = vst [vmem:[#allocation141_spill] sm:$0xff] %v10908_v7  ;;  %v8649_v43 = vpop.eup %8648  ;;  %v4794_v33 = vmul.f32 1.442695, %v4741_v16  ;;  %v10915_v63 = vshll.u32 %v16055_v19, %v16151_v20  ;;  %v4830_v52 = vadd.f32 1.0, %v8645_v2  ;;  %8670 = vpow2.f32 %v4798_v53  ;;  %v7916_v31 = vpop.f32.mrf.mxu0 }
 0x1f8   : > { %16161 = vst [vmem:[#allocation142_spill] sm:$0xff] %v10911_v12  ;;  %v8651_v25 = vpop.eup %8650  ;;  %v4714_v49 = vand.u32 2147483647, %v10905_v34  ;;  %v4712_v4 = vand.u32 2147483647, %v10908_v7  ;;  %v4831_v28 = vadd.f32 1.0, %v8647_v56  ;;  %v10921_v19 = vadd.f32 %v10531_v18, %v4628_v46 }
 0x1f9   : > { %v8653_v37 = vpop.eup %8652  ;;  %8672 = vpow2.f32 %v4794_v33  ;;  %v4715_v45 = vand.u32 2147483647, %v10911_v12  ;;  %v7571_v9 = vadd.f32 -0.6931472, %v4913_v17  ;;  %v4834_v2 = vadd.f32 1.0, %v8651_v25  ;;  %v4641_v25 = vpop.f32.mrf.mxu0 }
 0x1fa   : > { %v8655_v23 = vpop.eup %8654  ;;  %8674 = vpow2.f32 %v4796_v32  ;;  %v4746_v16 = vsub.f32 0.0, %v4714_v49  ;;  %v4744_v42 = vsub.f32 0.0, %v4712_v4  ;;  %v16162_v7 = vmax.f32 %v10693_v57, 0.0 }
 0x1fb   : > { %v4832_v53 = vadd.f32 1.0, %v8655_v23  ;;  %v4747_v39 = vsub.f32 0.0, %v4715_v45  ;;  %v4976_v34 = vpack.c.bf16 %v7571_v9, %v7570_v0  ;;  %v8657_v47 = vpop.eup %8656  ;;  %v4865_v33 = vmul.f32 0.6931472, %v8649_v43 }
 0x1fc   : > { %v4917_v56 = vadd.f32 %v4859_v27, %v16162_v7  ;;  %8676 = vlog2.f32 %v4830_v52  ;;  %v4977_v17 = vpack.c.bf16 %v10894_v35, %v10886_v3  ;;  %v8659_v12 = vpop.eup %8658  ;;  %v4867_v32 = vmul.f32 0.6931472, %v8653_v37 }
 0x1fd   : > { %8678 = vlog2.f32 %v4831_v28  ;;  %v4800_v49 = vmul.f32 1.442695, %v4744_v42  ;;  %7934 = vmatprep.mubr.bf16.mxu1 %v4976_v34  ;;  %v4713_v46 = vand.u32 2147483647, %v10921_v19  ;;  %v8661_v4 = vpop.eup %8660  ;;  %v4833_v9 = vadd.f32 1.0, %v8659_v12 }
 0x1fe   : > { %8680 = vlog2.f32 %v4832_v53  ;;  %v4804_v0 = vmul.f32 1.442695, %v4746_v16  ;;  %7935 = vmatmul.mubr.bf16.vlgmr.msra.gmra.mxu1 %v4977_v17  ;;  %v10929_v57 = vadd.f32 %v7916_v31, %v10531_v18  ;;  %v8663_v7 = vpop.eup %8662  ;;  %v16163_v43 = vmax.f32 %v10680_v40, 0.0  ;;  %v7917_v31 = vpop.f32.mrf.mxu0 }
 0x1ff   : > { %8682 = vlog2.f32 %v4834_v2  ;;  %v4806_v35 = vmul.f32 1.442695, %v4747_v39  ;;  %v4745_v28 = vsub.f32 0.0, %v4713_v46  ;;  %v8665_v42 = vpop.eup %8664  ;;  %v4835_v34 = vadd.f32 1.0, %v8657_v47 }
 0x200   : > { %v4919_v3 = vadd.f32 %v4863_v6, %v16163_v43  ;;  %8684 = vlog2.f32 %v4833_v9  ;;  %v4718_v12 = vand.u32 2147483647, %v10929_v57  ;;  %v10937_v27 = vadd.f32 %v10531_v18, %v4641_v25  ;;  %v8667_v52 = vpop.eup %8666 }
 0x201   : > { %v7575_v37 = vadd.f32 -0.6931472, %v4917_v56  ;;  %v16164_v45 = vmax.f32 %v10726_v5, 0.0  ;;  %v16165_v6 = vmax.f32 %v10739_v24, 0.0  ;;  %8686 = vpow2.f32 %v4800_v49  ;;  %v4644_v49 = vpop.f32.mrf.mxu0 }
 0x202   : > { %v4871_v23 = vmul.f32 0.6931472, %v8663_v7  ;;  %v4836_v16 = vadd.f32 1.0, %v8667_v52  ;;  %8688 = vpow2.f32 %v4804_v0  ;;  %v4802_v47 = vmul.f32 1.442695, %v4745_v28 }
 0x203   : > { %v4920_v40 = vadd.f32 %v4865_v33, %v16164_v45  ;;  %v4921_v39 = vadd.f32 %v4867_v32, %v16165_v6  ;;  %v8669_v2 = vpop.eup %8668  ;;  %v7577_v53 = vadd.f32 -0.6931472, %v4919_v3  ;;  %v4873_v17 = vmul.f32 0.6931472, %v8665_v42 }
 0x204   : > { %8690 = vpow2.f32 %v4806_v35  ;;  %v4750_v46 = vsub.f32 0.0, %v4718_v12  ;;  %v4869_v25 = vmul.f32 0.6931472, %v8661_v4  ;;  %v4875_v9 = vmul.f32 0.6931472, %v8669_v2  ;;  %v8671_v56 = vpop.eup %8670 }
 0x205   : > { %8692 = vlog2.f32 %v4835_v34  ;;  %v4716_v5 = vand.u32 2147483647, %v10937_v27  ;;  %v7578_v33 = vadd.f32 -0.6931472, %v4920_v40  ;;  %v7579_v24 = vadd.f32 -0.6931472, %v4921_v39 }
 0x206   : > { %8694 = vpow2.f32 %v4802_v47  ;;  %v10945_v32 = vadd.f32 %v7917_v31, %v10531_v18  ;;  %v8673_v0 = vpop.eup %8672  ;;  %v16166_v7 = vmax.f32 %v10750_v51, 0.0  ;;  %v4978_v4 = vpack.c.bf16 %v7575_v37, %v10902_v26 }
 0x207   : > { %8696 = vlog2.f32 %v4836_v16  ;;  %v4748_v3 = vsub.f32 0.0, %v4716_v5  ;;  %v8675_v35 = vpop.eup %8674  ;;  %v16167_v28 = vmax.f32 %v10809_v38, 0.0  ;;  %v4837_v34 = vadd.f32 1.0, %v8673_v0 }
 0x208   : > { %v4923_v43 = vadd.f32 %v4871_v23, %v16166_v7  ;;  %v4812_v12 = vmul.f32 1.442695, %v4750_v46  ;;  %v4719_v52 = vand.u32 2147483647, %v10945_v32  ;;  %v16168_v45 = vmax.f32 %v10839_v1, 0.0  ;;  %7938 = vmatprep.mubr.bf16.mxu1 %v4978_v4 }
 0x209   : > { %v4924_v42 = vadd.f32 %v4873_v17, %v16167_v28  ;;  %v4839_v6 = vadd.f32 1.0, %v8671_v56  ;;  %v4808_v39 = vmul.f32 1.442695, %v4748_v3  ;;  %v10956_v51 = vadd.f32 %v10531_v18, %v4644_v49  ;;  %v8677_v31 = vpop.eup %8676 }
 0x20a   : > { %v4925_v40 = vadd.f32 %v4875_v9, %v16168_v45  ;;  %8698 = vlog2.f32 %v4837_v34  ;;  %v4751_v26 = vsub.f32 0.0, %v4719_v52  ;;  %v4979_v37 = vpack.c.bf16 %v7577_v53, %v10899_v62  ;;  %v8679_v23 = vpop.eup %8678 }
 0x20b   : > { %v4980_v38 = vpack.c.bf16 %v7579_v24, %v7578_v33  ;;  %v4838_v16 = vadd.f32 1.0, %v8675_v35  ;;  %8700 = vpow2.f32 %v4808_v39  ;;  %v4717_v47 = vand.u32 2147483647, %v10956_v51  ;;  %v8681_v2 = vpop.eup %8680 }
 0x20c   : > { %v1319_v1 = vsel %vm1317_vm13, %v10834_v13, %v10789_v48  ;;  %v16169_v18 = vmax.f32 %v10734_v8, 0.0  ;;  %v4670_v46 = vmax.f32 %v10802_v22, 0.0  ;;  %8702 = vpow2.f32 %v4812_v12  ;;  %7939 = vmatmul.mubr.bf16.gmra.mxu1 %v4979_v37  ;;  %v8683_v53 = vpop.eup %8682 }
 0x20d   : > { %v4814_v62 = vmul.f32 1.442695, %v4751_v26  ;;  %v7583_v9 = vadd.f32 -0.6931472, %v4925_v40  ;;  %v4673_v5 = vmax.f32 %v10865_v14, 0.0  ;;  %8704 = vlog2.f32 %v4839_v6  ;;  %7942 = vmatprep.mubr.bf16.mxu1 %v4980_v38  ;;  %v8685_v33 = vpop.eup %8684 }
 0x20e   : > { %v4922_v17 = vadd.f32 %v4869_v25, %v16169_v18  ;;  %v4749_v56 = vsub.f32 0.0, %v4717_v47  ;;  %v7581_v24 = vadd.f32 -0.6931472, %v4923_v43  ;;  %v7582_v49 = vadd.f32 -0.6931472, %v4924_v42  ;;  %v8687_v13 = vpop.eup %8686 }
 0x20f   : > { %v4879_v48 = vmul.f32 0.6931472, %v8679_v23  ;;  %8706 = vpow2.f32 %v4814_v62  ;;  %v4881_v8 = vmul.f32 0.6931472, %v8681_v2  ;;  %v4883_v25 = vmul.f32 0.6931472, %v8685_v33  ;;  %v8689_v0 = vpop.eup %8688 }
 0x210   : > { %8708 = vlog2.f32 %v4838_v16  ;;  %v4810_v22 = vmul.f32 1.442695, %v4749_v56  ;;  %v7580_v7 = vadd.f32 -0.6931472, %v4922_v17  ;;  %v4877_v3 = vmul.f32 0.6931472, %v8677_v31 }
 0x211   : > { %v4671_v4 = vmax.f32 %v10823_v54, 0.0  ;;  %v4840_v35 = vadd.f32 1.0, %v8687_v13  ;;  %v8691_v14 = vpop.eup %8690  ;;  %v4672_v28 = vmax.f32 %v10857_v60, 0.0  ;;  %v4929_v34 = vadd.f32 %v4883_v25, %v4673_v5 }
 0x212   : > { %8710 = vpow2.f32 %v4810_v22  ;;  %v4982_v43 = vpack.c.bf16 %v7583_v9, %v7582_v49  ;;  %v8693_v42 = vpop.eup %8692  ;;  %v4843_v52 = vadd.f32 1.0, %v8691_v14  ;;  %v4981_v45 = vpack.c.bf16 %v7581_v24, %v7580_v7 }
 0x213   : > { %v4927_v12 = vadd.f32 %v4879_v48, %v4671_v4  ;;  %8712 = vlog2.f32 %v4840_v35  ;;  %v8695_v40 = vpop.eup %8694  ;;  %v4928_v6 = vadd.f32 %v4881_v8, %v4672_v28  ;;  %v16170_v39 = vand.u32 2147483647, %v16150_v30 }
 0x214   : > { %v1587_v54 = vshrl.u32 %v16061_v11, %v10830_v36  ;;  %v1589_v60 = vshll.u32 %v16061_v11, %v16151_v20  ;;  %v8697_v31 = vpop.eup %8696  ;;  %v4926_v37 = vadd.f32 %v4877_v3, %v4670_v46  ;;  %v4842_v38 = vadd.f32 1.0, %v8689_v0  ;;  %7943 = vmatmul.mubr.bf16.gmra.mxu1 %v4981_v45 }
 0x215   : > { %v10973_v26 = vand.u32 8388607, %v16170_v39  ;;  %v4841_v23 = vadd.f32 1.0, %v8695_v40  ;;  %v1590_v16 = vshrl.u32 %v16062_v61, %v10830_v36  ;;  %v7587_v47 = vadd.f32 -0.6931472, %v4929_v34  ;;  %7946 = vmatprep.mubr.bf16.mxu1 %v4982_v43 }
 0x216   : > { %8714 = vlog2.f32 %v4843_v52  ;;  %v16171_v2 = vmul.u32 %v10775_v58, %v10806_v10  ;;  %v1592_v17 = vshll.u32 %v16062_v61, %v16151_v20  ;;  %v7585_v62 = vadd.f32 -0.6931472, %v4927_v12 }
 0x217   : > { %v4887_v9 = vmul.f32 0.6931472, %v8693_v42  ;;  %8716 = vlog2.f32 %v4841_v23  ;;  %v1593_v46 = vshrl.u32 %v16060_v55, %v10830_v36  ;;  %v8699_v5 = vpop.eup %8698  ;;  %v7586_v56 = vadd.f32 -0.6931472, %v4928_v6 }
 0x218   : > { %v10984_v18 = vadd.s32 %v1319_v1, %v16171_v2  ;;  %v4675_v33 = vmax.f32 %v10860_v44, 0.0  ;;  %v4889_v24 = vmul.f32 0.6931472, %v8697_v31  ;;  %v4677_v49 = vmax.f32 %v10884_v50, 0.0  ;;  %v8701_v48 = vpop.eup %8700 }
 0x219   : > { %v7584_v58 = vadd.f32 -0.6931472, %v4926_v37  ;;  %v4885_v10 = vmul.f32 0.6931472, %v8683_v53  ;;  %v4891_v1 = vmul.f32 0.6931472, %v8699_v5  ;;  %8718 = vlog2.f32 %v4842_v38  ;;  %v8703_v13 = vpop.eup %8702 }
 0x21a   : > { %v4676_v8 = vmax.f32 %v10868_v59, 0.0  ;;  %v4844_v25 = vadd.f32 1.0, %v8701_v48  ;;  %v4984_v22 = vpack.c.bf16 %v7587_v47, %v7586_v56  ;;  %v1596_v0 = vshrl.u32 %v16038_v41, %v10830_v36  ;;  %v8705_v7 = vpop.eup %8704 }
 0x21b   : > { %v4674_v3 = vmax.f32 %v10847_v21, 0.0  ;;  %v4931_v44 = vadd.f32 %v4887_v9, %v4675_v33  ;;  %v4933_v4 = vadd.f32 %v4891_v1, %v4677_v49  ;;  %v4983_v35 = vpack.c.bf16 %v7585_v62, %v7584_v58  ;;  %v16173_v9 = vld [vmem:[#allocation57_spill] sm:$0xff] }
 0x21c   : > { %v8707_v50 = vpop.eup %8706  ;;  %v4932_v14 = vadd.f32 %v4889_v24, %v4676_v8  ;;  %8720 = vlog2.f32 %v4844_v25  ;;  %v10997_v53 = vor.u32 %v1587_v54, %v10915_v63  ;;  %v16172_v28 = vmov 1326507024   ;;  %v16176_v24 = vld [vmem:[#allocation141_spill] sm:$0xff] }
 0x21d   : > { %v1599_v59 = vshrl.u32 %v16172_v28, %v10830_v36  ;;  %v8709_v34 = vpop.eup %8708  ;;  %v4930_v43 = vadd.f32 %v4885_v10, %v4674_v3  ;;  %v4846_v42 = vadd.f32 1.0, %v8703_v13  ;;  %v4847_v12 = vadd.f32 1.0, %v8707_v50  ;;  %7947 = vmatmul.mubr.bf16.gmra.mxu1 %v4983_v35 }
 0x21e   : > { %v1595_v21 = vshll.u32 %v16060_v55, %v16151_v20  ;;  %v7591_v52 = vadd.f32 -0.6931472, %v4933_v4  ;;  %7950 = vmatprep.mubr.bf16.mxu1 %v4984_v22  ;;  %v11003_v45 = vor.u32 %v1590_v16, %v1589_v60  ;;  %v11005_v40 = vor.u32 %v1593_v46, %v1592_v17  ;;  %v16174_v16 = vld [vmem:[#allocation43_spill] sm:$0xff] }
 0x21f   : > { %v1598_v63 = vshll.u32 %v16038_v41, %v16151_v20  ;;  %v8711_v6 = vpop.eup %8710  ;;  %v7589_v39 = vadd.f32 -0.6931472, %v4931_v44  ;;  %v4895_v54 = vmul.f32 0.6931472, %v8705_v7  ;;  %8722 = vlog2.f32 %v4847_v12  ;;  %v16175_v20 = vld [vmem:[#allocation56_spill] sm:$0xff] }
 0x220   : > { %v1597_v31 = vor.u32 %v1596_v0, %v1595_v21  ;;  %v8713_v37 = vpop.eup %8712  ;;  %v4893_v38 = vmul.f32 0.6931472, %v8709_v34  ;;  %v7590_v23 = vadd.f32 -0.6931472, %v4932_v14  ;;  %v4845_v47 = vadd.f32 1.0, %v8711_v6  ;;  %v16177_v34 = vld [vmem:[#allocation142_spill] sm:$0xff] }
 0x221   : > { %v1600_v2 = vor.u32 %v1599_v59, %v1598_v63  ;;  %v7588_v62 = vadd.f32 -0.6931472, %v4930_v43  ;;  %v4679_v5 = vmax.f32 %v16173_v9, 0.0  ;;  %v4897_v60 = vmul.f32 0.6931472, %v8713_v37 }
 0x222   : > { %8724 = vlog2.f32 %v4846_v42  ;;  %v4678_v17 = vmax.f32 %v16174_v16, 0.0  ;;  %v4986_v46 = vpack.c.bf16 %v7591_v52, %v7590_v23  ;;  %vm1604_vm14 = vcmp.lt.s32.totalorder %v16175_v20, 4 }
 0x223   : > { %8726 = vlog2.f32 %v4845_v47  ;;  %v8715_v56 = vpop.eup %8714  ;;  %v4935_v33 = vadd.f32 %v4895_v54, %v4679_v5  ;;  %v4680_v49 = vmax.f32 %v16176_v24, 0.0  ;;  %v4985_v48 = vpack.c.bf16 %v7589_v39, %v7588_v62  ;;  %v16178_v39 = vld [vmem:[#allocation137_spill] sm:$0xff] }
 0x224   : > { %v1610_v58 = vsel %vm1604_vm14, %v1597_v31, 920167782  ;;  %v8717_v10 = vpop.eup %8716  ;;  %v4934_v1 = vadd.f32 %v4893_v38, %v4678_v17  ;;  %v1321_v13 = vadd.s32 536870912, %v10984_v18  ;;  %vm1601_vm15 = vcmp.lt.s32.totalorder %v16175_v20, 1  ;;  %v16180_v38 = vld [vmem:[#allocation139_spill] sm:$0xff] }
 0x225   : > { %v1614_v8 = vsel %vm1604_vm14, %v1600_v2, 1326507024  ;;  %v4936_v25 = vadd.f32 %v4897_v60, %v4680_v49  ;;  %v4681_v22 = vmax.f32 %v10921_v19, 0.0  ;;  %v4899_v0 = vmul.f32 0.6931472, %v8717_v10  ;;  %7951 = vmatmul.mubr.bf16.gmra.mxu1 %v4985_v48  ;;  %v16181_v2 = vld [vmem:[#allocation140_spill] sm:$0xff] }
 0x226   : > { %vm1603_vm0 = vcmp.lt.s32.totalorder %v16175_v20, 3  ;;  %v8719_v7 = vpop.eup %8718  ;;  %7954 = vmatprep.mubr.bf16.mxu1 %v4986_v46  ;;  %v1577_v3 = vor.u32 8388608, %v10973_v26  ;;  %v1609_v44 = vsel %vm1601_vm15, %v10997_v53, %v11003_v45  ;;  %v1613_v19 = vsel %vm1601_vm15, %v11003_v45, %v11005_v40  ;;  %v16182_v46 = vld [vmem:[#allocation131_spill] sm:$0xff] }
 0x227   : > { %v1611_v4 = vsel %vm1603_vm0, %v11005_v40, %v1610_v58  ;;  %v7593_v35 = vadd.f32 -0.6931472, %v4935_v33  ;;  %v4903_v50 = vmul.f32 0.6931472, %v8715_v56  ;;  %v4937_v14 = vadd.f32 %v4899_v0, %v4681_v22  ;;  %v16185_v22 = vld [vmem:[#allocation138_spill] sm:$0xff] }
 0x228   : > { %v1615_v26 = vsel %vm1603_vm0, %v1597_v31, %v1614_v8  ;;  %v7592_v59 = vadd.f32 -0.6931472, %v4934_v1  ;;  %v4683_v43 = vmax.f32 %v16177_v34, 0.0  ;;  %v11036_v42 = vshrl.u32 %v1321_v13, 30  ;;  %v16183_v13 = vld [vmem:[#allocation122_spill] sm:$0xff] }
 0x229   : > { %vm1602_vm1 = vcmp.lt.s32.totalorder %v16175_v20, 2  ;;  %v8721_v12 = vpop.eup %8720  ;;  %v4901_v21 = vmul.f32 0.6931472, %v8719_v7  ;;  %v7594_v52 = vadd.f32 -0.6931472, %v4936_v25  ;;  %v16179_v54 = vsub.s32 4294967266, %v16178_v39 }
 0x22a   : > { %v7595_v63 = vadd.f32 -0.6931472, %v4937_v14  ;;  %v1612_v6 = vsel %vm1602_vm1, %v1609_v44, %v1611_v4  ;;  %v1534_v23 = vclz %v16180_v38  ;;  %v1616_v31 = vsel %vm1602_vm1, %v1613_v19, %v1615_v26 }
 0x22b   : > { %v1028_v37 = vadd.s32 127, %v16179_v54  ;;  %v11046_v47 = vshll.u32 %v1577_v3, 8  ;;  %v4682_v62 = vmax.f32 %v16181_v2, 0.0  ;;  %v4939_v9 = vadd.f32 %v4903_v50, %v4683_v43  ;;  %v16188_v2 = vld [vmem:[#allocation127_spill] sm:$0xff] }
 0x22c   : > { %v4987_v5 = vpack.c.bf16 %v7593_v35, %v7592_v59  ;;  %v4988_v60 = vpack.c.bf16 %v7595_v63, %v7594_v52  ;;  %v8723_v16 = vpop.eup %8722  ;;  %v4905_v17 = vmul.f32 0.6931472, %v8721_v12  ;;  %8728 = vsinq.f32 %v16182_v46 }
 0x22d   : > { %v11051_v56 = vmul.u32.u64.low %v11046_v47, %v1612_v6  ;;  %v11052_v33 = vmul.u32.u64.high %v11046_v47, %v1612_v6, %v11051_v56  ;;  %v4938_v24 = vadd.f32 %v4901_v21, %v4682_v62  ;;  %v1323_v49 = vshll.u32 %v11036_v42, 30 }
 0x22e   : > { %7955 = vmatmul.mubr.bf16.gmra.mxu1 %v4987_v5  ;;  %v11057_v48 = vmul.u32.u64.low %v11046_v47, %v1616_v31  ;;  %v11058_v58 = vmul.u32.u64.high %v11046_v47, %v1616_v31, %v11057_v48  ;;  %v4684_v1 = vmax.f32 %v10937_v27, 0.0  ;;  %v1024_v8 = vshll.u32 %v16183_v13, %v16178_v39  ;;  %v16189_v5 = vld [vmem:[#allocation15_spill] sm:$0xff] }
 0x22f   : > { %v8725_v10 = vpop.eup %8724  ;;  %7958 = vmatprep.mubr.bf16.mxu1 %v4988_v60  ;;  %v16184_v25 = vsub.s32 32, %v16178_v39  ;;  %v1029_v7 = vshll.u32 %v1028_v37, 23  ;;  %v7597_v44 = vadd.f32 -0.6931472, %v4939_v9  ;;  %v4911_v4 = vmul.f32 0.6931472, %v8723_v16 }
 0x230   : > { %v8727_v3 = vpop.eup %8726  ;;  %v7458_v19 = vadd.s32 4294967294, %v1534_v23  ;;  %v16186_v35 = vmov 683565275   ;;  %v4940_v14 = vadd.f32 %v4905_v17, %v4684_v1  ;;  %v4685_v26 = vmax.f32 %v10956_v51, 0.0  ;;  %v16190_v60 = vld [vmem:[#allocation55_spill] sm:$0xff]  ;;  %v16191_v16 = vld [vmem:[#allocation132_spill] sm:$0xff] }
 0x231   : > { %v1025_v0 = vshrl.u32 %v16185_v22, %v16184_v25  ;;  %v1585_v50 = vshrl.u32 %v16186_v35, %v10830_v36  ;;  %v4907_v27 = vmul.f32 0.6931472, %v8727_v3  ;;  %v1606_v59 = vsel %vm1604_vm14, %v11005_v40, 2102212464  ;;  %v16194_v48 = vld [vmem:[#allocation130_spill] sm:$0xff] }
 0x232   : > { %v7596_v34 = vadd.f32 -0.6931472, %v4938_v24  ;;  %v4909_v43 = vmul.f32 0.6931472, %v8725_v10  ;;  %v4687_v12 = vmax.f32 %v10945_v32, 0.0  ;;  %v11074_v21 = vsub.s32 %v10984_v18, %v1323_v49  ;;  %v16192_v24 = vld [vmem:[#allocation129_spill] sm:$0xff] }
 0x233   : > { %v4941_v52 = vadd.f32 %v4907_v27, %v4685_v26  ;;  %v1026_v63 = vor.u32 %v1025_v0, %v1024_v8  ;;  %v1030_v6 = vor.u32 4788187, %v1029_v7  ;;  %v1605_v36 = vsel %vm1601_vm15, %v1585_v50, %v10997_v53  ;;  %v16187_v53 = vld [vmem:[#allocation53_spill] sm:$0xff] }
 0x234   : > { %v4686_v51 = vmax.f32 %v10929_v57, 0.0  ;;  %v4943_v39 = vadd.f32 %v4911_v4, %v4687_v12  ;;  %v4989_v54 = vpack.c.bf16 %v7597_v44, %v7596_v34  ;;  %v1607_v40 = vsel %vm1603_vm0, %v11003_v45, %v1606_v59  ;;  %v16196_v44 = vld [vmem:[#allocation40_spill] sm:$0xff]  ;;  %v16197_v26 = vld [vmem:[#allocation41_spill] sm:$0xff] }
 0x235   : > { %v7598_v37 = vadd.f32 -0.6931472, %v4940_v14  ;;  %v7599_v32 = vadd.f32 -0.6931472, %v4941_v52  ;;  %vm7459_vm2 = vcmp.lt.s32.totalorder %v7458_v19, 0  ;;  %v1627_v18 = vadd.s32 1, %v11052_v33 }
 0x236   : > { %v4942_v38 = vadd.f32 %v4909_v43, %v4686_v51  ;;  %7959 = vmatmul.mubr.bf16.gmra.mxu1 %v4989_v54  ;;  %v1326_v23 = vsub.s32 0, %v11074_v21  ;;  %vm1626_vm4 = vc.u32 %v11058_v58, %v11051_v56  ;;  %v11088_v57 = vsub.s32 32, %v16187_v53  ;;  %v16198_v52 = vld [vmem:[#allocation54_spill] sm:$0xff] }
 0x237   : > { %v4990_v31 = vpack.c.bf16 %v7599_v32, %v7598_v37  ;;  %vm1148_vm5 = vcmp.lt.s32.totalorder %v16188_v2, 2  ;;  %v1031_v62 = vand.u32 2147483647, %v1030_v6  ;;  %v1608_v45 = vsel %vm1602_vm1, %v1605_v36, %v1607_v40  ;;  %v16199_v6 = vld [vmem:[#allocation134_spill] sm:$0xff] }
 0x238   : > { %v7601_v9 = vadd.f32 -0.6931472, %v4943_v39  ;;  %vm1146_vm6 = vweird.f32 %v16189_v5  ;;  %v1155_v17 = vsel %vm1148_vm5, %v16191_v16, %v16190_v60  ;;  %v11096_v46 = vsel %vm7459_vm2, 0, %v7458_v19  ;;  %v16204_v16 = vld [vmem:[#allocation52_spill] sm:$0xff] }
 0x239   : > { %7962 = vmatprep.mubr.bf16.mxu1 %v4990_v31  ;;  %vm946_vm7 = vcmp.eq.s32.totalorder %v16192_v24, 2  ;;  %v16195_v10 = vsel %vm10629_vm3, 0, %v16194_v48  ;;  %v1033_v13 = vcvt.s32.f32 %v1026_v63  ;;  %v1628_v20 = vsel %vm1626_vm4, %v1627_v18, %v11052_v33  ;;  %v11106_v8 = vpop.eup %8728 }
 0x23a   : > { %v11103_v1 = vand.u32 3, %v16195_v10  ;;  %v7600_v25 = vadd.f32 -0.6931472, %v4942_v38  ;;  %v7449_v22 = vmin.u32 %v1326_v23, %v11074_v21  ;;  %v1624_v0 = vmul.u32 %v11046_v47, %v1608_v45 }
 0x23b   : > { %v1390_v7 = vshrl.u32 %v16038_v41, %v11088_v57  ;;  %v11112_v3 = vsel %vm1146_vm6, nan, %v1155_v17  ;;  %vm953_vm8 = vcmp.lt.s32.totalorder %v16196_v44, 0  ;;  %v1034_v4 = vmul.f32 %v1033_v13, %v1031_v62  ;;  %v16205_v13 = vld [vmem:[#allocation135_spill] sm:$0xff] }
 0x23c   : > { %v1542_v19 = vsub.s32 4294967266, %v11096_v46  ;;  %v1393_v33 = vshrl.u32 %v16172_v28, %v11088_v57  ;;  %v4991_v50 = vpack.c.bf16 %v7601_v9, %v7600_v25  ;;  %v11118_v14 = vadd.s32 %v1628_v20, %v1624_v0  ;;  %v16206_v25 = vld [vmem:[#allocation123_spill] sm:$0xff] }
 0x23d   : > { %v15860_v27 = vand.u32 2147483647, %v16197_v26  ;;  %v1389_v47 = vshll.u32 %v16060_v55, %v16187_v53  ;;  %v1381_v59 = vshrl.u32 %v16061_v11, %v11088_v57  ;;  %v1384_v34 = vshrl.u32 %v16062_v61, %v11088_v57 }
 0x23e   : > { %v1387_v43 = vshrl.u32 %v16060_v55, %v11088_v57  ;;  %v1392_v12 = vshll.u32 %v16038_v41, %v16187_v53  ;;  %7963 = vmatmul.mubr.bf16.gmra.mxu1 %v4991_v50  ;;  %vm943_vm3 = vcmp.eq.s32.totalorder %v16192_v24, 0  ;;  %v944_v63 = vxor.u32 2147483648, %v16198_v52 }
 0x23f   : > { %v947_v36 = vxor.u32 2147483648, %v16199_v6  ;;  %vm1255_vm9 = vcmp.eq.s32.totalorder %v11103_v1, 2  ;;  %v16200_v51 = vand.u32 2147483647, %v16196_v44  ;;  %v1328_v54 = vclz %v7449_v22  ;;  %v16207_v22 = vld [vmem:[#allocation121_spill] sm:$0xff] }
 0x240   : > { %v1391_v40 = vor.u32 %v1390_v7, %v1389_v47  ;;  %vm1252_vm12 = vcmp.eq.s32.totalorder %v11103_v1, 0  ;;  %v1380_v37 = vshll.u32 %v16186_v35, %v16187_v53  ;;  %v1383_v32 = vshll.u32 %v16061_v11, %v16187_v53 }
 0x241   : > { %vm11137_vm11 = vcmp.le.f32.partialorder %v16200_v51, 0.7853982  ;;  %v1386_v18 = vshll.u32 %v16062_v61, %v16187_v53  ;;  %v1394_v38 = vor.u32 %v1393_v33, %v1392_v12  ;;  %v16203_v23 = vmov 0.0  }
 0x242   : > { %8002 = vmatprep.mubr.msk.bf16.mxu1 %vm8952_vm10, %v16203_v23  ;;  %v1035_v31 = vxor.u32 2147483648, %v1034_v4  ;;  %v1543_v2 = vadd.s32 127, %v1542_v19  ;;  %v1630_v62 = vadd.s32 536870912, %v11118_v14  ;;  %v1370_v45 = vand.u32 8388607, %v15860_v27 }
 0x243   : > { %vm942_vm13 = vcmp.lt.s32.totalorder %v16192_v24, 2  ;;  %v11154_v9 = vor.u32 %v1381_v59, %v1380_v37  ;;  %v11156_v5 = vor.u32 %v1384_v34, %v1383_v32  ;;  %v1388_v60 = vor.u32 %v1387_v43, %v1386_v18  ;;  %v11202_v37 = vpop.f32.mrf.mxu0 }
 0x244   : > { %vm1398_vm14 = vcmp.lt.s32.totalorder %v16204_v16, 4  ;;  %v948_v53 = vsel %vm946_vm7, %v947_v36, %v16198_v52  ;;  %vm1251_vm15 = vcmp.lt.s32.totalorder %v11103_v1, 2  ;;  %v1538_v17 = vsub.s32 32, %v11096_v46  ;;  %16208 = vst [vmem:[#allocation57_spill] sm:$0xff] %v11202_v37  ;;  %v16215_v1 = vld [vmem:[#allocation16_spill] sm:$0xff] }
 0x245   : > { %v7450_v49 = vadd.s32 4294967294, %v1328_v54  ;;  %v1404_v48 = vsel %vm1398_vm14, %v1391_v40, 920167782  ;;  %v1253_v10 = vxor.u32 2147483648, %v11106_v8  ;;  %v1256_v20 = vxor.u32 2147483648, %v16205_v13 }
 0x246   : > { %v1522_v0 = vadd.s32 %v16207_v22, %v16206_v25  ;;  %v1408_v7 = vsel %vm1398_vm14, %v1394_v38, 1326507024  ;;  %v1036_v19 = vsel %vm953_vm8, %v1035_v31, %v1034_v4  ;;  %v1544_v33 = vshll.u32 %v1543_v2, 23  ;;  %v16211_v25 = vld [vmem:[#allocation125_spill] sm:$0xff] }
 0x247   : > { %vm1395_vm0 = vcmp.lt.s32.totalorder %v16204_v16, 1  ;;  %vm1397_vm1 = vcmp.lt.s32.totalorder %v16204_v16, 3  ;;  %v11176_v50 = vshrl.u32 %v1630_v62, 30  ;;  %v1371_v47 = vor.u32 8388608, %v1370_v45  ;;  %v16210_v62 = vld [vmem:[#allocation59_spill] sm:$0xff] }
 0x248   : > { %v1403_v59 = vsel %vm1395_vm0, %v11154_v9, %v11156_v5  ;;  %v1405_v34 = vsel %vm1397_vm1, %v1388_v60, %v1404_v48  ;;  %v1540_v43 = vshrl.u32 %v1522_v0, %v1538_v17  ;;  %vm7451_vm2 = vcmp.lt.s32.totalorder %v7450_v49, 0  ;;  %v16213_v0 = vld [vmem:[#allocation120_spill] sm:$0xff] }
 0x249   : > { %v1407_v4 = vsel %vm1395_vm0, %v11156_v5, %v1388_v60  ;;  %v1409_v12 = vsel %vm1397_vm1, %v1391_v40, %v1408_v7  ;;  %v945_v52 = vsel %vm943_vm3, %v16199_v6, %v944_v63  ;;  %v1257_v36 = vsel %vm1255_vm9, %v1256_v20, %v11106_v8  ;;  %v16209_v40 = vld [vmem:[#allocation136_spill] sm:$0xff] }
 0x24a   : > { %v1039_v51 = vsel %vm11137_vm11, %v16196_v44, %v1036_v19  ;;  %vm1396_vm4 = vcmp.lt.s32.totalorder %v16204_v16, 2  ;;  %v1254_v54 = vsel %vm1252_vm12, %v16205_v13, %v1253_v10  ;;  %v1539_v32 = vshll.u32 %v16209_v40, %v11096_v46  ;;  %v7984_v46 = vpop.f32.mrf.mxu0 }
 0x24b   : > { %v1545_v63 = vor.u32 4788187, %v1544_v33  ;;  %v1406_v6 = vsel %vm1396_vm4, %v1403_v59, %v1405_v34  ;;  %v11208_v8 = vsel %vm7451_vm2, 0, %v7450_v49  ;;  %v1632_v18 = vshll.u32 %v11176_v50, 30 }
 0x24c   : > { %v1410_v38 = vsel %vm1396_vm4, %v1407_v4, %v1409_v12  ;;  %v11213_v31 = vshll.u32 %v1371_v47, 8  ;;  %v949_v2 = vsel %vm942_vm13, %v945_v52, %v948_v53  ;;  %v1037_v45 = vsub.s32 4, %v16210_v62  ;;  %v16216_v47 = vld [vmem:[#allocation38_spill] sm:$0xff]  ;;  %v16217_v12 = vld [vmem:[#allocation133_spill] sm:$0xff]  ;;  %v11270_v46 = vpop.f32.mrf.mxu0 }
 0x24d   : > { %8730 = vcosq.f32 %v1039_v51  ;;  %v1541_v17 = vor.u32 %v1540_v43, %v1539_v32  ;;  %v1258_v48 = vsel %vm1251_vm15, %v1254_v54, %v1257_v36  ;;  %v1546_v13 = vand.u32 2147483647, %v1545_v63  ;;  %16221 = vst [vmem:[#allocation142_spill] sm:$0xff] %v11270_v46 }
 0x24e   : > { %8732 = vsinq.f32 %v1039_v51  ;;  %v11221_v49 = vmul.u32.u64.low %v11213_v31, %v1406_v6  ;;  %v11222_v10 = vmul.u32.u64.high %v11213_v31, %v1406_v6, %v11221_v49  ;;  %v1336_v20 = vsub.s32 4294967266, %v11208_v8  ;;  %v16218_v51 = vld [vmem:[#allocation5_spill] sm:$0xff] }
 0x24f   : > { %v11227_v24 = vmul.u32.u64.low %v11213_v31, %v1410_v38  ;;  %v11228_v53 = vmul.u32.u64.high %v11213_v31, %v1410_v38, %v11227_v24  ;;  %v11231_v22 = vsub.s32 32, %v16211_v25  ;;  %v11234_v7 = vand.u32 31, %v16213_v0  ;;  %v7985_v0 = vpop.f32.mrf.mxu0 }
 0x250   : > { %vm940_vm5 = vweird.f32 %v16215_v1  ;;  %v11238_v19 = vsub.s32 %v11118_v14, %v1632_v18  ;;  %vm1249_vm6 = vweird.f32 %v16216_v47  ;;  %v1038_v59 = vsel %vm953_vm8, %v1037_v45, %v16210_v62 }
 0x251   : > { %16212 = vst [vmem:[#allocation43_spill] sm:$0xff] %v11231_v22  ;;  %16214 = vst [vmem:[#allocation56_spill] sm:$0xff] %v11234_v7  ;;  %v950_v33 = vsel %vm940_vm5, nan, %v949_v2  ;;  %v1548_v34 = vcvt.s32.f32 %v1541_v17  ;;  %v4146_v43 = vadd.f32 1.0, %v11112_v3  ;;  %v1259_v4 = vsel %vm1249_vm6, nan, %v1258_v48  ;;  %v16219_v3 = vld [vmem:[#allocation44_spill] sm:$0xff] }
 0x252   : > { %v1552_v52 = vsub.s32 4, %v16217_v12  ;;  %v1400_v36 = vsel %vm1398_vm14, %v1388_v60, 2102212464  ;;  %vm786_vm7 = vcmp.lt.f32.partialorder %v16218_v51, 10.0  ;;  %v1332_v54 = vsub.s32 32, %v11208_v8 }
 0x253   : > { %v1549_v14 = vmul.f32 %v1548_v34, %v1546_v13  ;;  %v1337_v40 = vadd.s32 127, %v1336_v20  ;;  %v1379_v32 = vshrl.u32 %v16186_v35, %v11088_v57  ;;  %v4144_v63 = vadd.f32 1.0, %v950_v33  ;;  %v16231_v13 = vld [vmem:[#allocation48_spill] sm:$0xff] }
 0x254   : > { %v1040_v6 = vsel %vm11137_vm11, 0, %v1038_v59  ;;  %vm1468_vm8 = vcmp.lt.s32.totalorder %v16219_v3, 0  ;;  %v1635_v18 = vsub.s32 0, %v11238_v19  ;;  %v4147_v38 = vadd.f32 1.0, %v1259_v4  ;;  %v16225_v59 = vld [vmem:[#allocation68_spill] sm:$0xff]  ;;  %v16226_v4 = vld [vmem:[#allocation13_spill] sm:$0xff] }
 0x255   : > { %v1316_v60 = vadd.s32 %v10788_v15, %v10814_v29  ;;  %v1399_v2 = vsel %vm1395_vm0, %v1379_v32, %v11154_v9  ;;  %v1401_v57 = vsel %vm1397_vm1, %v11156_v5, %v1400_v36  ;;  %v11265_v62 = vsub.s32 32, %v11234_v7 }
 0x256   : > { %v4178_v39 = vmul.f32 0.5, %v4146_v43  ;;  %v1553_v45 = vsel %vm1468_vm8, %v1552_v52, %v16217_v12  ;;  %v1421_v15 = vadd.s32 1, %v11222_v10  ;;  %v1550_v29 = vxor.u32 2147483648, %v1549_v14  ;;  %v16227_v12 = vld [vmem:[#allocation6_spill] sm:$0xff] }
 0x257   : > { %16220 = vst [vmem:[#allocation141_spill] sm:$0xff] %v11265_v62  ;;  %v1334_v17 = vshrl.u32 %v1316_v60, %v1332_v54  ;;  %v1338_v48 = vshll.u32 %v1337_v40, 23  ;;  %vm1420_vm3 = vc.u32 %v11228_v53, %v11221_v49  ;;  %v1044_v9 = vand.u32 3, %v1040_v6 }
 0x258   : > { %v16222_v5 = vand.u32 2147483647, %v16219_v3  ;;  %v7461_v20 = vmin.u32 %v1635_v18, %v11238_v19  ;;  %v1402_v24 = vsel %vm1396_vm4, %v1399_v2, %v1401_v57  ;;  %v4176_v1 = vmul.f32 0.5, %v4144_v63 }
 0x259   : > { %v4179_v33 = vmul.f32 0.5, %v4147_v38  ;;  %v1333_v47 = vshll.u32 %v11074_v21, %v11208_v8  ;;  %v11287_v34 = vsub.s32 32, %v16225_v59  ;;  %vm784_vm11 = vcmp.lt.f32.partialorder %v16226_v4, 10.0 }
 0x25a   : > { %vm11277_vm9 = vcmp.le.f32.partialorder %v16222_v5, 0.7853982  ;;  %v8731_v43 = vpop.eup %8730  ;;  %vm787_vm12 = vcmp.lt.f32.partialorder %v16227_v12, 10.0  ;;  %v1422_v16 = vsel %vm1420_vm3, %v1421_v15, %v11222_v10  ;;  %v1551_v54 = vsel %vm1468_vm8, %v1550_v29, %v1549_v14 }
 0x25b   : > { %v1555_v52 = vsel %vm11277_vm9, 0, %v1553_v45  ;;  %v8733_v36 = vpop.eup %8732  ;;  %v1335_v40 = vor.u32 %v1334_v17, %v1333_v47  ;;  %v1339_v32 = vor.u32 4788187, %v1338_v48  ;;  %v1418_v21 = vmul.u32 %v11213_v31, %v1402_v24 }
 0x25c   : > { %v11299_v8 = vsel %vm786_vm7, %v4178_v39, 0.0  ;;  %vm1046_vm13 = vcmp.eq.s32.totalorder %v1044_v9, 0  ;;  %vm1049_vm14 = vcmp.eq.s32.totalorder %v1044_v9, 2  ;;  %v1637_v63 = vclz %v7461_v20 }
 0x25d   : > { %16228 = vst [vmem:[#allocation137_spill] sm:$0xff] %v11299_v8  ;;  %v11301_v6 = vsel %vm784_vm11, %v4176_v1, 0.0  ;;  %v11303_v18 = vsel %vm787_vm12, %v4179_v33, 0.0  ;;  %vm1045_vm15 = vcmp.lt.s32.totalorder %v1044_v9, 2  ;;  %v11305_v10 = vadd.s32 %v1422_v16, %v1418_v21  ;;  %v16232_v21 = vld [vmem:[#allocation67_spill] sm:$0xff]  ;;  %v16235_v9 = vld [vmem:[#allocation42_spill] sm:$0xff] }
 0x25e   : > { %16229 = vst [vmem:[#allocation139_spill] sm:$0xff] %v11301_v6  ;;  %16230 = vst [vmem:[#allocation140_spill] sm:$0xff] %v11303_v18  ;;  %v1905_v14 = vshrl.u32 %v16038_v41, %v11287_v34  ;;  %v1047_v38 = vxor.u32 2147483648, %v8733_v36  ;;  %v1050_v60 = vxor.u32 2147483648, %v8731_v43  ;;  %v1554_v31 = vsel %vm11277_vm9, %v16219_v3, %v1551_v54 }
 0x25f   : > { %v11312_v51 = vand.u32 3, %v1555_v52  ;;  %v1340_v2 = vand.u32 2147483647, %v1339_v32  ;;  %v1342_v57 = vcvt.s32.f32 %v1335_v40  ;;  %v1904_v39 = vshll.u32 %v16060_v55, %v16225_v59 }
 0x260   : > { %v1908_v45 = vshrl.u32 %v16172_v28, %v11287_v34  ;;  %v7462_v15 = vadd.s32 4294967294, %v1637_v63  ;;  %v1896_v29 = vshrl.u32 %v16061_v11, %v11287_v34  ;;  %v1899_v17 = vshrl.u32 %v16062_v61, %v11287_v34 }
 0x261   : > { %v1902_v48 = vshrl.u32 %v16060_v55, %v11287_v34  ;;  %v1424_v5 = vadd.s32 536870912, %v11305_v10  ;;  %v15859_v20 = vand.u32 2147483647, %v16231_v13  ;;  %v1906_v24 = vor.u32 %v1905_v14, %v1904_v39 }
 0x262   : > { %v1907_v0 = vshll.u32 %v16038_v41, %v16225_v59  ;;  %v1051_v1 = vsel %vm1049_vm14, %v1050_v60, %v8733_v36  ;;  %v1895_v33 = vshll.u32 %v16186_v35, %v16225_v59  ;;  %v1898_v47 = vshll.u32 %v16061_v11, %v16225_v59 }
 0x263   : > { %v1901_v4 = vshll.u32 %v16062_v61, %v16225_v59  ;;  %v1048_v12 = vsel %vm1046_vm13, %v8731_v43, %v1047_v38  ;;  %8734 = vcosq.f32 %v1554_v31  ;;  %v1343_v52 = vmul.f32 %v1342_v57, %v1340_v2  ;;  %v16234_v38 = vld [vmem:[#allocation64_spill] sm:$0xff] }
 0x264   : > { %v1909_v16 = vor.u32 %v1908_v45, %v1907_v0  ;;  %v1897_v54 = vor.u32 %v1896_v29, %v1895_v33  ;;  %v1900_v40 = vor.u32 %v1899_v17, %v1898_v47  ;;  %vm1913_vm0 = vcmp.lt.s32.totalorder %v16232_v21, 4  ;;  %v16236_v33 = vld [vmem:[#allocation46_spill] sm:$0xff] }
 0x265   : > { %v1903_v32 = vor.u32 %v1902_v48, %v1901_v4  ;;  %vm7463_vm1 = vcmp.lt.s32.totalorder %v7462_v15, 0  ;;  %v11337_v36 = vshrl.u32 %v1424_v5, 30  ;;  %v1885_v63 = vand.u32 8388607, %v15859_v20 }
 0x266   : > { %v1919_v14 = vsel %vm1913_vm0, %v1906_v24, 920167782  ;;  %v11344_v59 = vsel %vm1045_vm15, %v1048_v12, %v1051_v1  ;;  %8736 = vsinq.f32 %v1554_v31  ;;  %v11348_v60 = vsub.s32 32, %v16234_v38 }
 0x267   : > { %16233 = vst [vmem:[#allocation131_spill] sm:$0xff] %v11337_v36  ;;  %v11352_v2 = vadd.s32 %v11051_v56, %v11058_v58  ;;  %vm1910_vm2 = vcmp.lt.s32.totalorder %v16232_v21, 1  ;;  %vm1912_vm4 = vcmp.lt.s32.totalorder %v16232_v21, 3  ;;  %v1923_v57 = vsel %vm1913_vm0, %v1909_v16, 1326507024 }
 0x268   : > { %vm1262_vm5 = vcmp.lt.s32.totalorder %v16235_v9, 0  ;;  %v1344_v39 = vxor.u32 2147483648, %v1343_v52  ;;  %v11359_v31 = vsel %vm7463_vm1, 0, %v7462_v15  ;;  %v1918_v45 = vsel %vm1910_vm2, %v1897_v54, %v1900_v40 }
 0x269   : > { %v1920_v29 = vsel %vm1912_vm4, %v1903_v32, %v1919_v14  ;;  %v1426_v56 = vshll.u32 %v11337_v36, 30  ;;  %v1886_v58 = vor.u32 8388608, %v1885_v63  ;;  %v1894_v17 = vshrl.u32 %v16186_v35, %v11287_v34 }
 0x26a   : > { %vm1911_vm6 = vcmp.lt.s32.totalorder %v16232_v21, 2  ;;  %v1922_v48 = vsel %vm1910_vm2, %v1900_v40, %v1903_v32  ;;  %v1924_v15 = vsel %vm1912_vm4, %v1906_v24, %v1923_v57  ;;  %v1699_v5 = vshrl.u32 %v16038_v41, %v11348_v60 }
 0x26b   : > { %v1702_v0 = vshrl.u32 %v16172_v28, %v11348_v60  ;;  %v1914_v1 = vsel %vm1910_vm2, %v1894_v17, %v1897_v54  ;;  %v1921_v34 = vsel %vm1911_vm6, %v1918_v45, %v1920_v29  ;;  %v1690_v4 = vshrl.u32 %v16061_v11, %v11348_v60 }
 0x26c   : > { %v1693_v24 = vshrl.u32 %v16062_v61, %v11348_v60  ;;  %v1696_v12 = vshrl.u32 %v16060_v55, %v11348_v60  ;;  %v1698_v16 = vshll.u32 %v16060_v55, %v16234_v38  ;;  %v1701_v54 = vshll.u32 %v16038_v41, %v16234_v38 }
 0x26d   : > { %v1915_v63 = vsel %vm1913_vm0, %v1903_v32, 2102212464  ;;  %v1925_v14 = vsel %vm1911_vm6, %v1922_v48, %v1924_v15  ;;  %v11396_v57 = vshll.u32 %v1886_v58, 8  ;;  %v1689_v45 = vshll.u32 %v16186_v35, %v16234_v38  ;;  %v16239_v48 = vld [vmem:[#allocation66_spill] sm:$0xff] }
 0x26e   : > { %v1692_v29 = vshll.u32 %v16061_v11, %v16234_v38  ;;  %v1695_v17 = vshll.u32 %v16062_v61, %v16234_v38  ;;  %v1700_v20 = vor.u32 %v1699_v5, %v1698_v16  ;;  %v1703_v27 = vor.u32 %v1702_v0, %v1701_v54  ;;  %v16240_v54 = vld [vmem:[#allocation63_spill] sm:$0xff] }
 0x26f   : > { %v11405_v43 = vmul.u32.u64.low %v11396_v57, %v1921_v34  ;;  %v11406_v47 = vmul.u32.u64.high %v11396_v57, %v1921_v34, %v11405_v43  ;;  %v16238_v32 = vand.u32 2147483647, %v16236_v33  ;;  %v11412_v15 = vsub.s32 32, %v16239_v48  ;;  %v16243_v33 = vld [vmem:[#allocation65_spill] sm:$0xff] }
 0x270   : > { %v11414_v25 = vpop.eup %8734  ;;  %v1916_v22 = vsel %vm1912_vm4, %v1900_v40, %v1915_v63  ;;  %v1691_v7 = vor.u32 %v1690_v4, %v1689_v45  ;;  %v1694_v38 = vor.u32 %v1693_v24, %v1692_v29  ;;  %v1697_v5 = vor.u32 %v1696_v12, %v1695_v17 }
 0x271   : > { %16237 = vst [vmem:[#allocation122_spill] sm:$0xff] %v11405_v43  ;;  %v1679_v58 = vand.u32 8388607, %v16238_v32  ;;  %v11420_v0 = vsel %vm1262_vm5, %v1344_v39, %v1343_v52  ;;  %v11424_v16 = vsub.s32 %v11305_v10, %v1426_v56  ;;  %vm1707_vm7 = vcmp.lt.s32.totalorder %v16240_v54, 4 }
 0x272   : > { %v11428_v32 = vmul.u32.u64.low %v11396_v57, %v1925_v14  ;;  %v11429_v62 = vmul.u32.u64.high %v11396_v57, %v1925_v14, %v11428_v32  ;;  %v1713_v40 = vsel %vm1707_vm7, %v1700_v20, 920167782  ;;  %v1717_v4 = vsel %vm1707_vm7, %v1703_v27, 1326507024 }
 0x273   : > { %v11435_v24 = vpop.eup %8736  ;;  %v1917_v52 = vsel %vm1911_vm6, %v1914_v1, %v1916_v22  ;;  %v1680_v39 = vor.u32 8388608, %v1679_v58  ;;  %vm1704_vm8 = vcmp.lt.s32.totalorder %v16240_v54, 1  ;;  %v2008_v10 = vshrl.u32 %v16038_v41, %v11412_v15  ;;  %v16241_v1 = vld [vmem:[#allocation47_spill] sm:$0xff] }
 0x274   : > { %vm1706_vm3 = vcmp.lt.s32.totalorder %v16240_v54, 3  ;;  %v1712_v56 = vsel %vm1704_vm8, %v1691_v7, %v1694_v38  ;;  %v1716_v12 = vsel %vm1704_vm8, %v1694_v38, %v1697_v5  ;;  %v2011_v27 = vshrl.u32 %v16172_v28, %v11412_v15 }
 0x275   : > { %v1714_v22 = vsel %vm1706_vm3, %v1697_v5, %v1713_v40  ;;  %v1718_v21 = vsel %vm1706_vm3, %v1700_v20, %v1717_v4  ;;  %v2007_v14 = vshll.u32 %v16060_v55, %v16239_v48  ;;  %v1999_v45 = vshrl.u32 %v16061_v11, %v11412_v15 }
 0x276   : > { %v2002_v29 = vshrl.u32 %v16062_v61, %v11412_v15  ;;  %v2005_v17 = vshrl.u32 %v16060_v55, %v11412_v15  ;;  %v2010_v58 = vshll.u32 %v16038_v41, %v16239_v48  ;;  %v1933_v32 = vmul.u32 %v11396_v57, %v1917_v52 }
 0x277   : > { %v1936_v20 = vadd.s32 1, %v11406_v47  ;;  %vm1705_vm9 = vcmp.lt.s32.totalorder %v16240_v54, 2  ;;  %v2009_v40 = vor.u32 %v2008_v10, %v2007_v14  ;;  %v1998_v4 = vshll.u32 %v16186_v35, %v16239_v48 }
 0x278   : > { %v2001_v34 = vshll.u32 %v16061_v11, %v16239_v48  ;;  %v2004_v63 = vshll.u32 %v16062_v61, %v16239_v48  ;;  %v2012_v37 = vor.u32 %v2011_v27, %v2010_v58  ;;  %v1715_v46 = vsel %vm1705_vm9, %v1712_v56, %v1714_v22  ;;  %v16245_v22 = vld [vmem:[#allocation62_spill] sm:$0xff] }
 0x279   : > { %v1719_v57 = vsel %vm1705_vm9, %v1716_v12, %v1718_v21  ;;  %v11477_v52 = vshll.u32 %v1680_v39, 8  ;;  %v16242_v10 = vand.u32 2147483647, %v16241_v1  ;;  %v11481_v6 = vor.u32 %v1999_v45, %v1998_v4 }
 0x27a   : > { %v11483_v8 = vor.u32 %v2002_v29, %v2001_v34  ;;  %v11485_v18 = vor.u32 %v2005_v17, %v2004_v63  ;;  %vm2016_vm11 = vcmp.lt.s32.totalorder %v16243_v33, 4  ;;  %vm1935_vm12 = vc.u32 %v11429_v62, %v11405_v43  ;;  %v16252_v43 = vld [vmem:[#allocation61_spill] sm:$0xff] }
 0x27b   : > { %v1988_v14 = vand.u32 8388607, %v16242_v10  ;;  %v1688_v48 = vshrl.u32 %v16186_v35, %v11348_v60  ;;  %v1709_v39 = vsel %vm1707_vm7, %v1697_v5, 2102212464  ;;  %v2022_v56 = vsel %vm2016_vm11, %v2009_v40, 920167782 }
 0x27c   : > { %v11497_v12 = vmul.u32.u64.low %v11477_v52, %v1719_v57  ;;  %v11498_v34 = vmul.u32.u64.high %v11477_v52, %v1719_v57, %v11497_v12  ;;  %v2026_v27 = vsel %vm2016_vm11, %v2012_v37, 1326507024  ;;  %v11503_v21 = vsub.s32 32, %v16245_v22 }
 0x27d   : > { %v11506_v63 = vmul.u32.u64.low %v11477_v52, %v1715_v46  ;;  %v11507_v45 = vmul.u32.u64.high %v11477_v52, %v1715_v46, %v11506_v63  ;;  %vm2013_vm13 = vcmp.lt.s32.totalorder %v16243_v33, 1  ;;  %vm2015_vm14 = vcmp.lt.s32.totalorder %v16243_v33, 3 }
 0x27e   : > { %16244 = vst [vmem:[#allocation138_spill] sm:$0xff] %v11498_v34  ;;  %v1937_v60 = vsel %vm1935_vm12, %v1936_v20, %v11406_v47  ;;  %v1989_v5 = vor.u32 8388608, %v1988_v14  ;;  %v2021_v37 = vsel %vm2013_vm13, %v11481_v6, %v11483_v8  ;;  %v2023_v29 = vsel %vm2015_vm14, %v11485_v18, %v2022_v56  ;;  %v16247_v56 = vld [vmem:[#allocation45_spill] sm:$0xff] }
 0x27f   : > { %16246 = vst [vmem:[#allocation53_spill] sm:$0xff] %v11506_v63  ;;  %v1708_v46 = vsel %vm1704_vm8, %v1688_v48, %v1691_v7  ;;  %v1710_v17 = vsel %vm1706_vm3, %v1694_v38, %v1709_v39  ;;  %v2025_v47 = vsel %vm2013_vm13, %v11483_v8, %v11485_v18  ;;  %v2027_v58 = vsel %vm2015_vm14, %v2009_v40, %v2026_v27 }
 0x280   : > { %v1642_v20 = vshll.u32 %v11238_v19, %v11359_v31  ;;  %v1645_v4 = vsub.s32 4294967266, %v11359_v31  ;;  %vm2014_vm15 = vcmp.lt.s32.totalorder %v16243_v33, 2  ;;  %v1805_v7 = vshrl.u32 %v16172_v28, %v11503_v21 }
 0x281   : > { %v1429_v38 = vsub.s32 0, %v11424_v16  ;;  %v11537_v57 = vadd.s32 %v1937_v60, %v1933_v32  ;;  %v2024_v10 = vsel %vm2014_vm15, %v2021_v37, %v2023_v29  ;;  %v1802_v40 = vshrl.u32 %v16038_v41, %v11503_v21 }
 0x282   : > { %v1711_v19 = vsel %vm1705_vm9, %v1708_v46, %v1710_v17  ;;  %v2028_v14 = vsel %vm2014_vm15, %v2025_v47, %v2027_v58  ;;  %v11547_v48 = vshll.u32 %v1989_v5, 8  ;;  %v1804_v39 = vshll.u32 %v16038_v41, %v16245_v22 }
 0x283   : > { %v1796_v12 = vshrl.u32 %v16062_v61, %v11503_v21  ;;  %v1799_v27 = vshrl.u32 %v16060_v55, %v11503_v21  ;;  %v1801_v54 = vshll.u32 %v16060_v55, %v16245_v22  ;;  %v1793_v5 = vshrl.u32 %v16061_v11, %v11503_v21 }
 0x284   : > { %v11559_v60 = vmul.u32.u64.low %v11547_v48, %v2024_v10  ;;  %v11560_v37 = vmul.u32.u64.high %v11547_v48, %v2024_v10, %v11559_v60  ;;  %v1806_v29 = vor.u32 %v1805_v7, %v1804_v39  ;;  %v16248_v46 = vand.u32 2147483647, %v16235_v9 }
 0x285   : > { %v1730_v47 = vadd.s32 1, %v11507_v45  ;;  %v1795_v58 = vshll.u32 %v16061_v11, %v16245_v22  ;;  %v1798_v10 = vshll.u32 %v16062_v61, %v16245_v22  ;;  %v1803_v32 = vor.u32 %v1802_v40, %v1801_v54 }
 0x286   : > { %vm11567_vm0 = vcmp.le.f32.partialorder %v16248_v46, 0.7853982  ;;  %vm1729_vm1 = vc.u32 %v11498_v34, %v11506_v63  ;;  %v11579_v7 = vmul.u32.u64.low %v11547_v48, %v2028_v14  ;;  %v11580_v39 = vmul.u32.u64.high %v11547_v48, %v2028_v14, %v11579_v7 }
 0x287   : > { %v1792_v46 = vshll.u32 %v16186_v35, %v16245_v22  ;;  %v16251_v1 = vand.u32 2147483647, %v16247_v56  ;;  %v11586_v23 = vor.u32 %v1796_v12, %v1795_v58  ;;  %v1800_v36 = vor.u32 %v1799_v27, %v1798_v10 }
 0x288   : > { %vm1810_vm2 = vcmp.lt.s32.totalorder %v16252_v43, 4  ;;  %v16253_v40 = vsub.s32 32, %v11359_v31  ;;  %v11592_v63 = vadd.s32 127, %v1645_v4  ;;  %v11599_v22 = vmin.u32 %v1429_v38, %v11424_v16 }
 0x289   : > { %v1782_v13 = vand.u32 8388607, %v16251_v1  ;;  %v11594_v34 = vor.u32 %v1793_v5, %v1792_v46  ;;  %v1820_v14 = vsel %vm1810_vm2, %v1806_v29, 1326507024  ;;  %v1939_v1 = vadd.s32 536870912, %v11537_v57  ;;  %v16254_v29 = vld [vmem:[#allocation84_spill] sm:$0xff] }
 0x28a   : > { %v1643_v54 = vshrl.u32 %v11352_v2, %v16253_v40  ;;  %v1731_v12 = vsel %vm1729_vm1, %v1730_v47, %v11507_v45  ;;  %v1816_v27 = vsel %vm1810_vm2, %v1803_v32, 920167782  ;;  %v1727_v31 = vmul.u32 %v11477_v52, %v1711_v19 }
 0x28b   : > { %v2018_v2 = vsel %vm2016_vm11, %v11485_v18, 2102212464  ;;  %vm1807_vm4 = vcmp.lt.s32.totalorder %v16252_v43, 1  ;;  %vm1809_vm6 = vcmp.lt.s32.totalorder %v16252_v43, 3  ;;  %v1997_v4 = vshrl.u32 %v16186_v35, %v11412_v15 }
 0x28c   : > { %v1783_v38 = vor.u32 8388608, %v1782_v13  ;;  %v1819_v45 = vsel %vm1807_vm4, %v11586_v23, %v1800_v36  ;;  %v1821_v5 = vsel %vm1809_vm6, %v1803_v32, %v1820_v14  ;;  %v11618_v52 = vadd.s32 %v1731_v12, %v1727_v31 }
 0x28d   : > { %v1815_v18 = vsel %vm1807_vm4, %v11594_v34, %v11586_v23  ;;  %v1817_v19 = vsel %vm1809_vm6, %v1800_v36, %v1816_v27  ;;  %v11627_v15 = vsub.s32 32, %v16254_v29  ;;  %v2017_v13 = vsel %vm2013_vm13, %v1997_v4, %v11481_v6 }
 0x28e   : > { %v2019_v32 = vsel %vm2015_vm14, %v11483_v8, %v2018_v2  ;;  %v2039_v47 = vadd.s32 1, %v11560_v37  ;;  %vm1808_vm7 = vcmp.lt.s32.totalorder %v16252_v43, 2  ;;  %v11641_v58 = vsel %vm11567_vm0, %v16235_v9, %v11420_v0  ;;  %v16256_v2 = vld [vmem:[#allocation58_spill] sm:$0xff] }
 0x28f   : > { %v11643_v10 = vor.u32 %v1643_v54, %v1642_v20  ;;  %vm2038_vm8 = vc.u32 %v11580_v39, %v11559_v60  ;;  %v1822_v6 = vsel %vm1808_vm7, %v1819_v45, %v1821_v5  ;;  %v1647_v8 = vshll.u32 %v11592_v63, 23 }
 0x290   : > { %v1431_v7 = vclz %v11599_v22  ;;  %v1818_v46 = vsel %vm1808_vm7, %v1815_v18, %v1817_v19  ;;  %v11653_v40 = vshll.u32 %v1783_v38, 8  ;;  %v11655_v14 = vshrl.u32 %v1939_v1, 30 }
 0x291   : > { %v1733_v0 = vadd.s32 536870912, %v11618_v52  ;;  %v2020_v20 = vsel %vm2014_vm15, %v2017_v13, %v2019_v32  ;;  %v2317_v54 = vshrl.u32 %v16038_v41, %v11627_v15  ;;  %v2040_v12 = vsel %vm2038_vm8, %v2039_v47, %v11560_v37 }
 0x292   : > { %16255 = vst [vmem:[#allocation127_spill] sm:$0xff] %v11655_v14  ;;  %v11664_v63 = vmul.u32.u64.low %v11653_v40, %v1822_v6  ;;  %v11665_v22 = vmul.u32.u64.high %v11653_v40, %v1822_v6, %v11664_v63  ;;  %v2320_v27 = vshrl.u32 %v16172_v28, %v11627_v15  ;;  %v2316_v4 = vshll.u32 %v16060_v55, %v16254_v29 }
 0x293   : > { %v11670_v1 = vmul.u32.u64.low %v11653_v40, %v1818_v46  ;;  %v11671_v31 = vmul.u32.u64.high %v11653_v40, %v1818_v46, %v11670_v1  ;;  %v2308_v37 = vshrl.u32 %v16061_v11, %v11627_v15  ;;  %v2311_v38 = vshrl.u32 %v16062_v61, %v11627_v15 }
 0x294   : > { %v2314_v45 = vshrl.u32 %v16060_v55, %v11627_v15  ;;  %v2319_v5 = vshll.u32 %v16038_v41, %v16254_v29  ;;  %v1941_v18 = vshll.u32 %v11655_v14, 30  ;;  %v11686_v19 = vshrl.u32 %v1733_v0, 30 }
 0x295   : > { %v2036_v13 = vmul.u32 %v11547_v48, %v2020_v20  ;;  %v2318_v32 = vor.u32 %v2317_v54, %v2316_v4  ;;  %v2307_v47 = vshll.u32 %v16186_v35, %v16254_v29  ;;  %v2310_v6 = vshll.u32 %v16061_v11, %v16254_v29 }
 0x296   : > { %v2313_v46 = vshll.u32 %v16062_v61, %v16254_v29  ;;  %v2321_v63 = vor.u32 %v2320_v27, %v2319_v5  ;;  %v1791_v56 = vshrl.u32 %v16186_v35, %v11503_v21  ;;  %v1812_v0 = vsel %vm1810_vm2, %v1800_v36, 2102212464  ;;  %v16258_v29 = vld [vmem:[#allocation79_spill] sm:$0xff] }
 0x297   : > { %v11695_v33 = vadd.s32 %v2040_v12, %v2036_v13  ;;  %v16257_v48 = vand.u32 2147483647, %v16256_v2  ;;  %vm1043_vm3 = vweird.f32 %v16196_v44  ;;  %v11704_v54 = vor.u32 %v2308_v37, %v2307_v47 }
 0x298   : > { %v11706_v4 = vor.u32 %v2311_v38, %v2310_v6  ;;  %v2315_v14 = vor.u32 %v2314_v45, %v2313_v46  ;;  %vm2325_vm9 = vcmp.lt.s32.totalorder %v16258_v29, 4  ;;  %v1648_v12 = vor.u32 4788187, %v1647_v8 }
 0x299   : > { %v2297_v20 = vand.u32 8388607, %v16257_v48  ;;  %v7454_v27 = vadd.s32 4294967294, %v1431_v7  ;;  %v1735_v5 = vshll.u32 %v11686_v19, 30  ;;  %v2331_v21 = vsel %vm2325_vm9, %v2318_v32, 920167782 }
 0x29a   : > { %v11713_v36 = vsub.s32 %v11537_v57, %v1941_v18  ;;  %v1811_v37 = vsel %vm1807_vm4, %v1791_v56, %v11594_v34  ;;  %v1813_v38 = vsel %vm1809_vm6, %v11586_v23, %v1812_v0  ;;  %v2335_v8 = vsel %vm2325_vm9, %v2321_v63, 1326507024 }
 0x29b   : > { %v2042_v7 = vadd.s32 536870912, %v11695_v33  ;;  %v1833_v45 = vadd.s32 1, %v11671_v31  ;;  %vm2322_vm11 = vcmp.lt.s32.totalorder %v16258_v29, 1  ;;  %vm2324_vm12 = vcmp.lt.s32.totalorder %v16258_v29, 3 }
 0x29c   : > { %vm1832_vm13 = vc.u32 %v11665_v22, %v11670_v1  ;;  %v2298_v57 = vor.u32 8388608, %v2297_v20  ;;  %v2330_v23 = vsel %vm2322_vm11, %v11704_v54, %v11706_v4  ;;  %v2332_v34 = vsel %vm2324_vm12, %v2315_v14, %v2331_v21 }
 0x29d   : > { %v11736_v56 = vsub.s32 %v11618_v52, %v1735_v5  ;;  %v1814_v18 = vsel %vm1808_vm7, %v1811_v37, %v1813_v38  ;;  %v2334_v13 = vsel %vm2322_vm11, %v11706_v4, %v2315_v14  ;;  %v2336_v47 = vsel %vm2324_vm12, %v2318_v32, %v2335_v8 }
 0x29e   : > { %8738 = vcosq.f32 %v11641_v58  ;;  %v1649_v6 = vand.u32 2147483647, %v1648_v12  ;;  %v1651_v46 = vcvt.s32.f32 %v11643_v10  ;;  %vm2323_vm14 = vcmp.lt.s32.totalorder %v16258_v29, 2 }
 0x29f   : > { %vm1561_vm15 = vcmp.eq.s32.totalorder %v11312_v51, 0  ;;  %vm1564_vm1 = vcmp.eq.s32.totalorder %v11312_v51, 2  ;;  %vm7455_vm2 = vcmp.lt.s32.totalorder %v7454_v27, 0  ;;  %v11750_v43 = vshrl.u32 %v2042_v7, 30 }
 0x2a0   : > { %v1834_v52 = vsel %vm1832_vm13, %v1833_v45, %v11671_v31  ;;  %v2333_v32 = vsel %vm2323_vm14, %v2330_v23, %v2332_v34  ;;  %v1944_v63 = vsub.s32 0, %v11713_v36  ;;  %v1830_v10 = vmul.u32 %v11653_v40, %v1814_v18 }
 0x2a1   : > { %v2337_v0 = vsel %vm2323_vm14, %v2334_v13, %v2336_v47  ;;  %v11762_v48 = vshll.u32 %v2298_v57, 8  ;;  %v1053_v20 = vsel %vm1043_vm3, nan, %v11344_v59  ;;  %v16259_v12 = vsub.s32 4, %v11036_v42  ;;  %v16263_v13 = vld [vmem:[#allocation17_spill] sm:$0xff] }
 0x2a2   : > { %8740 = vsinq.f32 %v11641_v58  ;;  %v1738_v5 = vsub.s32 0, %v11736_v56  ;;  %v1652_v40 = vmul.f32 %v1651_v46, %v1649_v6  ;;  %v11774_v21 = vadd.s32 %v1834_v52, %v1830_v10 }
 0x2a3   : > { %v1347_v31 = vsel %vm1262_vm5, %v16259_v12, %v11036_v42  ;;  %v11777_v37 = vmul.u32.u64.low %v11762_v48, %v2333_v32  ;;  %v11778_v38 = vmul.u32.u64.high %v11762_v48, %v2333_v32, %v11777_v37  ;;  %v1434_v44 = vsel %vm7455_vm2, 0, %v7454_v27 }
 0x2a4   : > { %v2044_v59 = vshll.u32 %v11750_v43, 30  ;;  %v11783_v8 = vmul.u32.u64.low %v11762_v48, %v2337_v0  ;;  %v11784_v7 = vmul.u32.u64.high %v11762_v48, %v2337_v0, %v11783_v8  ;;  %vm1560_vm5 = vcmp.lt.s32.totalorder %v11312_v51, 2 }
 0x2a5   : > { %v1562_v42 = vxor.u32 2147483648, %v11435_v24  ;;  %v1565_v58 = vxor.u32 2147483648, %v11414_v25  ;;  %v1655_v45 = vsub.s32 4, %v11176_v50  ;;  %v7473_v57 = vmin.u32 %v1944_v63, %v11713_v36 }
 0x2a6   : > { %v4145_v23 = vadd.f32 1.0, %v1053_v20  ;;  %v16260_v34 = vand.u32 2147483647, %v16150_v30  ;;  %vm1571_vm6 = vcmp.lt.s32.totalorder %v16150_v30, 0  ;;  %v7465_v18 = vmin.u32 %v1738_v5, %v11736_v56 }
 0x2a7   : > { %vm785_vm7 = vcmp.lt.f32.partialorder %v16263_v13, 10.0  ;;  %v1653_v47 = vxor.u32 2147483648, %v1652_v40  ;;  %v1439_v6 = vsub.s32 4294967266, %v1434_v44  ;;  %v1836_v46 = vadd.s32 536870912, %v11774_v21 }
 0x2a8   : > { %vm11793_vm4 = vcmp.le.f32.partialorder %v16260_v34, 0.7853982  ;;  %v2327_v52 = vsel %vm2325_vm9, %v2315_v14, 2102212464  ;;  %vm1558_vm8 = vweird.f32 %v16219_v3  ;;  %v1349_v32 = vsel %vm11567_vm0, 0, %v1347_v31 }
 0x2a9   : > { %v1435_v63 = vsub.s32 32, %v1434_v44  ;;  %v11807_v10 = vsub.s32 %v11695_v33, %v2044_v59  ;;  %v2306_v0 = vshrl.u32 %v16186_v35, %v11627_v15  ;;  %v1563_v20 = vsel %vm1561_vm15, %v11414_v25, %v1562_v42 }
 0x2aa   : > { %v1566_v14 = vsel %vm1564_vm1, %v1565_v58, %v11435_v24  ;;  %v1656_v17 = vsel %vm1571_vm6, %v1655_v45, %v11176_v50  ;;  %v1946_v12 = vclz %v7473_v57  ;;  %v1419_v33 = vadd.s32 %v11221_v49, %v11228_v53 }
 0x2ab   : > { %v1740_v31 = vclz %v7465_v18  ;;  %v2326_v15 = vsel %vm2322_vm11, %v2306_v0, %v11704_v54  ;;  %v2328_v25 = vsel %vm2324_vm12, %v11706_v4, %v2327_v52  ;;  %v1654_v24 = vsel %vm1571_vm6, %v1653_v47, %v1652_v40  ;;  %v11833_v8 = vpop.eup %8738  ;;  %v16264_v52 = vld [vmem:[#allocation72_spill] sm:$0xff] }
 0x2ac   : > { %v1440_v5 = vadd.s32 127, %v1439_v6  ;;  %v11830_v59 = vshrl.u32 %v1836_v46, 30  ;;  %v2348_v50 = vadd.s32 1, %v11778_v38  ;;  %v4177_v49 = vmul.f32 0.5, %v4145_v23 }
 0x2ad   : > { %v1437_v53 = vshrl.u32 %v1419_v33, %v1435_v63  ;;  %v2047_v42 = vsub.s32 0, %v11807_v10  ;;  %vm2347_vm0 = vc.u32 %v11784_v7, %v11777_v37  ;;  %v11838_v54 = vand.u32 3, %v1349_v32 }
 0x2ae   : > { %v1658_v4 = vsel %vm11793_vm4, 0, %v1656_v17  ;;  %v7474_v40 = vadd.s32 4294967294, %v1946_v12  ;;  %v2329_v58 = vsel %vm2323_vm14, %v2326_v15, %v2328_v25  ;;  %v1567_v45 = vsel %vm1560_vm5, %v1563_v20, %v1566_v14  ;;  %v16266_v15 = vld [vmem:[#allocation50_spill] sm:$0xff] }
 0x2af   : > { %v1657_v57 = vsel %vm11793_vm4, %v16150_v30, %v1654_v24  ;;  %v1436_v23 = vshll.u32 %v11424_v16, %v1434_v44  ;;  %v7466_v34 = vadd.s32 4294967294, %v1740_v31  ;;  %v8741_v18 = vpop.eup %8740  ;;  %v1441_v47 = vshll.u32 %v1440_v5, 23 }
 0x2b0   : > { %v1838_v6 = vshll.u32 %v11830_v59, 30  ;;  %v2349_v46 = vsel %vm2347_vm0, %v2348_v50, %v11778_v38  ;;  %v11853_v32 = vsub.s32 32, %v16264_v52  ;;  %v11857_v51 = vsel %vm785_vm7, %v4177_v49, 0.0 }
 0x2b1   : > { %16265 = vst [vmem:[#allocation15_spill] sm:$0xff] %v11857_v51  ;;  %v1438_v29 = vor.u32 %v1437_v53, %v1436_v23  ;;  %v7477_v27 = vmin.u32 %v2047_v42, %v11807_v10  ;;  %v2345_v63 = vmul.u32 %v11762_v48, %v2329_v58  ;;  %v11863_v16 = vsel %vm1558_vm8, nan, %v1567_v45 }
 0x2b2   : > { %v1359_v44 = vxor.u32 2147483648, %v11833_v8  ;;  %v11866_v0 = vand.u32 3, %v1658_v4  ;;  %vm7475_vm3 = vcmp.lt.s32.totalorder %v7474_v40, 0  ;;  %vm1355_vm9 = vcmp.eq.s32.totalorder %v11838_v54, 0 }
 0x2b3   : > { %v1356_v38 = vxor.u32 2147483648, %v8741_v18  ;;  %vm1358_vm11 = vcmp.eq.s32.totalorder %v11838_v54, 2  ;;  %8742 = vcosq.f32 %v1657_v57  ;;  %vm7467_vm12 = vcmp.lt.s32.totalorder %v7466_v34, 0 }
 0x2b4   : > { %v11870_v13 = vadd.s32 %v2349_v46, %v2345_v63  ;;  %8744 = vsinq.f32 %v1657_v57  ;;  %v1442_v48 = vor.u32 4788187, %v1441_v47  ;;  %v11873_v3 = vsub.s32 %v11774_v21, %v1838_v6 }
 0x2b5   : > { %v2111_v20 = vshrl.u32 %v16038_v41, %v11853_v32  ;;  %v1445_v14 = vcvt.s32.f32 %v1438_v29  ;;  %v11877_v17 = vsel %vm7475_vm3, 0, %v7474_v40  ;;  %v2049_v12 = vclz %v7477_v27 }
 0x2b6   : > { %v2114_v33 = vshrl.u32 %v16172_v28, %v11853_v32  ;;  %v11881_v31 = vsel %vm7467_vm12, 0, %v7466_v34  ;;  %v15878_v25 = vand.u32 2147483647, %v16266_v15  ;;  %v2102_v24 = vshrl.u32 %v16061_v11, %v11853_v32 }
 0x2b7   : > { %v2110_v21 = vshll.u32 %v16060_v55, %v16264_v52  ;;  %v2351_v5 = vadd.s32 536870912, %v11870_v13  ;;  %v2105_v50 = vshrl.u32 %v16062_v61, %v11853_v32  ;;  %v2108_v49 = vshrl.u32 %v16060_v55, %v11853_v32 }
 0x2b8   : > { %v2113_v53 = vshll.u32 %v16038_v41, %v16264_v52  ;;  %vm1354_vm13 = vcmp.lt.s32.totalorder %v11838_v54, 2  ;;  %v1443_v42 = vand.u32 2147483647, %v1442_v48  ;;  %v1841_v4 = vsub.s32 0, %v11873_v3 }
 0x2b9   : > { %v2101_v40 = vshll.u32 %v16186_v35, %v16264_v52  ;;  %v2112_v58 = vor.u32 %v2111_v20, %v2110_v21  ;;  %v7478_v45 = vadd.s32 4294967294, %v2049_v12  ;;  %v2104_v57 = vshll.u32 %v16061_v11, %v16264_v52  ;;  %v16268_v20 = vld [vmem:[#allocation71_spill] sm:$0xff] }
 0x2ba   : > { %v2107_v23 = vshll.u32 %v16062_v61, %v16264_v52  ;;  %v2115_v34 = vor.u32 %v2114_v33, %v2113_v53  ;;  %v1954_v47 = vsub.s32 4294967266, %v11877_v17  ;;  %v1748_v6 = vsub.s32 4294967266, %v11881_v31 }
 0x2bb   : > { %v2091_v46 = vand.u32 8388607, %v15878_v25  ;;  %v11907_v29 = vor.u32 %v2102_v24, %v2101_v40  ;;  %v11909_v27 = vshrl.u32 %v2351_v5, 30  ;;  %v11911_v63 = vor.u32 %v2105_v50, %v2104_v57 }
 0x2bc   : > { %v2109_v48 = vor.u32 %v2108_v49, %v2107_v23  ;;  %vm2119_vm14 = vcmp.lt.s32.totalorder %v16268_v20, 4  ;;  %v1357_v52 = vsel %vm1355_vm9, %v11833_v8, %v1356_v38  ;;  %v1360_v12 = vsel %vm1358_vm11, %v1359_v44, %v8741_v18 }
 0x2bd   : > { %16267 = vst [vmem:[#allocation55_spill] sm:$0xff] %v11909_v27  ;;  %v7469_v33 = vmin.u32 %v1841_v4, %v11873_v3  ;;  %v2125_v24 = vsel %vm2119_vm14, %v2112_v58, 920167782  ;;  %v1446_v21 = vmul.f32 %v1445_v14, %v1443_v42  ;;  %v1950_v5 = vsub.s32 32, %v11877_v17 }
 0x2be   : > { %vm7479_vm15 = vcmp.lt.s32.totalorder %v7478_v45, 0  ;;  %v2129_v50 = vsel %vm2119_vm14, %v2115_v34, 1326507024  ;;  %vm1352_vm1 = vweird.f32 %v16235_v9  ;;  %vm1365_vm2 = vcmp.lt.s32.totalorder %v16197_v26, 0 }
 0x2bf   : > { %v1955_v8 = vadd.s32 127, %v1954_v47  ;;  %v1749_v38 = vadd.s32 127, %v1748_v6  ;;  %vm2116_vm5 = vcmp.lt.s32.totalorder %v16268_v20, 1  ;;  %vm2118_vm4 = vcmp.lt.s32.totalorder %v16268_v20, 3 }
 0x2c0   : > { %v2353_v18 = vshll.u32 %v11909_v27, 30  ;;  %v2092_v44 = vor.u32 8388608, %v2091_v46  ;;  %v2124_v14 = vsel %vm2116_vm5, %v11907_v29, %v11911_v63  ;;  %v2126_v49 = vsel %vm2118_vm4, %v2109_v48, %v2125_v24  ;;  %v8743_v53 = vpop.eup %8742  ;;  %v16272_v46 = vld [vmem:[#allocation122_spill] sm:$0xff] }
 0x2c1   : > { %v11936_v42 = vsel %vm7479_vm15, 0, %v7478_v45  ;;  %v1843_v4 = vclz %v7469_v33  ;;  %v2128_v40 = vsel %vm2116_vm5, %v11911_v63, %v2109_v48  ;;  %v2130_v57 = vsel %vm2118_vm4, %v2112_v58, %v2129_v50  ;;  %v8745_v23 = vpop.eup %8744 }
 0x2c2   : > { %v1361_v34 = vsel %vm1354_vm13, %v1357_v52, %v1360_v12  ;;  %vm1664_vm6 = vcmp.eq.s32.totalorder %v11866_v0, 0  ;;  %v16269_v47 = vand.u32 2147483647, %v16197_v26  ;;  %v1447_v45 = vxor.u32 2147483648, %v1446_v21 }
 0x2c3   : > { %vm2117_vm8 = vcmp.lt.s32.totalorder %v16268_v20, 2  ;;  %v1934_v33 = vadd.s32 %v16272_v46, %v11429_v62  ;;  %v1956_v24 = vshll.u32 %v1955_v8, 23  ;;  %v1744_v58 = vsub.s32 32, %v11881_v31  ;;  %v16273_v62 = vld [vmem:[#allocation138_spill] sm:$0xff]  ;;  %v16274_v8 = vld [vmem:[#allocation53_spill] sm:$0xff] }
 0x2c4   : > { %vm11948_vm7 = vcmp.le.f32.partialorder %v16269_v47, 0.7853982  ;;  %v2127_v54 = vsel %vm2117_vm8, %v2124_v14, %v2126_v49  ;;  %v2057_v52 = vsub.s32 4294967266, %v11936_v42  ;;  %v11960_v12 = vsub.s32 %v11870_v13, %v2353_v18 }
 0x2c5   : > { %v2131_v50 = vsel %vm2117_vm8, %v2128_v40, %v2130_v57  ;;  %v11964_v47 = vshll.u32 %v2092_v44, 8  ;;  %vm1667_vm0 = vcmp.eq.s32.totalorder %v11866_v0, 2  ;;  %v1952_v25 = vshrl.u32 %v1934_v33, %v1950_v5 }
 0x2c6   : > { %v1728_v46 = vadd.s32 %v16274_v8, %v16273_v62  ;;  %v1750_v15 = vshll.u32 %v1749_v38, 23  ;;  %v7470_v51 = vadd.s32 4294967294, %v1843_v4  ;;  %v1665_v27 = vxor.u32 2147483648, %v8745_v23 }
 0x2c7   : > { %v1951_v14 = vshll.u32 %v11713_v36, %v11877_v17  ;;  %v11972_v13 = vmul.u32.u64.low %v11964_v47, %v2127_v54  ;;  %v11973_v18 = vmul.u32.u64.high %v11964_v47, %v2127_v54, %v11972_v13  ;;  %v1957_v49 = vor.u32 4788187, %v1956_v24 }
 0x2c8   : > { %v1746_v44 = vshrl.u32 %v1728_v46, %v1744_v58  ;;  %v11977_v40 = vmul.u32.u64.low %v11964_v47, %v2131_v50  ;;  %v11978_v57 = vmul.u32.u64.high %v11964_v47, %v2131_v50, %v11977_v40  ;;  %v1362_v5 = vsel %vm1352_vm1, nan, %v1361_v34 }
 0x2c9   : > { %v1448_v38 = vsel %vm1365_vm2, %v1447_v45, %v1446_v21  ;;  %v2058_v4 = vadd.s32 127, %v2057_v52  ;;  %v2356_v36 = vsub.s32 0, %v11960_v12  ;;  %v1953_v17 = vor.u32 %v1952_v25, %v1951_v14 }
 0x2ca   : > { %v1745_v33 = vshll.u32 %v11736_v56, %v11881_v31  ;;  %v1751_v54 = vor.u32 4788187, %v1750_v15  ;;  %vm7471_vm3 = vcmp.lt.s32.totalorder %v7470_v51, 0  ;;  %v1666_v24 = vsel %vm1664_vm6, %v8743_v53, %v1665_v27 }
 0x2cb   : > { %v1668_v58 = vxor.u32 2147483648, %v8743_v53  ;;  %v2053_v50 = vsub.s32 32, %v11936_v42  ;;  %v2121_v9 = vsel %vm2119_vm14, %v2109_v48, 2102212464  ;;  %v11995_v21 = vsel %vm11948_vm7, %v16197_v26, %v1448_v38  ;;  %v8366_v38 = vld [vmem:[%s15636_s5 + $0x2e8] ss:$52 sps:$4 sm:$0xff]  }
 0x2cc   : > { %v1958_v25 = vand.u32 2147483647, %v1957_v49  ;;  %v1747_v34 = vor.u32 %v1746_v44, %v1745_v33  ;;  %v2100_v56 = vshrl.u32 %v16186_v35, %v11853_v32  ;;  %v2037_v31 = vadd.s32 %v11559_v60, %v11580_v39  ;;  %7987 = vmatpush3.bf16.msra.mxu1 %v8366_v38 }
 0x2cd   : > { %v2059_v15 = vshll.u32 %v2058_v4, 23  ;;  %v12001_v27 = vsel %vm7471_vm3, 0, %v7470_v51  ;;  %v7489_v53 = vmin.u32 %v2356_v36, %v11960_v12  ;;  %v1960_v45 = vcvt.s32.f32 %v1953_v17  ;;  %v16275_v36 = vld [vmem:[#allocation131_spill] sm:$0xff] }
 0x2ce   : > { %v1752_v48 = vand.u32 2147483647, %v1751_v54  ;;  %v2120_v52 = vsel %vm2116_vm5, %v2100_v56, %v11907_v29  ;;  %v2122_v62 = vsel %vm2118_vm4, %v11911_v63, %v2121_v9  ;;  %v1669_v32 = vsel %vm1667_vm0, %v1668_v58, %v8745_v23  ;;  %v16276_v54 = vld [vmem:[#allocation127_spill] sm:$0xff] }
 0x2cf   : > { %8746 = vcosq.f32 %v11995_v21  ;;  %v2055_v60 = vshrl.u32 %v2037_v31, %v2053_v50  ;;  %v2142_v39 = vadd.s32 1, %v11973_v18  ;;  %v1961_v51 = vmul.f32 %v1960_v45, %v1958_v25  ;;  %v16278_v31 = vld [vmem:[#allocation48_spill] sm:$0xff] }
 0x2d0   : > { %v1754_v8 = vcvt.s32.f32 %v1747_v34  ;;  %v1851_v46 = vsub.s32 4294967266, %v12001_v27  ;;  %vm2141_vm9 = vc.u32 %v11978_v57, %v11972_v13  ;;  %v2054_v29 = vshll.u32 %v11807_v10, %v11936_v42 }
 0x2d1   : > { %v2060_v14 = vor.u32 4788187, %v2059_v15  ;;  %v2358_v63 = vclz %v7489_v53  ;;  %v2123_v23 = vsel %vm2117_vm8, %v2120_v52, %v2122_v62  ;;  %v4150_v49 = vadd.f32 1.0, %v11863_v16  ;;  %v16279_v52 = vld [vmem:[#allocation46_spill] sm:$0xff] }
 0x2d2   : > { %v4148_v44 = vadd.f32 1.0, %v1362_v5  ;;  %vm1663_vm11 = vcmp.lt.s32.totalorder %v11866_v0, 2  ;;  %v1755_v40 = vmul.f32 %v1754_v8, %v1752_v48  ;;  %v1449_v17 = vsub.s32 4, %v16275_v36 }
 0x2d3   : > { %v1670_v4 = vsel %vm1663_vm11, %v1666_v24, %v1669_v32  ;;  %v2056_v33 = vor.u32 %v2055_v60, %v2054_v29  ;;  %v2143_v10 = vsel %vm2141_vm9, %v2142_v39, %v11973_v18  ;;  %v1962_v42 = vxor.u32 2147483648, %v1961_v51 }
 0x2d4   : > { %v1964_v20 = vsub.s32 4, %v16276_v54  ;;  %v1852_v58 = vadd.s32 127, %v1851_v46  ;;  %v2139_v16 = vmul.u32 %v11964_v47, %v2123_v23  ;;  %vm1661_vm12 = vweird.f32 %v16150_v30 }
 0x2d5   : > { %v2061_v0 = vand.u32 2147483647, %v2060_v14  ;;  %v1847_v5 = vsub.s32 32, %v12001_v27  ;;  %v7490_v50 = vadd.s32 4294967294, %v2358_v63  ;;  %v16277_v9 = vmov 0.0  }
 0x2d6   : > { %7988 = vmatprep.subr.bf16.mxu1 %v16277_v9  ;;  %v12033_v24 = vmul.f32 0.5, %v4150_v49  ;;  %v12035_v25 = vmul.f32 0.5, %v4148_v44  ;;  %v1756_v18 = vxor.u32 2147483648, %v1755_v40  ;;  %v12037_v34 = vadd.s32 %v2143_v10, %v2139_v16  ;;  %v16287_v10 = vld [vmem:[#allocation47_spill] sm:$0xff] }
 0x2d7   : > { %v1671_v56 = vsel %vm1661_vm12, nan, %v1670_v4  ;;  %vm1880_vm13 = vcmp.lt.s32.totalorder %v16278_v31, 0  ;;  %v2063_v47 = vcvt.s32.f32 %v2056_v33  ;;  %v1831_v30 = vadd.s32 %v11670_v1, %v11665_v22 }
 0x2d8   : > { %v1450_v15 = vsel %vm1365_vm2, %v1449_v17, %v16275_v36  ;;  %v1963_v53 = vsel %vm1880_vm13, %v1962_v42, %v1961_v51  ;;  %v1965_v45 = vsel %vm1880_vm13, %v1964_v20, %v16276_v54  ;;  %v1853_v48 = vshll.u32 %v1852_v58, 23 }
 0x2d9   : > { %vm1674_vm14 = vcmp.lt.s32.totalorder %v16279_v52, 0  ;;  %v2064_v62 = vmul.f32 %v2063_v47, %v2061_v0  ;;  %v1849_v32 = vshrl.u32 %v1831_v30, %v1847_v5  ;;  %vm7491_vm15 = vcmp.lt.s32.totalorder %v7490_v50, 0 }
 0x2da   : > { %v12047_v60 = vadd.f32 1.0, %v1671_v56  ;;  %v16280_v39 = vand.u32 2147483647, %v16278_v31  ;;  %v1757_v22 = vsel %vm1674_vm14, %v1756_v18, %v1755_v40  ;;  %v2145_v1 = vadd.s32 536870912, %v12037_v34  ;;  %v16286_v40 = vld [vmem:[#allocation74_spill] sm:$0xff]  ;;  %v16291_v56 = vld [vmem:[#allocation51_spill] sm:$0xff] }
 0x2db   : > { %v1452_v51 = vsel %vm11948_vm7, 0, %v1450_v15  ;;  %v1848_v14 = vshll.u32 %v11873_v3, %v12001_v27  ;;  %v16283_v23 = vand.u32 2147483647, %v16279_v52  ;;  %v1854_v6 = vor.u32 4788187, %v1853_v48 }
 0x2dc   : > { %vm12051_vm1 = vcmp.le.f32.partialorder %v16280_v39, 0.7853982  ;;  %v12067_v63 = vpop.eup %8746  ;;  %v12075_v44 = vsel %vm7491_vm15, 0, %v7490_v50  ;;  %v12078_v38 = vsub.s32 32, %v16286_v40  ;;  %8748 = vsinq.f32 %v11995_v21 }
 0x2dd   : > { %v1966_v46 = vsel %vm12051_vm1, %v16278_v31, %v1963_v53  ;;  %v1967_v29 = vsel %vm12051_vm1, 0, %v1965_v45  ;;  %vm12071_vm2 = vcmp.le.f32.partialorder %v16283_v23, 0.7853982  ;;  %v2065_v27 = vxor.u32 2147483648, %v2064_v62 }
 0x2de   : > { %v1760_v3 = vsel %vm12071_vm2, %v16279_v52, %v1757_v22  ;;  %v1850_v4 = vor.u32 %v1849_v32, %v1848_v14  ;;  %v12084_v36 = vand.u32 3, %v1452_v51  ;;  %8750 = vcosq.f32 %v1966_v46 }
 0x2df   : > { %v12086_v17 = vand.u32 3, %v1967_v29  ;;  %v12088_v33 = vshrl.u32 %v2145_v1, 30  ;;  %8752 = vsinq.f32 %v1966_v46  ;;  %v16288_v42 = vand.u32 2147483647, %v16287_v10 }
 0x2e0   : > { %vm1983_vm4 = vcmp.lt.s32.totalorder %v16287_v10, 0  ;;  %v2366_v21 = vsub.s32 4294967266, %v12075_v44  ;;  %v1462_v20 = vxor.u32 2147483648, %v12067_v63  ;;  %8754 = vcosq.f32 %v1760_v3 }
 0x2e1   : > { %vm12092_vm5 = vcmp.le.f32.partialorder %v16288_v42, 0.7853982  ;;  %v1855_v58 = vand.u32 2147483647, %v1854_v6  ;;  %v2420_v16 = vshrl.u32 %v16038_v41, %v12078_v38  ;;  %8756 = vsinq.f32 %v1760_v3 }
 0x2e2   : > { %v2066_v0 = vsel %vm1983_vm4, %v2065_v27, %v2064_v62  ;;  %v1857_v5 = vcvt.s32.f32 %v1850_v4  ;;  %v2423_v50 = vshrl.u32 %v16172_v28, %v12078_v38  ;;  %v2147_v18 = vshll.u32 %v12088_v33, 30 }
 0x2e3   : > { %v2393_v47 = vand.u32 2147483647, %v16291_v56  ;;  %v2411_v30 = vshrl.u32 %v16061_v11, %v12078_v38  ;;  %v2419_v15 = vshll.u32 %v16060_v55, %v16286_v40  ;;  %v2367_v53 = vadd.s32 127, %v2366_v21 }
 0x2e4   : > { %v2414_v45 = vshrl.u32 %v16062_v61, %v12078_v38  ;;  %v2417_v48 = vshrl.u32 %v16060_v55, %v12078_v38  ;;  %v2422_v62 = vshll.u32 %v16038_v41, %v16286_v40  ;;  %v2069_v32 = vsel %vm12092_vm5, %v16287_v10, %v2066_v0 }
 0x2e5   : > { %v1858_v39 = vmul.f32 %v1857_v5, %v1855_v58  ;;  %v2410_v8 = vshll.u32 %v16186_v35, %v16286_v40  ;;  %v2421_v22 = vor.u32 %v2420_v16, %v2419_v15  ;;  %v2362_v1 = vsub.s32 32, %v12075_v44 }
 0x2e6   : > { %v2413_v51 = vshll.u32 %v16061_v11, %v16286_v40  ;;  %v2416_v46 = vshll.u32 %v16062_v61, %v16286_v40  ;;  %v2424_v29 = vor.u32 %v2423_v50, %v2422_v62  ;;  %v2346_v14 = vadd.s32 %v11777_v37, %v11784_v7  ;;  %v16292_v40 = vld [vmem:[#allocation73_spill] sm:$0xff] }
 0x2e7   : > { %v12130_v23 = vsub.s32 %v12037_v34, %v2147_v18  ;;  %v2400_v6 = vand.u32 8388607, %v2393_v47  ;;  %v12134_v3 = vor.u32 %v2411_v30, %v2410_v8  ;;  %vm1461_vm6 = vcmp.eq.s32.totalorder %v12084_v36, 2  ;;  %v16293_v34 = vld [vmem:[#allocation45_spill] sm:$0xff] }
 0x2e8   : > { %v2368_v27 = vshll.u32 %v2367_v53, 23  ;;  %v12137_v4 = vor.u32 %v2414_v45, %v2413_v51  ;;  %v12139_v42 = vor.u32 %v2417_v48, %v2416_v46  ;;  %vm2428_vm7 = vcmp.lt.s32.totalorder %v16292_v40, 4 }
 0x2e9   : > { %v1758_v21 = vsub.s32 4, %v11686_v19  ;;  %8758 = vcosq.f32 %v2069_v32  ;;  %v1859_v37 = vxor.u32 2147483648, %v1858_v39  ;;  %v2434_v7 = vsel %vm2428_vm7, %v2421_v22, 920167782  ;;  %v8749_v0 = vpop.eup %8748 }
 0x2ea   : > { %8760 = vsinq.f32 %v2069_v32  ;;  %vm1777_vm8 = vcmp.lt.s32.totalorder %v16293_v34, 0  ;;  %v2364_v58 = vshrl.u32 %v2346_v14, %v2362_v1  ;;  %v2438_v16 = vsel %vm2428_vm7, %v2424_v29, 1326507024 }
 0x2eb   : > { %vm1458_vm0 = vcmp.eq.s32.totalorder %v12084_v36, 0  ;;  %v2363_v5 = vshll.u32 %v11960_v12, %v12075_v44  ;;  %v2150_v50 = vsub.s32 0, %v12130_v23  ;;  %vm2425_vm3 = vcmp.lt.s32.totalorder %v16292_v40, 1  ;;  %v8751_v18 = vpop.eup %8750 }
 0x2ec   : > { %vm2427_vm9 = vcmp.lt.s32.totalorder %v16292_v40, 3  ;;  %v2369_v30 = vor.u32 4788187, %v2368_v27  ;;  %v2401_v15 = vor.u32 8388608, %v2400_v6  ;;  %v2433_v53 = vsel %vm2425_vm3, %v12134_v3, %v12137_v4  ;;  %v8753_v48 = vpop.eup %8752 }
 0x2ed   : > { %v2435_v45 = vsel %vm2427_vm9, %v12139_v42, %v2434_v7  ;;  %v2067_v12 = vsub.s32 4, %v11750_v43  ;;  %v1860_v44 = vsel %vm1777_vm8, %v1859_v37, %v1858_v39  ;;  %v2437_v62 = vsel %vm2425_vm3, %v12137_v4, %v12139_v42  ;;  %v8755_v8 = vpop.eup %8754 }
 0x2ee   : > { %v2439_v32 = vsel %vm2427_vm9, %v2421_v22, %v2438_v16  ;;  %vm1457_vm11 = vcmp.lt.s32.totalorder %v12084_v36, 2  ;;  %v1459_v1 = vxor.u32 2147483648, %v8749_v0  ;;  %v1759_v51 = vsel %vm1674_vm14, %v1758_v21, %v11686_v19  ;;  %v8757_v39 = vpop.eup %8756 }
 0x2ef   : > { %v2365_v46 = vor.u32 %v2364_v58, %v2363_v5  ;;  %vm2426_vm12 = vcmp.lt.s32.totalorder %v16292_v40, 2  ;;  %vm1976_vm13 = vcmp.eq.s32.totalorder %v12086_v17, 2  ;;  %v16294_v29 = vand.u32 2147483647, %v16293_v34 }
 0x2f0   : > { %v7481_v22 = vmin.u32 %v2150_v50, %v12130_v23  ;;  %v2436_v6 = vsel %vm2426_vm12, %v2433_v53, %v2435_v45  ;;  %v2370_v27 = vand.u32 2147483647, %v2369_v30  ;;  %v2440_v21 = vsel %vm2426_vm12, %v2437_v62, %v2439_v32 }
 0x2f1   : > { %vm12178_vm15 = vcmp.le.f32.partialorder %v16294_v29, 0.7853982  ;;  %v12190_v37 = vshll.u32 %v2401_v15, 8  ;;  %v1463_v7 = vsel %vm1461_vm6, %v1462_v20, %v8749_v0  ;;  %v1977_v58 = vxor.u32 2147483648, %v8751_v18 }
 0x2f2   : > { %v1863_v19 = vsel %vm12178_vm15, %v16293_v34, %v1860_v44  ;;  %v1761_v16 = vsel %vm12071_vm2, 0, %v1759_v51  ;;  %v2068_v5 = vsel %vm1983_vm4, %v2067_v12, %v11750_v43  ;;  %v1974_v50 = vxor.u32 2147483648, %v8753_v48 }
 0x2f3   : > { %v2372_v30 = vcvt.s32.f32 %v2365_v46  ;;  %v12202_v53 = vmul.u32.u64.low %v12190_v37, %v2436_v6  ;;  %v12203_v45 = vmul.u32.u64.high %v12190_v37, %v2436_v6, %v12202_v53  ;;  %vm1455_vm14 = vweird.f32 %v16197_v26 }
 0x2f4   : > { %8762 = vcosq.f32 %v1863_v19  ;;  %v2152_v15 = vclz %v7481_v22  ;;  %v12208_v20 = vmul.u32.u64.low %v12190_v37, %v2440_v21  ;;  %v12209_v0 = vmul.u32.u64.high %v12190_v37, %v2440_v21, %v12208_v20 }
 0x2f5   : > { %v1460_v49 = vsel %vm1458_vm0, %v12067_v63, %v1459_v1  ;;  %v1765_v43 = vand.u32 3, %v1761_v16  ;;  %8764 = vsinq.f32 %v1863_v19  ;;  %v2373_v12 = vmul.f32 %v2372_v30, %v2370_v27 }
 0x2f6   : > { %vm1970_vm1 = vweird.f32 %v16278_v31  ;;  %vm1973_vm2 = vcmp.eq.s32.totalorder %v12086_v17, 0  ;;  %v1978_v44 = vsel %vm1976_vm13, %v1977_v58, %v8753_v48  ;;  %v2070_v62 = vsel %vm12092_vm5, 0, %v2068_v5  ;;  %v8759_v32 = vpop.eup %8758  ;;  %v16298_v5 = vld [vmem:[#allocation8_spill] sm:$0xff] }
 0x2f7   : > { %v1975_v51 = vsel %vm1973_vm2, %v8751_v18, %v1974_v50  ;;  %v1768_v46 = vxor.u32 2147483648, %v8757_v39  ;;  %v1771_v29 = vxor.u32 2147483648, %v8755_v8  ;;  %v2430_v63 = vsel %vm2428_vm7, %v12139_v42, 2102212464  ;;  %v8761_v1 = vpop.eup %8760 }
 0x2f8   : > { %v1464_v22 = vsel %vm1457_vm11, %v1460_v49, %v1463_v7  ;;  %vm1972_vm4 = vcmp.lt.s32.totalorder %v12086_v17, 2  ;;  %v7482_v6 = vadd.s32 4294967294, %v2152_v15  ;;  %v2409_v48 = vshrl.u32 %v16186_v35, %v12078_v38  ;;  %v16297_v17 = vld [vmem:[#allocation10_spill] sm:$0xff] }
 0x2f9   : > { %vm1767_vm6 = vcmp.eq.s32.totalorder %v1765_v43, 0  ;;  %vm1770_vm5 = vcmp.eq.s32.totalorder %v1765_v43, 2  ;;  %v2074_v54 = vand.u32 3, %v2070_v62  ;;  %v2374_v18 = vxor.u32 2147483648, %v2373_v12 }
 0x2fa   : > { %v1979_v19 = vsel %vm1972_vm4, %v1975_v51, %v1978_v44  ;;  %v1861_v27 = vsub.s32 4, %v11830_v59  ;;  %v2429_v42 = vsel %vm2425_vm3, %v2409_v48, %v12134_v3  ;;  %v2431_v36 = vsel %vm2427_vm9, %v12137_v4, %v2430_v63 }
 0x2fb   : > { %vm790_vm7 = vcmp.lt.f32.partialorder %v16297_v17, 10.0  ;;  %v1769_v21 = vsel %vm1767_vm6, %v8755_v8, %v1768_v46  ;;  %v1772_v7 = vsel %vm1770_vm5, %v1771_v29, %v8757_v39  ;;  %vm2292_vm0 = vcmp.lt.s32.totalorder %v16256_v2, 0  ;;  %v16299_v39 = vld [vmem:[#allocation9_spill] sm:$0xff]  ;;  %v16303_v29 = vld [vmem:[#allocation55_spill] sm:$0xff] }
 0x2fc   : > { %v2451_v38 = vadd.s32 1, %v12203_v45  ;;  %v2077_v58 = vxor.u32 2147483648, %v8761_v1  ;;  %v2080_v16 = vxor.u32 2147483648, %v8759_v32  ;;  %vm7483_vm11 = vcmp.lt.s32.totalorder %v7482_v6, 0 }
 0x2fd   : > { %vm2450_vm13 = vc.u32 %v12209_v0, %v12202_v53  ;;  %vm788_vm3 = vcmp.lt.f32.partialorder %v16298_v5, 10.0  ;;  %v1465_v3 = vsel %vm1455_vm14, nan, %v1464_v22  ;;  %vm1766_vm9 = vcmp.lt.s32.totalorder %v1765_v43, 2  ;;  %v12262_v43 = vpop.f32.mrf.mxu1  ;;  %v16304_v22 = vld [vmem:[#allocation7_spill] sm:$0xff] }
 0x2fe   : > { %v2375_v4 = vsel %vm2292_vm0, %v2374_v18, %v2373_v12  ;;  %v2432_v8 = vsel %vm2426_vm12, %v2429_v42, %v2431_v36  ;;  %vm791_vm2 = vcmp.lt.f32.partialorder %v16299_v39, 10.0  ;;  %v1980_v50 = vsel %vm1970_vm1, nan, %v1979_v19 }
 0x2ff   : > { %vm2076_vm4 = vcmp.eq.s32.totalorder %v2074_v54, 0  ;;  %vm2079_vm6 = vcmp.eq.s32.totalorder %v2074_v54, 2  ;;  %v1862_v30 = vsel %vm1777_vm8, %v1861_v27, %v11830_v59  ;;  %v1773_v26 = vsel %vm1766_vm9, %v1769_v21, %v1772_v7 }
 0x300   : > { %v16300_v15 = vand.u32 2147483647, %v16256_v2  ;;  %v12259_v40 = vsel %vm7483_vm11, 0, %v7482_v6  ;;  %v2452_v49 = vsel %vm2450_vm13, %v2451_v38, %v12203_v45  ;;  %v2078_v31 = vsel %vm2076_vm4, %v8759_v32, %v2077_v58  ;;  %v16305_v38 = vld [vmem:[#allocation18_spill] sm:$0xff] }
 0x301   : > { %v2081_v12 = vsel %vm2079_vm6, %v2080_v16, %v8761_v1  ;;  %v2448_v59 = vmul.u32 %v12190_v37, %v2432_v8  ;;  %v8763_v62 = vpop.eup %8762  ;;  %v4183_v51 = vmul.f32 0.5, %v12047_v60  ;;  %vm1764_vm8 = vweird.f32 %v16279_v52  ;;  %v5096_v60 = vpop.f32.mrf.mxu1 }
 0x302   : > { %vm12255_vm14 = vcmp.le.f32.partialorder %v16300_v15, 0.7853982  ;;  %v1864_v46 = vsel %vm12178_vm15, 0, %v1862_v30  ;;  %v2376_v45 = vsub.s32 4, %v16303_v29  ;;  %v8765_v63 = vpop.eup %8764  ;;  %vm789_vm12 = vcmp.lt.f32.partialorder %v16304_v22, 10.0  ;;  %v16306_v30 = vld [vmem:[#allocation12_spill] sm:$0xff] }
 0x303   : > { %v2378_v44 = vsel %vm12255_vm14, %v16256_v2, %v2375_v4  ;;  %v1774_v32 = vsel %vm1764_vm8, nan, %v1773_v26  ;;  %vm2075_vm1 = vcmp.lt.s32.totalorder %v2074_v54, 2  ;;  %v2160_v1 = vsub.s32 4294967266, %v12259_v40  ;;  %v7937_v16 = vpop.f32.mrf.mxu1 }
 0x304   : > { %v12275_v6 = vadd.s32 %v2452_v49, %v2448_v59  ;;  %v4149_v37 = vadd.f32 1.0, %v1465_v3  ;;  %v4154_v48 = vadd.f32 1.0, %v1980_v50  ;;  %v2082_v18 = vsel %vm2075_vm1, %v2078_v31, %v2081_v12  ;;  %v12315_v31 = vld [vmem:[%s15635_s4 + $0x2] ss:$0 sm:$0xff] }
 0x305   : > { %8766 = vcosq.f32 %v2378_v44  ;;  %v12280_v52 = vsel %vm790_vm7, %v12033_v24, 0.0  ;;  %vm2073_vm15 = vweird.f32 %v16287_v10  ;;  %v1868_v14 = vand.u32 3, %v1864_v46  ;;  %v5099_v12 = vpop.f32.mrf.mxu1 }
 0x306   : > { %8768 = vsinq.f32 %v2378_v44  ;;  %v4152_v19 = vadd.f32 1.0, %v1774_v32  ;;  %v1871_v54 = vxor.u32 2147483648, %v8765_v63  ;;  %v1874_v27 = vxor.u32 2147483648, %v8763_v62 }
 0x307   : > { %v2377_v42 = vsel %vm2292_vm0, %v2376_v45, %v16303_v29  ;;  %v12289_v36 = vsel %vm788_vm3, %v12035_v25, 0.0  ;;  %v2083_v21 = vsel %vm2073_vm15, nan, %v2082_v18  ;;  %v2161_v17 = vadd.s32 127, %v2160_v1 }
 0x308   : > { %v2454_v24 = vadd.s32 536870912, %v12275_v6  ;;  %v12294_v10 = vsel %vm791_vm2, %v4183_v51, 0.0  ;;  %v4181_v7 = vmul.f32 0.5, %v4149_v37  ;;  %vm794_vm5 = vcmp.lt.f32.partialorder %v16305_v38, 10.0 }
 0x309   : > { %v4186_v58 = vmul.f32 0.5, %v4154_v48  ;;  %vm1870_vm7 = vcmp.eq.s32.totalorder %v1868_v14, 0  ;;  %vm1873_vm0 = vcmp.eq.s32.totalorder %v1868_v14, 2  ;;  %v2379_v5 = vsel %vm12255_vm14, 0, %v2377_v42 }
 0x30a   : > { %v2156_v25 = vsub.s32 32, %v12259_v40  ;;  %v4184_v3 = vmul.f32 0.5, %v4152_v19  ;;  %v4155_v4 = vadd.f32 1.0, %v2083_v21  ;;  %v1872_v8 = vsel %vm1870_vm7, %v8763_v62, %v1871_v54  ;;  %v16308_v62 = vld [vmem:[#allocation70_spill] sm:$0xff]  ;;  %v16309_v21 = vld [vmem:[#allocation140_spill] sm:$0xff] }
 0x30b   : > { %v1875_v50 = vsel %vm1873_vm0, %v1874_v27, %v8765_v63  ;;  %vm792_vm11 = vcmp.lt.f32.partialorder %v16306_v30, 10.0  ;;  %v2140_v39 = vadd.s32 %v11972_v13, %v11978_v57  ;;  %v2162_v26 = vshll.u32 %v2161_v17, 23  ;;  %v16307_v57 = vld [vmem:[#allocation49_spill] sm:$0xff] }
 0x30c   : > { %v12303_v15 = vshrl.u32 %v2454_v24, 30  ;;  %v12307_v49 = vsel %vm789_vm12, %v4181_v7, 0.0  ;;  %vm1867_vm13 = vweird.f32 %v16293_v34  ;;  %vm1869_vm3 = vcmp.lt.s32.totalorder %v1868_v14, 2 }
 0x30d   : > { %v12310_v20 = vand.u32 3, %v2379_v5  ;;  %v1876_v44 = vsel %vm1869_vm3, %v1872_v8, %v1875_v50  ;;  %v2158_v13 = vshrl.u32 %v2140_v39, %v2156_v25  ;;  %v15882_v59 = vand.u32 2147483647, %v16307_v57  ;;  %v16311_v5 = vld [vmem:[#allocation137_spill] sm:$0xff]  ;;  %v16315_v39 = vld [vmem:[#allocation50_spill] sm:$0xff] }
 0x30e   : > { %v12319_v51 = vsub.s32 32, %v16308_v62  ;;  %v5108_v46 = vadd.f32 %v7937_v16, %v12315_v31  ;;  %v12324_v29 = vsel %vm794_vm5, %v4186_v58, 0.0  ;;  %v12328_v45 = vsel %vm792_vm11, %v4184_v3, 0.0  ;;  %v16313_v3 = vld [vmem:[#allocation15_spill] sm:$0xff] }
 0x30f   : > { %v12330_v63 = vmul.f32 0.5, %v4155_v4  ;;  %v2157_v22 = vshll.u32 %v12130_v23, %v12259_v40  ;;  %v2163_v32 = vor.u32 4788187, %v2162_v26  ;;  %v2170_v1 = vsub.s32 4, %v12088_v33 }
 0x310   : > { %v2456_v37 = vshll.u32 %v12303_v15, 30  ;;  %v5105_v48 = vadd.f32 %v12262_v43, %v12315_v31  ;;  %v5100_v18 = vadd.f32 %v12315_v31, %v5099_v12  ;;  %v12341_v14 = vsel %vm1867_vm13, nan, %v1876_v44  ;;  %v16316_v44 = vld [vmem:[#allocation139_spill] sm:$0xff] }
 0x311   : > { %vm2385_vm9 = vcmp.eq.s32.totalorder %v12310_v20, 0  ;;  %vm2388_vm2 = vcmp.eq.s32.totalorder %v12310_v20, 2  ;;  %v2204_v23 = vshll.u32 %v16186_v35, %v16308_v62  ;;  %v2159_v19 = vor.u32 %v2158_v13, %v2157_v22 }
 0x312   : > { %v8767_v40 = vpop.eup %8766  ;;  %v12349_v54 = vand.u32 8388607, %v15882_v59  ;;  %v2207_v43 = vshll.u32 %v16061_v11, %v16308_v62  ;;  %v2214_v34 = vshrl.u32 %v16038_v41, %v12319_v51  ;;  %v5097_v42 = vadd.f32 %v12315_v31, %v5096_v60 }
 0x313   : > { %v8769_v27 = vpop.eup %8768  ;;  %v12357_v17 = vmul.f32 %v5108_v46, %v16309_v21  ;;  %v2205_v24 = vshrl.u32 %v16061_v11, %v12319_v51  ;;  %v2217_v7 = vshrl.u32 %v16172_v28, %v12319_v51  ;;  %vm2384_vm4 = vcmp.lt.s32.totalorder %v12310_v20, 2  ;;  %v16318_v46 = vld [vmem:[#allocation142_spill] sm:$0xff] }
 0x314   : > { %v2164_v38 = vand.u32 2147483647, %v2163_v32  ;;  %v12365_v58 = vsub.s32 %v12275_v6, %v2456_v37  ;;  %v2208_v16 = vshrl.u32 %v16062_v61, %v12319_v51  ;;  %v2213_v60 = vshll.u32 %v16060_v55, %v16308_v62 }
 0x315   : > { %16310 = vst [vmem:[#allocation132_spill] sm:$0xff] %v12357_v17  ;;  %v12372_v25 = vmul.f32 %v5105_v48, %v16311_v5  ;;  %v12375_v4 = vmul.f32 %v5100_v18, %v16313_v3  ;;  %v2211_v8 = vshrl.u32 %v16060_v55, %v12319_v51  ;;  %v2216_v50 = vshll.u32 %v16038_v41, %v16308_v62  ;;  %v16320_v5 = vld [vmem:[#allocation14_spill] sm:$0xff] }
 0x316   : > { %v2386_v6 = vxor.u32 2147483648, %v8769_v27  ;;  %v2389_v30 = vxor.u32 2147483648, %v8767_v40  ;;  %vm2086_vm6 = vcmp.lt.s32.totalorder %v16315_v39, 0  ;;  %v2166_v26 = vcvt.s32.f32 %v2159_v19 }
 0x317   : > { %16312 = vst [vmem:[#allocation129_spill] sm:$0xff] %v12372_v25  ;;  %16314 = vst [vmem:[#allocation128_spill] sm:$0xff] %v12375_v4  ;;  %vm2395_vm14 = vcmp.lt.s32.totalorder %v16291_v56, 0  ;;  %v2215_v12 = vor.u32 %v2214_v34, %v2213_v60  ;;  %v12384_v13 = vmul.f32 %v5097_v42, %v16316_v44  ;;  %v5400_v22 = vmul.f32 %v16318_v46, %v12357_v17  ;;  %v16319_v42 = vld [vmem:[#allocation57_spill] sm:$0xff] }
 0x318   : > { %vm2382_vm8 = vweird.f32 %v16256_v2  ;;  %v2210_v32 = vshll.u32 %v16062_v61, %v16308_v62  ;;  %v2218_v37 = vor.u32 %v2217_v7, %v2216_v50  ;;  %v2167_v48 = vmul.f32 %v2166_v26, %v2164_v38  ;;  %v16324_v38 = vld [vmem:[#allocation69_spill] sm:$0xff] }
 0x319   : > { %16317 = vst [vmem:[#allocation130_spill] sm:$0xff] %v12384_v13  ;;  %v2459_v18 = vsub.s32 0, %v12365_v58  ;;  %v12392_v21 = vor.u32 %v2205_v24, %v2204_v23  ;;  %v12394_v19 = vor.u32 %v2208_v16, %v2207_v43  ;;  %v5398_v34 = vmul.f32 %v16318_v46, %v12375_v4  ;;  %v7940_v23 = vpop.f32.mrf.mxu1 }
 0x31a   : > { %v5399_v60 = vmul.f32 %v16319_v42, %v12372_v25  ;;  %vm795_vm12 = vcmp.lt.f32.partialorder %v16320_v5, 10.0  ;;  %v16321_v3 = vand.u32 2147483647, %v16315_v39  ;;  %v2212_v7 = vor.u32 %v2211_v8, %v2210_v32  ;;  %v16347_v25 = vld [vmem:[#allocation89_spill] sm:$0xff] }
 0x31b   : > { %vm2222_vm15 = vcmp.lt.s32.totalorder %v16324_v38, 4  ;;  %v2387_v43 = vsel %vm2385_vm9, %v8767_v40, %v2386_v6  ;;  %v2390_v24 = vsel %vm2388_vm2, %v2389_v30, %v8769_v27  ;;  %v2195_v16 = vor.u32 8388608, %v12349_v54  ;;  %v16325_v27 = vld [vmem:[#allocation11_spill] sm:$0xff] }
 0x31c   : > { %vm12403_vm1 = vcmp.le.f32.partialorder %v16321_v3, 0.7853982  ;;  %v2228_v50 = vsel %vm2222_vm15, %v2215_v12, 920167782  ;;  %v5397_v26 = vmul.f32 %v16319_v42, %v12384_v13  ;;  %v5436_v44 = vadd.f32 %v5400_v22, %v5399_v60 }
 0x31d   : > { %v2479_v8 = vsub.s32 4, %v12303_v15  ;;  %v2232_v32 = vsel %vm2222_vm15, %v2218_v37, 1326507024  ;;  %v2168_v3 = vxor.u32 2147483648, %v2167_v48  ;;  %v7493_v40 = vmin.u32 %v2459_v18, %v12365_v58  ;;  %v5112_v37 = vpop.f32.mrf.mxu1 }
 0x31e   : > { %vm2219_vm5 = vcmp.lt.s32.totalorder %v16324_v38, 1  ;;  %vm2221_vm7 = vcmp.lt.s32.totalorder %v16324_v38, 3  ;;  %v5429_v54 = vadd.f32 %v5398_v34, %v5397_v26  ;;  %vm793_vm0 = vcmp.lt.f32.partialorder %v16325_v27, 10.0 }
 0x31f   : > { %v2391_v6 = vsel %vm2384_vm4, %v2387_v43, %v2390_v24  ;;  %v2227_v30 = vsel %vm2219_vm5, %v12392_v21, %v12394_v19  ;;  %v2229_v22 = vsel %vm2221_vm7, %v2212_v7, %v2228_v50  ;;  %v4153_v18 = vadd.f32 1.0, %v12341_v14 }
 0x320   : > { %vm12435_vm11 = vcmp.le.f32.partialorder %v2393_v47, 0.7853982  ;;  %v2231_v20 = vsel %vm2219_vm5, %v12394_v19, %v2212_v7  ;;  %v2233_v60 = vsel %vm2221_vm7, %v2215_v12, %v2232_v32  ;;  %v5437_v43 = vrot.slane %v5436_v44, 4 }
 0x321   : > { %v2171_v14 = vsel %vm2086_vm6, %v2170_v1, %v12088_v33  ;;  %v2480_v47 = vsel %vm2395_vm14, %v2479_v8, %v12303_v15  ;;  %vm2220_vm13 = vcmp.lt.s32.totalorder %v16324_v38, 2  ;;  %v2392_v24 = vsel %vm2382_vm8, nan, %v2391_v6  ;;  %v7941_v15 = vpop.f32.mrf.mxu1 }
 0x322   : > { %v2169_v50 = vsel %vm2086_vm6, %v2168_v3, %v2167_v48  ;;  %v2461_v12 = vclz %v7493_v40  ;;  %v2230_v26 = vsel %vm2220_vm13, %v2227_v30, %v2229_v22  ;;  %v5121_v32 = vadd.f32 %v7940_v23, %v12315_v31 }
 0x323   : > { %v5430_v59 = vrot.slane %v5429_v54, 4  ;;  %v2234_v33 = vsel %vm2220_vm13, %v2231_v20, %v2233_v60  ;;  %v12462_v1 = vshll.u32 %v2195_v16, 8  ;;  %v12467_v2 = vsel %vm795_vm12, %v12330_v63, 0.0 }
 0x324   : > { %v4185_v8 = vmul.f32 0.5, %v4153_v18  ;;  %v2173_v48 = vsel %vm12403_vm1, 0, %v2171_v14  ;;  %v2482_v3 = vsel %vm12435_vm11, 0, %v2480_v47  ;;  %v5438_v23 = vadd.f32 %v5437_v43, %v5436_v44  ;;  %v16329_v47 = vld [vmem:[#allocation95_spill] sm:$0xff] }
 0x325   : > { %v4158_v40 = vadd.f32 1.0, %v2392_v24  ;;  %v12474_v6 = vmul.u32.u64.low %v12462_v1, %v2230_v26  ;;  %v12475_v30 = vmul.u32.u64.high %v12462_v1, %v2230_v26, %v12474_v6  ;;  %v2172_v5 = vsel %vm12403_vm1, %v16315_v39, %v2169_v50 }
 0x326   : > { %v7494_v63 = vadd.s32 4294967294, %v2461_v12  ;;  %v12482_v16 = vmul.u32.u64.low %v12462_v1, %v2234_v33  ;;  %v12483_v22 = vmul.u32.u64.high %v12462_v1, %v2234_v33, %v12482_v16  ;;  %v12486_v18 = vmul.f32 %v5121_v32, %v12280_v52 }
 0x327   : > { %v5113_v44 = vadd.f32 %v12315_v31, %v5112_v37  ;;  %v5124_v20 = vadd.f32 %v7941_v15, %v12315_v31  ;;  %v5431_v60 = vadd.f32 %v5430_v59, %v5429_v54  ;;  %v12492_v43 = vsel %vm793_vm0, %v4185_v8, 0.0  ;;  %v5115_v54 = vpop.f32.mrf.mxu1 }
 0x328   : > { %16328 = vst [vmem:[#allocation40_spill] sm:$0xff] %v12486_v18  ;;  %v12494_v14 = vand.u32 3, %v2173_v48  ;;  %v12498_v62 = vadd.s32 %v12202_v53, %v12209_v0  ;;  %v12501_v24 = vsub.s32 32, %v16329_v47  ;;  %v5439_v52 = vrot.slane %v5438_v23, 2 }
 0x329   : > { %8770 = vcosq.f32 %v2172_v5  ;;  %v2203_v37 = vshrl.u32 %v16186_v35, %v12319_v51  ;;  %v2224_v59 = vsel %vm2222_vm15, %v2212_v7, 2102212464  ;;  %v12507_v27 = vmul.f32 0.5, %v4158_v40  ;;  %v16333_v40 = vld [vmem:[#allocation22_spill] sm:$0xff] }
 0x32a   : > { %8772 = vsinq.f32 %v2172_v5  ;;  %vm7495_vm3 = vcmp.lt.s32.totalorder %v7494_v63, 0  ;;  %v12509_v50 = vand.u32 3, %v2482_v3  ;;  %v5403_v53 = vmul.f32 %v16319_v42, %v12486_v18 }
 0x32b   : > { %v12514_v0 = vmul.f32 %v5113_v44, %v12289_v36  ;;  %v12517_v12 = vmul.f32 %v5124_v20, %v12294_v10  ;;  %v5432_v51 = vrot.slane %v5431_v60, 2  ;;  %v2223_v7 = vsel %vm2219_vm5, %v2203_v37, %v12392_v21  ;;  %v16332_v21 = vld [vmem:[#allocation77_spill] sm:$0xff] }
 0x32c   : > { %v2225_v26 = vsel %vm2221_vm7, %v12394_v19, %v2224_v59  ;;  %v2729_v32 = vshrl.u32 %v16038_v41, %v12501_v24  ;;  %v2732_v33 = vshrl.u32 %v16172_v28, %v12501_v24  ;;  %v5116_v36 = vadd.f32 %v12315_v31, %v5115_v54 }
 0x32d   : > { %16330 = vst [vmem:[#allocation41_spill] sm:$0xff] %v12514_v0  ;;  %16331 = vst [vmem:[#allocation54_spill] sm:$0xff] %v12517_v12  ;;  %v5440_v15 = vadd.f32 %v5439_v52, %v5438_v23  ;;  %v12530_v10 = vsel %vm7495_vm3, 0, %v7494_v63  ;;  %v2245_v8 = vadd.s32 1, %v12475_v30  ;;  %vm2244_vm9 = vc.u32 %v12483_v22, %v12474_v6  ;;  %v7944_v52 = vpop.f32.mrf.mxu1 }
 0x32e   : > { %v2728_v19 = vshll.u32 %v16060_v55, %v16329_v47  ;;  %v2731_v3 = vshll.u32 %v16038_v41, %v16329_v47  ;;  %vm798_vm2 = vcmp.lt.f32.partialorder %v16333_v40, 10.0  ;;  %v2226_v23 = vsel %vm2220_vm13, %v2223_v7, %v2225_v26 }
 0x32f   : > { %v2720_v5 = vshrl.u32 %v16061_v11, %v12501_v24  ;;  %v2723_v63 = vshrl.u32 %v16062_v61, %v12501_v24  ;;  %v2726_v16 = vshrl.u32 %v16060_v55, %v12501_v24  ;;  %v5404_v44 = vmul.f32 %v16318_v46, %v12517_v12 }
 0x330   : > { %v5433_v20 = vadd.f32 %v5432_v51, %v5431_v60  ;;  %v2730_v37 = vor.u32 %v2729_v32, %v2728_v19  ;;  %v2733_v59 = vor.u32 %v2732_v33, %v2731_v3  ;;  %v2246_v54 = vsel %vm2244_vm9, %v2245_v8, %v12475_v30  ;;  %v16336_v19 = vld [vmem:[#allocation94_spill] sm:$0xff]  ;;  %v5128_v3 = vpop.f32.mrf.mxu1 }
 0x331   : > { %v2719_v38 = vshll.u32 %v16186_v35, %v16329_v47  ;;  %v2722_v7 = vshll.u32 %v16061_v11, %v16329_v47  ;;  %v2725_v26 = vshll.u32 %v16062_v61, %v16329_v47  ;;  %v12559_v48 = vmul.f32 %v5116_v36, %v12307_v49 }
 0x332   : > { %v5441_v17 = vrot.slane %v5440_v15, 1  ;;  %v2242_v60 = vmul.u32 %v12462_v1, %v2226_v23  ;;  %v16335_v51 = vand.u32 2147483647, %v16332_v21  ;;  %vm2737_vm4 = vcmp.lt.s32.totalorder %v16336_v19, 4 }
 0x333   : > { %16334 = vst [vmem:[#allocation134_spill] sm:$0xff] %v12559_v48  ;;  %v12564_v33 = vor.u32 %v2720_v5, %v2719_v38  ;;  %v12566_v30 = vor.u32 %v2723_v63, %v2722_v7  ;;  %v2727_v8 = vor.u32 %v2726_v16, %v2725_v26  ;;  %v2469_v12 = vsub.s32 4294967266, %v12530_v10 }
 0x334   : > { %v2709_v32 = vand.u32 8388607, %v16335_v51  ;;  %v12570_v47 = vadd.s32 %v2246_v54, %v2242_v60  ;;  %v2743_v49 = vsel %vm2737_vm4, %v2730_v37, 920167782  ;;  %v2747_v1 = vsel %vm2737_vm4, %v2733_v59, 1326507024  ;;  %v7945_v60 = vpop.f32.mrf.mxu1 }
 0x335   : > { %v5450_v36 = vadd.f32 %v5404_v44, %v5403_v53  ;;  %v5434_v23 = vrot.slane %v5433_v20, 1  ;;  %v5137_v5 = vadd.f32 %v7944_v52, %v12315_v31  ;;  %v2465_v63 = vsub.s32 32, %v12530_v10 }
 0x336   : > { %v12578_v16 = vpop.eup %8770  ;;  %v5402_v38 = vmul.f32 %v16318_v46, %v12559_v48  ;;  %v2710_v7 = vor.u32 8388608, %v2709_v32  ;;  %vm2734_vm6 = vcmp.lt.s32.totalorder %v16336_v19, 1  ;;  %vm2736_vm8 = vcmp.lt.s32.totalorder %v16336_v19, 3 }
 0x337   : > { %v12584_v54 = vpop.eup %8772  ;;  %v2742_v53 = vsel %vm2734_vm6, %v12564_v33, %v12566_v30  ;;  %v2744_v44 = vsel %vm2736_vm8, %v2727_v8, %v2743_v49  ;;  %v2746_v52 = vsel %vm2734_vm6, %v12566_v30, %v2727_v8  ;;  %v2748_v59 = vsel %vm2736_vm8, %v2730_v37, %v2747_v1 }
 0x338   : > { %v5442_v26 = vadd.f32 %v5441_v17, %v5440_v15  ;;  %v12600_v51 = vsel %vm798_vm2, %v12507_v27, 0.0  ;;  %v2470_v32 = vadd.s32 127, %v2469_v12  ;;  %v2248_v48 = vadd.s32 536870912, %v12570_v47 }
 0x339   : > { %v5401_v49 = vmul.f32 %v16319_v42, %v12514_v0  ;;  %v2466_v4 = vshll.u32 %v12365_v58, %v12530_v10  ;;  %v2467_v18 = vshrl.u32 %v12498_v62, %v2465_v63  ;;  %vm2735_vm12 = vcmp.lt.s32.totalorder %v16336_v19, 2  ;;  %v8367_v62 = vld [vmem:[%s15636_s5 + $0x280] ss:$52 sps:$4 sm:$0xff]   ;;  %v5131_v63 = vpop.f32.mrf.mxu1 }
 0x33a   : > { %v5451_v17 = vrot.slane %v5450_v36, 4  ;;  %v5129_v15 = vadd.f32 %v12315_v31, %v5128_v3  ;;  %v2745_v27 = vsel %vm2735_vm12, %v2742_v53, %v2744_v44  ;;  %v2749_v12 = vsel %vm2735_vm12, %v2746_v52, %v2748_v59  ;;  %7989 = vmatpush3.bf16.msra.mxu1 %v8367_v62 }
 0x33b   : > { %v12614_v40 = vadd.f32 %v5434_v23, %v5433_v20  ;;  %v5443_v37 = vadd.f32 %v5402_v38, %v5401_v49  ;;  %v12617_v1 = vmul.f32 %v5137_v5, %v12324_v29  ;;  %v12619_v58 = vshll.u32 %v2710_v7, 8  ;;  %7990 = vmatprep.subr.bf16.mxu1 %v16277_v9 }
 0x33c   : > { %v5542_v10 = vpack.c.bf16 %v5442_v26, %v5442_v26  ;;  %v5140_v3 = vadd.f32 %v7945_v60, %v12315_v31  ;;  %v2471_v53 = vshll.u32 %v2470_v32, 23  ;;  %v12625_v44 = vshrl.u32 %v2248_v48, 30  ;;  %v16340_v60 = vld [vmem:[#allocation90_spill] sm:$0xff] }
 0x33d   : > { %16337 = vst [vmem:[#allocation52_spill] sm:$0xff] %v12614_v40  ;;  %16338 = vst [vmem:[#allocation135_spill] sm:$0xff] %v12617_v1  ;;  %v12628_v20 = vmul.u32.u64.low %v12619_v58, %v2749_v12  ;;  %v12629_v23 = vmul.u32.u64.high %v12619_v58, %v2749_v12, %v12628_v20  ;;  %v12632_v29 = vmul.u32.u64.low %v12619_v58, %v2745_v27  ;;  %v12633_v5 = vmul.u32.u64.high %v12619_v58, %v2745_v27, %v12632_v29 }
 0x33e   : > { %v5452_v38 = vadd.f32 %v5451_v17, %v5450_v36  ;;  %v12637_v7 = vmul.f32 %v5129_v15, %v12328_v45  ;;  %vm2179_vm1 = vcmp.eq.s32.totalorder %v12494_v14, 0  ;;  %vm2182_vm15 = vcmp.eq.s32.totalorder %v12494_v14, 2 }
 0x33f   : > { %v12641_v48 = vor.u32 %v2467_v18, %v2466_v4  ;;  %v2739_v52 = vsel %vm2737_vm4, %v2727_v8, 2102212464  ;;  %v5444_v59 = vrot.slane %v5443_v37, 4  ;;  %v5132_v26 = vadd.f32 %v12315_v31, %v5131_v63  ;;  %v7948_v8 = vpop.f32.mrf.mxu1 }
 0x340   : > { %16339 = vst [vmem:[#allocation123_spill] sm:$0xff] %v12637_v7  ;;  %v2718_v36 = vshrl.u32 %v16186_v35, %v12501_v24  ;;  %v12650_v45 = vsub.s32 32, %v16340_v60  ;;  %v5407_v4 = vmul.f32 %v16319_v42, %v12617_v1  ;;  %v12657_v18 = vmul.f32 %v5140_v3, %v12467_v2 }
 0x341   : > { %v2250_v49 = vshll.u32 %v12625_v44, 30  ;;  %v12660_v17 = vunpack.c.l.b16 %v5542_v10  ;;  %v12662_v15 = vor.u32 4788187, %v2471_v53  ;;  %v2740_v27 = vsel %vm2736_vm8, %v12566_v30, %v2739_v52 }
 0x342   : > { %16341 = vst [vmem:[#allocation121_spill] sm:$0xff] %v12657_v18  ;;  %v2738_v24 = vsel %vm2734_vm6, %v2718_v36, %v12564_v33  ;;  %v5453_v12 = vrot.slane %v5452_v38, 2  ;;  %v12672_v2 = vmul.f32 %v16319_v42, %v12637_v7  ;;  %v2180_v62 = vxor.u32 2147483648, %v12584_v54 }
 0x343   : > { %16342 = vst [vmem:[#allocation136_spill] sm:$0xff] %v12660_v17  ;;  %v2183_v10 = vxor.u32 2147483648, %v12578_v16  ;;  %v5445_v3 = vadd.f32 %v5444_v59, %v5443_v37  ;;  %v12677_v63 = vmul.f32 %v5132_v26, %v12492_v43  ;;  %v5153_v53 = vadd.f32 %v7948_v8, %v12315_v31  ;;  %v16344_v59 = vld [vmem:[#allocation75_spill] sm:$0xff] }
 0x344   : > { %v2523_v33 = vshrl.u32 %v16038_v41, %v12650_v45  ;;  %v5408_v30 = vmul.f32 %v16318_v46, %v12657_v18  ;;  %vm2178_vm5 = vcmp.lt.s32.totalorder %v12494_v14, 2  ;;  %v12686_v20 = vsub.s32 %v12570_v47, %v2250_v49 }
 0x345   : > { %16343 = vst [vmem:[#allocation59_spill] sm:$0xff] %v12677_v63  ;;  %v2741_v52 = vsel %vm2735_vm12, %v2738_v24, %v2740_v27  ;;  %v2526_v43 = vshrl.u32 %v16172_v28, %v12650_v45  ;;  %vm2759_vm7 = vc.u32 %v12629_v23, %v12632_v29  ;;  %v2760_v37 = vadd.s32 1, %v12633_v5 }
 0x346   : > { %v2522_v36 = vshll.u32 %v16060_v55, %v16340_v60  ;;  %v2514_v47 = vshrl.u32 %v16061_v11, %v12650_v45  ;;  %v2517_v19 = vshrl.u32 %v16062_v61, %v12650_v45  ;;  %v2520_v8 = vshrl.u32 %v16060_v55, %v12650_v45 }
 0x347   : > { %v2525_v49 = vshll.u32 %v16038_v41, %v16340_v60  ;;  %v12706_v24 = vadd.f32 %v5453_v12, %v5452_v38  ;;  %v2181_v27 = vsel %vm2179_vm1, %v12578_v16, %v2180_v62  ;;  %v2184_v32 = vsel %vm2182_vm15, %v2183_v10, %v12584_v54 }
 0x348   : > { %v2524_v26 = vor.u32 %v2523_v33, %v2522_v36  ;;  %v2513_v18 = vshll.u32 %v16186_v35, %v16340_v60  ;;  %v2516_v1 = vshll.u32 %v16061_v11, %v16340_v60  ;;  %v2519_v7 = vshll.u32 %v16062_v61, %v16340_v60 }
 0x349   : > { %16345 = vst [vmem:[#allocation120_spill] sm:$0xff] %v12706_v24  ;;  %v2527_v38 = vor.u32 %v2526_v43, %v2525_v49  ;;  %v2253_v12 = vsub.s32 0, %v12686_v20  ;;  %v2757_v0 = vmul.u32 %v12619_v58, %v2741_v52  ;;  %v2761_v16 = vsel %vm2759_vm7, %v2760_v37, %v12633_v5  ;;  %v5144_v52 = vpop.f32.mrf.mxu1 }
 0x34a   : > { %v16346_v54 = vand.u32 2147483647, %v16344_v59  ;;  %v12728_v10 = vor.u32 %v2514_v47, %v2513_v18  ;;  %v12730_v33 = vor.u32 %v2517_v19, %v2516_v1  ;;  %v2521_v36 = vor.u32 %v2520_v8, %v2519_v7  ;;  %v16349_v7 = vld [vmem:[#allocation93_spill] sm:$0xff]  ;;  %v16366_v59 = vld [vmem:[#allocation103_spill] sm:$0xff] }
 0x34b   : > { %vm2531_vm0 = vcmp.lt.s32.totalorder %v16347_v25, 4  ;;  %v5446_v60 = vrot.slane %v5445_v3, 2  ;;  %v5406_v43 = vmul.f32 %v16318_v46, %v12677_v63  ;;  %v12736_v58 = vmul.f32 %v5153_v53, %v12600_v51  ;;  %v16352_v46 = vld [vmem:[#allocation91_spill] sm:$0xff] }
 0x34c   : > { %v2503_v62 = vand.u32 8388607, %v16346_v54  ;;  %v2537_v5 = vsel %vm2531_vm0, %v2524_v26, 920167782  ;;  %v12740_v37 = vadd.f32 %v5408_v30, %v5407_v4  ;;  %v12742_v18 = vadd.s32 %v2761_v16, %v2757_v0 }
 0x34d   : > { %16348 = vst [vmem:[#allocation16_spill] sm:$0xff] %v12736_v58  ;;  %v2541_v1 = vsel %vm2531_vm0, %v2527_v38, 1326507024  ;;  %v12747_v47 = vsub.s32 32, %v16349_v7  ;;  %v2185_v19 = vsel %vm2178_vm5, %v2181_v27, %v2184_v32  ;;  %v7485_v51 = vmin.u32 %v2253_v12, %v12686_v20 }
 0x34e   : > { %vm2528_vm13 = vcmp.lt.s32.totalorder %v16347_v25, 1  ;;  %vm2530_vm3 = vcmp.lt.s32.totalorder %v16347_v25, 3  ;;  %v12755_v4 = vadd.f32 %v12315_v31, %v5144_v52  ;;  %v2504_v0 = vor.u32 8388608, %v2503_v62  ;;  %v16350_v62 = vld [vmem:[#allocation76_spill] sm:$0xff] }
 0x34f   : > { %v2536_v53 = vsel %vm2528_vm13, %v12728_v10, %v12730_v33  ;;  %v2538_v30 = vsel %vm2530_vm3, %v2521_v36, %v2537_v5  ;;  %v2473_v32 = vand.u32 2147483647, %v12662_v15  ;;  %v2540_v8 = vsel %vm2528_vm13, %v12730_v33, %v2521_v36 }
 0x350   : > { %v2542_v31 = vsel %vm2530_vm3, %v2524_v26, %v2541_v1  ;;  %v12770_v49 = vadd.f32 %v5446_v60, %v5445_v3  ;;  %vm2176_vm9 = vweird.f32 %v16315_v39  ;;  %v2763_v27 = vadd.s32 536870912, %v12742_v18 }
 0x351   : > { %vm2529_vm2 = vcmp.lt.s32.totalorder %v16347_v25, 2  ;;  %v2832_v38 = vshrl.u32 %v16038_v41, %v12747_v47  ;;  %v2475_v15 = vcvt.s32.f32 %v12641_v48  ;;  %v2255_v12 = vclz %v7485_v51 }
 0x352   : > { %v2539_v16 = vsel %vm2529_vm2, %v2536_v53, %v2538_v30  ;;  %v2835_v26 = vshrl.u32 %v16172_v28, %v12747_v47  ;;  %v2543_v3 = vsel %vm2529_vm2, %v2540_v8, %v2542_v31  ;;  %v12784_v54 = vshll.u32 %v2504_v0, 8 }
 0x353   : > { %v2831_v52 = vshll.u32 %v16060_v55, %v16349_v7  ;;  %v2823_v48 = vshrl.u32 %v16061_v11, %v12747_v47  ;;  %v2826_v5 = vshrl.u32 %v16062_v61, %v12747_v47  ;;  %v2829_v1 = vshrl.u32 %v16060_v55, %v12747_v47 }
 0x354   : > { %v2834_v51 = vshll.u32 %v16038_v41, %v16349_v7  ;;  %v12797_v53 = vshrl.u32 %v2763_v27, 30  ;;  %v12800_v0 = vmul.u32.u64.low %v12784_v54, %v2539_v16  ;;  %v12801_v30 = vmul.u32.u64.high %v12784_v54, %v2539_v16, %v12800_v0 }
 0x355   : > { %v2833_v8 = vor.u32 %v2832_v38, %v2831_v52  ;;  %v2822_v31 = vshll.u32 %v16186_v35, %v16349_v7  ;;  %v2825_v14 = vshll.u32 %v16061_v11, %v16349_v7  ;;  %v2828_v60 = vshll.u32 %v16062_v61, %v16349_v7 }
 0x356   : > { %v2836_v63 = vor.u32 %v2835_v26, %v2834_v51  ;;  %v2533_v27 = vsel %vm2531_vm0, %v2521_v36, 2102212464  ;;  %v12813_v13 = vmul.u32.u64.low %v12784_v54, %v2543_v3  ;;  %v12814_v17 = vmul.u32.u64.high %v12784_v54, %v2543_v3, %v12813_v13 }
 0x357   : > { %v16351_v16 = vand.u32 2147483647, %v16350_v62  ;;  %v12818_v52 = vor.u32 %v2823_v48, %v2822_v31  ;;  %v12820_v40 = vor.u32 %v2826_v5, %v2825_v14  ;;  %v2830_v24 = vor.u32 %v2829_v1, %v2828_v60 }
 0x358   : > { %vm2840_vm4 = vcmp.lt.s32.totalorder %v16352_v46, 4  ;;  %v12824_v7 = vadd.f32 %v5406_v43, %v12672_v2  ;;  %v2765_v26 = vshll.u32 %v12797_v53, 30  ;;  %v2512_v36 = vshrl.u32 %v16186_v35, %v12650_v45 }
 0x359   : > { %v2812_v38 = vand.u32 8388607, %v16351_v16  ;;  %v2846_v13 = vsel %vm2840_vm4, %v2833_v8, 920167782  ;;  %v12833_v3 = vmul.f32 %v16319_v42, %v12736_v58  ;;  %v2186_v14 = vsel %vm2176_vm9, nan, %v2185_v19 }
 0x35a   : > { %v2476_v60 = vmul.f32 %v2475_v15, %v2473_v32  ;;  %v2850_v2 = vsel %vm2840_vm4, %v2836_v63, 1326507024  ;;  %v2532_v43 = vsel %vm2528_vm13, %v2512_v36, %v12728_v10  ;;  %v2534_v45 = vsel %vm2530_vm3, %v12730_v33, %v2533_v27  ;;  %v16354_v32 = vld [vmem:[#allocation88_spill] sm:$0xff] }
 0x35b   : > { %16353 = vst [vmem:[#allocation38_spill] sm:$0xff] %v12833_v3  ;;  %vm2837_vm6 = vcmp.lt.s32.totalorder %v16352_v46, 1  ;;  %vm2839_vm8 = vcmp.lt.s32.totalorder %v16352_v46, 3  ;;  %v7486_v48 = vadd.s32 4294967294, %v2255_v12  ;;  %v2813_v5 = vor.u32 8388608, %v2812_v38 }
 0x35c   : > { %v2845_v39 = vsel %vm2837_vm6, %v12818_v52, %v12820_v40  ;;  %v2847_v63 = vsel %vm2839_vm8, %v2830_v24, %v2846_v13  ;;  %v12854_v10 = vsub.s32 %v12742_v18, %v2765_v26  ;;  %v2849_v33 = vsel %vm2837_vm6, %v12820_v40, %v2830_v24 }
 0x35d   : > { %v2851_v19 = vsel %vm2839_vm8, %v2833_v8, %v2850_v2  ;;  %v12862_v15 = vsub.s32 32, %v16354_v32  ;;  %v2535_v1 = vsel %vm2529_vm2, %v2532_v43, %v2534_v45  ;;  %v2554_v51 = vadd.s32 1, %v12801_v30  ;;  %v16356_v45 = vld [vmem:[#allocation60_spill] sm:$0xff] }
 0x35e   : > { %vm2838_vm12 = vcmp.lt.s32.totalorder %v16352_v46, 2  ;;  %v4156_v31 = vadd.f32 1.0, %v2186_v14  ;;  %vm2553_vm1 = vc.u32 %v12814_v17, %v12800_v0  ;;  %v2477_v27 = vxor.u32 2147483648, %v2476_v60 }
 0x35f   : > { %v2848_v8 = vsel %vm2838_vm12, %v2845_v39, %v2847_v63  ;;  %vm7487_vm15 = vcmp.lt.s32.totalorder %v7486_v48, 0  ;;  %v2852_v16 = vsel %vm2838_vm12, %v2849_v33, %v2851_v19  ;;  %v12876_v25 = vshll.u32 %v2813_v5, 8 }
 0x360   : > { %v2768_v38 = vsub.s32 0, %v12854_v10  ;;  %v2551_v26 = vmul.u32 %v12784_v54, %v2535_v1  ;;  %v2626_v36 = vshrl.u32 %v16038_v41, %v12862_v15  ;;  %v2629_v13 = vshrl.u32 %v16172_v28, %v12862_v15 }
 0x361   : > { %v2555_v14 = vsel %vm2553_vm1, %v2554_v51, %v12801_v30  ;;  %v12886_v2 = vmul.u32.u64.low %v12876_v25, %v2848_v8  ;;  %v12887_v43 = vmul.u32.u64.high %v12876_v25, %v2848_v8, %v12886_v2  ;;  %v2625_v54 = vshll.u32 %v16060_v55, %v16354_v32 }
 0x362   : > { %v12892_v39 = vmul.u32.u64.low %v12876_v25, %v2852_v16  ;;  %v12893_v63 = vmul.u32.u64.high %v12876_v25, %v2852_v16, %v12892_v39  ;;  %v2628_v33 = vshll.u32 %v16038_v41, %v16354_v32  ;;  %v2842_v30 = vsel %vm2840_vm4, %v2830_v24, 2102212464 }
 0x363   : > { %16355 = vst [vmem:[#allocation133_spill] sm:$0xff] %v12886_v2  ;;  %v2617_v19 = vshrl.u32 %v16061_v11, %v12862_v15  ;;  %v2620_v1 = vshrl.u32 %v16062_v61, %v12862_v15  ;;  %v2623_v51 = vshrl.u32 %v16060_v55, %v12862_v15  ;;  %v12907_v8 = vadd.s32 %v2555_v14, %v2551_v26 }
 0x364   : > { %16357 = vst [vmem:[#allocation5_spill] sm:$0xff] %v12893_v63  ;;  %v2821_v16 = vshrl.u32 %v16186_v35, %v12747_v47  ;;  %v2627_v39 = vor.u32 %v2626_v36, %v2625_v54  ;;  %v2630_v18 = vor.u32 %v2629_v13, %v2628_v33  ;;  %v7505_v12 = vmin.u32 %v2768_v38, %v12854_v10  ;;  %v16359_v33 = vld [vmem:[#allocation85_spill] sm:$0xff] }
 0x365   : > { %v2616_v24 = vshll.u32 %v16186_v35, %v16354_v32  ;;  %v2619_v5 = vshll.u32 %v16061_v11, %v16354_v32  ;;  %v2622_v58 = vshll.u32 %v16062_v61, %v16354_v32  ;;  %v12919_v3 = vsel %vm7487_vm15, 0, %v7486_v48 }
 0x366   : > { %v2841_v47 = vsel %vm2837_vm6, %v2821_v16, %v12818_v52  ;;  %v2843_v38 = vsel %vm2839_vm8, %v12820_v40, %v2842_v30  ;;  %v16358_v26 = vand.u32 2147483647, %v16356_v45  ;;  %vm2634_vm5 = vcmp.lt.s32.totalorder %v16359_v33, 4 }
 0x367   : > { %v2618_v13 = vor.u32 %v2617_v19, %v2616_v24  ;;  %v2621_v14 = vor.u32 %v2620_v1, %v2619_v5  ;;  %v2624_v54 = vor.u32 %v2623_v51, %v2622_v58  ;;  %v2478_v48 = vsel %vm2395_vm14, %v2477_v27, %v2476_v60  ;;  %v16361_v24 = vld [vmem:[#allocation104_spill] sm:$0xff] }
 0x368   : > { %v2606_v36 = vand.u32 8388607, %v16358_v26  ;;  %v2557_v32 = vadd.s32 536870912, %v12907_v8  ;;  %v2640_v52 = vsel %vm2634_vm5, %v2627_v39, 920167782  ;;  %v2259_v40 = vsub.s32 32, %v12919_v3 }
 0x369   : > { %v2644_v16 = vsel %vm2634_vm5, %v2630_v18, 1326507024  ;;  %v2770_v30 = vclz %v7505_v12  ;;  %v2844_v5 = vsel %vm2838_vm12, %v2841_v47, %v2843_v38  ;;  %v2863_v58 = vadd.s32 1, %v12887_v43 }
 0x36a   : > { %vm2862_vm7 = vc.u32 %v12893_v63, %v12886_v2  ;;  %v2607_v60 = vor.u32 8388608, %v2606_v36  ;;  %vm2631_vm14 = vcmp.lt.s32.totalorder %v16359_v33, 1  ;;  %vm2633_vm0 = vcmp.lt.s32.totalorder %v16359_v33, 3 }
 0x36b   : > { %v2639_v27 = vsel %vm2631_vm14, %v2618_v13, %v2621_v14  ;;  %v2641_v18 = vsel %vm2633_vm0, %v2624_v54, %v2640_v52  ;;  %v2643_v46 = vsel %vm2631_vm14, %v2621_v14, %v2624_v54  ;;  %v2645_v12 = vsel %vm2633_vm0, %v2627_v39, %v2644_v16 }
 0x36c   : > { %v12956_v19 = vsel %vm12435_vm11, %v16291_v56, %v2478_v48  ;;  %v2263_v1 = vsub.s32 4294967266, %v12919_v3  ;;  %v12959_v51 = vshrl.u32 %v2557_v32, 30  ;;  %v12962_v47 = vsub.s32 32, %v16361_v24 }
 0x36d   : > { %v12964_v38 = vmul.f32 0.5, %v4156_v31  ;;  %v2243_v26 = vadd.s32 %v12474_v6, %v12483_v22  ;;  %v2864_v36 = vsel %vm2862_vm7, %v2863_v58, %v12887_v43  ;;  %vm2632_vm13 = vcmp.lt.s32.totalorder %v16359_v33, 2 }
 0x36e   : > { %16360 = vst [vmem:[#allocation44_spill] sm:$0xff] %v12959_v51  ;;  %v7506_v39 = vadd.s32 4294967294, %v2770_v30  ;;  %v2860_v34 = vmul.u32 %v12876_v25, %v2844_v5  ;;  %v2642_v48 = vsel %vm2632_vm13, %v2639_v27, %v2641_v18  ;;  %v2646_v32 = vsel %vm2632_vm13, %v2643_v46, %v2645_v12 }
 0x36f   : > { %8774 = vcosq.f32 %v12956_v19  ;;  %v2260_v31 = vshll.u32 %v12686_v20, %v12919_v3  ;;  %v2261_v52 = vshrl.u32 %v2243_v26, %v2259_v40  ;;  %v12978_v6 = vshll.u32 %v2607_v60, 8  ;;  %v16364_v20 = vld [vmem:[#allocation82_spill] sm:$0xff] }
 0x370   : > { %v2264_v22 = vadd.s32 127, %v2263_v1  ;;  %v2559_v43 = vshll.u32 %v12959_v51, 30  ;;  %v12981_v16 = vadd.s32 %v2864_v36, %v2860_v34  ;;  %v3141_v25 = vshrl.u32 %v16038_v41, %v12962_v47 }
 0x371   : > { %v12986_v30 = vmul.u32.u64.low %v12978_v6, %v2646_v32  ;;  %v12987_v5 = vmul.u32.u64.high %v12978_v6, %v2646_v32, %v12986_v30  ;;  %v12990_v58 = vmul.u32.u64.low %v12978_v6, %v2642_v48  ;;  %v12991_v27 = vmul.u32.u64.high %v12978_v6, %v2642_v48, %v12990_v58 }
 0x372   : > { %vm7507_vm11 = vcmp.lt.s32.totalorder %v7506_v39, 0  ;;  %v3140_v40 = vshll.u32 %v16060_v55, %v16361_v24  ;;  %v3144_v60 = vshrl.u32 %v16172_v28, %v12962_v47  ;;  %v2636_v18 = vsel %vm2634_vm5, %v2624_v54, 2102212464 }
 0x373   : > { %16362 = vst [vmem:[#allocation68_spill] sm:$0xff] %v12987_v5  ;;  %16363 = vst [vmem:[#allocation13_spill] sm:$0xff] %v12990_v58  ;;  %v3132_v46 = vshrl.u32 %v16061_v11, %v12962_v47  ;;  %v3135_v12 = vshrl.u32 %v16062_v61, %v12962_v47  ;;  %v3138_v1 = vshrl.u32 %v16060_v55, %v12962_v47  ;;  %v2866_v54 = vadd.s32 536870912, %v12981_v16 }
 0x374   : > { %v13008_v26 = vsub.s32 %v12907_v8, %v2559_v43  ;;  %v2615_v36 = vshrl.u32 %v16186_v35, %v12862_v15  ;;  %v3142_v34 = vor.u32 %v3141_v25, %v3140_v40  ;;  %v3143_v48 = vshll.u32 %v16038_v41, %v16361_v24 }
 0x375   : > { %v3131_v32 = vshll.u32 %v16186_v35, %v16361_v24  ;;  %v3134_v30 = vshll.u32 %v16061_v11, %v16361_v24  ;;  %v3137_v3 = vshll.u32 %v16062_v61, %v16361_v24  ;;  %v2637_v15 = vsel %vm2633_vm0, %v2621_v14, %v2636_v18 }
 0x376   : > { %v2635_v8 = vsel %vm2631_vm14, %v2615_v36, %v2618_v13  ;;  %v16365_v43 = vand.u32 2147483647, %v16364_v20  ;;  %v3145_v40 = vor.u32 %v3144_v60, %v3143_v48  ;;  %vm3149_vm3 = vcmp.lt.s32.totalorder %v16366_v59, 4 }
 0x377   : > { %v13027_v45 = vor.u32 %v3132_v46, %v3131_v32  ;;  %v13029_v62 = vor.u32 %v3135_v12, %v3134_v30  ;;  %v3139_v51 = vor.u32 %v3138_v1, %v3137_v3  ;;  %v13032_v2 = vor.u32 %v2261_v52, %v2260_v31 }
 0x378   : > { %v3121_v25 = vand.u32 8388607, %v16365_v43  ;;  %v2265_v24 = vshll.u32 %v2264_v22, 23  ;;  %v2562_v63 = vsub.s32 0, %v13008_v26  ;;  %v3155_v13 = vsel %vm3149_vm3, %v3142_v34, 920167782 }
 0x379   : > { %v13038_v14 = vsel %vm7507_vm11, 0, %v7506_v39  ;;  %v13040_v18 = vshrl.u32 %v2866_v54, 30  ;;  %v2638_v60 = vsel %vm2632_vm13, %v2635_v8, %v2637_v15  ;;  %v2657_v3 = vadd.s32 1, %v12991_v27  ;;  %v16368_v22 = vld [vmem:[#allocation100_spill] sm:$0xff] }
 0x37a   : > { %vm2656_vm9 = vc.u32 %v12987_v5, %v12990_v58  ;;  %vm3146_vm2 = vcmp.lt.s32.totalorder %v16366_v59, 1  ;;  %vm3148_vm4 = vcmp.lt.s32.totalorder %v16366_v59, 3  ;;  %v3159_v31 = vsel %vm3149_vm3, %v3145_v40, 1326507024  ;;  %v16370_v58 = vld [vmem:[#allocation99_spill] sm:$0xff] }
 0x37b   : > { %16367 = vst [vmem:[#allocation6_spill] sm:$0xff] %v13040_v18  ;;  %v3122_v52 = vor.u32 8388608, %v3121_v25  ;;  %v3154_v39 = vsel %vm3146_vm2, %v13027_v45, %v13029_v62  ;;  %v3156_v33 = vsel %vm3148_vm4, %v3139_v51, %v3155_v13  ;;  %v13058_v46 = vsub.s32 32, %v16368_v22 }
 0x37c   : > { %v13060_v12 = vpop.eup %8774  ;;  %8776 = vsinq.f32 %v12956_v19  ;;  %v2758_v1 = vadd.s32 %v12632_v29, %v12629_v23  ;;  %v2778_v36 = vsub.s32 4294967266, %v13038_v14  ;;  %v7497_v48 = vmin.u32 %v2562_v63, %v13008_v26 }
 0x37d   : > { %v2658_v54 = vsel %vm2656_vm9, %v2657_v3, %v12991_v27  ;;  %vm3147_vm6 = vcmp.lt.s32.totalorder %v16366_v59, 2  ;;  %v3158_v32 = vsel %vm3146_vm2, %v13029_v62, %v3139_v51  ;;  %v3160_v30 = vsel %vm3148_vm4, %v3142_v34, %v3159_v31 }
 0x37e   : > { %v13074_v8 = vor.u32 4788187, %v2265_v24  ;;  %v2868_v19 = vshll.u32 %v13040_v18, 30  ;;  %v2654_v23 = vmul.u32 %v12978_v6, %v2638_v60  ;;  %v3157_v29 = vsel %vm3147_vm6, %v3154_v39, %v3156_v33  ;;  %v16369_v60 = vld [vmem:[#allocation80_spill] sm:$0xff] }
 0x37f   : > { %v2774_v27 = vsub.s32 32, %v13038_v14  ;;  %v13082_v15 = vshll.u32 %v3122_v52, 8  ;;  %v2935_v43 = vshrl.u32 %v16038_v41, %v13058_v46  ;;  %v2779_v25 = vadd.s32 127, %v2778_v36 }
 0x380   : > { %v2564_v34 = vclz %v7497_v48  ;;  %v13086_v40 = vadd.s32 %v2658_v54, %v2654_v23  ;;  %v3161_v24 = vsel %vm3147_vm6, %v3158_v32, %v3160_v30  ;;  %v15927_v3 = vand.u32 2147483647, %v16369_v60 }
 0x381   : > { %v13091_v6 = vmul.u32.u64.low %v13082_v15, %v3157_v29  ;;  %v13092_v13 = vmul.u32.u64.high %v13082_v15, %v3157_v29, %v13091_v6  ;;  %v2934_v31 = vshll.u32 %v16060_v55, %v16368_v22  ;;  %v13099_v52 = vsub.s32 %v12981_v16, %v2868_v19 }
 0x382   : > { %v2926_v39 = vshrl.u32 %v16061_v11, %v13058_v46  ;;  %v2929_v33 = vshrl.u32 %v16062_v61, %v13058_v46  ;;  %v2932_v36 = vshrl.u32 %v16060_v55, %v13058_v46  ;;  %v2938_v30 = vshrl.u32 %v16172_v28, %v13058_v46 }
 0x383   : > { %v13108_v48 = vmul.u32.u64.low %v13082_v15, %v3161_v24  ;;  %v13109_v54 = vmul.u32.u64.high %v13082_v15, %v3161_v24, %v13108_v48  ;;  %v2936_v32 = vor.u32 %v2935_v43, %v2934_v31  ;;  %v2660_v16 = vadd.s32 536870912, %v13086_v40 }
 0x384   : > { %v2925_v19 = vshll.u32 %v16186_v35, %v16368_v22  ;;  %v2928_v23 = vshll.u32 %v16061_v11, %v16368_v22  ;;  %v2931_v29 = vshll.u32 %v16062_v61, %v16368_v22  ;;  %v2267_v63 = vand.u32 2147483647, %v13074_v8 }
 0x385   : > { %v3151_v24 = vsel %vm3149_vm3, %v3139_v51, 2102212464  ;;  %v2915_v43 = vand.u32 8388607, %v15927_v3  ;;  %v2937_v31 = vshll.u32 %v16038_v41, %v16368_v22  ;;  %vm2943_vm8 = vcmp.lt.s32.totalorder %v16370_v58, 4 }
 0x386   : > { %v13127_v48 = vor.u32 %v2926_v39, %v2925_v19  ;;  %v13129_v20 = vor.u32 %v2929_v33, %v2928_v23  ;;  %v13131_v18 = vor.u32 %v2932_v36, %v2931_v29  ;;  %v2776_v5 = vshrl.u32 %v2758_v1, %v2774_v27 }
 0x387   : > { %v3130_v8 = vshrl.u32 %v16186_v35, %v12962_v47  ;;  %v2939_v61 = vor.u32 %v2938_v30, %v2937_v31  ;;  %v2949_v51 = vsel %vm2943_vm8, %v2936_v32, 920167782  ;;  %v2780_v3 = vshll.u32 %v2779_v25, 23  ;;  %v16371_v47 = vld [vmem:[#allocation20_spill] sm:$0xff] }
 0x388   : > { %v7498_v60 = vadd.s32 4294967294, %v2564_v34  ;;  %v2871_v22 = vsub.s32 0, %v13099_v52  ;;  %v13139_v39 = vshrl.u32 %v2660_v16, 30  ;;  %v3152_v1 = vsel %vm3148_vm4, %v13029_v62, %v3151_v24 }
 0x389   : > { %v8777_v33 = vpop.eup %8776  ;;  %v3150_v36 = vsel %vm3146_vm2, %v3130_v8, %v13027_v45  ;;  %vm2940_vm12 = vcmp.lt.s32.totalorder %v16370_v58, 1  ;;  %vm2942_vm1 = vcmp.lt.s32.totalorder %v16370_v58, 3  ;;  %vm796_vm15 = vcmp.lt.f32.partialorder %v16371_v47, 10.0 }
 0x38a   : > { %v3172_v27 = vadd.s32 1, %v13092_v13  ;;  %v2916_v25 = vor.u32 8388608, %v2915_v43  ;;  %v2948_v34 = vsel %vm2940_vm12, %v13127_v48, %v13129_v20  ;;  %v2950_v45 = vsel %vm2942_vm1, %v13131_v18, %v2949_v51 }
 0x38b   : > { %vm2488_vm5 = vcmp.eq.s32.totalorder %v12509_v50, 0  ;;  %vm2491_vm7 = vcmp.eq.s32.totalorder %v12509_v50, 2  ;;  %v2775_v62 = vshll.u32 %v12854_v10, %v13038_v14  ;;  %vm3171_vm14 = vc.u32 %v13109_v54, %v13091_v6 }
 0x38c   : > { %v2952_v30 = vsel %vm2940_vm12, %v13129_v20, %v13131_v18  ;;  %v2953_v16 = vsel %vm2943_vm8, %v2939_v61, 1326507024  ;;  %v2781_v19 = vor.u32 4788187, %v2780_v3  ;;  %v3153_v23 = vsel %vm3147_vm6, %v3150_v36, %v3152_v1  ;;  %v7949_v36 = vpop.f32.mrf.mxu1 }
 0x38d   : > { %vm2941_vm0 = vcmp.lt.s32.totalorder %v16370_v58, 2  ;;  %v2954_v10 = vsel %vm2942_vm1, %v2936_v32, %v2953_v16  ;;  %v2777_v14 = vor.u32 %v2776_v5, %v2775_v62  ;;  %vm7499_vm13 = vcmp.lt.s32.totalorder %v7498_v60, 0 }
 0x38e   : > { %v2662_v29 = vshll.u32 %v13139_v39, 30  ;;  %v2951_v24 = vsel %vm2941_vm0, %v2948_v34, %v2950_v45  ;;  %v7509_v43 = vmin.u32 %v2871_v22, %v13099_v52  ;;  %v3173_v61 = vsel %vm3171_vm14, %v3172_v27, %v13092_v13 }
 0x38f   : > { %v2955_v59 = vsel %vm2941_vm0, %v2952_v30, %v2954_v10  ;;  %v13182_v3 = vshll.u32 %v2916_v25, 8  ;;  %vm2487_vm11 = vcmp.lt.s32.totalorder %v12509_v50, 2  ;;  %v2489_v31 = vxor.u32 2147483648, %v8777_v33  ;;  %v5147_v50 = vpop.f32.mrf.mxu1 }
 0x390   : > { %v2492_v5 = vxor.u32 2147483648, %v13060_v12  ;;  %v16372_v32 = vcvt.s32.f32 %v13032_v2  ;;  %v3169_v51 = vmul.u32 %v13082_v15, %v3153_v23  ;;  %vm2189_vm3 = vcmp.lt.s32.totalorder %v16307_v57, 0 }
 0x391   : > { %v2782_v22 = vand.u32 2147483647, %v2781_v19  ;;  %v13190_v13 = vsel %vm7499_vm13, 0, %v7498_v60  ;;  %v13193_v1 = vmul.u32.u64.low %v13182_v3, %v2951_v24  ;;  %v13194_v27 = vmul.u32.u64.high %v13182_v3, %v2951_v24, %v13193_v1 }
 0x392   : > { %v2270_v8 = vmul.f32 %v16372_v32, %v2267_v63  ;;  %v13198_v25 = vsub.s32 %v13086_v40, %v2662_v29  ;;  %v13200_v34 = vadd.s32 %v3173_v61, %v3169_v51  ;;  %v16373_v15 = vrot.slane %v12740_v37, 4 }
 0x393   : > { %v13203_v2 = vmul.u32.u64.low %v13182_v3, %v2955_v59  ;;  %v13204_v63 = vmul.u32.u64.high %v13182_v3, %v2955_v59, %v13203_v2  ;;  %v5458_v60 = vrot.slane %v12824_v7, 4  ;;  %vm2485_vm9 = vweird.f32 %v16291_v56 }
 0x394   : > { %v13209_v45 = vadd.f32 %v16373_v15, %v12740_v37  ;;  %v2784_v62 = vcvt.s32.f32 %v2777_v14  ;;  %v2873_v30 = vclz %v7509_v43  ;;  %v16375_v40 = vrot.slane %v12770_v49, 1  ;;  %v13224_v37 = vld [vmem:[%s15635_s4 + $0x2] ss:$0 sm:$0xff] }
 0x395   : > { %v4220_v19 = vsel %vm796_vm15, %v12964_v38, 0.0  ;;  %v13227_v23 = vadd.f32 %v13224_v37, %v7949_v36  ;;  %v16377_v10 = vand.u32 2147483647, %v16307_v57  ;;  %v2490_v38 = vsel %vm2488_vm5, %v13060_v12, %v2489_v31 }
 0x396   : > { %16374 = vst [vmem:[#allocation67_spill] sm:$0xff] %v13209_v45  ;;  %v13216_v16 = vadd.f32 %v16375_v40, %v12770_v49  ;;  %v2572_v49 = vsub.s32 4294967266, %v13190_v13  ;;  %v2493_v47 = vsel %vm2491_vm7, %v2492_v5, %v8777_v33  ;;  %v2785_v29 = vmul.f32 %v2784_v62, %v2782_v22 }
 0x397   : > { %vm13231_vm2 = vcmp.le.f32.partialorder %v16377_v10, 0.7853982  ;;  %v2945_v24 = vsel %vm2943_vm8, %v13131_v18, 2102212464  ;;  %v2271_v43 = vxor.u32 2147483648, %v2270_v8  ;;  %v2665_v61 = vsub.s32 0, %v13198_v25 }
 0x398   : > { %16376 = vst [vmem:[#allocation64_spill] sm:$0xff] %v13216_v16  ;;  %v3175_v59 = vadd.s32 536870912, %v13200_v34  ;;  %v2924_v32 = vshrl.u32 %v16186_v35, %v13058_v46  ;;  %v13250_v12 = vadd.f32 %v5458_v60, %v12824_v7  ;;  %v13253_v33 = vmul.f32 %v12755_v4, %v4220_v19 }
 0x399   : > { %v7510_v31 = vadd.s32 4294967294, %v2873_v30  ;;  %v2273_v5 = vsub.s32 4, %v12625_v44  ;;  %v2573_v18 = vadd.s32 127, %v2572_v49  ;;  %v2946_v46 = vsel %vm2942_vm1, %v13129_v20, %v2945_v24 }
 0x39a   : > { %16380 = vst [vmem:[#allocation42_spill] sm:$0xff] %v13250_v12  ;;  %16381 = vst [vmem:[#allocation66_spill] sm:$0xff] %v13253_v33  ;;  %v2944_v36 = vsel %vm2940_vm12, %v2924_v32, %v13127_v48  ;;  %v2494_v22 = vsel %vm2487_vm11, %v2490_v38, %v2493_v47  ;;  %v2786_v7 = vxor.u32 2147483648, %v2785_v29  ;;  %v2568_v2 = vsub.s32 32, %v13190_v13  ;;  %v16400_v12 = vld [vmem:[#allocation21_spill] sm:$0xff] }
 0x39b   : > { %v2966_v4 = vadd.s32 1, %v13194_v27  ;;  %v2272_v15 = vsel %vm2189_vm3, %v2271_v43, %v2270_v8  ;;  %v7501_v60 = vmin.u32 %v2665_v61, %v13198_v25  ;;  %v13269_v62 = vshrl.u32 %v3175_v59, 30 }
 0x39c   : > { %vm2965_vm4 = vc.u32 %v13204_v63, %v13193_v1  ;;  %v13275_v20 = vmul.f32 %v16319_v42, %v13253_v33  ;;  %v2552_v48 = vadd.s32 %v12800_v0, %v12814_v17  ;;  %vm7511_vm6 = vcmp.lt.s32.totalorder %v7510_v31, 0  ;;  %v16394_v33 = vld [vmem:[#allocation101_spill] sm:$0xff] }
 0x39d   : > { %v2947_v30 = vsel %vm2941_vm0, %v2944_v36, %v2946_v46  ;;  %v2495_v8 = vsel %vm2485_vm9, nan, %v2494_v22  ;;  %v2274_v40 = vsel %vm2189_vm3, %v2273_v5, %v12625_v44  ;;  %vm2704_vm8 = vcmp.lt.s32.totalorder %v16332_v21, 0 }
 0x39e   : > { %16382 = vst [vmem:[#allocation63_spill] sm:$0xff] %v13275_v20  ;;  %v2574_v19 = vshll.u32 %v2573_v18, 23  ;;  %v2275_v10 = vsel %vm13231_vm2, %v16307_v57, %v2272_v15  ;;  %v2787_v17 = vsel %vm2704_vm8, %v2786_v7, %v2785_v29  ;;  %v2570_v0 = vshrl.u32 %v2552_v48, %v2568_v2  ;;  %v7952_v29 = vpop.f32.mrf.mxu1 }
 0x39f   : > { %v2967_v58 = vsel %vm2965_vm4, %v2966_v4, %v13194_v27  ;;  %v13293_v49 = vsel %vm7511_vm6, 0, %v7510_v31  ;;  %v2667_v56 = vclz %v7501_v60  ;;  %v3177_v38 = vshll.u32 %v13269_v62, 30  ;;  %v16386_v31 = vld [vmem:[#allocation102_spill] sm:$0xff] }
 0x3a0   : > { %v2963_v44 = vmul.u32 %v13182_v3, %v2947_v30  ;;  %v4159_v47 = vadd.f32 1.0, %v2495_v8  ;;  %v2276_v24 = vsel %vm13231_vm2, 0, %v2274_v40  ;;  %v16383_v43 = vand.u32 2147483647, %v16332_v21  ;;  %v16389_v30 = vld [vmem:[#allocation133_spill] sm:$0xff] }
 0x3a1   : > { %v2569_v27 = vshll.u32 %v13008_v26, %v13190_v13  ;;  %v2575_v32 = vor.u32 4788187, %v2574_v19  ;;  %v13313_v14 = vsub.s32 32, %v16386_v31  ;;  %8778 = vcosq.f32 %v2275_v10  ;;  %v8368_v26 = vld [vmem:[%s15636_s5 + $0x218] ss:$52 sps:$4 sm:$0xff]  }
 0x3a2   : > { %vm13301_vm12 = vcmp.le.f32.partialorder %v16383_v43, 0.7853982  ;;  %v13310_v3 = vadd.s32 %v2967_v58, %v2963_v44  ;;  %v13316_v5 = vadd.f32 %v13224_v37, %v5147_v50  ;;  %v2881_v36 = vsub.s32 4294967266, %v13293_v49  ;;  %7991 = vmatpush3.bf16.msra.mxu1 %v8368_v26  ;;  %v16392_v43 = vld [vmem:[#allocation75_spill] sm:$0xff] }
 0x3a3   : > { %v2790_v59 = vsel %vm13301_vm12, %v16332_v21, %v2787_v17  ;;  %v2571_v18 = vor.u32 %v2570_v0, %v2569_v27  ;;  %8780 = vsinq.f32 %v2275_v10  ;;  %v13323_v13 = vadd.f32 %v13224_v37, %v7952_v29  ;;  %7992 = vmatprep.subr.bf16.mxu1 %v16277_v9  ;;  %v16390_v17 = vld [vmem:[#allocation81_spill] sm:$0xff] }
 0x3a4   : > { %16387 = vst [vmem:[#allocation65_spill] sm:$0xff] %v13316_v5  ;;  %v7502_v46 = vadd.s32 4294967294, %v2667_v56  ;;  %v13326_v22 = vsub.s32 %v13200_v34, %v3177_v38  ;;  %v13328_v7 = vmul.f32 0.5, %v4159_v47  ;;  %v13330_v2 = vand.u32 3, %v2276_v24  ;;  %v16388_v34 = vld [vmem:[#allocation5_spill] sm:$0xff] }
 0x3a5   : > { %v2788_v4 = vsub.s32 4, %v12797_v53  ;;  %8782 = vcosq.f32 %v2790_v59  ;;  %v2576_v15 = vand.u32 2147483647, %v2575_v32  ;;  %v2969_v60 = vadd.s32 536870912, %v13310_v3 }
 0x3a6   : > { %8784 = vsinq.f32 %v2790_v59  ;;  %v3244_v50 = vshrl.u32 %v16038_v41, %v13313_v14  ;;  %v2578_v48 = vcvt.s32.f32 %v2571_v18  ;;  %v2861_v8 = vadd.s32 %v16389_v30, %v16388_v34 }
 0x3a7   : > { %v2882_v40 = vadd.s32 127, %v2881_v36  ;;  %v3247_v19 = vshrl.u32 %v16172_v28, %v13313_v14  ;;  %vm7503_vm1 = vcmp.lt.s32.totalorder %v7502_v46, 0  ;;  %v3180_v10 = vsub.s32 0, %v13326_v22 }
 0x3a8   : > { %v15931_v0 = vand.u32 2147483647, %v16390_v17  ;;  %v3243_v58 = vshll.u32 %v16060_v55, %v16386_v31  ;;  %v3235_v56 = vshrl.u32 %v16061_v11, %v13313_v14  ;;  %v16391_v38 = vmov 2131351028  }
 0x3a9   : > { %v3238_v44 = vshrl.u32 %v16391_v38, %v13313_v14  ;;  %v3241_v47 = vshrl.u32 %v16060_v55, %v13313_v14  ;;  %v3246_v24 = vshll.u32 %v16038_v41, %v16386_v31  ;;  %vm2498_vm15 = vcmp.lt.s32.totalorder %v16392_v43, 0 }
 0x3aa   : > { %v2579_v29 = vmul.f32 %v2578_v48, %v2576_v15  ;;  %v2877_v27 = vsub.s32 32, %v13293_v49  ;;  %v13355_v59 = vshrl.u32 %v2969_v60, 30  ;;  %v3245_v32 = vor.u32 %v3244_v50, %v3243_v58 }
 0x3ab   : > { %v3234_v18 = vshll.u32 %v16186_v35, %v16386_v31  ;;  %v3237_v36 = vshll.u32 %v16061_v11, %v16386_v31  ;;  %v3240_v26 = vshll.u32 %v16391_v38, %v16386_v31  ;;  %v3248_v34 = vor.u32 %v3247_v19, %v3246_v24 }
 0x3ac   : > { %16393 = vst [vmem:[#allocation62_spill] sm:$0xff] %v13355_v59  ;;  %v2883_v30 = vshll.u32 %v2882_v40, 23  ;;  %v13364_v51 = vsel %vm7503_vm1, 0, %v7502_v46  ;;  %v7521_v15 = vmin.u32 %v3180_v10, %v13326_v22  ;;  %v3224_v60 = vand.u32 8388607, %v15931_v0 }
 0x3ad   : > { %v13369_v50 = vor.u32 %v3235_v56, %v3234_v18  ;;  %v13371_v48 = vor.u32 %v3238_v44, %v3237_v36  ;;  %v13373_v58 = vor.u32 %v3241_v47, %v3240_v26  ;;  %vm3252_vm5 = vcmp.lt.s32.totalorder %v16394_v33, 4 }
 0x3ae   : > { %v2789_v31 = vsel %vm2704_vm8, %v2788_v4, %v12797_v53  ;;  %v16395_v46 = vand.u32 2147483647, %v16392_v43  ;;  %v2971_v19 = vshll.u32 %v13355_v59, 30  ;;  %v3258_v10 = vsel %vm3252_vm5, %v3245_v32, 920167782  ;;  %v8779_v18 = vpop.eup %8778 }
 0x3af   : > { %v2580_v56 = vxor.u32 2147483648, %v2579_v29  ;;  %v2879_v44 = vshrl.u32 %v2861_v8, %v2877_v27  ;;  %v2675_v47 = vsub.s32 4294967266, %v13364_v51  ;;  %v3262_v24 = vsel %vm3252_vm5, %v3248_v34, 1326507024 }
 0x3b0   : > { %vm13381_vm7 = vcmp.le.f32.partialorder %v16395_v46, 0.7853982  ;;  %vm2282_vm14 = vcmp.eq.s32.totalorder %v13330_v2, 0  ;;  %vm2285_vm0 = vcmp.eq.s32.totalorder %v13330_v2, 2  ;;  %v2878_v53 = vshll.u32 %v13099_v52, %v13293_v49  ;;  %v8781_v36 = vpop.eup %8780 }
 0x3b1   : > { %v3182_v4 = vclz %v7521_v15  ;;  %vm3249_vm13 = vcmp.lt.s32.totalorder %v16394_v33, 1  ;;  %vm3251_vm11 = vcmp.lt.s32.totalorder %v16394_v33, 3  ;;  %v2884_v8 = vor.u32 4788187, %v2883_v30 }
 0x3b2   : > { %v3225_v27 = vor.u32 8388608, %v3224_v60  ;;  %v3257_v26 = vsel %vm3249_vm13, %v13369_v50, %v13371_v48  ;;  %v3259_v34 = vsel %vm3251_vm11, %v13373_v58, %v3258_v10  ;;  %v8783_v46 = vpop.eup %8782  ;;  %v2791_v52 = vsel %vm13301_vm12, 0, %v2789_v31 }
 0x3b3   : > { %v13407_v49 = vsub.s32 %v13310_v3, %v2971_v19  ;;  %v3261_v30 = vsel %vm3249_vm13, %v13371_v48, %v13373_v58  ;;  %v3263_v15 = vsel %vm3251_vm11, %v3245_v32, %v3262_v24  ;;  %v8785_v60 = vpop.eup %8784  ;;  %v2581_v0 = vsel %vm2498_vm15, %v2580_v56, %v2579_v29 }
 0x3b4   : > { %v2880_v10 = vor.u32 %v2879_v44, %v2878_v53  ;;  %v2676_v16 = vadd.s32 127, %v2675_v47  ;;  %vm3250_vm3 = vcmp.lt.s32.totalorder %v16394_v33, 2  ;;  %vm2281_vm9 = vcmp.lt.s32.totalorder %v13330_v2, 2  ;;  %v16398_v44 = vld [vmem:[#allocation68_spill] sm:$0xff]  ;;  %v16399_v47 = vld [vmem:[#allocation13_spill] sm:$0xff] }
 0x3b5   : > { %v2283_v61 = vxor.u32 2147483648, %v8781_v36  ;;  %v2286_v3 = vxor.u32 2147483648, %v8779_v18  ;;  %v7522_v31 = vadd.s32 4294967294, %v3182_v4  ;;  %v3260_v19 = vsel %vm3250_vm3, %v3257_v26, %v3259_v34 }
 0x3b6   : > { %v2885_v45 = vand.u32 2147483647, %v2884_v8  ;;  %v2671_v20 = vsub.s32 32, %v13364_v51  ;;  %v3264_v32 = vsel %vm3250_vm3, %v3261_v30, %v3263_v15  ;;  %v13424_v24 = vshll.u32 %v3225_v27, 8 }
 0x3b7   : > { %v2795_v29 = vand.u32 3, %v2791_v52  ;;  %v2584_v56 = vsel %vm13381_vm7, %v16392_v43, %v2581_v0  ;;  %v2655_v53 = vadd.s32 %v16399_v47, %v16398_v44  ;;  %v2974_v4 = vsub.s32 0, %v13407_v49  ;;  %v16401_v52 = vld [vmem:[#allocation44_spill] sm:$0xff] }
 0x3b8   : > { %vm799_vm2 = vcmp.lt.f32.partialorder %v16400_v12, 10.0  ;;  %vm2279_vm4 = vweird.f32 %v16307_v57  ;;  %v2887_v8 = vcvt.s32.f32 %v2880_v10  ;;  %v2677_v26 = vshll.u32 %v2676_v16, 23 }
 0x3b9   : > { %v13435_v34 = vmul.u32.u64.low %v13424_v24, %v3260_v19  ;;  %v13436_v27 = vmul.u32.u64.high %v13424_v24, %v3260_v19, %v13435_v34  ;;  %v2582_v30 = vsub.s32 4, %v16401_v52  ;;  %vm7523_vm6 = vcmp.lt.s32.totalorder %v7522_v31, 0 }
 0x3ba   : > { %v13441_v0 = vmul.u32.u64.low %v13424_v24, %v3264_v32  ;;  %v13442_v15 = vmul.u32.u64.high %v13424_v24, %v3264_v32, %v13441_v0  ;;  %v2284_v44 = vsel %vm2282_vm14, %v8779_v18, %v2283_v61  ;;  %v2287_v47 = vsel %vm2285_vm0, %v2286_v3, %v8781_v36 }
 0x3bb   : > { %v2888_v10 = vmul.f32 %v2887_v8, %v2885_v45  ;;  %v2673_v16 = vshrl.u32 %v2655_v53, %v2671_v20  ;;  %v2798_v17 = vxor.u32 2147483648, %v8785_v60  ;;  %v2801_v9 = vxor.u32 2147483648, %v8783_v46  ;;  %v16407_v0 = vld [vmem:[#allocation6_spill] sm:$0xff] }
 0x3bc   : > { %8786 = vcosq.f32 %v2584_v56  ;;  %v7513_v19 = vmin.u32 %v2974_v4, %v13407_v49  ;;  %v2672_v42 = vshll.u32 %v13198_v25, %v13364_v51  ;;  %v2678_v5 = vor.u32 4788187, %v2677_v26 }
 0x3bd   : > { %v13451_v59 = vsel %vm7523_vm6, 0, %v7522_v31  ;;  %v3254_v18 = vsel %vm3252_vm5, %v13373_v58, 2102212464  ;;  %vm2794_vm8 = vweird.f32 %v16332_v21  ;;  %vm2797_vm12 = vcmp.eq.s32.totalorder %v2795_v29, 0  ;;  %v16409_v21 = vld [vmem:[#allocation142_spill] sm:$0xff] }
 0x3be   : > { %vm2800_vm1 = vcmp.eq.s32.totalorder %v2795_v29, 2  ;;  %v2583_v45 = vsel %vm2498_vm15, %v2582_v30, %v16401_v52  ;;  %v3233_v20 = vshrl.u32 %v16186_v35, %v13313_v14  ;;  %v2288_v25 = vsel %vm2281_vm9, %v2284_v44, %v2287_v47 }
 0x3bf   : > { %8788 = vsinq.f32 %v2584_v56  ;;  %v2889_v51 = vxor.u32 2147483648, %v2888_v10  ;;  %v2674_v36 = vor.u32 %v2673_v16, %v2672_v42  ;;  %v3190_v61 = vsub.s32 4294967266, %v13451_v59 }
 0x3c0   : > { %v2976_v58 = vclz %v7513_v19  ;;  %v3253_v3 = vsel %vm3249_vm13, %v3233_v20, %v13369_v50  ;;  %v3255_v31 = vsel %vm3251_vm11, %v13371_v48, %v3254_v18  ;;  %v2799_v32 = vsel %vm2797_vm12, %v8783_v46, %v2798_v17  ;;  %v5160_v48 = vpop.f32.mrf.mxu1  ;;  %v16402_v17 = vld [vmem:[#allocation76_spill] sm:$0xff]  ;;  %v16408_v18 = vld [vmem:[#allocation98_spill] sm:$0xff] }
 0x3c1   : > { %v2802_v53 = vsel %vm2800_vm1, %v2801_v9, %v8785_v60  ;;  %v2679_v14 = vand.u32 2147483647, %v2678_v5  ;;  %v3275_v2 = vadd.s32 1, %v13436_v27  ;;  %v4223_v42 = vsel %vm799_vm2, %v13328_v7, 0.0 }
 0x3c2   : > { %v2289_v56 = vsel %vm2279_vm4, nan, %v2288_v25  ;;  %vm2796_vm15 = vcmp.lt.s32.totalorder %v2795_v29, 2  ;;  %vm3274_vm5 = vc.u32 %v13442_v15, %v13435_v34  ;;  %v2585_v50 = vsel %vm13381_vm7, 0, %v2583_v45  ;;  %v7953_v47 = vpop.f32.mrf.mxu1 }
 0x3c3   : > { %vm2807_vm14 = vcmp.lt.s32.totalorder %v16402_v17, 0  ;;  %v2681_v9 = vcvt.s32.f32 %v2674_v36  ;;  %v3256_v5 = vsel %vm3250_vm3, %v3253_v3, %v3255_v31  ;;  %v2803_v46 = vsel %vm2796_vm15, %v2799_v32, %v2802_v53 }
 0x3c4   : > { %v2890_v12 = vsel %vm2807_vm14, %v2889_v51, %v2888_v10  ;;  %v3191_v57 = vadd.s32 127, %v3190_v61  ;;  %v7514_v7 = vadd.s32 4294967294, %v2976_v58  ;;  %v13487_v60 = vmul.f32 %v13227_v23, %v4223_v42 }
 0x3c5   : > { %v4157_v29 = vadd.f32 1.0, %v2289_v56  ;;  %v2682_v4 = vmul.f32 %v2681_v9, %v2679_v14  ;;  %v3276_v40 = vsel %vm3274_vm5, %v3275_v2, %v13436_v27  ;;  %v13490_v8 = vand.u32 3, %v2585_v50 }
 0x3c6   : > { %16403 = vst [vmem:[#allocation61_spill] sm:$0xff] %v13487_v60  ;;  %v16404_v26 = vand.u32 2147483647, %v16402_v17  ;;  %v3186_v52 = vsub.s32 32, %v13451_v59  ;;  %v3272_v30 = vmul.u32 %v13424_v24, %v3256_v5  ;;  %v2804_v23 = vsel %vm2794_vm8, nan, %v2803_v46 }
 0x3c7   : > { %v2891_v44 = vsub.s32 4, %v16407_v0  ;;  %v3170_v10 = vadd.s32 %v13091_v6, %v13109_v54  ;;  %v3192_v16 = vshll.u32 %v3191_v57, 23  ;;  %vm7515_vm0 = vcmp.lt.s32.totalorder %v7514_v7, 0  ;;  %v16411_v54 = vld [vmem:[#allocation60_spill] sm:$0xff]  ;;  %v16415_v57 = vld [vmem:[#allocation78_spill] sm:$0xff] }
 0x3c8   : > { %vm13494_vm7 = vcmp.le.f32.partialorder %v16404_v26, 0.7853982  ;;  %v13508_v19 = vadd.s32 %v3276_v40, %v3272_v30  ;;  %v13511_v45 = vsub.s32 32, %v16408_v18  ;;  %v13515_v20 = vmul.f32 %v16409_v21, %v13487_v60 }
 0x3c9   : > { %v2893_v27 = vsel %vm13494_vm7, %v16402_v17, %v2890_v12  ;;  %v8787_v24 = vpop.eup %8786  ;;  %v13517_v25 = vmul.f32 0.5, %v4157_v29  ;;  %v13520_v51 = vadd.f32 %v13224_v37, %v5160_v48  ;;  %v2683_v36 = vxor.u32 2147483648, %v2682_v4 }
 0x3ca   : > { %16410 = vst [vmem:[#allocation84_spill] sm:$0xff] %v13515_v20  ;;  %v13523_v6 = vadd.f32 %v13224_v37, %v7953_v47  ;;  %v16412_v61 = vand.u32 2147483647, %v16411_v54  ;;  %vm2601_vm11 = vcmp.lt.s32.totalorder %v16411_v54, 0  ;;  %v3188_v3 = vshrl.u32 %v3170_v10, %v3186_v52 }
 0x3cb   : > { %v13532_v31 = vadd.f32 1.0, %v2804_v23  ;;  %vm2594_vm3 = vcmp.eq.s32.totalorder %v13490_v8, 2  ;;  %v13538_v32 = vsel %vm2807_vm14, %v2891_v44, %v16407_v0  ;;  %8790 = vcosq.f32 %v2893_v27 }
 0x3cc   : > { %vm13527_vm13 = vcmp.le.f32.partialorder %v16412_v61, 0.7853982  ;;  %v13541_v53 = vsel %vm7515_vm0, 0, %v7514_v7  ;;  %v8789_v14 = vpop.eup %8788  ;;  %vm2591_vm9 = vcmp.eq.s32.totalorder %v13490_v8, 0  ;;  %v3187_v2 = vshll.u32 %v13326_v22, %v13451_v59 }
 0x3cd   : > { %v3193_v42 = vor.u32 4788187, %v3192_v16  ;;  %v3278_v56 = vadd.s32 536870912, %v13508_v19  ;;  %v3038_v50 = vshrl.u32 %v16038_v41, %v13511_v45  ;;  %v2595_v48 = vxor.u32 2147483648, %v8787_v24 }
 0x3ce   : > { %8792 = vsinq.f32 %v2893_v27  ;;  %v2684_v9 = vsel %vm2601_vm11, %v2683_v36, %v2682_v4  ;;  %v3041_v5 = vshrl.u32 %v16172_v28, %v13511_v45  ;;  %v3189_v46 = vor.u32 %v3188_v3, %v3187_v2 }
 0x3cf   : > { %v2984_v12 = vsub.s32 4294967266, %v13541_v53  ;;  %v15942_v7 = vand.u32 2147483647, %v16415_v57  ;;  %v3037_v22 = vshll.u32 %v16060_v55, %v16408_v18  ;;  %v3029_v59 = vshrl.u32 %v16061_v11, %v13511_v45 }
 0x3d0   : > { %v3032_v29 = vshrl.u32 %v16391_v38, %v13511_v45  ;;  %v3035_v4 = vshrl.u32 %v16060_v55, %v13511_v45  ;;  %v3040_v40 = vshll.u32 %v16038_v41, %v16408_v18  ;;  %v2592_v26 = vxor.u32 2147483648, %v8789_v14 }
 0x3d1   : > { %v3194_v52 = vand.u32 2147483647, %v3193_v42  ;;  %v13565_v30 = vshrl.u32 %v3278_v56, 30  ;;  %v3039_v23 = vor.u32 %v3038_v50, %v3037_v22  ;;  %vm2590_vm2 = vcmp.lt.s32.totalorder %v13490_v8, 2  ;;  %v16416_v56 = vld [vmem:[#allocation96_spill] sm:$0xff] }
 0x3d2   : > { %v3028_v0 = vshll.u32 %v16186_v35, %v16408_v18  ;;  %v3031_v44 = vshll.u32 %v16061_v11, %v16408_v18  ;;  %v3034_v27 = vshll.u32 %v16391_v38, %v16408_v18  ;;  %v3042_v47 = vor.u32 %v3041_v5, %v3040_v40 }
 0x3d3   : > { %v2687_v10 = vsel %vm13527_vm13, %v16411_v54, %v2684_v9  ;;  %v3196_v16 = vcvt.s32.f32 %v3189_v46  ;;  %v2985_v36 = vadd.s32 127, %v2984_v12  ;;  %v3018_v61 = vand.u32 8388607, %v15942_v7 }
 0x3d4   : > { %v13579_v3 = vor.u32 %v3029_v59, %v3028_v0  ;;  %v13581_v2 = vor.u32 %v3032_v29, %v3031_v44  ;;  %v3036_v42 = vor.u32 %v3035_v4, %v3034_v27  ;;  %vm3046_vm4 = vcmp.lt.s32.totalorder %v16416_v56, 4 }
 0x3d5   : > { %vm2588_vm6 = vweird.f32 %v16392_v43  ;;  %v2596_v18 = vsel %vm2594_vm3, %v2595_v48, %v8789_v14  ;;  %v3197_v50 = vmul.f32 %v3196_v16, %v3194_v52  ;;  %v3280_v9 = vshll.u32 %v13565_v30, 30  ;;  %v16417_v14 = vld [vmem:[#allocation19_spill] sm:$0xff]  ;;  %v16418_v48 = vld [vmem:[#allocation26_spill] sm:$0xff] }
 0x3d6   : > { %v3052_v5 = vsel %vm3046_vm4, %v3039_v23, 920167782  ;;  %v2593_v46 = vsel %vm2591_vm9, %v8787_v24, %v2592_v26  ;;  %8794 = vcosq.f32 %v2687_v10  ;;  %v2980_v12 = vsub.s32 32, %v13541_v53 }
 0x3d7   : > { %v3056_v22 = vsel %vm3046_vm4, %v3042_v47, 1326507024  ;;  %8796 = vsinq.f32 %v2687_v10  ;;  %v2964_v59 = vadd.s32 %v13193_v1, %v13204_v63  ;;  %vm3043_vm8 = vcmp.lt.s32.totalorder %v16416_v56, 1 }
 0x3d8   : > { %vm3045_vm12 = vcmp.lt.s32.totalorder %v16416_v56, 3  ;;  %vm797_vm1 = vcmp.lt.f32.partialorder %v16417_v14, 10.0  ;;  %vm802_vm15 = vcmp.lt.f32.partialorder %v16418_v48, 10.0  ;;  %v2986_v29 = vshll.u32 %v2985_v36, 23  ;;  %v8791_v26 = vpop.eup %8790  ;;  %v16419_v36 = vld [vmem:[#allocation82_spill] sm:$0xff] }
 0x3d9   : > { %v3019_v24 = vor.u32 8388608, %v3018_v61  ;;  %v3051_v4 = vsel %vm3043_vm8, %v13579_v3, %v13581_v2  ;;  %v3053_v40 = vsel %vm3045_vm12, %v3036_v42, %v3052_v5  ;;  %v3198_v1 = vxor.u32 2147483648, %v3197_v50 }
 0x3da   : > { %v13608_v63 = vsub.s32 %v13508_v19, %v3280_v9  ;;  %v3055_v52 = vsel %vm3043_vm8, %v13581_v2, %v3036_v42  ;;  %v3057_v0 = vsel %vm3045_vm12, %v3039_v23, %v3056_v22  ;;  %v4194_v44 = vmul.f32 0.5, %v13532_v31 }
 0x3db   : > { %v2894_v27 = vsel %vm13494_vm7, 0, %v13538_v32  ;;  %v2982_v47 = vshrl.u32 %v2964_v59, %v2980_v12  ;;  %vm3044_vm5 = vcmp.lt.s32.totalorder %v16416_v56, 2  ;;  %v8793_v10 = vpop.eup %8792  ;;  %v2597_v19 = vsel %vm2590_vm2, %v2593_v46, %v2596_v18  ;;  %v16425_v18 = vld [vmem:[#allocation80_spill] sm:$0xff] }
 0x3dc   : > { %v2685_v16 = vsub.s32 4, %v13139_v39  ;;  %vm3116_vm14 = vcmp.lt.s32.totalorder %v16419_v36, 0  ;;  %v3054_v23 = vsel %vm3044_vm5, %v3051_v4, %v3053_v40  ;;  %v2981_v31 = vshll.u32 %v13407_v49, %v13541_v53 }
 0x3dd   : > { %v2987_v61 = vor.u32 4788187, %v2986_v29  ;;  %v3058_v33 = vsel %vm3044_vm5, %v3055_v52, %v3057_v0  ;;  %v13630_v32 = vshll.u32 %v3019_v24, 8  ;;  %v2898_v9 = vand.u32 3, %v2894_v27 }
 0x3de   : > { %v16420_v8 = vand.u32 2147483647, %v16419_v36  ;;  %v3199_v5 = vsel %vm3116_vm14, %v3198_v1, %v3197_v50  ;;  %v3283_v46 = vsub.s32 0, %v13608_v63  ;;  %v2598_v49 = vsel %vm2588_vm6, nan, %v2597_v19 }
 0x3df   : > { %v2983_v53 = vor.u32 %v2982_v47, %v2981_v31  ;;  %v13644_v12 = vmul.u32.u64.low %v13630_v32, %v3054_v23  ;;  %v13645_v22 = vmul.u32.u64.high %v13630_v32, %v3054_v23, %v13644_v12  ;;  %v2904_v59 = vxor.u32 2147483648, %v8791_v26  ;;  %v5163_v23 = vpop.f32.mrf.mxu1 }
 0x3e0   : > { %vm13634_vm7 = vcmp.le.f32.partialorder %v16420_v8, 0.7853982  ;;  %v2686_v29 = vsel %vm2601_vm11, %v2685_v16, %v13139_v39  ;;  %v13652_v24 = vmul.u32.u64.low %v13630_v32, %v3058_v33  ;;  %v13653_v4 = vmul.u32.u64.high %v13630_v32, %v3058_v33, %v13652_v24 }
 0x3e1   : > { %v2901_v50 = vxor.u32 2147483648, %v8793_v10  ;;  %v3200_v40 = vsub.s32 4, %v13269_v62  ;;  %v3202_v43 = vsel %vm13634_vm7, %v16419_v36, %v3199_v5  ;;  %v2988_v1 = vand.u32 2147483647, %v2987_v61 }
 0x3e2   : > { %v13662_v52 = vsel %vm797_vm1, %v13517_v25, 0.0  ;;  %v4226_v39 = vsel %vm802_vm15, %v4194_v44, 0.0  ;;  %vm2900_vm0 = vcmp.eq.s32.totalorder %v2898_v9, 0  ;;  %v7525_v0 = vmin.u32 %v3283_v46, %v13608_v63 }
 0x3e3   : > { %vm2897_vm11 = vweird.f32 %v16402_v17  ;;  %vm2903_vm3 = vcmp.eq.s32.totalorder %v2898_v9, 2  ;;  %v2688_v27 = vsel %vm13527_vm13, 0, %v2686_v29  ;;  %v2990_v47 = vcvt.s32.f32 %v2983_v53  ;;  %v8795_v16 = vpop.eup %8794  ;;  %v16429_v17 = vld [vmem:[#allocation92_spill] sm:$0xff] }
 0x3e4   : > { %v3048_v19 = vsel %vm3046_vm4, %v3036_v42, 2102212464  ;;  %v4160_v14 = vadd.f32 1.0, %v2598_v49  ;;  %v2905_v25 = vsel %vm2903_vm3, %v2904_v59, %v8793_v10  ;;  %8798 = vcosq.f32 %v3202_v43  ;;  %v8797_v44 = vpop.eup %8796 }
 0x3e5   : > { %v3027_v48 = vshrl.u32 %v16186_v35, %v13511_v45  ;;  %v2902_v31 = vsel %vm2900_vm0, %v8791_v26, %v2901_v50  ;;  %v3201_v58 = vsel %vm3116_vm14, %v3200_v40, %v13269_v62  ;;  %8800 = vsinq.f32 %v3202_v43 }
 0x3e6   : > { %v2991_v61 = vmul.f32 %v2990_v47, %v2988_v1  ;;  %v2692_v33 = vand.u32 3, %v2688_v27  ;;  %v3285_v8 = vclz %v7525_v0  ;;  %v3049_v10 = vsel %vm3045_vm12, %v13581_v2, %v3048_v19 }
 0x3e7   : > { %v3047_v42 = vsel %vm3043_vm8, %v3027_v48, %v13579_v3  ;;  %v13685_v45 = vmul.f32 %v13323_v13, %v4226_v39  ;;  %vm2899_vm13 = vcmp.lt.s32.totalorder %v2898_v9, 2  ;;  %v13688_v26 = vadd.f32 %v13224_v37, %v5163_v23  ;;  %v16424_v3 = vld [vmem:[#allocation115_spill] sm:$0xff] }
 0x3e8   : > { %v3069_v62 = vadd.s32 1, %v13645_v22  ;;  %v2906_v5 = vsel %vm2899_vm13, %v2902_v31, %v2905_v25  ;;  %v3203_v46 = vsel %vm13634_vm7, 0, %v3201_v58  ;;  %vm3068_vm9 = vc.u32 %v13653_v4, %v13644_v12 }
 0x3e9   : > { %16423 = vst [vmem:[#allocation58_spill] sm:$0xff] %v13685_v45  ;;  %v13696_v49 = vsub.s32 32, %v16424_v3  ;;  %v2695_v2 = vxor.u32 2147483648, %v8797_v44  ;;  %v2698_v53 = vxor.u32 2147483648, %v8795_v16  ;;  %v2992_v13 = vxor.u32 2147483648, %v2991_v61 }
 0x3ea   : > { %v3050_v9 = vsel %vm3044_vm5, %v3047_v42, %v3049_v10  ;;  %v13700_v59 = vmul.f32 0.5, %v4160_v14  ;;  %vm2693_vm2 = vcmp.lt.s32.totalorder %v2692_v33, 2  ;;  %vm2694_vm4 = vcmp.eq.s32.totalorder %v2692_v33, 0  ;;  %v16430_v42 = vld [vmem:[#allocation24_spill] sm:$0xff] }
 0x3eb   : > { %v7526_v29 = vadd.s32 4294967294, %v3285_v8  ;;  %vm2691_vm6 = vweird.f32 %v16411_v54  ;;  %vm2697_vm8 = vcmp.eq.s32.totalorder %v2692_v33, 2  ;;  %v16426_v24 = vand.u32 2147483647, %v16425_v18  ;;  %v16434_v54 = vld [vmem:[#allocation23_spill] sm:$0xff] }
 0x3ec   : > { %vm2910_vm1 = vcmp.lt.s32.totalorder %v16425_v18, 0  ;;  %v3070_v40 = vsel %vm3068_vm9, %v3069_v62, %v13645_v22  ;;  %v2907_v56 = vsel %vm2897_vm11, nan, %v2906_v5  ;;  %v13713_v43 = vand.u32 3, %v3203_v46 }
 0x3ed   : > { %vm13705_vm12 = vcmp.le.f32.partialorder %v16426_v24, 0.7853982  ;;  %v3066_v1 = vmul.u32 %v13630_v32, %v3050_v9  ;;  %v3553_v39 = vshrl.u32 %v16038_v41, %v13696_v49  ;;  %v2696_v0 = vsel %vm2694_vm4, %v8795_v16, %v2695_v2 }
 0x3ee   : > { %v2699_v27 = vsel %vm2697_vm8, %v2698_v53, %v8797_v44  ;;  %v2993_v47 = vsel %vm2910_vm1, %v2992_v13, %v2991_v61  ;;  %v3556_v19 = vshrl.u32 %v16172_v28, %v13696_v49  ;;  %vm7527_vm15 = vcmp.lt.s32.totalorder %v7526_v29, 0 }
 0x3ef   : > { %v13722_v22 = vadd.s32 %v3070_v40, %v3066_v1  ;;  %v15941_v14 = vand.u32 2147483647, %v16429_v17  ;;  %v3552_v25 = vshll.u32 %v16060_v55, %v16424_v3  ;;  %v3544_v32 = vshrl.u32 %v16061_v11, %v13696_v49  ;;  %v16432_v1 = vld [vmem:[#allocation62_spill] sm:$0xff] }
 0x3f0   : > { %v3547_v16 = vshrl.u32 %v16391_v38, %v13696_v49  ;;  %v3550_v23 = vshrl.u32 %v16060_v55, %v13696_v49  ;;  %v3555_v48 = vshll.u32 %v16038_v41, %v16424_v3  ;;  %v4163_v44 = vadd.f32 1.0, %v2907_v56  ;;  %v16431_v56 = vld [vmem:[#allocation114_spill] sm:$0xff] }
 0x3f1   : > { %v2700_v31 = vsel %vm2693_vm2, %v2696_v0, %v2699_v27  ;;  %v2996_v58 = vsel %vm13705_vm12, %v16425_v18, %v2993_v47  ;;  %v3554_v61 = vor.u32 %v3553_v39, %v3552_v25  ;;  %v8799_v8 = vpop.eup %8798  ;;  %vm800_vm5 = vcmp.lt.f32.partialorder %v16430_v42, 10.0  ;;  %v16433_v0 = vld [vmem:[#allocation25_spill] sm:$0xff] }
 0x3f2   : > { %v3543_v10 = vshll.u32 %v16186_v35, %v16424_v3  ;;  %v3546_v62 = vshll.u32 %v16061_v11, %v16424_v3  ;;  %v3549_v5 = vshll.u32 %v16391_v38, %v16424_v3  ;;  %v3557_v46 = vor.u32 %v3556_v19, %v3555_v48  ;;  %v8801_v33 = vpop.eup %8800 }
 0x3f3   : > { %vm3209_vm14 = vcmp.eq.s32.totalorder %v13713_v43, 0  ;;  %v13748_v2 = vsel %vm7527_vm15, 0, %v7526_v29  ;;  %v3072_v53 = vadd.s32 536870912, %v13722_v22  ;;  %v3533_v13 = vand.u32 8388607, %v15941_v14  ;;  %v16444_v14 = vld [vmem:[#allocation110_spill] sm:$0xff] }
 0x3f4   : > { %v13753_v9 = vor.u32 %v3544_v32, %v3543_v10  ;;  %v13755_v24 = vor.u32 %v3547_v16, %v3546_v62  ;;  %v3551_v40 = vor.u32 %v3550_v23, %v3549_v5  ;;  %vm3561_vm7 = vcmp.lt.s32.totalorder %v16431_v56, 4 }
 0x3f5   : > { %v2701_v3 = vsel %vm2691_vm6, nan, %v2700_v31  ;;  %v2994_v39 = vsub.s32 4, %v16432_v1  ;;  %8802 = vcosq.f32 %v2996_v58  ;;  %v3567_v29 = vsel %vm3561_vm7, %v3554_v61, 920167782 }
 0x3f6   : > { %vm803_vm0 = vcmp.lt.f32.partialorder %v16433_v0, 10.0  ;;  %v3210_v27 = vxor.u32 2147483648, %v8801_v33  ;;  %v3213_v47 = vxor.u32 2147483648, %v8799_v8  ;;  %v3293_v19 = vsub.s32 4294967266, %v13748_v2  ;;  %v16439_v0 = vld [vmem:[#allocation57_spill] sm:$0xff] }
 0x3f7   : > { %v3571_v25 = vsel %vm3561_vm7, %v3557_v46, 1326507024  ;;  %vm3212_vm11 = vcmp.eq.s32.totalorder %v13713_v43, 2  ;;  %8804 = vsinq.f32 %v2996_v58  ;;  %vm3558_vm3 = vcmp.lt.s32.totalorder %v16431_v56, 1 }
 0x3f8   : > { %vm3560_vm13 = vcmp.lt.s32.totalorder %v16431_v56, 3  ;;  %vm801_vm9 = vcmp.lt.f32.partialorder %v16434_v54, 10.0  ;;  %v13771_v32 = vshrl.u32 %v3072_v53, 30  ;;  %v3534_v16 = vor.u32 8388608, %v3533_v13 }
 0x3f9   : > { %v3566_v23 = vsel %vm3558_vm3, %v13753_v9, %v13755_v24  ;;  %v3568_v48 = vsel %vm3560_vm13, %v3551_v40, %v3567_v29  ;;  %v4161_v31 = vadd.f32 1.0, %v2701_v3  ;;  %v2995_v58 = vsel %vm2910_vm1, %v2994_v39, %v16432_v1 }
 0x3fa   : > { %v3570_v10 = vsel %vm3558_vm3, %v13755_v24, %v3551_v40  ;;  %v3572_v62 = vsel %vm3560_vm13, %v3554_v61, %v3571_v25  ;;  %v3211_v5 = vsel %vm3209_vm14, %v8799_v8, %v3210_v27  ;;  %v3214_v46 = vsel %vm3212_vm11, %v3213_v47, %v8801_v33 }
 0x3fb   : > { %v3294_v53 = vadd.s32 127, %v3293_v19  ;;  %vm3559_vm2 = vcmp.lt.s32.totalorder %v16431_v56, 2  ;;  %v4224_v13 = vsel %vm800_vm5, %v13700_v59, 0.0  ;;  %v4195_v3 = vmul.f32 0.5, %v4163_v44 }
 0x3fc   : > { %vm3208_vm4 = vcmp.lt.s32.totalorder %v13713_v43, 2  ;;  %v3569_v1 = vsel %vm3559_vm2, %v3566_v23, %v3568_v48  ;;  %v3289_v39 = vsub.s32 32, %v13748_v2  ;;  %v3074_v61 = vshll.u32 %v13771_v32, 30  ;;  %v16437_v48 = vld [vmem:[#allocation65_spill] sm:$0xff] }
 0x3fd   : > { %v3573_v8 = vsel %vm3559_vm2, %v3570_v10, %v3572_v62  ;;  %v13800_v33 = vshll.u32 %v3534_v16, 8  ;;  %v13803_v29 = vmul.f32 %v13520_v51, %v4224_v13  ;;  %v4193_v42 = vmul.f32 0.5, %v4161_v31  ;;  %v7956_v10 = vpop.f32.mrf.mxu1 }
 0x3fe   : > { %v3215_v59 = vsel %vm3208_vm4, %v3211_v5, %v3214_v46  ;;  %v2997_v43 = vsel %vm13705_vm12, 0, %v2995_v58  ;;  %v3273_v44 = vadd.s32 %v13435_v34, %v13442_v15  ;;  %v3295_v27 = vshll.u32 %v3294_v53, 23 }
 0x3ff   : > { %16435 = vst [vmem:[#allocation79_spill] sm:$0xff] %v13803_v29  ;;  %v13810_v47 = vmul.u32.u64.low %v13800_v33, %v3569_v1  ;;  %v13811_v19 = vmul.u32.u64.high %v13800_v33, %v3569_v1, %v13810_v47  ;;  %v4227_v25 = vsel %vm803_vm0, %v4195_v3, 0.0  ;;  %vm3206_vm6 = vweird.f32 %v16419_v36  ;;  %v16441_v3 = vld [vmem:[#allocation111_spill] sm:$0xff] }
 0x400   : > { %v13818_v51 = vmul.u32.u64.low %v13800_v33, %v3573_v8  ;;  %v13819_v16 = vmul.u32.u64.high %v13800_v33, %v3573_v8, %v13818_v51  ;;  %v13822_v50 = vmul.f32 %v13523_v6, %v4227_v25  ;;  %v3216_v23 = vsel %vm3206_vm6, nan, %v3215_v59 }
 0x401   : > { %v3291_v34 = vshrl.u32 %v3273_v44, %v3289_v39  ;;  %v13825_v15 = vsub.s32 %v13722_v22, %v3074_v61  ;;  %v13829_v31 = vmul.f32 %v16437_v48, %v13662_v52  ;;  %v13833_v58 = vmul.f32 %v16439_v0, %v13685_v45 }
 0x402   : > { %16436 = vst [vmem:[#allocation17_spill] sm:$0xff] %v13822_v50  ;;  %v4225_v36 = vsel %vm801_vm9, %v4193_v42, 0.0  ;;  %v13837_v62 = vand.u32 3, %v2997_v43  ;;  %v13839_v6 = vpop.eup %8802  ;;  %v3290_v22 = vshll.u32 %v13608_v63, %v13748_v2  ;;  %v3296_v52 = vor.u32 4788187, %v3295_v27 }
 0x403   : > { %16438 = vst [vmem:[#allocation72_spill] sm:$0xff] %v13829_v31  ;;  %v13842_v5 = vmul.f32 %v13688_v26, %v4225_v36  ;;  %v3563_v46 = vsel %vm3561_vm7, %v3551_v40, 2102212464  ;;  %v13850_v53 = vmul.f32 %v16439_v0, %v13803_v29  ;;  %v4166_v54 = vadd.f32 1.0, %v3216_v23  ;;  %v16442_v23 = vld [vmem:[#allocation86_spill] sm:$0xff] }
 0x404   : > { %v3542_v13 = vshrl.u32 %v16186_v35, %v13696_v49  ;;  %v13855_v1 = vsub.s32 32, %v16441_v3  ;;  %v13857_v26 = vpop.eup %8804  ;;  %v13861_v63 = vmul.f32 %v16409_v21, %v13822_v50  ;;  %v13864_v2 = vadd.f32 %v13224_v37, %v7956_v10 }
 0x405   : > { %16440 = vst [vmem:[#allocation71_spill] sm:$0xff] %v13842_v5  ;;  %v3292_v40 = vor.u32 %v3291_v34, %v3290_v22  ;;  %v3077_v39 = vsub.s32 0, %v13825_v15  ;;  %vm3006_vm8 = vcmp.eq.s32.totalorder %v13837_v62, 2  ;;  %v3007_v61 = vxor.u32 2147483648, %v13839_v6  ;;  %v16443_v22 = vld [vmem:[#allocation113_spill] sm:$0xff] }
 0x406   : > { %v3562_v49 = vsel %vm3558_vm3, %v3542_v13, %v13753_v9  ;;  %v3564_v8 = vsel %vm3560_vm13, %v13755_v24, %v3563_v46  ;;  %v13877_v42 = vmul.f32 %v16409_v21, %v13842_v5  ;;  %v3297_v37 = vand.u32 2147483647, %v3296_v52 }
 0x407   : > { %v3584_v43 = vadd.s32 1, %v13811_v19  ;;  %v13881_v44 = vmul.f32 0.5, %v4166_v54  ;;  %vm3583_vm12 = vc.u32 %v13819_v16, %v13810_v47  ;;  %v3347_v9 = vshrl.u32 %v16038_v41, %v13855_v1 }
 0x408   : > { %v3299_v24 = vcvt.s32.f32 %v3292_v40  ;;  %v13889_v25 = vmin.u32 %v3077_v39, %v13825_v15  ;;  %v3565_v51 = vsel %vm3559_vm2, %v3562_v49, %v3564_v8  ;;  %v15940_v34 = vand.u32 2147483647, %v16442_v23 }
 0x409   : > { %v13897_v48 = vsel %vm3006_vm8, %v3007_v61, %v13857_v26  ;;  %v3346_v36 = vshll.u32 %v16060_v55, %v16441_v3  ;;  %v3350_v10 = vshrl.u32 %v16172_v28, %v13855_v1  ;;  %v13904_v52 = vsub.s32 32, %v16443_v22 }
 0x40a   : > { %v13906_v46 = vmul.f32 %v3299_v24, %v3297_v37  ;;  %v3585_v56 = vsel %vm3583_vm12, %v3584_v43, %v13811_v19  ;;  %v3338_v54 = vshrl.u32 %v16061_v11, %v13855_v1  ;;  %v3341_v13 = vshrl.u32 %v16391_v38, %v13855_v1 }
 0x40b   : > { %v3581_v40 = vmul.u32 %v13800_v33, %v3565_v51  ;;  %v3344_v39 = vshrl.u32 %v16060_v55, %v13855_v1  ;;  %v3348_v61 = vor.u32 %v3347_v9, %v3346_v36  ;;  %v3349_v49 = vshll.u32 %v16038_v41, %v16441_v3  ;;  %v8369_v33 = vld [vmem:[%s15636_s5 + $0x1b0] ss:$52 sps:$4 sm:$0xff]  }
 0x40c   : > { %v3079_v8 = vclz %v13889_v25  ;;  %v3327_v19 = vand.u32 8388607, %v15940_v34  ;;  %v3337_v37 = vshll.u32 %v16186_v35, %v16441_v3  ;;  %v3340_v43 = vshll.u32 %v16061_v11, %v16441_v3  ;;  %7993 = vmatpush3.bf16.msra.mxu1 %v8369_v33 }
 0x40d   : > { %vm3003_vm1 = vcmp.eq.s32.totalorder %v13837_v62, 0  ;;  %v13929_v9 = vadd.s32 %v3585_v56, %v3581_v40  ;;  %v3343_v24 = vshll.u32 %v16391_v38, %v16441_v3  ;;  %v3351_v25 = vor.u32 %v3350_v10, %v3349_v49  ;;  %v16445_v40 = vld [vmem:[#allocation87_spill] sm:$0xff] }
 0x40e   : > { %v3656_v51 = vshrl.u32 %v16038_v41, %v13904_v52  ;;  %v13935_v36 = vor.u32 %v3338_v54, %v3337_v37  ;;  %v13937_v34 = vor.u32 %v3341_v13, %v3340_v43  ;;  %vm3355_vm15 = vcmp.lt.s32.totalorder %v16444_v14, 4  ;;  %v16447_v43 = vld [vmem:[#allocation81_spill] sm:$0xff] }
 0x40f   : > { %v3659_v7 = vshrl.u32 %v16172_v28, %v13904_v52  ;;  %v3345_v59 = vor.u32 %v3344_v39, %v3343_v24  ;;  %v3361_v56 = vsel %vm3355_vm15, %v3348_v61, 920167782  ;;  %v3655_v10 = vshll.u32 %v16060_v55, %v16443_v22 }
 0x410   : > { %v16446_v49 = vmov 0.0   ;;  %v3647_v54 = vshrl.u32 %v16061_v11, %v13904_v52  ;;  %v3650_v13 = vshrl.u32 %v16391_v38, %v13904_v52  ;;  %v3653_v37 = vshrl.u32 %v16060_v55, %v13904_v52 }
 0x411   : > { %7994 = vmatprep.subr.bf16.mxu1 %v16446_v49  ;;  %v3658_v39 = vshll.u32 %v16038_v41, %v16443_v22  ;;  %vm3219_vm5 = vcmp.lt.s32.totalorder %v16447_v43, 0  ;;  %vm3352_vm14 = vcmp.lt.s32.totalorder %v16444_v14, 1  ;;  %vm3354_vm7 = vcmp.lt.s32.totalorder %v16444_v14, 3 }
 0x412   : > { %v3365_v33 = vsel %vm3355_vm15, %v3351_v25, 1326507024  ;;  %v3657_v24 = vor.u32 %v3656_v51, %v3655_v10  ;;  %v3646_v27 = vshll.u32 %v16186_v35, %v16443_v22  ;;  %v3649_v3 = vshll.u32 %v16061_v11, %v16443_v22 }
 0x413   : > { %v3652_v50 = vshll.u32 %v16391_v38, %v16443_v22  ;;  %v3660_v5 = vor.u32 %v3659_v7, %v3658_v39  ;;  %v3328_v45 = vor.u32 8388608, %v3327_v19  ;;  %v3360_v29 = vsel %vm3352_vm14, %v13935_v36, %v13937_v34  ;;  %v16452_v39 = vld [vmem:[#allocation112_spill] sm:$0xff] }
 0x414   : > { %v3362_v25 = vsel %vm3354_vm7, %v3345_v59, %v3361_v56  ;;  %v16448_v51 = vand.u32 2147483647, %v16445_v40  ;;  %vm3002_vm0 = vcmp.lt.s32.totalorder %v13837_v62, 2  ;;  %v16449_v60 = vand.u32 2147483647, %v16447_v43 }
 0x415   : > { %v13982_v7 = vor.u32 %v3647_v54, %v3646_v27  ;;  %v13984_v22 = vor.u32 %v3650_v13, %v3649_v3  ;;  %v3654_v19 = vor.u32 %v3653_v37, %v3652_v50  ;;  %vm3664_vm3 = vcmp.lt.s32.totalorder %v16452_v39, 4 }
 0x416   : > { %v3636_v10 = vand.u32 8388607, %v16448_v51  ;;  %vm13978_vm11 = vcmp.le.f32.partialorder %v16449_v60, 0.7853982  ;;  %v3587_v56 = vadd.s32 536870912, %v13929_v9  ;;  %v3364_v51 = vsel %vm3352_vm14, %v13937_v34, %v3345_v59 }
 0x417   : > { %v3366_v40 = vsel %vm3354_vm7, %v3348_v61, %v3365_v33  ;;  %v3670_v60 = vsel %vm3664_vm3, %v3657_v24, 920167782  ;;  %v16453_v27 = vxor.u32 2147483648, %v13857_v26  ;;  %v3301_v3 = vxor.u32 2147483648, %v13906_v46 }
 0x418   : > { %vm3353_vm13 = vcmp.lt.s32.totalorder %v16444_v14, 2  ;;  %v3674_v54 = vsel %vm3664_vm3, %v3660_v5, 1326507024  ;;  %vm3000_vm9 = vweird.f32 %v16425_v18  ;;  %v14007_v13 = vshll.u32 %v3328_v45, 8 }
 0x419   : > { %v3005_v50 = vsel %vm3003_vm1, %v13839_v6, %v16453_v27  ;;  %v3363_v61 = vsel %vm3353_vm13, %v3360_v29, %v3362_v25  ;;  %vm3661_vm2 = vcmp.lt.s32.totalorder %v16452_v39, 1  ;;  %vm3663_vm4 = vcmp.lt.s32.totalorder %v16452_v39, 3 }
 0x41a   : > { %v3367_v6 = vsel %vm3353_vm13, %v3364_v51, %v3366_v40  ;;  %v3637_v26 = vor.u32 8388608, %v3636_v10  ;;  %v3669_v5 = vsel %vm3661_vm2, %v13982_v7, %v13984_v22  ;;  %v3671_v37 = vsel %vm3663_vm4, %v3654_v19, %v3670_v60 }
 0x41b   : > { %v7518_v33 = vadd.s32 4294967294, %v3079_v8  ;;  %v14019_v29 = vshrl.u32 %v3587_v56, 30  ;;  %v3673_v45 = vsel %vm3661_vm2, %v13984_v22, %v3654_v19  ;;  %v3675_v25 = vsel %vm3663_vm4, %v3657_v24, %v3674_v54  ;;  %v16456_v54 = vld [vmem:[#allocation109_spill] sm:$0xff] }
 0x41c   : > { %v3302_v40 = vsel %vm3219_vm5, %v3301_v3, %v13906_v46  ;;  %v14030_v10 = vmul.u32.u64.low %v14007_v13, %v3363_v61  ;;  %v14031_v51 = vmul.u32.u64.high %v14007_v13, %v3363_v61, %v14030_v10  ;;  %vm3662_vm6 = vcmp.lt.s32.totalorder %v16452_v39, 2 }
 0x41d   : > { %16454 = vst [vmem:[#allocation122_spill] sm:$0xff] %v14019_v29  ;;  %v3357_v8 = vsel %vm3355_vm15, %v3345_v59, 2102212464  ;;  %v14038_v56 = vmul.u32.u64.low %v14007_v13, %v3367_v6  ;;  %v14039_v60 = vmul.u32.u64.high %v14007_v13, %v3367_v6, %v14038_v56  ;;  %v3672_v24 = vsel %vm3662_vm6, %v3669_v5, %v3671_v37 }
 0x41e   : > { %16455 = vst [vmem:[#allocation138_spill] sm:$0xff] %v14030_v10  ;;  %v3336_v46 = vshrl.u32 %v16186_v35, %v13855_v1  ;;  %v3676_v27 = vsel %vm3662_vm6, %v3673_v45, %v3675_v25  ;;  %v14047_v3 = vshll.u32 %v3637_v26, 8  ;;  %v14050_v61 = vsub.s32 32, %v16456_v54 }
 0x41f   : > { %v3009_v59 = vsel %vm3002_vm0, %v3005_v50, %v13897_v48  ;;  %v3305_v6 = vsel %vm13978_vm11, %v16447_v43, %v3302_v40  ;;  %vm7519_vm8 = vcmp.lt.s32.totalorder %v7518_v33, 0  ;;  %v3589_v5 = vshll.u32 %v14019_v29, 30  ;;  %v16458_v40 = vld [vmem:[#allocation83_spill] sm:$0xff] }
 0x420   : > { %v3356_v1 = vsel %vm3352_vm14, %v3336_v46, %v13935_v36  ;;  %v3358_v26 = vsel %vm3354_vm7, %v13937_v34, %v3357_v8  ;;  %v14066_v37 = vmul.u32.u64.low %v14047_v3, %v3672_v24  ;;  %v14067_v45 = vmul.u32.u64.high %v14047_v3, %v3672_v24, %v14066_v37 }
 0x421   : > { %v16457_v62 = vsub.s32 4, %v13565_v30  ;;  %v14079_v50 = vadd.s32 %v13644_v12, %v13653_v4  ;;  %v14082_v36 = vmul.u32.u64.low %v14047_v3, %v3676_v27  ;;  %v14083_v25 = vmul.u32.u64.high %v14047_v3, %v3676_v27, %v14082_v36 }
 0x422   : > { %v14087_v34 = vsel %vm3000_vm9, nan, %v3009_v59  ;;  %8806 = vcosq.f32 %v3305_v6  ;;  %v15958_v8 = vand.u32 2147483647, %v16458_v40  ;;  %v3441_v56 = vshrl.u32 %v16061_v11, %v14050_v61 }
 0x423   : > { %v14075_v48 = vsel %vm3219_vm5, %v16457_v62, %v13565_v30  ;;  %v14092_v30 = vsel %vm7519_vm8, 0, %v7518_v33  ;;  %v14095_v24 = vsub.s32 %v13929_v9, %v3589_v5  ;;  %v3359_v12 = vsel %vm3353_vm13, %v3356_v1, %v3358_v26 }
 0x424   : > { %v3444_v4 = vshrl.u32 %v16391_v38, %v14050_v61  ;;  %v3378_v18 = vadd.s32 1, %v14031_v51  ;;  %v3666_v46 = vsel %vm3664_vm3, %v3654_v19, 2102212464  ;;  %v3440_v27 = vshll.u32 %v16186_v35, %v16456_v54 }
 0x425   : > { %v3450_v33 = vshrl.u32 %v16038_v41, %v14050_v61  ;;  %v3443_v9 = vshll.u32 %v16061_v11, %v16456_v54  ;;  %v3447_v14 = vshrl.u32 %v16060_v55, %v14050_v61  ;;  %v3449_v59 = vshll.u32 %v16060_v55, %v16456_v54 }
 0x426   : > { %v3453_v5 = vshrl.u32 %v16172_v28, %v14050_v61  ;;  %vm3377_vm12 = vc.u32 %v14039_v60, %v14030_v10  ;;  %v3645_v19 = vshrl.u32 %v16186_v35, %v13904_v52  ;;  %v3430_v1 = vand.u32 8388607, %v15958_v8 }
 0x427   : > { %v3442_v26 = vor.u32 %v3441_v56, %v3440_v27  ;;  %v3445_v62 = vor.u32 %v3444_v4, %v3443_v9  ;;  %v3446_v36 = vshll.u32 %v16391_v38, %v16456_v54  ;;  %v3451_v23 = vor.u32 %v3450_v33, %v3449_v59  ;;  %v16459_v4 = vld [vmem:[#allocation30_spill] sm:$0xff] }
 0x428   : > { %v3452_v49 = vshll.u32 %v16038_v41, %v16456_v54  ;;  %v3087_v29 = vsub.s32 4294967266, %v14092_v30  ;;  %v3665_v10 = vsel %vm3661_vm2, %v3645_v19, %v13982_v7  ;;  %v3667_v52 = vsel %vm3663_vm4, %v13984_v22, %v3666_v46  ;;  %v16460_v7 = vld [vmem:[#allocation105_spill] sm:$0xff] }
 0x429   : > { %v3687_v56 = vadd.s32 1, %v14067_v45  ;;  %vm806_vm1 = vcmp.lt.f32.partialorder %v16459_v4, 10.0  ;;  %v3379_v27 = vsel %vm3377_vm12, %v3378_v18, %v14031_v51  ;;  %vm3686_vm15 = vc.u32 %v14083_v25, %v14066_v37 }
 0x42a   : > { %v3448_v54 = vor.u32 %v3447_v14, %v3446_v36  ;;  %v3454_v33 = vor.u32 %v3453_v5, %v3452_v49  ;;  %v3592_v9 = vsub.s32 0, %v14095_v24  ;;  %v3375_v59 = vmul.u32 %v14007_v13, %v3359_v12 }
 0x42b   : > { %vm3455_vm5 = vcmp.lt.s32.totalorder %v16460_v7, 1  ;;  %vm3458_vm14 = vcmp.lt.s32.totalorder %v16460_v7, 4  ;;  %v3668_v22 = vsel %vm3662_vm6, %v3665_v10, %v3667_v52  ;;  %v3431_v46 = vor.u32 8388608, %v3430_v1 }
 0x42c   : > { %v3463_v51 = vsel %vm3455_vm5, %v3442_v26, %v3445_v62  ;;  %v3464_v18 = vsel %vm3458_vm14, %v3451_v23, 920167782  ;;  %8808 = vsinq.f32 %v3305_v6  ;;  %v14148_v49 = vadd.s32 %v3379_v27, %v3375_v59  ;;  %v5176_v27 = vpop.f32.mrf.mxu1 }
 0x42d   : > { %v3688_v14 = vsel %vm3686_vm15, %v3687_v56, %v14067_v45  ;;  %vm3457_vm7 = vcmp.lt.s32.totalorder %v16460_v7, 3  ;;  %vm3456_vm0 = vcmp.lt.s32.totalorder %v16460_v7, 2  ;;  %v3467_v13 = vsel %vm3455_vm5, %v3445_v62, %v3448_v54 }
 0x42e   : > { %v3465_v39 = vsel %vm3457_vm7, %v3448_v54, %v3464_v18  ;;  %v3468_v10 = vsel %vm3458_vm14, %v3454_v33, 1326507024  ;;  %v3083_v12 = vsub.s32 32, %v14092_v30  ;;  %v3684_v6 = vmul.u32 %v14047_v3, %v3668_v22 }
 0x42f   : > { %v3466_v45 = vsel %vm3456_vm0, %v3463_v51, %v3465_v39  ;;  %v3469_v5 = vsel %vm3457_vm7, %v3451_v23, %v3468_v10  ;;  %v14165_v19 = vpop.eup %8806  ;;  %v3088_v1 = vadd.s32 127, %v3087_v29  ;;  %v7537_v36 = vmin.u32 %v3592_v9, %v14095_v24  ;;  %v14228_v10 = vld [vmem:[%s15635_s4 + $0x2] ss:$0 sm:$0xff] }
 0x430   : > { %v3470_v52 = vsel %vm3456_vm0, %v3467_v13, %v3469_v5  ;;  %v3471_v56 = vshll.u32 %v3431_v46, 8  ;;  %v3381_v33 = vadd.s32 536870912, %v14148_v49  ;;  %v14171_v59 = vadd.s32 %v3688_v14, %v3684_v6 }
 0x431   : > { %v3439_v3 = vshrl.u32 %v16186_v35, %v14050_v61  ;;  %v3460_v23 = vsel %vm3458_vm14, %v3448_v54, 2102212464  ;;  %v14186_v46 = vadd.f32 %v13861_v63, %v13833_v58  ;;  %v14190_v18 = vadd.f32 %v13877_v42, %v13850_v53  ;;  %v7957_v42 = vpop.f32.mrf.mxu1 }
 0x432   : > { %v14177_v22 = vmul.u32.u64.low %v3471_v56, %v3470_v52  ;;  %v14178_v51 = vmul.u32.u64.high %v3471_v56, %v3470_v52, %v14177_v22  ;;  %v14180_v29 = vmul.u32.u64.low %v3471_v56, %v3466_v45  ;;  %v14181_v9 = vmul.u32.u64.high %v3471_v56, %v3466_v45, %v14180_v29 }
 0x433   : > { %16461 = vst [vmem:[#allocation53_spill] sm:$0xff] %v14186_v46  ;;  %16462 = vst [vmem:[#allocation131_spill] sm:$0xff] %v14190_v18  ;;  %v4230_v61 = vsel %vm806_vm1, %v13881_v44, 0.0  ;;  %v3085_v54 = vshrl.u32 %v14079_v50, %v3083_v12  ;;  %v3306_v39 = vsel %vm13978_vm11, 0, %v14075_v48  ;;  %v3459_v58 = vsel %vm3455_vm5, %v3439_v3, %v3442_v26  ;;  %v16466_v22 = vld [vmem:[#allocation108_spill] sm:$0xff] }
 0x434   : > { %v14197_v14 = vmul.f32 %v13864_v2, %v4230_v61  ;;  %v3461_v53 = vsel %vm3457_vm7, %v3445_v62, %v3460_v23  ;;  %v4164_v63 = vadd.f32 1.0, %v14087_v34  ;;  %v3084_v44 = vshll.u32 %v13825_v15, %v14092_v30 }
 0x435   : > { %v3089_v50 = vshll.u32 %v3088_v1, 23  ;;  %v3594_v4 = vclz %v7537_v36  ;;  %v14209_v2 = vshrl.u32 %v3381_v33, 30  ;;  %v3690_v13 = vadd.s32 536870912, %v14171_v59 }
 0x436   : > { %16463 = vst [vmem:[#allocation127_spill] sm:$0xff] %v14197_v14  ;;  %vm3480_vm11 = vc.u32 %v14178_v51, %v14180_v29  ;;  %v3481_v20 = vadd.s32 1, %v14181_v9  ;;  %v14217_v48 = vmul.f32 %v16409_v21, %v13829_v31  ;;  %v14219_v34 = vand.u32 3, %v3306_v39 }
 0x437   : > { %v3086_v26 = vor.u32 %v3085_v54, %v3084_v44  ;;  %v3462_v15 = vsel %vm3456_vm0, %v3459_v58, %v3461_v53  ;;  %v14231_v12 = vadd.f32 %v14228_v10, %v5176_v27  ;;  %v14234_v6 = vadd.f32 %v14228_v10, %v7957_v42  ;;  %v16467_v54 = vld [vmem:[#allocation141_spill] sm:$0xff] }
 0x438   : > { %16464 = vst [vmem:[#allocation48_spill] sm:$0xff] %v14217_v48  ;;  %v14238_v45 = vmul.f32 %v16439_v0, %v14197_v14  ;;  %v3090_v7 = vor.u32 4788187, %v3089_v50  ;;  %v7538_v5 = vadd.s32 4294967294, %v3594_v4  ;;  %v3482_v1 = vsel %vm3480_vm11, %v3481_v20, %v14181_v9 }
 0x439   : > { %v8809_v36 = vpop.eup %8808  ;;  %v14241_v52 = vmul.f32 0.5, %v4164_v63  ;;  %v3383_v33 = vshll.u32 %v14209_v2, 30  ;;  %v14244_v3 = vshrl.u32 %v3690_v13, 30  ;;  %v3478_v27 = vmul.u32 %v3471_v56, %v3462_v15  ;;  %v16468_v63 = vld [vmem:[#allocation56_spill] sm:$0xff] }
 0x43a   : > { %16465 = vst [vmem:[#allocation46_spill] sm:$0xff] %v14238_v45  ;;  %vm3315_vm3 = vcmp.eq.s32.totalorder %v14219_v34, 2  ;;  %v3093_v23 = vcvt.s32.f32 %v3086_v26  ;;  %v15963_v61 = vand.u32 2147483647, %v16466_v22  ;;  %v3956_v39 = vshrl.u32 %v16061_v11, %v16467_v54 }
 0x43b   : > { %v3959_v58 = vshrl.u32 %v16391_v38, %v16467_v54  ;;  %vm3312_vm13 = vcmp.eq.s32.totalorder %v14219_v34, 0  ;;  %v14253_v9 = vadd.s32 %v3482_v1, %v3478_v27  ;;  %v3962_v53 = vshrl.u32 %v16060_v55, %v16467_v54 }
 0x43c   : > { %v3964_v56 = vshll.u32 %v16060_v55, %v16468_v63  ;;  %v3965_v42 = vshrl.u32 %v16038_v41, %v16467_v54  ;;  %v3091_v44 = vand.u32 2147483647, %v3090_v7  ;;  %vm7539_vm9 = vcmp.lt.s32.totalorder %v7538_v5, 0 }
 0x43d   : > { %v3955_v50 = vshll.u32 %v16186_v35, %v16468_v63  ;;  %v3958_v4 = vshll.u32 %v16061_v11, %v16468_v63  ;;  %v14266_v13 = vsub.s32 %v14148_v49, %v3383_v33  ;;  %v3692_v20 = vshll.u32 %v14244_v3, 30 }
 0x43e   : > { %v3961_v26 = vshll.u32 %v16391_v38, %v16468_v63  ;;  %v3966_v15 = vor.u32 %v3965_v42, %v3964_v56  ;;  %v3945_v1 = vand.u32 8388607, %v15963_v61  ;;  %v3968_v30 = vshrl.u32 %v16172_v28, %v16467_v54 }
 0x43f   : > { %v3957_v7 = vor.u32 %v3956_v39, %v3955_v50  ;;  %v3960_v27 = vor.u32 %v3959_v58, %v3958_v4  ;;  %v3313_v62 = vxor.u32 2147483648, %v8809_v36  ;;  %v3316_v8 = vxor.u32 2147483648, %v14165_v19  ;;  %v16469_v39 = vld [vmem:[#allocation126_spill] sm:$0xff]  ;;  %v16470_v58 = vld [vmem:[#allocation28_spill] sm:$0xff] }
 0x440   : > { %vm3013_vm2 = vcmp.lt.s32.totalorder %v16415_v57, 0  ;;  %v3484_v49 = vadd.s32 536870912, %v14253_v9  ;;  %v3963_v33 = vor.u32 %v3962_v53, %v3961_v26  ;;  %v3094_v14 = vmul.f32 %v3093_v23, %v3091_v44 }
 0x441   : > { %v14279_v31 = vsel %vm7539_vm9, 0, %v7538_v5  ;;  %v3967_v56 = vshll.u32 %v16038_v41, %v16468_v63  ;;  %vm3973_vm4 = vcmp.lt.s32.totalorder %v16469_v39, 4  ;;  %vm804_vm6 = vcmp.lt.f32.partialorder %v16470_v58, 10.0 }
 0x442   : > { %vm3311_vm8 = vcmp.lt.s32.totalorder %v14219_v34, 2  ;;  %v3386_v42 = vsub.s32 0, %v14266_v13  ;;  %v14288_v50 = vsub.s32 %v14171_v59, %v3692_v20  ;;  %vm3970_vm12 = vcmp.lt.s32.totalorder %v16469_v39, 1 }
 0x443   : > { %v3979_v5 = vsel %vm3973_vm4, %v3966_v15, 920167782  ;;  %v16471_v23 = vand.u32 2147483647, %v16415_v57  ;;  %v3946_v63 = vor.u32 8388608, %v3945_v1  ;;  %v3969_v44 = vor.u32 %v3968_v30, %v3967_v56 }
 0x444   : > { %vm3972_vm15 = vcmp.lt.s32.totalorder %v16469_v39, 3  ;;  %v3978_v4 = vsel %vm3970_vm12, %v3957_v7, %v3960_v27  ;;  %v3317_v59 = vsel %vm3315_vm3, %v3316_v8, %v8809_v36  ;;  %v3097_v20 = vsub.s32 4, %v13771_v32 }
 0x445   : > { %vm14295_vm1 = vcmp.le.f32.partialorder %v16471_v23, 0.7853982  ;;  %v14305_v26 = vshrl.u32 %v3484_v49, 30  ;;  %v3980_v23 = vsel %vm3972_vm15, %v3963_v33, %v3979_v5  ;;  %vm3309_vm5 = vweird.f32 %v16447_v43 }
 0x446   : > { %v3314_v30 = vsel %vm3312_vm13, %v14165_v19, %v3313_v62  ;;  %v3095_v1 = vxor.u32 2147483648, %v3094_v14  ;;  %vm3971_vm14 = vcmp.lt.s32.totalorder %v16469_v39, 2  ;;  %v3975_v56 = vsel %vm3973_vm4, %v3963_v33, 2102212464 }
 0x447   : > { %v3602_v8 = vsub.s32 4294967266, %v14279_v31  ;;  %v3954_v36 = vshrl.u32 %v16186_v35, %v16467_v54  ;;  %v3981_v49 = vsel %vm3971_vm14, %v3978_v4, %v3980_v23  ;;  %v3982_v5 = vsel %vm3970_vm12, %v3960_v27, %v3963_v33 }
 0x448   : > { %v7529_v61 = vmin.u32 %v3386_v42, %v14266_v13  ;;  %v3695_v19 = vsub.s32 0, %v14288_v50  ;;  %v3983_v62 = vsel %vm3973_vm4, %v3969_v44, 1326507024  ;;  %v3986_v46 = vshll.u32 %v3946_v63, 8 }
 0x449   : > { %v3486_v18 = vshll.u32 %v14305_v26, 30  ;;  %v3974_v48 = vsel %vm3970_vm12, %v3954_v36, %v3957_v7  ;;  %v3976_v54 = vsel %vm3972_vm15, %v3960_v27, %v3975_v56  ;;  %v3984_v4 = vsel %vm3972_vm15, %v3966_v15, %v3983_v62 }
 0x44a   : > { %v3096_v33 = vsel %vm3013_vm2, %v3095_v1, %v3094_v14  ;;  %v3985_v42 = vsel %vm3971_vm14, %v3982_v5, %v3984_v4  ;;  %v14338_v23 = vmul.u32.u64.low %v3986_v46, %v3981_v49  ;;  %v14339_v44 = vmul.u32.u64.high %v3986_v46, %v3981_v49, %v14338_v23 }
 0x44b   : > { %v3098_v7 = vsel %vm3013_vm2, %v3097_v20, %v13771_v32  ;;  %v3603_v63 = vadd.s32 127, %v3602_v8  ;;  %v14345_v36 = vmul.u32.u64.low %v3986_v46, %v3985_v42  ;;  %v14346_v27 = vmul.u32.u64.high %v3986_v46, %v3985_v42, %v14345_v36 }
 0x44c   : > { %v4228_v15 = vsel %vm804_vm6, %v14241_v52, 0.0  ;;  %v3318_v14 = vsel %vm3311_vm8, %v3314_v30, %v3317_v59  ;;  %v3598_v1 = vsub.s32 32, %v14279_v31  ;;  %v3977_v56 = vsel %vm3971_vm14, %v3974_v48, %v3976_v54 }
 0x44d   : > { %v3099_v32 = vsel %vm14295_vm1, %v16415_v57, %v3096_v33  ;;  %v3388_v20 = vclz %v7529_v61  ;;  %v7541_v8 = vmin.u32 %v3695_v19, %v14288_v50  ;;  %v14361_v49 = vsub.s32 %v14253_v9, %v3486_v18  ;;  %v5179_v61 = vpop.f32.mrf.mxu1  ;;  %v16475_v9 = vld [vmem:[#allocation119_spill] sm:$0xff] }
 0x44e   : > { %v14364_v52 = vmul.f32 %v14231_v12, %v4228_v15  ;;  %v3100_v34 = vsel %vm14295_vm1, 0, %v3098_v7  ;;  %v3582_v39 = vadd.s32 %v13810_v47, %v13819_v16  ;;  %v3996_v48 = vadd.s32 1, %v14339_v44 }
 0x44f   : > { %v3319_v58 = vsel %vm3309_vm5, nan, %v3318_v14  ;;  %v3604_v59 = vshll.u32 %v3603_v63, 23  ;;  %v3993_v30 = vmul.u32 %v3986_v46, %v3977_v56  ;;  %vm3995_vm7 = vc.u32 %v14346_v27, %v14338_v23  ;;  %v7960_v45 = vpop.f32.mrf.mxu1 }
 0x450   : > { %16474 = vst [vmem:[#allocation74_spill] sm:$0xff] %v14364_v52  ;;  %8810 = vcosq.f32 %v3099_v32  ;;  %v3600_v18 = vshrl.u32 %v3582_v39, %v3598_v1  ;;  %v3997_v12 = vsel %vm3995_vm7, %v3996_v48, %v14339_v44  ;;  %v3747_v53 = vsub.s32 32, %v16475_v9  ;;  %v16477_v44 = vld [vmem:[#allocation106_spill] sm:$0xff] }
 0x451   : > { %v7530_v5 = vadd.s32 4294967294, %v3388_v20  ;;  %v3697_v19 = vclz %v7541_v8  ;;  %v3489_v47 = vsub.s32 0, %v14361_v49  ;;  %v3998_v16 = vadd.s32 %v3997_v12, %v3993_v30 }
 0x452   : > { %v14380_v43 = vmul.f32 %v16439_v0, %v14364_v52  ;;  %v4167_v62 = vadd.f32 1.0, %v3319_v58  ;;  %v14382_v46 = vand.u32 3, %v3100_v34  ;;  %v14385_v54 = vadd.f32 %v14228_v10, %v5179_v61  ;;  %v16479_v52 = vld [vmem:[#allocation29_spill] sm:$0xff] }
 0x453   : > { %v3599_v4 = vshll.u32 %v14095_v24, %v14279_v31  ;;  %v3605_v33 = vor.u32 4788187, %v3604_v59  ;;  %v3999_v42 = vadd.s32 536870912, %v3998_v16  ;;  %v15968_v7 = vand.u32 2147483647, %v16477_v44 }
 0x454   : > { %16476 = vst [vmem:[#allocation47_spill] sm:$0xff] %v14380_v43  ;;  %8812 = vsinq.f32 %v3099_v32  ;;  %vm3528_vm0 = vcmp.lt.s32.totalorder %v16429_v17, 0  ;;  %v3750_v63 = vshrl.u32 %v16061_v11, %v3747_v53  ;;  %v3753_v36 = vshrl.u32 %v16391_v38, %v3747_v53 }
 0x455   : > { %v3759_v15 = vshrl.u32 %v16038_v41, %v3747_v53  ;;  %v3601_v14 = vor.u32 %v3600_v18, %v3599_v4  ;;  %vm7531_vm11 = vcmp.lt.s32.totalorder %v7530_v5, 0  ;;  %v7542_v1 = vadd.s32 4294967294, %v3697_v19  ;;  %v16478_v19 = vld [vmem:[#allocation122_spill] sm:$0xff] }
 0x456   : > { %v7533_v56 = vmin.u32 %v3489_v47, %v14361_v49  ;;  %v3749_v31 = vshll.u32 %v16186_v35, %v16475_v9  ;;  %v3752_v24 = vshll.u32 %v16061_v11, %v16475_v9  ;;  %v3756_v32 = vshrl.u32 %v16060_v55, %v3747_v53 }
 0x457   : > { %v3758_v20 = vshll.u32 %v16060_v55, %v16475_v9  ;;  %v3606_v8 = vand.u32 2147483647, %v3605_v33  ;;  %v14402_v34 = vshrl.u32 %v3999_v42, 30  ;;  %v3739_v39 = vand.u32 8388607, %v15968_v7 }
 0x458   : > { %v3755_v48 = vshll.u32 %v16391_v38, %v16475_v9  ;;  %v3751_v58 = vor.u32 %v3750_v63, %v3749_v31  ;;  %v3754_v61 = vor.u32 %v3753_v36, %v3752_v24  ;;  %v3762_v30 = vshrl.u32 %v16172_v28, %v3747_v53 }
 0x459   : > { %v3760_v59 = vor.u32 %v3759_v15, %v3758_v20  ;;  %v4199_v18 = vmul.f32 0.5, %v4167_v62  ;;  %v3608_v12 = vcvt.s32.f32 %v3601_v14  ;;  %v3612_v47 = vsub.s32 4, %v16478_v19  ;;  %v16480_v15 = vld [vmem:[#allocation118_spill] sm:$0xff] }
 0x45a   : > { %v14411_v4 = vsel %vm7531_vm11, 0, %v7530_v5  ;;  %vm7543_vm3 = vcmp.lt.s32.totalorder %v7542_v1, 0  ;;  %v3491_v33 = vclz %v7533_v56  ;;  %v3757_v42 = vor.u32 %v3756_v32, %v3755_v48 }
 0x45b   : > { %v3761_v7 = vshll.u32 %v16038_v41, %v16475_v9  ;;  %vm807_vm13 = vcmp.lt.f32.partialorder %v16479_v52, 10.0  ;;  %v3609_v63 = vmul.f32 %v3608_v12, %v3606_v8  ;;  %v4001_v36 = vshll.u32 %v14402_v34, 30 }
 0x45c   : > { %vm3764_vm9 = vcmp.lt.s32.totalorder %v16480_v15, 1  ;;  %vm3767_vm2 = vcmp.lt.s32.totalorder %v16480_v15, 4  ;;  %v16481_v62 = vand.u32 2147483647, %v16429_v17  ;;  %v3740_v14 = vor.u32 8388608, %v3739_v39 }
 0x45d   : > { %v3763_v56 = vor.u32 %v3762_v30, %v3761_v7  ;;  %v3772_v9 = vsel %vm3764_vm9, %v3751_v58, %v3754_v61  ;;  %v3773_v31 = vsel %vm3767_vm2, %v3760_v59, 920167782  ;;  %v8811_v24 = vpop.eup %8810  ;;  %v14432_v32 = vsel %vm3528_vm0, %v3612_v47, %v16478_v19 }
 0x45e   : > { %vm14421_vm4 = vcmp.le.f32.partialorder %v16481_v62, 0.7853982  ;;  %v3396_v20 = vsub.s32 4294967266, %v14411_v4  ;;  %v14436_v8 = vsel %vm7543_vm3, 0, %v7542_v1  ;;  %vm3766_vm6 = vcmp.lt.s32.totalorder %v16480_v15, 3 }
 0x45f   : > { %v7534_v7 = vadd.s32 4294967294, %v3491_v33  ;;  %v3748_v39 = vshrl.u32 %v16186_v35, %v3747_v53  ;;  %vm3765_vm8 = vcmp.lt.s32.totalorder %v16480_v15, 2  ;;  %v3774_v48 = vsel %vm3766_vm6, %v3757_v42, %v3773_v31 }
 0x460   : > { %vm3106_vm12 = vcmp.eq.s32.totalorder %v14382_v46, 0  ;;  %v14444_v30 = vsub.s32 %v3998_v16, %v4001_v36  ;;  %v3769_v12 = vsel %vm3767_vm2, %v3757_v42, 2102212464  ;;  %v3775_v1 = vsel %vm3765_vm8, %v3772_v9, %v3774_v48 }
 0x461   : > { %v3776_v19 = vsel %vm3764_vm9, %v3754_v61, %v3757_v42  ;;  %v3110_v47 = vxor.u32 2147483648, %v8811_v24  ;;  %v3610_v53 = vxor.u32 2147483648, %v3609_v63  ;;  %v3777_v33 = vsel %vm3767_vm2, %v3763_v56, 1326507024  ;;  %v8813_v31 = vpop.eup %8812 }
 0x462   : > { %v3780_v62 = vshll.u32 %v3740_v14, 8  ;;  %v3397_v0 = vadd.s32 127, %v3396_v20  ;;  %v3705_v16 = vsub.s32 4294967266, %v14436_v8  ;;  %v3768_v36 = vsel %vm3764_vm9, %v3748_v39, %v3751_v58 }
 0x463   : > { %v3778_v9 = vsel %vm3766_vm6, %v3760_v59, %v3777_v33  ;;  %vm3105_vm1 = vcmp.lt.s32.totalorder %v14382_v46, 2  ;;  %v3770_v42 = vsel %vm3766_vm6, %v3754_v61, %v3769_v12  ;;  %vm7535_vm15 = vcmp.lt.s32.totalorder %v7534_v7, 0 }
 0x464   : > { %v3779_v56 = vsel %vm3765_vm8, %v3776_v19, %v3778_v9  ;;  %v14464_v14 = vmul.u32.u64.low %v3780_v62, %v3775_v1  ;;  %v14465_v48 = vmul.u32.u64.high %v3780_v62, %v3775_v1, %v14464_v14  ;;  %v4004_v20 = vsub.s32 0, %v14444_v30  ;;  %v16485_v9 = vld [vmem:[#allocation138_spill] sm:$0xff] }
 0x465   : > { %v14469_v43 = vmul.u32.u64.low %v3780_v62, %v3779_v56  ;;  %v14470_v58 = vmul.u32.u64.high %v3780_v62, %v3779_v56, %v14469_v43  ;;  %v4231_v59 = vsel %vm807_vm13, %v4199_v18, 0.0  ;;  %v3107_v39 = vxor.u32 2147483648, %v8813_v31 }
 0x466   : > { %vm3109_vm5 = vcmp.eq.s32.totalorder %v14382_v46, 2  ;;  %v14476_v61 = vadd.f32 %v14228_v10, %v7960_v45  ;;  %v3611_v12 = vsel %vm3528_vm0, %v3610_v53, %v3609_v63  ;;  %v3392_v19 = vsub.s32 32, %v14411_v4 }
 0x467   : > { %v3771_v43 = vsel %vm3765_vm8, %v3768_v36, %v3770_v42  ;;  %v3398_v52 = vshll.u32 %v3397_v0, 23  ;;  %v3701_v18 = vsub.s32 32, %v14436_v8  ;;  %v14487_v33 = vsel %vm7535_vm15, 0, %v7534_v7 }
 0x468   : > { %16484 = vst [vmem:[#allocation51_spill] sm:$0xff] %v14476_v61  ;;  %v3790_v10 = vadd.s32 1, %v14465_v48  ;;  %v3111_v45 = vsel %vm3109_vm5, %v3110_v47, %v8813_v31  ;;  %v3376_v63 = vadd.s32 %v16485_v9, %v14039_v60  ;;  %v3706_v53 = vadd.s32 127, %v3705_v16 }
 0x469   : > { %v7553_v56 = vmin.u32 %v4004_v20, %v14444_v30  ;;  %v3108_v1 = vsel %vm3106_vm12, %v8811_v24, %v3107_v39  ;;  %v3685_v15 = vadd.s32 %v14066_v37, %v14083_v25  ;;  %v3787_v0 = vmul.u32 %v3780_v62, %v3771_v43 }
 0x46a   : > { %vm3789_vm14 = vc.u32 %v14470_v58, %v14464_v14  ;;  %v14500_v7 = vmul.f32 %v14234_v6, %v4231_v59  ;;  %v14505_v60 = vsel %vm14421_vm4, %v16429_v17, %v3611_v12  ;;  %v3499_v47 = vsub.s32 4294967266, %v14487_v33 }
 0x46b   : > { %v3791_v31 = vsel %vm3789_vm14, %v3790_v10, %v14465_v48  ;;  %v3394_v24 = vshrl.u32 %v3376_v63, %v3392_v19  ;;  %v3399_v16 = vor.u32 4788187, %v3398_v52  ;;  %v3703_v36 = vshrl.u32 %v3685_v15, %v3701_v18 }
 0x46c   : > { %v3792_v37 = vadd.s32 %v3791_v31, %v3787_v0  ;;  %v14511_v25 = vsel %vm3105_vm1, %v3108_v1, %v3111_v45  ;;  %v3707_v62 = vshll.u32 %v3706_v53, 23  ;;  %v3495_v6 = vsub.s32 32, %v14487_v33  ;;  %v16486_v1 = vld [vmem:[#allocation107_spill] sm:$0xff]  ;;  %v16488_v0 = vld [vmem:[#allocation125_spill] sm:$0xff] }
 0x46d   : > { %v4006_v42 = vclz %v7553_v56  ;;  %v3393_v20 = vshll.u32 %v14266_v13, %v14411_v4  ;;  %v3702_v48 = vshll.u32 %v14288_v50, %v14436_v8  ;;  %8814 = vcosq.f32 %v14505_v60  ;;  %v16487_v50 = vld [vmem:[#allocation43_spill] sm:$0xff] }
 0x46e   : > { %v3793_v39 = vadd.s32 536870912, %v3792_v37  ;;  %v3479_v46 = vadd.s32 %v14180_v29, %v14178_v51  ;;  %v3500_v12 = vadd.s32 127, %v3499_v47  ;;  %v15972_v19 = vand.u32 2147483647, %v16486_v1  ;;  %v8370_v51 = vld [vmem:[%s15636_s5 + $0x148] ss:$52 sps:$4 sm:$0xff]  }
 0x46f   : > { %v3395_v43 = vor.u32 %v3394_v24, %v3393_v20  ;;  %v3400_v52 = vand.u32 2147483647, %v3399_v16  ;;  %v14523_v18 = vor.u32 %v3703_v36, %v3702_v48  ;;  %v14527_v13 = vor.u32 4788187, %v3707_v62  ;;  %7995 = vmatpush3.bf16.msra.mxu1 %v8370_v51  ;;  %v8371_v24 = vld [vmem:[%s15636_s5 + $0xe0] ss:$52 sps:$4 sm:$0xff]  }
 0x470   : > { %v14525_v10 = vshrl.u32 %v3793_v39, 30  ;;  %v3497_v4 = vshrl.u32 %v3479_v46, %v3495_v6  ;;  %v7554_v45 = vadd.s32 4294967294, %v4006_v42  ;;  %v4059_v8 = vshrl.u32 %v16061_v11, %v16487_v50  ;;  %v16490_v46 = vld [vmem:[#allocation86_spill] sm:$0xff] }
 0x471   : > { %v4062_v9 = vshrl.u32 %v16391_v38, %v16487_v50  ;;  %v4065_v63 = vshrl.u32 %v16060_v55, %v16487_v50  ;;  %v4068_v53 = vshrl.u32 %v16038_v41, %v16487_v50  ;;  %v3501_v56 = vshll.u32 %v3500_v12, 23 }
 0x472   : > { %v3795_v29 = vshll.u32 %v14525_v10, 30  ;;  %v4048_v15 = vand.u32 8388607, %v15972_v19  ;;  %v4058_v47 = vshll.u32 %v16186_v35, %v16488_v0  ;;  %v4061_v31 = vshll.u32 %v16061_v11, %v16488_v0 }
 0x473   : > { %v4064_v36 = vshll.u32 %v16391_v38, %v16488_v0  ;;  %v4067_v62 = vshll.u32 %v16060_v55, %v16488_v0  ;;  %v4071_v6 = vshrl.u32 %v16172_v28, %v16487_v50  ;;  %v16489_v42 = vmov 0.0  }
 0x474   : > { %v14550_v16 = vsub.s32 %v3792_v37, %v3795_v29  ;;  %7996 = vmatprep.subr.bf16.mxu1 %v16489_v42  ;;  %v3402_v20 = vcvt.s32.f32 %v3395_v43  ;;  %v3496_v48 = vshll.u32 %v14361_v49, %v14487_v33  ;;  %vm7555_vm7 = vcmp.lt.s32.totalorder %v7554_v45, 0  ;;  %v8372_v49 = vld [vmem:[%s15636_s5 + $0x78] ss:$52 sps:$4 sm:$0xff]  }
 0x475   : > { %v4060_v39 = vor.u32 %v4059_v8, %v4058_v47  ;;  %vm3322_vm0 = vcmp.lt.s32.totalorder %v16490_v46, 0  ;;  %v4063_v37 = vor.u32 %v4062_v9, %v4061_v31  ;;  %v4066_v12 = vor.u32 %v4065_v63, %v4064_v36  ;;  %7997 = vmatpush3.bf16.msra.mxu1 %v8371_v24 }
 0x476   : > { %v4069_v51 = vor.u32 %v4068_v53, %v4067_v62  ;;  %v4070_v29 = vshll.u32 %v16038_v41, %v16488_v0  ;;  %v14564_v19 = vmul.f32 %v3402_v20, %v3400_v52  ;;  %v3709_v59 = vand.u32 2147483647, %v14527_v13  ;;  %7998 = vmatprep.subr.bf16.mxu1 %v16489_v42  ;;  %v16491_v13 = vld [vmem:[#allocation124_spill] sm:$0xff]  ;;  %v8373_v0 = vld [vmem:[%s15636_s5 + $0x10] ss:$52 sps:$4 sm:$0xff]  }
 0x477   : > { %v3711_v61 = vcvt.s32.f32 %v14523_v18  ;;  %v3798_v43 = vsub.s32 0, %v14550_v16  ;;  %v3498_v33 = vor.u32 %v3497_v4, %v3496_v48  ;;  %v3502_v8 = vor.u32 4788187, %v3501_v56 }
 0x478   : > { %v4049_v9 = vor.u32 8388608, %v4048_v15  ;;  %v4072_v63 = vor.u32 %v4071_v6, %v4070_v29  ;;  %vm3103_vm11 = vweird.f32 %v16415_v57  ;;  %v14575_v52 = vsel %vm7555_vm7, 0, %v7554_v45 }
 0x479   : > { %v4057_v18 = vshrl.u32 %v16186_v35, %v16487_v50  ;;  %vm4073_vm3 = vcmp.lt.s32.totalorder %v16491_v13, 1  ;;  %vm4076_vm13 = vcmp.lt.s32.totalorder %v16491_v13, 4  ;;  %vm4075_vm9 = vcmp.lt.s32.totalorder %v16491_v13, 3  ;;  %7999 = vmatpush3.bf16.msra.mxu1 %v8372_v49 }
 0x47a   : > { %v4078_v4 = vsel %vm4076_vm13, %v4066_v12, 2102212464  ;;  %v4081_v53 = vsel %vm4073_vm3, %v4060_v39, %v4063_v37  ;;  %v4082_v56 = vsel %vm4076_vm13, %v4069_v51, 920167782  ;;  %v7545_v15 = vmin.u32 %v3798_v43, %v14550_v16  ;;  %v14593_v47 = vpop.eup %8814  ;;  %8000 = vmatprep.subr.bf16.mxu1 %v16489_v42 }
 0x47b   : > { %vm4074_vm2 = vcmp.lt.s32.totalorder %v16491_v13, 2  ;;  %v4083_v45 = vsel %vm4075_vm9, %v4066_v12, %v4082_v56  ;;  %v4085_v50 = vsel %vm4073_vm3, %v4063_v37, %v4066_v12  ;;  %v3503_v31 = vand.u32 2147483647, %v3502_v8 }
 0x47c   : > { %v4084_v24 = vsel %vm4074_vm2, %v4081_v53, %v4083_v45  ;;  %v4086_v36 = vsel %vm4076_vm13, %v4072_v63, 1326507024  ;;  %v4089_v62 = vshll.u32 %v4049_v9, 8  ;;  %v4014_v6 = vsub.s32 4294967266, %v14575_v52 }
 0x47d   : > { %v4077_v20 = vsel %vm4073_vm3, %v4057_v18, %v4060_v39  ;;  %v4079_v48 = vsel %vm4075_vm9, %v4063_v37, %v4078_v4  ;;  %v4087_v12 = vsel %vm4075_vm9, %v4069_v51, %v4086_v36  ;;  %v3505_v29 = vcvt.s32.f32 %v3498_v33  ;;  %8001 = vmatpush3.bf16.msra.mxu1 %v8373_v0  ;;  %v16497_v0 = vld [vmem:[#allocation87_spill] sm:$0xff] }
 0x47e   : > { %v4088_v43 = vsel %vm4074_vm2, %v4085_v50, %v4087_v12  ;;  %v14607_v49 = vmul.u32.u64.low %v4089_v62, %v4084_v24  ;;  %v14608_v8 = vmul.u32.u64.high %v4089_v62, %v4084_v24, %v14607_v49  ;;  %v16492_v9 = vsub.s32 4, %v14209_v2  ;;  %8026 = vmatprep.subr.bf16.mxu1 %v16489_v42 }
 0x47f   : > { %v3800_v63 = vclz %v7545_v15  ;;  %v14616_v18 = vmul.u32.u64.low %v4089_v62, %v4088_v43  ;;  %v14617_v37 = vmul.u32.u64.high %v4089_v62, %v4088_v43, %v14616_v18  ;;  %v3404_v51 = vxor.u32 2147483648, %v14564_v19 }
 0x480   : > { %v3407_v39 = vsel %vm3322_vm0, %v16492_v9, %v14209_v2  ;;  %v3712_v33 = vmul.f32 %v3711_v61, %v3709_v59  ;;  %v3506_v4 = vmul.f32 %v3505_v29, %v3503_v31  ;;  %v4080_v53 = vsel %vm4074_vm2, %v4077_v20, %v4079_v48  ;;  %v16504_v18 = vld [vmem:[#allocation117_spill] sm:$0xff] }
 0x481   : > { %v14625_v56 = vmul.f32 %v16409_v21, %v14500_v7  ;;  %v16493_v2 = vsel %vm14421_vm4, 0, %v14432_v32  ;;  %v16494_v45 = vand.u32 2147483647, %v16490_v46  ;;  %v4015_v59 = vadd.s32 127, %v4014_v6  ;;  %v16505_v61 = vld [vmem:[#allocation97_spill] sm:$0xff] }
 0x482   : > { %v14631_v15 = vand.u32 3, %v16493_v2  ;;  %v3113_v13 = vsel %vm3103_vm11, nan, %v14511_v25  ;;  %vm3631_vm8 = vcmp.lt.s32.totalorder %v16497_v0, 0  ;;  %v4099_v5 = vadd.s32 1, %v14608_v8 }
 0x483   : > { %vm14635_vm6 = vcmp.le.f32.partialorder %v16494_v45, 0.7853982  ;;  %v4010_v32 = vsub.s32 32, %v14575_v52  ;;  %v7546_v31 = vadd.s32 4294967294, %v3800_v63  ;;  %v4096_v24 = vmul.u32 %v4089_v62, %v4080_v53 }
 0x484   : > { %v3409_v50 = vsel %vm14635_vm6, 0, %v3407_v39  ;;  %vm4098_vm4 = vc.u32 %v14617_v37, %v14607_v49  ;;  %v3405_v36 = vsel %vm3322_vm0, %v3404_v51, %v14564_v19  ;;  %v3713_v57 = vxor.u32 2147483648, %v3712_v33 }
 0x485   : > { %v3507_v25 = vxor.u32 2147483648, %v3506_v4  ;;  %v4100_v6 = vsel %vm4098_vm4, %v4099_v5, %v14608_v8  ;;  %v16498_v20 = vand.u32 2147483647, %v16497_v0  ;;  %v3994_v62 = vadd.s32 %v14338_v23, %v14346_v27 }
 0x486   : > { %v4016_v12 = vshll.u32 %v4015_v59, 23  ;;  %v4101_v29 = vadd.s32 %v4100_v6, %v4096_v24  ;;  %v14661_v43 = vadd.f32 1.0, %v3113_v13  ;;  %8816 = vsinq.f32 %v14505_v60 }
 0x487   : > { %vm14655_vm12 = vcmp.le.f32.partialorder %v16498_v20, 0.7853982  ;;  %v14664_v19 = vand.u32 3, %v3409_v50  ;;  %vm3425_vm1 = vcmp.lt.s32.totalorder %v16458_v40, 0  ;;  %v3408_v8 = vsel %vm14635_vm6, %v16490_v46, %v3405_v36 }
 0x488   : > { %v4012_v9 = vshrl.u32 %v3994_v62, %v4010_v32  ;;  %vm7547_vm15 = vcmp.lt.s32.totalorder %v7546_v31, 0  ;;  %v4102_v39 = vadd.s32 536870912, %v4101_v29  ;;  %v3714_v23 = vsel %vm3631_vm8, %v3713_v57, %v3712_v33 }
 0x489   : > { %v16501_v27 = vand.u32 2147483647, %v16458_v40  ;;  %v3508_v60 = vsel %vm3425_vm1, %v3507_v25, %v3506_v4  ;;  %v3850_v51 = vsub.s32 32, %v16504_v18  ;;  %v4011_v53 = vshll.u32 %v14444_v30, %v14575_v52 }
 0x48a   : > { %v4017_v2 = vor.u32 4788187, %v4016_v12  ;;  %v14683_v45 = vshrl.u32 %v4102_v39, 30  ;;  %v15973_v59 = vand.u32 2147483647, %v16505_v61  ;;  %8818 = vcosq.f32 %v3408_v8 }
 0x48b   : > { %vm14674_vm5 = vcmp.le.f32.partialorder %v16501_v27, 0.7853982  ;;  %v14688_v50 = vsel %vm7547_vm15, 0, %v7546_v31  ;;  %8820 = vsinq.f32 %v3408_v8  ;;  %v14693_v4 = vsel %vm14655_vm12, %v16497_v0, %v3714_v23 }
 0x48c   : > { %v4013_v5 = vor.u32 %v4012_v9, %v4011_v53  ;;  %v4104_v30 = vshll.u32 %v14683_v45, 30  ;;  %v3511_v52 = vsel %vm14674_vm5, %v16458_v40, %v3508_v60  ;;  %v3853_v32 = vshrl.u32 %v16061_v11, %v3850_v51 }
 0x48d   : > { %v3856_v24 = vshrl.u32 %v16391_v38, %v3850_v51  ;;  %v3859_v31 = vshrl.u32 %v16060_v55, %v3850_v51  ;;  %v4018_v36 = vand.u32 2147483647, %v4017_v2  ;;  %v3808_v57 = vsub.s32 4294967266, %v14688_v50 }
 0x48e   : > { %v14703_v25 = vsub.s32 %v4101_v29, %v4104_v30  ;;  %v3842_v6 = vand.u32 8388607, %v15973_v59  ;;  %v3852_v20 = vshll.u32 %v16186_v35, %v16504_v18  ;;  %v3855_v62 = vshll.u32 %v16061_v11, %v16504_v18 }
 0x48f   : > { %v3858_v12 = vshll.u32 %v16391_v38, %v16504_v18  ;;  %v3862_v8 = vshrl.u32 %v16038_v41, %v3850_v51  ;;  %8822 = vcosq.f32 %v3511_v52  ;;  %v4020_v9 = vcvt.s32.f32 %v4013_v5 }
 0x490   : > { %v4107_v39 = vsub.s32 0, %v14703_v25  ;;  %v3861_v29 = vshll.u32 %v16060_v55, %v16504_v18  ;;  %8824 = vsinq.f32 %v3511_v52  ;;  %v3854_v23 = vor.u32 %v3853_v32, %v3852_v20  ;;  %v16506_v32 = vld [vmem:[#allocation116_spill] sm:$0xff] }
 0x491   : > { %v3857_v27 = vor.u32 %v3856_v24, %v3855_v62  ;;  %v3860_v60 = vor.u32 %v3859_v31, %v3858_v12  ;;  %v14717_v53 = vmul.f32 %v4020_v9, %v4018_v36  ;;  %v3804_v11 = vsub.s32 32, %v14688_v50 }
 0x492   : > { %v7557_v2 = vmin.u32 %v4107_v39, %v14703_v25  ;;  %v3863_v38 = vor.u32 %v3862_v8, %v3861_v29  ;;  %v3809_v30 = vadd.s32 127, %v3808_v57  ;;  %v3843_v59 = vor.u32 8388608, %v3842_v6 }
 0x493   : > { %v3864_v5 = vshll.u32 %v16038_v41, %v16504_v18  ;;  %v3865_v33 = vshrl.u32 %v16172_v28, %v3850_v51  ;;  %v14724_v13 = vpop.eup %8816  ;;  %v3851_v52 = vshrl.u32 %v16186_v35, %v3850_v51  ;;  %vm3867_vm14 = vcmp.lt.s32.totalorder %v16506_v32, 1 }
 0x494   : > { %v4109_v55 = vclz %v7557_v2  ;;  %vm3870_vm7 = vcmp.lt.s32.totalorder %v16506_v32, 4  ;;  %vm3868_vm0 = vcmp.lt.s32.totalorder %v16506_v32, 2  ;;  %v3875_v36 = vsel %vm3867_vm14, %v3854_v23, %v3857_v27 }
 0x495   : > { %v3866_v24 = vor.u32 %v3865_v33, %v3864_v5  ;;  %v3872_v31 = vsel %vm3870_vm7, %v3860_v60, 2102212464  ;;  %vm3869_vm11 = vcmp.lt.s32.totalorder %v16506_v32, 3  ;;  %v3876_v41 = vsel %vm3870_vm7, %v3863_v38, 920167782 }
 0x496   : > { %v7558_v57 = vadd.s32 4294967294, %v4109_v55  ;;  %v3879_v18 = vsel %vm3867_vm14, %v3857_v27, %v3860_v60  ;;  %v3871_v28 = vsel %vm3867_vm14, %v3851_v52, %v3854_v23  ;;  %v3877_v6 = vsel %vm3869_vm11, %v3860_v60, %v3876_v41 }
 0x497   : > { %v3880_v20 = vsel %vm3870_vm7, %v3866_v24, 1326507024  ;;  %v3883_v62 = vshll.u32 %v3843_v59, 8  ;;  %v14731_v12 = vpop.eup %8818  ;;  %v3873_v35 = vsel %vm3869_vm11, %v3857_v27, %v3872_v31  ;;  %v3878_v51 = vsel %vm3868_vm0, %v3875_v36, %v3877_v6 }
 0x498   : > { %vm7559_vm3 = vcmp.lt.s32.totalorder %v7558_v57, 0  ;;  %v3881_v33 = vsel %vm3869_vm11, %v3863_v38, %v3880_v20  ;;  %v14735_v8 = vpop.eup %8820  ;;  %v3788_v59 = vadd.s32 %v14464_v14, %v14470_v58  ;;  %v4097_v23 = vadd.s32 %v14607_v49, %v14617_v37 }
 0x499   : > { %v4112_v9 = vsel %vm7559_vm3, 0, %v7558_v57  ;;  %v3882_v39 = vsel %vm3868_vm0, %v3879_v18, %v3881_v33  ;;  %v14739_v29 = vmul.u32.u64.low %v3883_v62, %v3878_v51  ;;  %v14740_v2 = vmul.u32.u64.high %v3883_v62, %v3878_v51, %v14739_v29 }
 0x49a   : > { %v4113_v27 = vsub.s32 32, %v4112_v9  ;;  %v4117_v60 = vsub.s32 4294967266, %v4112_v9  ;;  %vm3621_vm13 = vcmp.eq.s32.totalorder %v14631_v15, 0  ;;  %vm3624_vm9 = vcmp.eq.s32.totalorder %v14631_v15, 2 }
 0x49b   : > { %v4022_v38 = vxor.u32 2147483648, %v14717_v53  ;;  %v3810_v5 = vshll.u32 %v3809_v30, 23  ;;  %v14750_v55 = vmul.u32.u64.low %v3883_v62, %v3882_v39  ;;  %v14751_v52 = vmul.u32.u64.high %v3883_v62, %v3882_v39, %v14750_v55 }
 0x49c   : > { %v4114_v24 = vshll.u32 %v14703_v25, %v4112_v9  ;;  %v4115_v31 = vshrl.u32 %v4097_v23, %v4113_v27  ;;  %v4118_v36 = vadd.s32 127, %v4117_v60  ;;  %v3874_v14 = vsel %vm3868_vm0, %v3871_v28, %v3873_v35  ;;  %v14756_v58 = vpop.eup %8822 }
 0x49d   : > { %8826 = vcosq.f32 %v14693_v4  ;;  %vm3940_vm2 = vcmp.lt.s32.totalorder %v16466_v22, 0  ;;  %v3806_v49 = vshrl.u32 %v3788_v59, %v3804_v11  ;;  %v3893_v37 = vadd.s32 1, %v14740_v2  ;;  %v14761_v30 = vpop.eup %8824 }
 0x49e   : > { %8828 = vsinq.f32 %v14693_v4  ;;  %v3509_v25 = vsub.s32 4, %v14305_v26  ;;  %v4116_v57 = vor.u32 %v4115_v31, %v4114_v24  ;;  %v4119_v41 = vshll.u32 %v4118_v36, 23 }
 0x49f   : > { %vm3620_vm6 = vcmp.lt.s32.totalorder %v14631_v15, 2  ;;  %v3805_v32 = vshll.u32 %v14550_v16, %v14688_v50  ;;  %v3811_v18 = vor.u32 4788187, %v3810_v5  ;;  %v3890_v28 = vmul.u32 %v3883_v62, %v3874_v14  ;;  %v16507_v50 = vld [vmem:[#allocation27_spill] sm:$0xff] }
 0x4a0   : > { %vm3892_vm4 = vc.u32 %v14751_v52, %v14739_v29  ;;  %v3622_v11 = vxor.u32 2147483648, %v14724_v13  ;;  %v4023_v4 = vsel %vm3940_vm2, %v4022_v38, %v14717_v53  ;;  %v4120_v6 = vor.u32 4788187, %v4119_v41 }
 0x4a1   : > { %v3894_v20 = vsel %vm3892_vm4, %v3893_v37, %v14740_v2  ;;  %v4197_v35 = vmul.f32 0.5, %v14661_v43  ;;  %vm3415_vm15 = vcmp.eq.s32.totalorder %v14664_v19, 0  ;;  %v3807_v51 = vor.u32 %v3806_v49, %v3805_v32 }
 0x4a2   : > { %v3895_v16 = vadd.s32 %v3894_v20, %v3890_v28  ;;  %vm805_vm14 = vcmp.lt.f32.partialorder %v16507_v50, 10.0  ;;  %v16508_v62 = vsub.s32 4, %v14244_v3  ;;  %v16509_v9 = vand.u32 2147483647, %v16466_v22 }
 0x4a3   : > { %v4121_v39 = vand.u32 2147483647, %v4120_v6  ;;  %v4123_v43 = vcvt.s32.f32 %v4116_v57  ;;  %vm3618_vm0 = vweird.f32 %v16429_v17  ;;  %v3510_v2 = vsel %vm3425_vm1, %v3509_v25, %v14305_v26 }
 0x4a4   : > { %v3716_v33 = vsel %vm3631_vm8, %v16508_v62, %v14244_v3  ;;  %vm14785_vm7 = vcmp.le.f32.partialorder %v16509_v9, 0.7853982  ;;  %v3812_v23 = vand.u32 2147483647, %v3811_v18  ;;  %v3896_v3 = vadd.s32 536870912, %v3895_v16 }
 0x4a5   : > { %v4026_v59 = vsel %vm14785_vm7, %v16466_v22, %v4023_v4  ;;  %v3623_v27 = vsel %vm3621_vm13, %v14593_v47, %v3622_v11  ;;  %v16512_v60 = vxor.u32 2147483648, %v14593_v47  ;;  %vm3418_vm8 = vcmp.eq.s32.totalorder %v14664_v19, 2 }
 0x4a6   : > { %v4124_v5 = vmul.f32 %v4123_v43, %v4121_v39  ;;  %v3419_v26 = vxor.u32 2147483648, %v14731_v12  ;;  %v3718_v55 = vsel %vm14655_vm12, 0, %v3716_v33  ;;  %v3814_v24 = vcvt.s32.f32 %v3807_v51 }
 0x4a7   : > { %v3626_v38 = vsel %vm3624_vm9, %v16512_v60, %v14724_v13  ;;  %v14808_v31 = vshrl.u32 %v3896_v3, 30  ;;  %v3416_v36 = vxor.u32 2147483648, %v14735_v8  ;;  %v3512_v14 = vsel %vm14674_vm5, 0, %v3510_v2 }
 0x4a8   : > { %8830 = vcosq.f32 %v4026_v59  ;;  %v4125_v47 = vxor.u32 2147483648, %v4124_v5  ;;  %vm3412_vm1 = vweird.f32 %v16490_v46  ;;  %v3815_v13 = vmul.f32 %v3814_v24, %v3812_v23  ;;  %v14866_v23 = vpop.f32.mrf.mxu1 }
 0x4a9   : > { %8832 = vsinq.f32 %v4026_v59  ;;  %vm4043_vm11 = vcmp.lt.s32.totalorder %v16486_v1, 0  ;;  %v3898_v49 = vshll.u32 %v14808_v31, 30  ;;  %v3627_v48 = vsel %vm3620_vm6, %v3623_v27, %v3626_v38 }
 0x4aa   : > { %v14818_v37 = vand.u32 3, %v3718_v55  ;;  %v16513_v25 = vand.u32 2147483647, %v16486_v1  ;;  %v4126_v57 = vsel %vm4043_vm11, %v4125_v47, %v4124_v5  ;;  %v3420_v41 = vsel %vm3418_vm8, %v3419_v26, %v14735_v8  ;;  %v8827_v28 = vpop.eup %8826 }
 0x4ab   : > { %v3516_v32 = vand.u32 3, %v3512_v14  ;;  %v14834_v18 = vsub.s32 %v3895_v16, %v3898_v49  ;;  %v3417_v11 = vsel %vm3415_vm15, %v14731_v12, %v3416_v36  ;;  %v4024_v4 = vsub.s32 4, %v14402_v34  ;;  %v8829_v20 = vpop.eup %8828  ;;  %v14886_v36 = vpop.f32.mrf.mxu1 }
 0x4ac   : > { %vm14822_vm12 = vcmp.le.f32.partialorder %v16513_v25, 0.7853982  ;;  %v4127_v6 = vsub.s32 4, %v14683_v45  ;;  %v14843_v8 = vsel %vm805_vm14, %v4197_v35, 0.0  ;;  %v3816_v51 = vxor.u32 2147483648, %v3815_v13 }
 0x4ad   : > { %v4129_v15 = vsel %vm14822_vm12, %v16486_v1, %v4126_v57  ;;  %v3901_v16 = vsub.s32 0, %v14834_v18  ;;  %v14848_v62 = vsel %vm3618_vm0, nan, %v3627_v48  ;;  %vm3414_vm5 = vcmp.lt.s32.totalorder %v14664_v19, 2 }
 0x4ae   : > { %8834 = vcosq.f32 %v4129_v15  ;;  %v3519_v12 = vxor.u32 2147483648, %v14761_v30  ;;  %v3522_v33 = vxor.u32 2147483648, %v14756_v58  ;;  %v3421_v9 = vsel %vm3414_vm5, %v3417_v11, %v3420_v41 }
 0x4af   : > { %8836 = vsinq.f32 %v4129_v15  ;;  %vm3723_vm3 = vcmp.lt.s32.totalorder %v14818_v37, 2  ;;  %vm3518_vm13 = vcmp.eq.s32.totalorder %v3516_v32, 0  ;;  %v7549_v35 = vmin.u32 %v3901_v16, %v14834_v18 }
 0x4b0   : > { %vm3521_vm9 = vcmp.eq.s32.totalorder %v3516_v32, 2  ;;  %v4025_v50 = vsel %vm3940_vm2, %v4024_v4, %v14402_v34  ;;  %vm3734_vm6 = vcmp.lt.s32.totalorder %v16477_v44, 0  ;;  %v4128_v17 = vsel %vm4043_vm11, %v4127_v6, %v14683_v45 }
 0x4b1   : > { %v3725_v19 = vxor.u32 2147483648, %v8829_v20  ;;  %v3728_v39 = vxor.u32 2147483648, %v8827_v28  ;;  %v3817_v43 = vsel %vm3734_vm6, %v3816_v51, %v3815_v13  ;;  %v3903_v2 = vclz %v7549_v35 }
 0x4b2   : > { %v3422_v59 = vsel %vm3412_vm1, nan, %v3421_v9  ;;  %vm3724_vm4 = vcmp.eq.s32.totalorder %v14818_v37, 0  ;;  %v3520_v34 = vsel %vm3518_vm13, %v14756_v58, %v3519_v12  ;;  %v3523_v3 = vsel %vm3521_vm9, %v3522_v33, %v14761_v30 }
 0x4b3   : > { %v4027_v45 = vsel %vm14785_vm7, 0, %v4025_v50  ;;  %v16516_v27 = vand.u32 2147483647, %v16477_v44  ;;  %v4130_v46 = vsel %vm14822_vm12, 0, %v4128_v17  ;;  %v7550_v38 = vadd.s32 4294967294, %v3903_v2 }
 0x4b4   : > { %vm3727_vm15 = vcmp.eq.s32.totalorder %v14818_v37, 2  ;;  %vm3515_vm14 = vweird.f32 %v16458_v40  ;;  %vm3517_vm0 = vcmp.lt.s32.totalorder %v3516_v32, 2  ;;  %v3726_v53 = vsel %vm3724_vm4, %v8827_v28, %v3725_v19  ;;  %v16519_v37 = vld [vmem:[#allocation31_spill] sm:$0xff] }
 0x4b5   : > { %vm14875_vm2 = vcmp.le.f32.partialorder %v16516_v27, 0.7853982  ;;  %v8831_v30 = vpop.eup %8830  ;;  %v3729_v5 = vsel %vm3727_vm15, %v3728_v39, %v8829_v20  ;;  %v3524_v26 = vsel %vm3517_vm0, %v3520_v34, %v3523_v3  ;;  %vm7551_vm7 = vcmp.lt.s32.totalorder %v7550_v38, 0  ;;  %v5195_v20 = vpop.f32.mrf.mxu1  ;;  %v16520_v3 = vld [vmem:[#allocation33_spill] sm:$0xff] }
 0x4b6   : > { %v3820_v58 = vsel %vm14875_vm2, %v16477_v44, %v3817_v43  ;;  %v8833_v55 = vpop.eup %8832  ;;  %v4168_v24 = vadd.f32 1.0, %v3422_v59  ;;  %v4031_v14 = vand.u32 3, %v4027_v45  ;;  %v4134_v47 = vand.u32 3, %v4130_v46  ;;  %v14907_v27 = vld [vmem:[%s15635_s4 + $0x2] ss:$0 sm:$0xff] }
 0x4b7   : > { %v3906_v13 = vsel %vm7551_vm7, 0, %v7550_v38  ;;  %8838 = vcosq.f32 %v3820_v58  ;;  %v3891_v49 = vadd.s32 %v14739_v29, %v14751_v52  ;;  %v3730_v63 = vsel %vm3723_vm3, %v3726_v53, %v3729_v5  ;;  %v7964_v39 = vpop.f32.mrf.mxu1 }
 0x4b8   : > { %v3907_v48 = vsub.s32 32, %v3906_v13  ;;  %v3911_v25 = vsub.s32 4294967266, %v3906_v13  ;;  %v3525_v57 = vsel %vm3515_vm14, nan, %v3524_v26  ;;  %v4037_v41 = vxor.u32 2147483648, %v8831_v30  ;;  %v16522_v26 = vld [vmem:[#allocation32_spill] sm:$0xff] }
 0x4b9   : > { %8840 = vsinq.f32 %v3820_v58  ;;  %v4034_v15 = vxor.u32 2147483648, %v8833_v55  ;;  %v3908_v28 = vshll.u32 %v14834_v18, %v3906_v13  ;;  %vm4033_vm8 = vcmp.eq.s32.totalorder %v4031_v14, 0 }
 0x4ba   : > { %v3909_v11 = vshrl.u32 %v3891_v49, %v3907_v48  ;;  %v3912_v4 = vadd.s32 127, %v3911_v25  ;;  %vm4036_vm1 = vcmp.eq.s32.totalorder %v4031_v14, 2  ;;  %v3818_v29 = vsub.s32 4, %v14525_v10 }
 0x4bb   : > { %v8835_v32 = vpop.eup %8834  ;;  %vm808_vm11 = vcmp.lt.f32.partialorder %v16519_v37, 10.0  ;;  %vm4139_vm12 = vcmp.eq.s32.totalorder %v4134_v47, 2  ;;  %v4169_v12 = vadd.f32 1.0, %v3525_v57  ;;  %v4038_v33 = vsel %vm4036_vm1, %v4037_v41, %v8833_v55  ;;  %v16528_v37 = vld [vmem:[#allocation47_spill] sm:$0xff] }
 0x4bc   : > { %v8837_v6 = vpop.eup %8836  ;;  %v4140_v52 = vxor.u32 2147483648, %v8835_v32  ;;  %v3910_v40 = vor.u32 %v3909_v11, %v3908_v28  ;;  %v3913_v16 = vshll.u32 %v3912_v4, 23  ;;  %vm4136_vm5 = vcmp.eq.s32.totalorder %v4134_v47, 0 }
 0x4bd   : > { %v4137_v51 = vxor.u32 2147483648, %v8837_v6  ;;  %v4035_v18 = vsel %vm4033_vm8, %v8831_v30, %v4034_v15  ;;  %vm4135_vm3 = vcmp.lt.s32.totalorder %v4134_v47, 2  ;;  %v14899_v17 = vmul.f32 %v14385_v54, %v14843_v8 }
 0x4be   : > { %v4141_v9 = vsel %vm4139_vm12, %v4140_v52, %v8837_v6  ;;  %v3914_v50 = vor.u32 4788187, %v3913_v16  ;;  %v4170_v19 = vadd.f32 1.0, %v14848_v62  ;;  %vm3721_vm13 = vweird.f32 %v16497_v0  ;;  %v16521_v0 = vld [vmem:[#allocation34_spill] sm:$0xff]  ;;  %v16529_v16 = vld [vmem:[#allocation57_spill] sm:$0xff] }
 0x4bf   : > { %v4138_v35 = vsel %vm4136_vm5, %v8835_v32, %v4137_v51  ;;  %v3731_v2 = vsel %vm3721_vm13, nan, %v3730_v63  ;;  %vm4032_vm9 = vcmp.lt.s32.totalorder %v4031_v14, 2  ;;  %v3917_v34 = vcvt.s32.f32 %v3910_v40 }
 0x4c0   : > { %v4142_v43 = vsel %vm4135_vm3, %v4138_v35, %v4141_v9  ;;  %v3915_v59 = vand.u32 2147483647, %v3914_v50  ;;  %vm810_vm4 = vcmp.lt.f32.partialorder %v16520_v3, 10.0  ;;  %v4200_v45 = vmul.f32 0.5, %v4168_v24  ;;  %v16532_v3 = vld [vmem:[#allocation46_spill] sm:$0xff] }
 0x4c1   : > { %v5193_v54 = vadd.f32 %v14907_v27, %v14866_v23  ;;  %v4039_v8 = vsel %vm4032_vm9, %v4035_v18, %v4038_v33  ;;  %vm4133_vm15 = vweird.f32 %v16486_v1  ;;  %vm811_vm14 = vcmp.lt.f32.partialorder %v16521_v0, 10.0  ;;  %v14920_v23 = vpop.f32.mrf.mxu1 }
 0x4c2   : > { %v4201_v62 = vmul.f32 0.5, %v4169_v12  ;;  %v3819_v46 = vsel %vm3734_vm6, %v3818_v29, %v14525_v10  ;;  %v4143_v38 = vsel %vm4133_vm15, nan, %v4142_v43  ;;  %v3918_v58 = vmul.f32 %v3917_v34, %v3915_v59 }
 0x4c3   : > { %v5418_v30 = vmul.f32 %v16409_v21, %v14899_v17  ;;  %v4171_v53 = vadd.f32 1.0, %v3731_v2  ;;  %v5196_v5 = vadd.f32 %v14907_v27, %v5195_v20  ;;  %vm4030_vm0 = vweird.f32 %v16466_v22  ;;  %v7965_v15 = vpop.f32.mrf.mxu1 }
 0x4c4   : > { %v4202_v1 = vmul.f32 0.5, %v4170_v19  ;;  %vm809_vm7 = vcmp.lt.f32.partialorder %v16522_v26, 10.0  ;;  %v4040_v55 = vsel %vm4030_vm0, nan, %v4039_v8  ;;  %v3919_v24 = vxor.u32 2147483648, %v3918_v58  ;;  %v8839_v14 = vpop.eup %8838  ;;  %v16531_v19 = vld [vmem:[#allocation37_spill] sm:$0xff]  ;;  %v16539_v26 = vld [vmem:[#allocation84_spill] sm:$0xff] }
 0x4c5   : > { %v4232_v10 = vsel %vm808_vm11, %v4200_v45, 0.0  ;;  %v3821_v47 = vsel %vm14875_vm2, 0, %v3819_v46  ;;  %v4175_v13 = vadd.f32 1.0, %v4143_v38  ;;  %vm3837_vm6 = vcmp.lt.s32.totalorder %v16505_v61, 0 }
 0x4c6   : > { %v8841_v49 = vpop.eup %8840  ;;  %v14928_v48 = vmul.f32 %v5193_v54, %v4232_v10  ;;  %v4233_v22 = vsel %vm809_vm7, %v4201_v62, 0.0  ;;  %v16524_v25 = vand.u32 2147483647, %v16505_v61  ;;  %v3920_v57 = vsel %vm3837_vm6, %v3919_v24, %v3918_v58  ;;  %v16533_v54 = vld [vmem:[#allocation51_spill] sm:$0xff] }
 0x4c7   : > { %v4203_v41 = vmul.f32 0.5, %v4171_v53  ;;  %v14938_v32 = vmul.f32 %v5196_v5, %v4233_v22  ;;  %v4174_v60 = vadd.f32 1.0, %v4040_v55  ;;  %v5204_v11 = vadd.f32 %v14907_v27, %v14886_v36  ;;  %v16537_v53 = vld [vmem:[#allocation42_spill] sm:$0xff]  ;;  %v16540_v24 = vld [vmem:[#allocation63_spill] sm:$0xff]  ;;  %v16544_v22 = vld [vmem:[#allocation53_spill] sm:$0xff] }
 0x4c8   : > { %16523 = vst [vmem:[#allocation73_spill] sm:$0xff] %v14928_v48  ;;  %vm14932_vm8 = vcmp.le.f32.partialorder %v16524_v25, 0.7853982  ;;  %v3825_v4 = vand.u32 3, %v3821_v47  ;;  %v3831_v6 = vxor.u32 2147483648, %v8839_v14  ;;  %v3828_v20 = vxor.u32 2147483648, %v8841_v49 }
 0x4c9   : > { %16527 = vst [vmem:[#allocation45_spill] sm:$0xff] %v14938_v32  ;;  %v3923_v28 = vsel %vm14932_vm8, %v16505_v61, %v3920_v57  ;;  %v4207_v29 = vmul.f32 0.5, %v4175_v13  ;;  %v3921_v52 = vsub.s32 4, %v14808_v31  ;;  %v5499_v51 = vadd.f32 %v5418_v30, %v16528_v37  ;;  %v16542_v47 = vld [vmem:[#allocation131_spill] sm:$0xff] }
 0x4ca   : > { %8842 = vcosq.f32 %v3923_v28  ;;  %v4234_v40 = vsel %vm810_vm4, %v4202_v1, 0.0  ;;  %v5421_v12 = vmul.f32 %v16529_v16, %v14928_v48  ;;  %v5220_v33 = vadd.f32 %v14907_v27, %v7965_v15  ;;  %v16538_v1 = vld [vmem:[#allocation38_spill] sm:$0xff] }
 0x4cb   : > { %8844 = vsinq.f32 %v3923_v28  ;;  %v4235_v36 = vsel %vm811_vm14, %v4203_v41, 0.0  ;;  %v5422_v9 = vmul.f32 %v16409_v21, %v14938_v32  ;;  %v4206_v18 = vmul.f32 0.5, %v4174_v60 }
 0x4cc   : > { %v5217_v35 = vadd.f32 %v14907_v27, %v7964_v39  ;;  %v14957_v50 = vmul.f32 %v5204_v11, %v4235_v36  ;;  %vm3827_vm2 = vcmp.eq.s32.totalorder %v3825_v4, 0  ;;  %vm3830_vm1 = vcmp.eq.s32.totalorder %v3825_v4, 2  ;;  %v16535_v39 = vld [vmem:[#allocation39_spill] sm:$0xff] }
 0x4cd   : > { %vm815_vm11 = vcmp.lt.f32.partialorder %v16531_v19, 10.0  ;;  %v3829_v43 = vsel %vm3827_vm2, %v8839_v14, %v3828_v20  ;;  %v3832_v2 = vsel %vm3830_vm1, %v3831_v6, %v8841_v49  ;;  %v3922_v34 = vsel %vm3837_vm6, %v3921_v52, %v14808_v31  ;;  %v16541_v14 = vld [vmem:[#allocation48_spill] sm:$0xff] }
 0x4ce   : > { %16530 = vst [vmem:[#allocation10_spill] sm:$0xff] %v14957_v50  ;;  %v4239_v59 = vsel %vm815_vm11, %v4207_v29, 0.0  ;;  %v5506_v45 = vadd.f32 %v14625_v56, %v16532_v3  ;;  %v14966_v8 = vmul.f32 %v16533_v54, %v4234_v40  ;;  %vm814_vm12 = vcmp.lt.f32.partialorder %v16535_v39, 10.0 }
 0x4cf   : > { %v14969_v0 = vmul.f32 %v5220_v33, %v4239_v59  ;;  %v5500_v62 = vrot.slane %v5499_v51, 4  ;;  %v5513_v46 = vadd.f32 %v5422_v9, %v5421_v12  ;;  %v4238_v38 = vsel %vm814_vm12, %v4206_v18, 0.0 }
 0x4d0   : > { %16534 = vst [vmem:[#allocation8_spill] sm:$0xff] %v14966_v8  ;;  %vm3826_vm5 = vcmp.lt.s32.totalorder %v3825_v4, 2  ;;  %v5424_v58 = vmul.f32 %v16409_v21, %v14957_v50  ;;  %v14973_v30 = vmul.f32 %v5217_v35, %v4238_v38  ;;  %v3924_v56 = vsel %vm14932_vm8, 0, %v3922_v34  ;;  %v16546_v4 = vld [vmem:[#allocation67_spill] sm:$0xff] }
 0x4d1   : > { %16536 = vst [vmem:[#allocation9_spill] sm:$0xff] %v14969_v0  ;;  %v3833_v31 = vsel %vm3826_vm5, %v3829_v43, %v3832_v2  ;;  %v5460_v5 = vrot.slane %v16537_v53, 2  ;;  %v5478_v55 = vadd.f32 %v16539_v26, %v16538_v1  ;;  %v5471_v10 = vadd.f32 %v16541_v14, %v16540_v24 }
 0x4d2   : > { %v16543_v13 = vrot.slane %v16542_v47, 4  ;;  %v16545_v25 = vrot.slane %v16544_v22, 4  ;;  %v5423_v63 = vmul.f32 %v16529_v16, %v14966_v8  ;;  %vm3824_vm3 = vweird.f32 %v16477_v44 }
 0x4d3   : > { %v5428_v41 = vmul.f32 %v16409_v21, %v14969_v0  ;;  %v5501_v60 = vadd.f32 %v5500_v62, %v5499_v51  ;;  %v5514_v15 = vrot.slane %v5513_v46, 4  ;;  %v3834_v28 = vsel %vm3824_vm3, nan, %v3833_v31 }
 0x4d4   : > { %v5487_v49 = vadd.f32 %v16543_v13, %v16542_v47  ;;  %v5494_v57 = vadd.f32 %v16545_v25, %v16544_v22  ;;  %v3928_v11 = vand.u32 3, %v3924_v56  ;;  %v16547_v6 = vrot.slane %v16546_v4, 2 }
 0x4d5   : > { %v5507_v29 = vrot.slane %v5506_v45, 4  ;;  %v5520_v52 = vadd.f32 %v5424_v58, %v5423_v63  ;;  %v5427_v37 = vmul.f32 %v16529_v16, %v14973_v30  ;;  %v15001_v44 = vadd.f32 %v5460_v5, %v16537_v53  ;;  %v5211_v53 = vpop.f32.mrf.mxu1 }
 0x4d6   : > { %v14996_v20 = vadd.f32 %v16547_v6, %v16546_v4  ;;  %v5479_v12 = vrot.slane %v5478_v55, 4  ;;  %v5472_v33 = vrot.slane %v5471_v10, 4  ;;  %v5488_v51 = vrot.slane %v5487_v49, 2  ;;  %v16550_v6 = vld [vmem:[#allocation120_spill] sm:$0xff] }
 0x4d7   : > { %v8843_v40 = vpop.eup %8842  ;;  %v5495_v9 = vrot.slane %v5494_v57, 2  ;;  %v4172_v18 = vadd.f32 1.0, %v3834_v28  ;;  %v5534_v35 = vadd.f32 %v5428_v41, %v5427_v37  ;;  %v5502_v43 = vrot.slane %v5501_v60, 2 }
 0x4d8   : > { %v8845_v36 = vpop.eup %8844  ;;  %v3934_v19 = vxor.u32 2147483648, %v8843_v40  ;;  %v5515_v2 = vadd.f32 %v5514_v15, %v5513_v46  ;;  %vm3933_vm13 = vcmp.eq.s32.totalorder %v3928_v11, 2  ;;  %v5508_v34 = vadd.f32 %v5507_v29, %v5506_v45 }
 0x4d9   : > { %v3931_v59 = vxor.u32 2147483648, %v8845_v36  ;;  %v5521_v3 = vrot.slane %v5520_v52, 4  ;;  %vm3930_vm9 = vcmp.eq.s32.totalorder %v3928_v11, 0  ;;  %v5473_v39 = vadd.f32 %v5472_v33, %v5471_v10 }
 0x4da   : > { %v3935_v54 = vsel %vm3933_vm13, %v3934_v19, %v8845_v36  ;;  %v5489_v62 = vadd.f32 %v5488_v51, %v5487_v49  ;;  %vm3929_vm4 = vcmp.lt.s32.totalorder %v3928_v11, 2  ;;  %v4204_v58 = vmul.f32 0.5, %v4172_v18  ;;  %v16548_v49 = vld [vmem:[#allocation35_spill] sm:$0xff] }
 0x4db   : > { %v3932_v38 = vsel %vm3930_vm9, %v8843_v40, %v3931_v59  ;;  %v5535_v31 = vrot.slane %v5534_v35, 4  ;;  %vm3927_vm15 = vweird.f32 %v16505_v61  ;;  %v5503_v5 = vadd.f32 %v5502_v43, %v5501_v60 }
 0x4dc   : > { %v3936_v56 = vsel %vm3929_vm4, %v3932_v38, %v3935_v54  ;;  %v5516_v1 = vrot.slane %v5515_v2, 2  ;;  %v5209_v46 = vadd.f32 %v14907_v27, %v14920_v23  ;;  %v5496_v45 = vadd.f32 %v5495_v9, %v5494_v57  ;;  %v16549_v23 = vld [vmem:[#allocation36_spill] sm:$0xff] }
 0x4dd   : > { %v3937_v26 = vsel %vm3927_vm15, nan, %v3936_v56  ;;  %v5509_v24 = vrot.slane %v5508_v34, 2  ;;  %v5522_v14 = vadd.f32 %v5521_v3, %v5520_v52  ;;  %v5480_v10 = vadd.f32 %v5479_v12, %v5478_v55  ;;  %v16553_v12 = vld [vmem:[#allocation64_spill] sm:$0xff] }
 0x4de   : > { %v4173_v47 = vadd.f32 1.0, %v3937_v26  ;;  %v5474_v13 = vrot.slane %v5473_v39, 2  ;;  %vm812_vm14 = vcmp.lt.f32.partialorder %v16548_v49, 10.0  ;;  %v5212_v22 = vadd.f32 %v14907_v27, %v5211_v53  ;;  %v16554_v54 = vld [vmem:[#allocation52_spill] sm:$0xff] }
 0x4df   : > { %vm5595_vm0 = vcmask 1041409   ;;  %v5490_v61 = vrot.slane %v5489_v62, 1  ;;  %v4236_v25 = vsel %vm812_vm14, %v4204_v58, 0.0  ;;  %v5536_v63 = vadd.f32 %v5535_v31, %v5534_v35 }
 0x4e0   : > { %v4205_v41 = vmul.f32 0.5, %v4173_v47  ;;  %v5504_v60 = vrot.slane %v5503_v5, 1  ;;  %v5517_v15 = vadd.f32 %v5516_v1, %v5515_v2  ;;  %v15008_v28 = vmul.f32 %v5209_v46, %v4236_v25 }
 0x4e1   : > { %vm813_vm7 = vcmp.lt.f32.partialorder %v16549_v23, 10.0  ;;  %vm5597_vm6 = vcmask 1042434   ;;  %v5497_v57 = vrot.slane %v5496_v45, 1  ;;  %v5510_v11 = vadd.f32 %v5509_v24, %v5508_v34 }
 0x4e2   : > { %v5523_v55 = vrot.slane %v5522_v14, 2  ;;  %v4237_v4 = vsel %vm813_vm7, %v4205_v41, 0.0  ;;  %v16551_v29 = vrot.slane %v16550_v6, 1  ;;  %v5462_v52 = vrot.slane %v15001_v44, 1 }
 0x4e3   : > { %v5475_v37 = vadd.f32 %v5474_v13, %v5473_v39  ;;  %v15015_v40 = vmul.f32 %v5212_v22, %v4237_v4  ;;  %v5543_v33 = vpack.c.bf16 %v16553_v12, %v16553_v12  ;;  %v5481_v51 = vrot.slane %v5480_v10, 2  ;;  %v16556_v13 = vld [vmem:[#allocation136_spill] sm:$0xff] }
 0x4e4   : > { %v5456_v27 = vadd.f32 %v16551_v29, %v16550_v6  ;;  %v5491_v36 = vadd.f32 %v5490_v61, %v5489_v62  ;;  %v5537_v9 = vrot.slane %v5536_v63, 2  ;;  %v5505_v18 = vadd.f32 %v5504_v60, %v5503_v5 }
 0x4e5   : > { %16552 = vst [vmem:[#allocation55_spill] sm:$0xff] %v15015_v40  ;;  %v5518_v35 = vrot.slane %v5517_v15, 1  ;;  %v5425_v19 = vmul.f32 %v16529_v16, %v15008_v28  ;;  %v5426_v43 = vmul.f32 %v16409_v21, %v15015_v40  ;;  %v5469_v2 = vrot.slane %v14996_v20, 1 }
 0x4e6   : > { %v5498_v59 = vadd.f32 %v5497_v57, %v5496_v45  ;;  %v5511_v34 = vrot.slane %v5510_v11, 1  ;;  %v5524_v3 = vadd.f32 %v5523_v55, %v5522_v14  ;;  %v16555_v39 = vpack.c.bf16 %v16554_v54, %v16554_v54 }
 0x4e7   : > { %v5463_v62 = vadd.f32 %v5462_v52, %v15001_v44  ;;  %v5476_v58 = vrot.slane %v5475_v37, 1  ;;  %v5527_v31 = vadd.f32 %v5426_v43, %v5425_v19  ;;  %v5544_v56 = vpack.c.bf16 %v5456_v27, %v5456_v27 }
 0x4e8   : > { %v5579_v38 = vunpack.c.l.b16 %v16555_v39  ;;  %v5482_v53 = vadd.f32 %v5481_v51, %v5480_v10  ;;  %v5549_v5 = vpack.c.bf16 %v5491_v36, %v5491_v36  ;;  %v5538_v16 = vadd.f32 %v5537_v9, %v5536_v63 }
 0x4e9   : > { %v5581_v1 = vunpack.c.l.b16 %v5543_v33  ;;  %v5551_v46 = vpack.c.bf16 %v5505_v18, %v5505_v18  ;;  %v5519_v21 = vadd.f32 %v5518_v35, %v5517_v15  ;;  %v5528_v26 = vrot.slane %v5527_v31, 4 }
 0x4ea   : > { %v5470_v45 = vadd.f32 %v5469_v2, %v14996_v20  ;;  %v5550_v24 = vpack.c.bf16 %v5498_v59, %v5498_v59  ;;  %v5512_v14 = vadd.f32 %v5511_v34, %v5510_v11  ;;  %v5525_v47 = vrot.slane %v5524_v3, 1 }
 0x4eb   : > { %v5596_v49 = vsel %vm5595_vm0, %v16556_v13, %v5579_v38  ;;  %v5545_v22 = vpack.c.bf16 %v5463_v62, %v5463_v62  ;;  %v5477_v44 = vadd.f32 %v5476_v58, %v5475_v37  ;;  %v5529_v61 = vadd.f32 %v5528_v26, %v5527_v31  ;;  %v8376_v13 = vld [vmem:[%s15636_s5 + $0x224] ss:$52 sps:$4 sm:$0xff]  }
 0x4ec   : > { %v5582_v25 = vunpack.c.l.b16 %v5544_v56  ;;  %v5483_v41 = vrot.slane %v5482_v53, 1  ;;  %v5587_v10 = vunpack.c.l.b16 %v5549_v5  ;;  %v5539_v60 = vrot.slane %v5538_v16, 1 }
 0x4ed   : > { %v5598_v63 = vsel %vm5597_vm6, %v5581_v1, %v5596_v49  ;;  %v5589_v23 = vunpack.c.l.b16 %v5551_v46  ;;  %v5553_v15 = vpack.c.bf16 %v5519_v21, %v5519_v21  ;;  %v5530_v57 = vrot.slane %v5529_v61, 2  ;;  %v8384_v49 = vld [vmem:[%s15636_s5 + $0x210] ss:$52 sps:$4 sm:$0xff]  }
 0x4ee   : > { %v5546_v55 = vpack.c.bf16 %v5470_v45, %v5470_v45  ;;  %v5588_v20 = vunpack.c.l.b16 %v5550_v24  ;;  %v5552_v4 = vpack.c.bf16 %v5512_v14, %v5512_v14  ;;  %v5526_v11 = vadd.f32 %v5525_v47, %v5524_v3  ;;  %v8374_v45 = vld [vmem:[%s15636_s5 + $0x2f4] ss:$52 sps:$4 sm:$0xff]   ;;  %v8375_v24 = vld [vmem:[%s15636_s5 + $0x28c] ss:$52 sps:$4 sm:$0xff]  }
 0x4ef   : > { %v5583_v6 = vunpack.c.l.b16 %v5545_v22  ;;  %v5547_v29 = vpack.c.bf16 %v5477_v44, %v5477_v44  ;;  %v5531_v27 = vadd.f32 %v5530_v57, %v5529_v61  ;;  %vm5599_vm8 = vcmask 1043459   ;;  %8007 = vmatpush3.bf16.msra.mxu0 %v8374_v45  ;;  %v8382_v14 = vld [vmem:[%s15636_s5 + $0x2e0] ss:$52 sps:$4 sm:$0xff]   ;;  %v8383_v47 = vld [vmem:[%s15636_s5 + $0x278] ss:$52 sps:$4 sm:$0xff]  }
 0x4f0   : > { %v5484_v52 = vadd.f32 %v5483_v41, %v5482_v53  ;;  %v5609_v37 = vsel %vm5595_vm0, %v5588_v20, %v5587_v10  ;;  %v5540_v12 = vadd.f32 %v5539_v60, %v5538_v16  ;;  %vm5601_vm2 = vcmask 1044484   ;;  %8008 = vmatprep.subr.bf16.mxu0 %v16489_v42  ;;  %v8377_v22 = vld [vmem:[%s15636_s5 + $0x1bc] ss:$52 sps:$4 sm:$0xff]   ;;  %v8378_v61 = vld [vmem:[%s15636_s5 + $0x154] ss:$52 sps:$4 sm:$0xff]  }
 0x4f1   : > { %v5610_v33 = vsel %vm5597_vm6, %v5589_v23, %v5609_v37  ;;  %v5591_v51 = vunpack.c.l.b16 %v5553_v15  ;;  %v5532_v36 = vrot.slane %v5531_v27, 1  ;;  %v5584_v9 = vunpack.c.l.b16 %v5546_v55  ;;  %v8385_v44 = vld [vmem:[%s15636_s5 + $0x1a8] ss:$52 sps:$4 sm:$0xff]   ;;  %v8379_v41 = vld [vmem:[%s15636_s5 + $0xec] ss:$52 sps:$4 sm:$0xff]  }
 0x4f2   : > { %v5590_v18 = vunpack.c.l.b16 %v5552_v4  ;;  %v5554_v35 = vpack.c.bf16 %v5526_v11, %v5526_v11  ;;  %v5600_v19 = vsel %vm5599_vm8, %v5582_v25, %v5598_v63  ;;  %v5585_v43 = vunpack.c.l.b16 %v5547_v29  ;;  %v8386_v25 = vld [vmem:[%s15636_s5 + $0x140] ss:$52 sps:$4 sm:$0xff]   ;;  %v8380_v10 = vld [vmem:[%s15636_s5 + $0x84] ss:$52 sps:$4 sm:$0xff]   ;;  %v8381_v60 = vld [vmem:[%s15636_s5 + $0x1c] ss:$52 sps:$4 sm:$0xff]  }
 0x4f3   : > { %v5533_v2 = vadd.f32 %v5532_v36, %v5531_v27  ;;  %v5602_v59 = vsel %vm5601_vm2, %v5583_v6, %v5600_v19  ;;  %vm5603_vm1 = vcmask 1045509   ;;  %v5548_v34 = vpack.c.bf16 %v5484_v52, %v5484_v52  ;;  %8009 = vmatpush3.bf16.msra.mxu0 %v8375_v24  ;;  %v7619_v63 = vld [vmem:[%s15635_s4 + $0x6] ss:$0 sm:$0xff]  ;;  %v8882_v45 = vld [vmem:[%s10306_s22 + $0x8] sm:$0xff] }
 0x4f4   : > { %v5556_v3 = vpack.c.bf16 %v5540_v12, %v5540_v12  ;;  %vm5605_vm11 = vcmask 1046534   ;;  %v5611_v54 = vsel %vm5599_vm8, %v5590_v18, %v5610_v33  ;;  %v5592_v62 = vunpack.c.l.b16 %v5554_v35  ;;  %8010 = vmatprep.subr.bf16.mxu0 %v16489_v42 }
 0x4f5   : > { %v5555_v39 = vpack.c.bf16 %v5533_v2, %v5533_v2  ;;  %v5612_v38 = vsel %vm5601_vm2, %v5591_v51, %v5611_v54  ;;  %v5604_v58 = vsel %vm5603_vm1, %v5584_v9, %v5602_v59  ;;  %vm5607_vm12 = vcmask 1047559  }
 0x4f6   : > { %v5606_v56 = vsel %vm5605_vm11, %v5585_v43, %v5604_v58  ;;  %v5586_v53 = vunpack.c.l.b16 %v5548_v34  ;;  %v5594_v5 = vunpack.c.l.b16 %v5556_v3  ;;  %v5613_v16 = vsel %vm5603_vm1, %v5592_v62, %v5612_v38  ;;  %v8387_v38 = vld [vmem:[%s15636_s5 + $0xd8] ss:$52 sps:$4 sm:$0xff]   ;;  %v8388_v62 = vld [vmem:[%s15636_s5 + $0x70] ss:$52 sps:$4 sm:$0xff]   ;;  %v8389_v58 = vld [vmem:[%s15636_s5 + $0x8] ss:$52 sps:$4 sm:$0xff]  }
 0x4f7   : > { %v5593_v31 = vunpack.c.l.b16 %v5555_v39  ;;  %8011 = vmatpush3.bf16.msra.mxu0 %v8376_v13  ;;  %v8391_v13 = vld [vmem:[%s15636_s5 + $0x284] ss:$52 sps:$4 sm:$0xff]  }
 0x4f8   : > { %v5608_v46 = vsel %vm5607_vm12, %v5586_v53, %v5606_v56  ;;  %8012 = vmatprep.subr.bf16.mxu0 %v16489_v42 }
 0x4f9   : > { %v5614_v1 = vsel %vm5605_vm11, %v5593_v31, %v5613_v16  ;;  %v7630_v31 = vld [vmem:[%s15635_s4 + $0x9] ss:$0 sm:$0xff] }
 0x4fa   : > { %v5615_v21 = vsel %vm5607_vm12, %v5594_v5, %v5614_v1 }
 0x4fb   : > { %v5616_v26 = vpack.c.b16 %v5615_v21, %v5608_v46  ;;  %8013 = vmatpush3.bf16.msra.mxu0 %v8377_v22  ;;  %v8881_v21 = vld [vmem:[%s10306_s22] sm:$0xff]  ;;  %v8393_v22 = vld [vmem:[%s15636_s5 + $0x1b4] ss:$52 sps:$4 sm:$0xff]   ;;  %s7731_s22 = sshll.u32 %s9016_s28, 8  ;;  %s8954_s28 = smov [#allocation2]  }
 0x4fc   : > { %8014 = vmatprep.subr.bf16.mxu0 %v16489_v42  ;;  %s7323_s18 = scalar_lea.hbm %s15638_s7, %s7731_s22  ;;  %s8887_s21 = sshll.u32 %s8954_s28, 4  ;;  %s8888_s21 = int_to_ptr.vmem [resolvable:$false] %s8887_s21 }
 0x4fd   : > { %8003 = vmatmul.mubr.bf16.vlgmr.msra.gmra.mxu1 %v5616_v26  ;;  %s8889_s23 = scalar_lea.vmem %s8888_s21, 512  ;;  %p8890_p0 = scmp.lt.s32.totalorder %s15593_s15, %s8888_s21 }
 0x4fe   : > { %8042 = vmatprep.mubr.msk.bf16.mxu1 %vm8952_vm10, %v16489_v42  ;;  %8027 = vmatpush3.bf16.msra.mxu1 %v8382_v14  ;;  %p8891_p1 = scmp.lt.s32.totalorder %s8889_s23, %s8883_s20 }
 0x4ff   : > { %8028 = vmatprep.subr.bf16.mxu1 %v16489_v42  ;;  %8015 = vmatpush3.bf16.msra.mxu0 %v8378_v61  ;;  %v8395_v61 = vld [vmem:[%s15636_s5 + $0xe4] ss:$52 sps:$4 sm:$0xff]  }
 0x500   : > { %8016 = vmatprep.subr.bf16.mxu0 %v16489_v42  ;;  %p8892_p2 = por %p8891_p1, %p8890_p0 }
 0x502   : > { %8029 = vmatpush3.bf16.msra.mxu1 %v8383_v47  ;;  %v8390_v47 = vld [vmem:[%s15636_s5 + $0x2ec] ss:$52 sps:$4 sm:$0xff]   ;;  %p8893_p3 = pnand %p8892_p2, %p8886_p13 }
 0x503   : > { %8030 = vmatprep.subr.bf16.mxu1 %v16489_v42  ;;  %8017 = vmatpush3.bf16.msra.mxu0 %v8379_v41  ;;  %v8397_v41 = vld [vmem:[%s15636_s5 + $0x14] ss:$52 sps:$4 sm:$0xff]  }
 0x504   : > { %8018 = vmatprep.subr.bf16.mxu0 %v16489_v42 }
 0x506   : > { %8031 = vmatpush3.bf16.msra.mxu1 %v8384_v49  ;;  %v8392_v49 = vld [vmem:[%s15636_s5 + $0x21c] ss:$52 sps:$4 sm:$0xff]  }
 0x507   : > { %8032 = vmatprep.subr.bf16.mxu1 %v16489_v42  ;;  %8019 = vmatpush3.bf16.msra.mxu0 %v8380_v10 }
 0x508   : > { %8020 = vmatprep.subr.bf16.mxu0 %v16489_v42 }
 0x50a   : > { %8033 = vmatpush3.bf16.msra.mxu1 %v8385_v44  ;;  %v8394_v44 = vld [vmem:[%s15636_s5 + $0x14c] ss:$52 sps:$4 sm:$0xff]  }
 0x50b   : > { %8034 = vmatprep.subr.bf16.mxu1 %v16489_v42  ;;  %8021 = vmatpush3.bf16.msra.mxu0 %v8381_v60 }
 0x50c   : > { %8046 = vmatprep.subr.bf16.mxu0 %v16489_v42 }
 0x50e   : > { %8035 = vmatpush3.bf16.msra.mxu1 %v8386_v25  ;;  %v8396_v25 = vld [vmem:[%s15636_s5 + $0x7c] ss:$52 sps:$4 sm:$0xff]  }
 0x50f   : > { %8036 = vmatprep.subr.bf16.mxu1 %v16489_v42 }
 0x512   : > { %8037 = vmatpush3.bf16.msra.mxu1 %v8387_v38  ;;  %v16570_v38 = vld [vmem:[#allocation61_spill] sm:$0xff] }
 0x513   : > { %8038 = vmatprep.subr.bf16.mxu1 %v16489_v42 }
 0x516   : > { %8039 = vmatpush3.bf16.msra.mxu1 %v8388_v62 }
 0x517   : > { %8040 = vmatprep.subr.bf16.mxu1 %v16489_v42 }
 0x51a   : > { %8041 = vmatpush3.bf16.msra.mxu1 %v8389_v58  ;;  %v16571_v58 = vld [vmem:[#allocation66_spill] sm:$0xff] }
 0x51b   : > { %8066 = vmatprep.subr.bf16.mxu1 %v16489_v42 }
 0x5bd   : > { %v5700_v23 = vpop.f32.mrf.mxu1 }
 0x5be   : > { %v5701_v15 = vadd.f32 %v7619_v63, %v5700_v23 }
 0x5bf   : > { %v8004_v57 = vpop.f32.mrf.mxu1 }
 0x5c0   : > { %v5709_v55 = vand.u32 2147483647, %v5701_v15  ;;  %v5707_v35 = vmax.f32 %v5701_v15, 0.0  ;;  %v16558_v15 = vld [vmem:[#allocation129_spill] sm:$0xff] }
 0x5c1   : > { %v5703_v20 = vpop.f32.mrf.mxu1 }
 0x5c2   : > { %v5711_v4 = vsub.f32 0.0, %v5709_v55  ;;  %v5704_v11 = vadd.f32 %v7619_v63, %v5703_v20  ;;  %v16557_v63 = vld [vmem:[#allocation130_spill] sm:$0xff]  ;;  %v16559_v20 = vld [vmem:[#allocation41_spill] sm:$0xff] }
 0x5c3   : > { %v8005_v6 = vpop.f32.mrf.mxu1 }
 0x5c4   : > { %v5713_v29 = vmul.f32 1.442695, %v5711_v4  ;;  %v5710_v27 = vand.u32 2147483647, %v5704_v11  ;;  %v5708_v2 = vmax.f32 %v5704_v11, 0.0  ;;  %v16560_v11 = vld [vmem:[#allocation40_spill] sm:$0xff] }
 0x5c6   : > { %8846 = vpow2.f32 %v5713_v29  ;;  %v5712_v52 = vsub.f32 0.0, %v5710_v27  ;;  %v16561_v29 = vld [vmem:[#allocation123_spill] sm:$0xff] }
 0x5c8   : > { %v5715_v37 = vmul.f32 1.442695, %v5712_v52  ;;  %v16562_v52 = vld [vmem:[#allocation135_spill] sm:$0xff] }
 0x5ca   : > { %8848 = vpow2.f32 %v5715_v37 }
 0x5d3   : > { %v8847_v12 = vpop.eup %8846 }
 0x5d4   : > { %v5717_v33 = vadd.f32 1.0, %v8847_v12  ;;  %v16563_v12 = vld [vmem:[#allocation128_spill] sm:$0xff] }
 0x5d6   : > { %8850 = vlog2.f32 %v5717_v33 }
 0x5d7   : > { %v8849_v51 = vpop.eup %8848 }
 0x5d8   : > { %v5718_v36 = vadd.f32 1.0, %v8849_v51  ;;  %v16564_v51 = vld [vmem:[#allocation132_spill] sm:$0xff] }
 0x5da   : > { %8852 = vlog2.f32 %v5718_v36 }
 0x5e3   : > { %v8851_v9 = vpop.eup %8850 }
 0x5e4   : > { %v5720_v18 = vmul.f32 0.6931472, %v8851_v9  ;;  %v16565_v9 = vld [vmem:[#allocation134_spill] sm:$0xff] }
 0x5e6   : > { %v5723_v43 = vadd.f32 %v5720_v18, %v5707_v35  ;;  %v16566_v35 = vld [vmem:[#allocation54_spill] sm:$0xff] }
 0x5e7   : > { %v8853_v19 = vpop.eup %8852 }
 0x5e8   : > { %v5722_v59 = vmul.f32 0.6931472, %v8853_v19  ;;  %v7628_v3 = vadd.f32 -0.6931472, %v5723_v43 }
 0x5ea   : > { %v5724_v34 = vadd.f32 %v5722_v59, %v5708_v2  ;;  %v16567_v2 = vld [vmem:[#allocation59_spill] sm:$0xff] }
 0x5ec   : > { %v7629_v54 = vadd.f32 -0.6931472, %v5724_v34  ;;  %v16568_v34 = vld [vmem:[#allocation121_spill] sm:$0xff] }
 0x5ee   : > { %v5727_v39 = vpack.c.bf16 %v7629_v54, %v7628_v3  ;;  %v16569_v54 = vld [vmem:[#allocation72_spill] sm:$0xff] }
 0x5f0   : > { %8023 = vmatmul.mubr.bf16.vlgmr.msra.gmra.mxu0 %v5727_v39 }
 0x5f1   : > { %8062 = vmatprep.mubr.msk.bf16.mxu0 %vm8952_vm10, %v16489_v42  ;;  %8047 = vmatpush3.bf16.msra.mxu0 %v8390_v47 }
 0x5f2   : > { %8048 = vmatprep.subr.bf16.mxu0 %v16489_v42 }
 0x5f5   : > { %8049 = vmatpush3.bf16.msra.mxu0 %v8391_v13 }
 0x5f6   : > { %8050 = vmatprep.subr.bf16.mxu0 %v16489_v42 }
 0x5f9   : > { %8051 = vmatpush3.bf16.msra.mxu0 %v8392_v49 }
 0x5fa   : > { %8052 = vmatprep.subr.bf16.mxu0 %v16489_v42 }
 0x5fd   : > { %8053 = vmatpush3.bf16.msra.mxu0 %v8393_v22 }
 0x5fe   : > { %8054 = vmatprep.subr.bf16.mxu0 %v16489_v42 }
 0x601   : > { %8055 = vmatpush3.bf16.msra.mxu0 %v8394_v44 }
 0x602   : > { %8056 = vmatprep.subr.bf16.mxu0 %v16489_v42 }
 0x605   : > { %8057 = vmatpush3.bf16.msra.mxu0 %v8395_v61 }
 0x606   : > { %8058 = vmatprep.subr.bf16.mxu0 %v16489_v42 }
 0x609   : > { %8059 = vmatpush3.bf16.msra.mxu0 %v8396_v25 }
 0x60a   : > { %8060 = vmatprep.subr.bf16.mxu0 %v16489_v42 }
 0x60d   : > { %8061 = vmatpush3.bf16.msra.mxu0 %v8397_v41 }
 0x60e   : > { %8086 = vmatprep.subr.bf16.mxu0 %v16489_v42 }
 0x6b0   : > { %v5816_v56 = vpop.f32.mrf.mxu0 }
 0x6b1   : > { %v5817_v5 = vadd.f32 %v7630_v31, %v5816_v56  ;;  %v16572_v56 = vld [vmem:[#allocation16_spill] sm:$0xff] }
 0x6b2   : > { %v8024_v53 = vpop.f32.mrf.mxu0 }
 0x6b3   : > { %v15119_v26 = vadd.f32 %v8881_v21, %v5817_v5  ;;  %v16573_v5 = vld [vmem:[#allocation79_spill] sm:$0xff]  ;;  %v16575_v21 = vld [vmem:[#allocation74_spill] sm:$0xff] }
 0x6b4   : > { %v5819_v16 = vpop.f32.mrf.mxu0 }
 0x6b5   : > { %v5820_v1 = vadd.f32 %v7630_v31, %v5819_v16 }
 0x6b6   : > { %v8025_v46 = vpop.f32.mrf.mxu0 }
 0x6b7   : > { %v15122_v24 = vadd.f32 %v8882_v45, %v5820_v1  ;;  %v16574_v1 = vld [vmem:[#allocation58_spill] sm:$0xff] }
 0x6b9   : > { %v5875_v14 = vpack.c.bf16 %v15122_v24, %v15119_v26 }
 0x6bb   : > { %8043 = vmatmul.mubr.bf16.vlgmr.msra.gmra.mxu1 %v5875_v14  ;;  %v16576_v14 = vld [vmem:[#allocation127_spill] sm:$0xff] }
 0x6bc   : > { %8082 = vmatprep.mubr.msk.bf16.mxu1 %vm8952_vm10, %v16489_v42 }
 0x77b   : > { %v5958_v10 = vpop.f32.mrf.mxu1 }
 0x77c   : > { %v5965_v23 = vmul.f32 %v5958_v10, %v16557_v63  ;;  %v5967_v57 = vmul.f32 %v5958_v10, %v16558_v15  ;;  %v5969_v4 = vmul.f32 %v5958_v10, %v16559_v20  ;;  %v5971_v6 = vmul.f32 %v5958_v10, %v16560_v11 }
 0x77d   : > { %v8044_v60 = vpop.f32.mrf.mxu1  ;;  %v5973_v27 = vmul.f32 %v5958_v10, %v16561_v29  ;;  %v5975_v37 = vmul.f32 %v5958_v10, %v16562_v52  ;;  %v5977_v31 = vmul.f32 %v5958_v10, %v16571_v58  ;;  %v5979_v53 = vmul.f32 %v5958_v10, %v16572_v56 }
 0x77e   : > { %v5981_v16 = vmul.f32 %v5958_v10, %v16573_v5  ;;  %v5983_v46 = vmul.f32 %v5958_v10, %v16574_v1  ;;  %v5985_v45 = vmul.f32 %v5958_v10, %v16575_v21  ;;  %v5987_v47 = vmul.f32 %v5958_v10, %v16576_v14 }
 0x77f   : > { %v15162_v55 = vpop.f32.mrf.mxu1  ;;  %v5989_v13 = vmul.f32 %v5958_v10, %v14928_v48  ;;  %v5991_v49 = vmul.f32 %v5958_v10, %v14966_v8 }
 0x780   : > { %v5966_v33 = vmul.f32 %v15162_v55, %v16563_v12  ;;  %v5968_v36 = vmul.f32 %v15162_v55, %v16564_v51  ;;  %v5970_v18 = vmul.f32 %v15162_v55, %v16565_v9  ;;  %v5972_v19 = vmul.f32 %v15162_v55, %v16566_v35 }
 0x781   : > { %v8045_v43 = vpop.f32.mrf.mxu1  ;;  %v5974_v59 = vmul.f32 %v15162_v55, %v16567_v2  ;;  %v5976_v3 = vmul.f32 %v15162_v55, %v16568_v34  ;;  %v5978_v39 = vmul.f32 %v15162_v55, %v16569_v54  ;;  %v5980_v62 = vmul.f32 %v15162_v55, %v16570_v38 }
 0x782   : > { %v5997_v22 = vadd.f32 %v5966_v33, %v5965_v23  ;;  %v6004_v44 = vadd.f32 %v5968_v36, %v5967_v57  ;;  %v6011_v61 = vadd.f32 %v5970_v18, %v5969_v4  ;;  %v6018_v25 = vadd.f32 %v5972_v19, %v5971_v6 }
 0x783   : > { %v6025_v41 = vadd.f32 %v5974_v59, %v5973_v27  ;;  %v6032_v60 = vadd.f32 %v5976_v3, %v5975_v37  ;;  %v6039_v43 = vadd.f32 %v5978_v39, %v5977_v31  ;;  %v6046_v56 = vadd.f32 %v5980_v62, %v5979_v53  ;;  %v16578_v53 = vld [vmem:[#allocation17_spill] sm:$0xff] }
 0x784   : > { %v5998_v58 = vrot.slane %v5997_v22, 4  ;;  %v6005_v5 = vrot.slane %v6004_v44, 4  ;;  %v6012_v38 = vrot.slane %v6011_v61, 4  ;;  %v6019_v1 = vrot.slane %v6018_v25, 4 }
 0x785   : > { %v6026_v54 = vrot.slane %v6025_v41, 4  ;;  %v6033_v21 = vrot.slane %v6032_v60, 4  ;;  %v6040_v34 = vrot.slane %v6039_v43, 4  ;;  %v6047_v14 = vrot.slane %v6046_v56, 4 }
 0x786   : > { %v5999_v2 = vadd.f32 %v5998_v58, %v5997_v22  ;;  %v6006_v48 = vadd.f32 %v6005_v5, %v6004_v44  ;;  %v6013_v35 = vadd.f32 %v6012_v38, %v6011_v61  ;;  %v6020_v8 = vadd.f32 %v6019_v1, %v6018_v25  ;;  %v16577_v38 = vld [vmem:[#allocation71_spill] sm:$0xff] }
 0x787   : > { %v6027_v23 = vadd.f32 %v6026_v54, %v6025_v41  ;;  %v6034_v57 = vadd.f32 %v6033_v21, %v6032_v60  ;;  %v6041_v4 = vadd.f32 %v6040_v34, %v6039_v43  ;;  %v6048_v6 = vadd.f32 %v6047_v14, %v6046_v56 }
 0x788   : > { %v6000_v27 = vrot.slane %v5999_v2, 2  ;;  %v6007_v37 = vrot.slane %v6006_v48, 2  ;;  %v6014_v33 = vrot.slane %v6013_v35, 2  ;;  %v6021_v36 = vrot.slane %v6020_v8, 2 }
 0x789   : > { %v5993_v18 = vmul.f32 %v5958_v10, %v15008_v28  ;;  %v5995_v19 = vmul.f32 %v5958_v10, %v14973_v30  ;;  %v6028_v59 = vrot.slane %v6027_v23, 2  ;;  %v6035_v3 = vrot.slane %v6034_v57, 2 }
 0x78a   : > { %v6001_v39 = vadd.f32 %v6000_v27, %v5999_v2  ;;  %v6008_v62 = vadd.f32 %v6007_v37, %v6006_v48  ;;  %v6042_v58 = vrot.slane %v6041_v4, 2  ;;  %v6049_v31 = vrot.slane %v6048_v6, 2 }
 0x78b   : > { %v5982_v54 = vmul.f32 %v15162_v55, %v16577_v38  ;;  %v5984_v34 = vmul.f32 %v15162_v55, %v16578_v53  ;;  %v6015_v56 = vadd.f32 %v6014_v33, %v6013_v35  ;;  %v15198_v5 = vadd.f32 %v6021_v36, %v6020_v8 }
 0x78c   : > { %v5986_v1 = vmul.f32 %v15162_v55, %v14899_v17  ;;  %v5988_v10 = vmul.f32 %v15162_v55, %v14500_v7  ;;  %v6002_v21 = vrot.slane %v6001_v39, 1  ;;  %v6009_v2 = vrot.slane %v6008_v62, 1 }
 0x78d   : > { %v5990_v48 = vmul.f32 %v15162_v55, %v14938_v32  ;;  %v5992_v14 = vmul.f32 %v15162_v55, %v14957_v50  ;;  %v5994_v22 = vmul.f32 %v15162_v55, %v15015_v40  ;;  %v5996_v8 = vmul.f32 %v15162_v55, %v14969_v0 }
 0x78e   : > { %v15212_v35 = vadd.f32 %v6028_v59, %v6027_v23  ;;  %v15214_v44 = vadd.f32 %v6035_v3, %v6034_v57  ;;  %v15216_v61 = vadd.f32 %v6042_v58, %v6041_v4  ;;  %v15218_v25 = vadd.f32 %v6049_v31, %v6048_v6 }
 0x78f   : > { %v15220_v41 = vadd.f32 %v6002_v21, %v6001_v39  ;;  %v15222_v60 = vadd.f32 %v6009_v2, %v6008_v62  ;;  %v6016_v43 = vrot.slane %v6015_v56, 1  ;;  %v6023_v27 = vrot.slane %v15198_v5, 1 }
 0x790   : > { %v6053_v37 = vadd.f32 %v5982_v54, %v5981_v16  ;;  %v6060_v33 = vadd.f32 %v5984_v34, %v5983_v46  ;;  %v6067_v36 = vadd.f32 %v5986_v1, %v5985_v45  ;;  %v6074_v40 = vadd.f32 %v5988_v10, %v5987_v47 }
 0x791   : > { %v6081_v55 = vadd.f32 %v5990_v48, %v5989_v13  ;;  %v6088_v23 = vadd.f32 %v5992_v14, %v5991_v49  ;;  %v6095_v59 = vadd.f32 %v5994_v22, %v5993_v18  ;;  %v6102_v57 = vadd.f32 %v5996_v8, %v5995_v19 }
 0x792   : > { %v6054_v3 = vrot.slane %v6053_v37, 4  ;;  %v6061_v4 = vrot.slane %v6060_v33, 4  ;;  %v6068_v58 = vrot.slane %v6067_v36, 4  ;;  %v6075_v6 = vrot.slane %v6074_v40, 4 }
 0x793   : > { %v6082_v31 = vrot.slane %v6081_v55, 4  ;;  %v6089_v39 = vrot.slane %v6088_v23, 4  ;;  %v6096_v21 = vrot.slane %v6095_v59, 4  ;;  %v6103_v62 = vrot.slane %v6102_v57, 4 }
 0x794   : > { %v6055_v2 = vadd.f32 %v6054_v3, %v6053_v37  ;;  %v6062_v0 = vadd.f32 %v6061_v4, %v6060_v33  ;;  %v6069_v50 = vadd.f32 %v6068_v58, %v6067_v36  ;;  %v6076_v32 = vadd.f32 %v6075_v6, %v6074_v40 }
 0x795   : > { %v6083_v16 = vadd.f32 %v6082_v31, %v6081_v55  ;;  %v6090_v46 = vadd.f32 %v6089_v39, %v6088_v23  ;;  %v6097_v45 = vadd.f32 %v6096_v21, %v6095_v59  ;;  %v6104_v47 = vadd.f32 %v6103_v62, %v6102_v57 }
 0x796   : > { %v6056_v13 = vrot.slane %v6055_v2, 2  ;;  %v6063_v49 = vrot.slane %v6062_v0, 2  ;;  %v6070_v18 = vrot.slane %v6069_v50, 2  ;;  %v6077_v19 = vrot.slane %v6076_v32, 2 }
 0x797   : > { %v6084_v54 = vrot.slane %v6083_v16, 2  ;;  %v6091_v34 = vrot.slane %v6090_v46, 2  ;;  %v6098_v1 = vrot.slane %v6097_v45, 2  ;;  %v6105_v10 = vrot.slane %v6104_v47, 2 }
 0x798   : > { %v6057_v48 = vadd.f32 %v6056_v13, %v6055_v2  ;;  %v6064_v14 = vadd.f32 %v6063_v49, %v6062_v0  ;;  %v6071_v22 = vadd.f32 %v6070_v18, %v6069_v50  ;;  %v6078_v8 = vadd.f32 %v6077_v19, %v6076_v32 }
 0x799   : > { %v6085_v37 = vadd.f32 %v6084_v54, %v6083_v16  ;;  %v6092_v33 = vadd.f32 %v6091_v34, %v6090_v46  ;;  %v6099_v36 = vadd.f32 %v6098_v1, %v6097_v45  ;;  %v6106_v40 = vadd.f32 %v6105_v10, %v6104_v47 }
 0x79a   : > { %v6058_v55 = vrot.slane %v6057_v48, 1  ;;  %v6065_v23 = vrot.slane %v6064_v14, 1  ;;  %v6072_v59 = vrot.slane %v6071_v22, 1  ;;  %v6079_v57 = vrot.slane %v6078_v8, 1 }
 0x79b   : > { %v6017_v3 = vadd.f32 %v6016_v43, %v6015_v56  ;;  %v6030_v4 = vrot.slane %v15212_v35, 1  ;;  %v6037_v58 = vrot.slane %v15214_v44, 1  ;;  %v6086_v6 = vrot.slane %v6085_v37, 1 }
 0x79c   : > { %v6059_v31 = vadd.f32 %v6058_v55, %v6057_v48  ;;  %v6066_v39 = vadd.f32 %v6065_v23, %v6064_v14  ;;  %v6073_v21 = vadd.f32 %v6072_v59, %v6071_v22  ;;  %v6093_v0 = vrot.slane %v6092_v33, 1 }
 0x79d   : > { %v6044_v32 = vrot.slane %v15216_v61, 1  ;;  %v6051_v50 = vrot.slane %v15218_v25, 1  ;;  %v6100_v62 = vrot.slane %v6099_v36, 1  ;;  %v6107_v2 = vrot.slane %v6106_v40, 1 }
 0x79e   : > { %v6024_v16 = vadd.f32 %v6023_v27, %v15198_v5  ;;  %v6080_v46 = vadd.f32 %v6079_v57, %v6078_v8  ;;  %v6109_v56 = vpack.c.bf16 %v15220_v41, %v15220_v41  ;;  %v6110_v43 = vpack.c.bf16 %v15222_v60, %v15222_v60 }
 0x79f   : > { %v6031_v45 = vadd.f32 %v6030_v4, %v15212_v35  ;;  %v6038_v47 = vadd.f32 %v6037_v58, %v15214_v44  ;;  %v6087_v13 = vadd.f32 %v6086_v6, %v6085_v37  ;;  %v6111_v49 = vpack.c.bf16 %v6017_v3, %v6017_v3 }
 0x7a0   : > { %v6094_v18 = vadd.f32 %v6093_v0, %v6092_v33  ;;  %v6117_v19 = vpack.c.bf16 %v6059_v31, %v6059_v31  ;;  %v6118_v54 = vpack.c.bf16 %v6066_v39, %v6066_v39  ;;  %v6119_v34 = vpack.c.bf16 %v6073_v21, %v6073_v21 }
 0x7a1   : > { %v6045_v1 = vadd.f32 %v6044_v32, %v15216_v61  ;;  %v6052_v5 = vadd.f32 %v6051_v50, %v15218_v25  ;;  %v6101_v27 = vadd.f32 %v6100_v62, %v6099_v36  ;;  %v6108_v10 = vadd.f32 %v6107_v2, %v6106_v40 }
 0x7a2   : > { %v6112_v41 = vpack.c.bf16 %v6024_v16, %v6024_v16  ;;  %v6120_v48 = vpack.c.bf16 %v6080_v46, %v6080_v46  ;;  %v6147_v14 = vunpack.c.l.b16 %v6109_v56  ;;  %v6148_v60 = vunpack.c.l.b16 %v6110_v43 }
 0x7a3   : > { %v6113_v22 = vpack.c.bf16 %v6031_v45, %v6031_v45  ;;  %v6114_v35 = vpack.c.bf16 %v6038_v47, %v6038_v47  ;;  %v6121_v8 = vpack.c.bf16 %v6087_v13, %v6087_v13  ;;  %v6149_v44 = vunpack.c.l.b16 %v6111_v49 }
 0x7a4   : > { %v6122_v37 = vpack.c.bf16 %v6094_v18, %v6094_v18  ;;  %v6155_v55 = vunpack.c.l.b16 %v6117_v19  ;;  %v6156_v33 = vunpack.c.l.b16 %v6118_v54  ;;  %v6157_v23 = vunpack.c.l.b16 %v6119_v34  ;;  %v8398_v34 = vld [vmem:[%s15636_s5 + $0x2f8] ss:$52 sps:$4 sm:$0xff]  }
 0x7a5   : > { %v6115_v59 = vpack.c.bf16 %v6045_v1, %v6045_v1  ;;  %v6116_v57 = vpack.c.bf16 %v6052_v5, %v6052_v5  ;;  %v6123_v3 = vpack.c.bf16 %v6101_v27, %v6101_v27  ;;  %v6124_v61 = vpack.c.bf16 %v6108_v10, %v6108_v10  ;;  %8067 = vmatpush3.bf16.msra.mxu1 %v8398_v34  ;;  %v8399_v1 = vld [vmem:[%s15636_s5 + $0x290] ss:$52 sps:$4 sm:$0xff]   ;;  %v8400_v10 = vld [vmem:[%s15636_s5 + $0x228] ss:$52 sps:$4 sm:$0xff]  }
 0x7a6   : > { %v6150_v4 = vunpack.c.l.b16 %v6112_v41  ;;  %v6158_v25 = vunpack.c.l.b16 %v6120_v48  ;;  %v6163_v36 = vsel %vm5595_vm0, %v6148_v60, %v6147_v14  ;;  %v6170_v40 = vsel %vm5595_vm0, %v6156_v33, %v6155_v55  ;;  %v8406_v5 = vld [vmem:[%s15636_s5 + $0x2e4] ss:$52 sps:$4 sm:$0xff]   ;;  %8068 = vmatprep.subr.bf16.mxu1 %v16489_v42  ;;  %v8407_v27 = vld [vmem:[%s15636_s5 + $0x27c] ss:$52 sps:$4 sm:$0xff]   ;;  %v8408_v41 = vld [vmem:[%s15636_s5 + $0x214] ss:$52 sps:$4 sm:$0xff]  }
 0x7a7   : > { %v6151_v58 = vunpack.c.l.b16 %v6113_v22  ;;  %v6159_v6 = vunpack.c.l.b16 %v6121_v8  ;;  %v6164_v31 = vsel %vm5597_vm6, %v6149_v44, %v6163_v36  ;;  %v6171_v39 = vsel %vm5597_vm6, %v6157_v23, %v6170_v40  ;;  %v8401_v48 = vld [vmem:[%s15636_s5 + $0x1c0] ss:$52 sps:$4 sm:$0xff]   ;;  %v8402_v60 = vld [vmem:[%s15636_s5 + $0x158] ss:$52 sps:$4 sm:$0xff]   ;;  %v8404_v8 = vld [vmem:[%s15636_s5 + $0x88] ss:$52 sps:$4 sm:$0xff]  }
 0x7a8   : > { %v6152_v21 = vunpack.c.l.b16 %v6114_v35  ;;  %v6160_v0 = vunpack.c.l.b16 %v6122_v37  ;;  %v6165_v32 = vsel %vm5599_vm8, %v6150_v4, %v6164_v31  ;;  %v6172_v50 = vsel %vm5599_vm8, %v6158_v25, %v6171_v39  ;;  %v8409_v14 = vld [vmem:[%s15636_s5 + $0x1ac] ss:$52 sps:$4 sm:$0xff]   ;;  %v8410_v22 = vld [vmem:[%s15636_s5 + $0x144] ss:$52 sps:$4 sm:$0xff]  }
 0x7a9   : > { %v6153_v62 = vunpack.c.l.b16 %v6115_v59  ;;  %v6161_v2 = vunpack.c.l.b16 %v6123_v3  ;;  %v6166_v16 = vsel %vm5601_vm2, %v6151_v58, %v6165_v32  ;;  %v6173_v46 = vsel %vm5601_vm2, %v6159_v6, %v6172_v50  ;;  %8069 = vmatpush3.bf16.msra.mxu1 %v8399_v1  ;;  %v8403_v35 = vld [vmem:[%s15636_s5 + $0xf0] ss:$52 sps:$4 sm:$0xff]   ;;  %v8405_v44 = vld [vmem:[%s15636_s5 + $0x20] ss:$52 sps:$4 sm:$0xff]  }
 0x7aa   : > { %v6154_v56 = vunpack.c.l.b16 %v6116_v57  ;;  %v6162_v43 = vunpack.c.l.b16 %v6124_v61  ;;  %v6167_v45 = vsel %vm5603_vm1, %v6152_v21, %v6166_v16  ;;  %v6174_v47 = vsel %vm5603_vm1, %v6160_v0, %v6173_v46  ;;  %8070 = vmatprep.subr.bf16.mxu1 %v16489_v42  ;;  %v7647_v37 = vld [vmem:[%s15635_s4 + $0x7] ss:$0 sm:$0xff] }
 0x7ab   : > { %v6168_v13 = vsel %vm5605_vm11, %v6153_v62, %v6167_v45  ;;  %v6175_v49 = vsel %vm5605_vm11, %v6161_v2, %v6174_v47 }
 0x7ac   : > { %v6169_v18 = vsel %vm5607_vm12, %v6154_v56, %v6168_v13  ;;  %v6176_v19 = vsel %vm5607_vm12, %v6162_v43, %v6175_v49  ;;  %v8411_v13 = vld [vmem:[%s15636_s5 + $0xdc] ss:$52 sps:$4 sm:$0xff]   ;;  %v8412_v49 = vld [vmem:[%s15636_s5 + $0x74] ss:$52 sps:$4 sm:$0xff]  }
 0x7ad   : > { %v6177_v54 = vpack.c.b16 %v6176_v19, %v6169_v18  ;;  %8071 = vmatpush3.bf16.msra.mxu1 %v8400_v10  ;;  %v8413_v18 = vld [vmem:[%s15636_s5 + $0xc] ss:$52 sps:$4 sm:$0xff]   ;;  %v7658_v19 = vld [vmem:[%s15635_s4 + $0xa] ss:$0 sm:$0xff] }
 0x7ae   : > { %8072 = vmatprep.subr.bf16.mxu1 %v16489_v42 }
 0x7af   : > { %8063 = vmatmul.mubr.bf16.vlgmr.msra.gmra.mxu0 %v6177_v54 }
 0x7b0   : > { %8102 = vmatprep.mubr.msk.bf16.mxu0 %vm8952_vm10, %v16489_v42  ;;  %8087 = vmatpush3.bf16.msra.mxu0 %v8406_v5 }
 0x7b1   : > { %8088 = vmatprep.subr.bf16.mxu0 %v16489_v42  ;;  %8073 = vmatpush3.bf16.msra.mxu1 %v8401_v48 }
 0x7b2   : > { %8074 = vmatprep.subr.bf16.mxu1 %v16489_v42 }
 0x7b4   : > { %8089 = vmatpush3.bf16.msra.mxu0 %v8407_v27 }
 0x7b5   : > { %8090 = vmatprep.subr.bf16.mxu0 %v16489_v42  ;;  %8075 = vmatpush3.bf16.msra.mxu1 %v8402_v60  ;;  %v8414_v60 = vld [vmem:[%s15636_s5 + $0x2f0] ss:$52 sps:$4 sm:$0xff]  }
 0x7b6   : > { %8076 = vmatprep.subr.bf16.mxu1 %v16489_v42 }
 0x7b8   : > { %8091 = vmatpush3.bf16.msra.mxu0 %v8408_v41 }
 0x7b9   : > { %8092 = vmatprep.subr.bf16.mxu0 %v16489_v42  ;;  %8077 = vmatpush3.bf16.msra.mxu1 %v8403_v35  ;;  %v8418_v35 = vld [vmem:[%s15636_s5 + $0x150] ss:$52 sps:$4 sm:$0xff]  }
 0x7ba   : > { %8078 = vmatprep.subr.bf16.mxu1 %v16489_v42 }
 0x7bc   : > { %8093 = vmatpush3.bf16.msra.mxu0 %v8409_v14 }
 0x7bd   : > { %8094 = vmatprep.subr.bf16.mxu0 %v16489_v42  ;;  %8079 = vmatpush3.bf16.msra.mxu1 %v8404_v8  ;;  %v8419_v8 = vld [vmem:[%s15636_s5 + $0xe8] ss:$52 sps:$4 sm:$0xff]  }
 0x7be   : > { %8080 = vmatprep.subr.bf16.mxu1 %v16489_v42 }
 0x7c0   : > { %8095 = vmatpush3.bf16.msra.mxu0 %v8410_v22  ;;  %v8417_v22 = vld [vmem:[%s15636_s5 + $0x1b8] ss:$52 sps:$4 sm:$0xff]  }
 0x7c1   : > { %8096 = vmatprep.subr.bf16.mxu0 %v16489_v42  ;;  %8081 = vmatpush3.bf16.msra.mxu1 %v8405_v44  ;;  %v8420_v44 = vld [vmem:[%s15636_s5 + $0x80] ss:$52 sps:$4 sm:$0xff]  }
 0x7c2   : > { %8106 = vmatprep.subr.bf16.mxu1 %v16489_v42 }
 0x7c4   : > { %8097 = vmatpush3.bf16.msra.mxu0 %v8411_v13 }
 0x7c5   : > { %8098 = vmatprep.subr.bf16.mxu0 %v16489_v42 }
 0x7c8   : > { %8099 = vmatpush3.bf16.msra.mxu0 %v8412_v49  ;;  %v16591_v49 = vld [vmem:[#allocation8_spill] sm:$0xff] }
 0x7c9   : > { %8100 = vmatprep.subr.bf16.mxu0 %v16489_v42 }
 0x7cc   : > { %8101 = vmatpush3.bf16.msra.mxu0 %v8413_v18 }
 0x7cd   : > { %8126 = vmatprep.subr.bf16.mxu0 %v16489_v42 }
 0x86f   : > { %v6261_v55 = vpop.f32.mrf.mxu0 }
 0x870   : > { %v6262_v33 = vadd.f32 %v7647_v37, %v6261_v55 }
 0x871   : > { %v8064_v23 = vpop.f32.mrf.mxu0 }
 0x872   : > { %v6270_v59 = vand.u32 2147483647, %v6262_v33  ;;  %v6268_v50 = vmax.f32 %v6262_v33, 0.0 }
 0x873   : > { %v6264_v57 = vpop.f32.mrf.mxu0 }
 0x874   : > { %v6272_v3 = vsub.f32 0.0, %v6270_v59  ;;  %v6265_v61 = vadd.f32 %v7647_v37, %v6264_v57  ;;  %v8421_v37 = vld [vmem:[%s15636_s5 + $0x18] ss:$52 sps:$4 sm:$0xff]  }
 0x875   : > { %v8065_v4 = vpop.f32.mrf.mxu0 }
 0x876   : > { %v6274_v25 = vmul.f32 1.442695, %v6272_v3  ;;  %v6271_v36 = vand.u32 2147483647, %v6265_v61  ;;  %v6269_v16 = vmax.f32 %v6265_v61, 0.0 }
 0x878   : > { %8854 = vpow2.f32 %v6274_v25  ;;  %v6273_v40 = vsub.f32 0.0, %v6271_v36 }
 0x87a   : > { %v6276_v58 = vmul.f32 1.442695, %v6273_v40 }
 0x87c   : > { %8856 = vpow2.f32 %v6276_v58 }
 0x885   : > { %v8855_v6 = vpop.eup %8854 }
 0x886   : > { %v6278_v31 = vadd.f32 1.0, %v8855_v6 }
 0x888   : > { %8858 = vlog2.f32 %v6278_v31  ;;  %v16581_v31 = vld [vmem:[#allocation121_spill] sm:$0xff] }
 0x889   : > { %v8857_v39 = vpop.eup %8856 }
 0x88a   : > { %v6279_v21 = vadd.f32 1.0, %v8857_v39 }
 0x88c   : > { %8860 = vlog2.f32 %v6279_v21 }
 0x895   : > { %v8859_v0 = vpop.eup %8858 }
 0x896   : > { %v6281_v32 = vmul.f32 0.6931472, %v8859_v0 }
 0x898   : > { %v6284_v2 = vadd.f32 %v6281_v32, %v6268_v50  ;;  %v16585_v32 = vld [vmem:[#allocation16_spill] sm:$0xff]  ;;  %v16586_v50 = vld [vmem:[#allocation79_spill] sm:$0xff] }
 0x899   : > { %v8861_v62 = vpop.eup %8860 }
 0x89a   : > { %v6283_v46 = vmul.f32 0.6931472, %v8861_v62  ;;  %v7656_v43 = vadd.f32 -0.6931472, %v6284_v2  ;;  %v16587_v2 = vld [vmem:[#allocation58_spill] sm:$0xff] }
 0x89c   : > { %v6285_v56 = vadd.f32 %v6283_v46, %v6269_v16  ;;  %v16588_v46 = vld [vmem:[#allocation74_spill] sm:$0xff] }
 0x89e   : > { %v7657_v45 = vadd.f32 -0.6931472, %v6285_v56 }
 0x8a0   : > { %v6288_v47 = vpack.c.bf16 %v7657_v45, %v7656_v43  ;;  %v16589_v43 = vld [vmem:[#allocation127_spill] sm:$0xff] }
 0x8a2   : > { %8083 = vmatmul.mubr.bf16.vlgmr.msra.gmra.mxu1 %v6288_v47  ;;  %v16590_v47 = vld [vmem:[#allocation73_spill] sm:$0xff] }
 0x8a3   : > { %8122 = vmatprep.mubr.msk.bf16.mxu1 %vm8952_vm10, %v16489_v42  ;;  %8107 = vmatpush3.bf16.msra.mxu1 %v8414_v60 }
 0x8a4   : > { %8108 = vmatprep.subr.bf16.mxu1 %v16489_v42 }
 0x962   : > { %v6377_v54 = vpop.f32.mrf.mxu1 }
 0x963   : > { %v6378_v1 = vadd.f32 %v7658_v19, %v6377_v54 }
 0x964   : > { %v8084_v34 = vpop.f32.mrf.mxu1 }
 0x965   : > { %v15327_v41 = vadd.f32 %v6378_v1, %v15119_v26  ;;  %v8415_v26 = vld [vmem:[%s15636_s5 + $0x288] ss:$52 sps:$4 sm:$0xff]  }
 0x966   : > { %v6380_v5 = vpop.f32.mrf.mxu1  ;;  %8109 = vmatpush3.bf16.msra.mxu1 %v8415_v26 }
 0x967   : > { %v6381_v27 = vadd.f32 %v7658_v19, %v6380_v5  ;;  %8110 = vmatprep.subr.bf16.mxu1 %v16489_v42 }
 0x968   : > { %v8085_v10 = vpop.f32.mrf.mxu1 }
 0x969   : > { %v15330_v48 = vadd.f32 %v6381_v27, %v15122_v24  ;;  %v8416_v24 = vld [vmem:[%s15636_s5 + $0x220] ss:$52 sps:$4 sm:$0xff]  }
 0x96a   : > { %8111 = vmatpush3.bf16.msra.mxu1 %v8416_v24 }
 0x96b   : > { %v6436_v14 = vpack.c.bf16 %v15330_v48, %v15327_v41  ;;  %8112 = vmatprep.subr.bf16.mxu1 %v16489_v42 }
 0x96d   : > { %8103 = vmatmul.mubr.bf16.vlgmr.msra.gmra.mxu0 %v6436_v14 }
 0x96e   : > { %8142 = vmatprep.mubr.msk.bf16.mxu0 %vm8952_vm10, %v16489_v42  ;;  %8113 = vmatpush3.bf16.msra.mxu1 %v8417_v22 }
 0x96f   : > { %8114 = vmatprep.subr.bf16.mxu1 %v16489_v42 }
 0x972   : > { %8115 = vmatpush3.bf16.msra.mxu1 %v8418_v35 }
 0x973   : > { %8116 = vmatprep.subr.bf16.mxu1 %v16489_v42 }
 0x976   : > { %8117 = vmatpush3.bf16.msra.mxu1 %v8419_v8 }
 0x977   : > { %8118 = vmatprep.subr.bf16.mxu1 %v16489_v42 }
 0x97a   : > { %8119 = vmatpush3.bf16.msra.mxu1 %v8420_v44 }
 0x97b   : > { %8120 = vmatprep.subr.bf16.mxu1 %v16489_v42 }
 0x97e   : > { %8121 = vmatpush3.bf16.msra.mxu1 %v8421_v37 }
 0x97f   : > { %8146 = vmatprep.subr.bf16.mxu1 %v16489_v42 }
 0xa2d   : > { %v6519_v55 = vpop.f32.mrf.mxu0 }
 0xa2e   : > { %v6526_v23 = vmul.f32 %v6519_v55, %v16557_v63  ;;  %v6528_v59 = vmul.f32 %v6519_v55, %v16558_v15  ;;  %v6530_v3 = vmul.f32 %v6519_v55, %v16559_v20  ;;  %v6532_v61 = vmul.f32 %v6519_v55, %v16560_v11  ;;  %v16579_v15 = vld [vmem:[#allocation54_spill] sm:$0xff]  ;;  %v16580_v20 = vld [vmem:[#allocation59_spill] sm:$0xff] }
 0xa2f   : > { %v8104_v33 = vpop.f32.mrf.mxu0  ;;  %v6534_v4 = vmul.f32 %v6519_v55, %v16561_v29  ;;  %v6536_v25 = vmul.f32 %v6519_v55, %v16562_v52  ;;  %v16582_v52 = vld [vmem:[#allocation72_spill] sm:$0xff]  ;;  %v6542_v62 = vmul.f32 %v6519_v55, %v16586_v50  ;;  %v6544_v16 = vmul.f32 %v6519_v55, %v16587_v2  ;;  %v16592_v50 = vld [vmem:[#allocation45_spill] sm:$0xff] }
 0xa30   : > { %v6546_v56 = vmul.f32 %v6519_v55, %v16588_v46  ;;  %v6548_v45 = vmul.f32 %v6519_v55, %v16589_v43  ;;  %v6550_v13 = vmul.f32 %v6519_v55, %v16590_v47  ;;  %v6552_v18 = vmul.f32 %v6519_v55, %v16591_v49  ;;  %v16593_v46 = vld [vmem:[#allocation10_spill] sm:$0xff]  ;;  %v16594_v43 = vld [vmem:[#allocation55_spill] sm:$0xff]  ;;  %v16595_v47 = vld [vmem:[#allocation9_spill] sm:$0xff] }
 0xa31   : > { %v15370_v57 = vpop.f32.mrf.mxu0 }
 0xa32   : > { %v6527_v36 = vmul.f32 %v15370_v57, %v16563_v12  ;;  %v6529_v40 = vmul.f32 %v15370_v57, %v16564_v51  ;;  %v6531_v63 = vmul.f32 %v15370_v57, %v16565_v9  ;;  %v6533_v58 = vmul.f32 %v15370_v57, %v16579_v15  ;;  %v16583_v12 = vld [vmem:[#allocation61_spill] sm:$0xff]  ;;  %v16584_v51 = vld [vmem:[#allocation66_spill] sm:$0xff] }
 0xa33   : > { %v8105_v6 = vpop.f32.mrf.mxu0  ;;  %v6535_v11 = vmul.f32 %v15370_v57, %v16580_v20  ;;  %v6537_v29 = vmul.f32 %v15370_v57, %v16581_v31  ;;  %v6539_v39 = vmul.f32 %v15370_v57, %v16582_v52  ;;  %v6541_v21 = vmul.f32 %v15370_v57, %v16583_v12 }
 0xa34   : > { %v6538_v0 = vmul.f32 %v6519_v55, %v16584_v51  ;;  %v6540_v9 = vmul.f32 %v6519_v55, %v16585_v32  ;;  %v6558_v19 = vadd.f32 %v6527_v36, %v6526_v23  ;;  %v6565_v54 = vadd.f32 %v6529_v40, %v6528_v59 }
 0xa35   : > { %v6572_v34 = vadd.f32 %v6531_v63, %v6530_v3  ;;  %v6579_v1 = vadd.f32 %v6533_v58, %v6532_v61  ;;  %v6586_v5 = vadd.f32 %v6535_v11, %v6534_v4  ;;  %v6593_v27 = vadd.f32 %v6537_v29, %v6536_v25 }
 0xa36   : > { %v6600_v10 = vadd.f32 %v6539_v39, %v6538_v0  ;;  %v6607_v14 = vadd.f32 %v6541_v21, %v6540_v9  ;;  %v6559_v60 = vrot.slane %v6558_v19, 4  ;;  %v6566_v26 = vrot.slane %v6565_v54, 4 }
 0xa37   : > { %v6573_v24 = vrot.slane %v6572_v34, 4  ;;  %v6580_v22 = vrot.slane %v6579_v1, 4  ;;  %v6587_v35 = vrot.slane %v6586_v5, 4  ;;  %v6594_v8 = vrot.slane %v6593_v27, 4 }
 0xa38   : > { %v6601_v44 = vrot.slane %v6600_v10, 4  ;;  %v6608_v37 = vrot.slane %v6607_v14, 4  ;;  %v6560_v33 = vadd.f32 %v6559_v60, %v6558_v19  ;;  %v6567_v15 = vadd.f32 %v6566_v26, %v6565_v54 }
 0xa39   : > { %v6574_v6 = vadd.f32 %v6573_v24, %v6572_v34  ;;  %v6581_v20 = vadd.f32 %v6580_v22, %v6579_v1  ;;  %v6588_v23 = vadd.f32 %v6587_v35, %v6586_v5  ;;  %v6595_v59 = vadd.f32 %v6594_v8, %v6593_v27 }
 0xa3a   : > { %v6602_v3 = vadd.f32 %v6601_v44, %v6600_v10  ;;  %v6609_v61 = vadd.f32 %v6608_v37, %v6607_v14  ;;  %v6561_v4 = vrot.slane %v6560_v33, 2  ;;  %v6568_v25 = vrot.slane %v6567_v15, 2 }
 0xa3b   : > { %v6575_v36 = vrot.slane %v6574_v6, 2  ;;  %v6582_v40 = vrot.slane %v6581_v20, 2  ;;  %v6554_v63 = vmul.f32 %v6519_v55, %v15008_v28  ;;  %v6556_v58 = vmul.f32 %v6519_v55, %v14973_v30 }
 0xa3c   : > { %v6589_v11 = vrot.slane %v6588_v23, 2  ;;  %v6596_v31 = vrot.slane %v6595_v59, 2  ;;  %v6562_v29 = vadd.f32 %v6561_v4, %v6560_v33  ;;  %v6569_v52 = vadd.f32 %v6568_v25, %v6567_v15 }
 0xa3d   : > { %v6603_v39 = vrot.slane %v6602_v3, 2  ;;  %v6610_v12 = vrot.slane %v6609_v61, 2  ;;  %v6543_v21 = vmul.f32 %v15370_v57, %v16577_v38  ;;  %v6545_v51 = vmul.f32 %v15370_v57, %v16578_v53 }
 0xa3e   : > { %v6576_v0 = vadd.f32 %v6575_v36, %v6574_v6  ;;  %v15406_v32 = vadd.f32 %v6582_v40, %v6581_v20  ;;  %v6547_v28 = vmul.f32 %v15370_v57, %v14899_v17  ;;  %v6549_v30 = vmul.f32 %v15370_v57, %v14500_v7 }
 0xa3f   : > { %v6563_v55 = vrot.slane %v6562_v29, 1  ;;  %v6570_v9 = vrot.slane %v6569_v52, 1  ;;  %v6551_v2 = vmul.f32 %v15370_v57, %v16592_v50  ;;  %v6553_v38 = vmul.f32 %v15370_v57, %v16593_v46 }
 0xa40   : > { %v6555_v53 = vmul.f32 %v15370_v57, %v16594_v43  ;;  %v6557_v49 = vmul.f32 %v15370_v57, %v16595_v47  ;;  %v15420_v19 = vadd.f32 %v6589_v11, %v6588_v23  ;;  %v15422_v17 = vadd.f32 %v6596_v31, %v6595_v59 }
 0xa41   : > { %v15424_v54 = vadd.f32 %v6603_v39, %v6602_v3  ;;  %v15426_v7 = vadd.f32 %v6610_v12, %v6609_v61  ;;  %v15428_v34 = vadd.f32 %v6563_v55, %v6562_v29  ;;  %v15430_v1 = vadd.f32 %v6570_v9, %v6569_v52 }
 0xa42   : > { %v6577_v5 = vrot.slane %v6576_v0, 1  ;;  %v6584_v27 = vrot.slane %v15406_v32, 1  ;;  %v6614_v10 = vadd.f32 %v6543_v21, %v6542_v62  ;;  %v6621_v14 = vadd.f32 %v6545_v51, %v6544_v16 }
 0xa43   : > { %v6628_v60 = vadd.f32 %v6547_v28, %v6546_v56  ;;  %v6635_v26 = vadd.f32 %v6549_v30, %v6548_v45  ;;  %v6642_v57 = vadd.f32 %v6551_v2, %v6550_v13  ;;  %v6649_v24 = vadd.f32 %v6553_v38, %v6552_v18 }
 0xa44   : > { %v6656_v22 = vadd.f32 %v6555_v53, %v6554_v63  ;;  %v6663_v35 = vadd.f32 %v6557_v49, %v6556_v58  ;;  %v6615_v8 = vrot.slane %v6614_v10, 4  ;;  %v6622_v44 = vrot.slane %v6621_v14, 4 }
 0xa45   : > { %v6629_v37 = vrot.slane %v6628_v60, 4  ;;  %v6636_v33 = vrot.slane %v6635_v26, 4  ;;  %v6643_v15 = vrot.slane %v6642_v57, 4  ;;  %v6650_v6 = vrot.slane %v6649_v24, 4 }
 0xa46   : > { %v6657_v20 = vrot.slane %v6656_v22, 4  ;;  %v6664_v23 = vrot.slane %v6663_v35, 4  ;;  %v6616_v59 = vadd.f32 %v6615_v8, %v6614_v10  ;;  %v6623_v3 = vadd.f32 %v6622_v44, %v6621_v14 }
 0xa47   : > { %v6630_v61 = vadd.f32 %v6629_v37, %v6628_v60  ;;  %v6637_v4 = vadd.f32 %v6636_v33, %v6635_v26  ;;  %v6644_v62 = vadd.f32 %v6643_v15, %v6642_v57  ;;  %v6651_v16 = vadd.f32 %v6650_v6, %v6649_v24 }
 0xa48   : > { %v6658_v56 = vadd.f32 %v6657_v20, %v6656_v22  ;;  %v6665_v45 = vadd.f32 %v6664_v23, %v6663_v35  ;;  %v6617_v13 = vrot.slane %v6616_v59, 2  ;;  %v6624_v18 = vrot.slane %v6623_v3, 2 }
 0xa49   : > { %v6631_v25 = vrot.slane %v6630_v61, 2  ;;  %v6638_v36 = vrot.slane %v6637_v4, 2  ;;  %v6645_v40 = vrot.slane %v6644_v62, 2  ;;  %v6652_v63 = vrot.slane %v6651_v16, 2 }
 0xa4a   : > { %v6659_v58 = vrot.slane %v6658_v56, 2  ;;  %v6666_v11 = vrot.slane %v6665_v45, 2  ;;  %v6618_v31 = vadd.f32 %v6617_v13, %v6616_v59  ;;  %v6625_v29 = vadd.f32 %v6624_v18, %v6623_v3 }
 0xa4b   : > { %v6632_v52 = vadd.f32 %v6631_v25, %v6630_v61  ;;  %v6639_v39 = vadd.f32 %v6638_v36, %v6637_v4  ;;  %v6646_v12 = vadd.f32 %v6645_v40, %v6644_v62  ;;  %v6653_v21 = vadd.f32 %v6652_v63, %v6651_v16 }
 0xa4c   : > { %v6660_v51 = vadd.f32 %v6659_v58, %v6658_v56  ;;  %v6667_v28 = vadd.f32 %v6666_v11, %v6665_v45  ;;  %v6619_v30 = vrot.slane %v6618_v31, 1  ;;  %v6626_v55 = vrot.slane %v6625_v29, 1 }
 0xa4d   : > { %v6633_v9 = vrot.slane %v6632_v52, 1  ;;  %v6640_v50 = vrot.slane %v6639_v39, 1  ;;  %v6578_v2 = vadd.f32 %v6577_v5, %v6576_v0  ;;  %v6591_v46 = vrot.slane %v15420_v19, 1 }
 0xa4e   : > { %v6598_v38 = vrot.slane %v15422_v17, 1  ;;  %v6647_v43 = vrot.slane %v6646_v12, 1  ;;  %v6620_v53 = vadd.f32 %v6619_v30, %v6618_v31  ;;  %v6627_v47 = vadd.f32 %v6626_v55, %v6625_v29 }
 0xa4f   : > { %v6634_v49 = vadd.f32 %v6633_v9, %v6632_v52  ;;  %v6654_v10 = vrot.slane %v6653_v21, 1  ;;  %v6605_v14 = vrot.slane %v15424_v54, 1  ;;  %v6612_v60 = vrot.slane %v15426_v7, 1 }
 0xa50   : > { %v6661_v26 = vrot.slane %v6660_v51, 1  ;;  %v6668_v57 = vrot.slane %v6667_v28, 1  ;;  %v6585_v24 = vadd.f32 %v6584_v27, %v15406_v32  ;;  %v6641_v22 = vadd.f32 %v6640_v50, %v6639_v39 }
 0xa51   : > { %v6670_v0 = vpack.c.bf16 %v15428_v34, %v15428_v34  ;;  %v6671_v5 = vpack.c.bf16 %v15430_v1, %v15430_v1  ;;  %v6592_v35 = vadd.f32 %v6591_v46, %v15420_v19  ;;  %v6599_v8 = vadd.f32 %v6598_v38, %v15422_v17 }
 0xa52   : > { %v6648_v44 = vadd.f32 %v6647_v43, %v6646_v12  ;;  %v6672_v37 = vpack.c.bf16 %v6578_v2, %v6578_v2  ;;  %v6655_v33 = vadd.f32 %v6654_v10, %v6653_v21  ;;  %v6678_v15 = vpack.c.bf16 %v6620_v53, %v6620_v53 }
 0xa53   : > { %v6679_v6 = vpack.c.bf16 %v6627_v47, %v6627_v47  ;;  %v6680_v20 = vpack.c.bf16 %v6634_v49, %v6634_v49  ;;  %v6606_v23 = vadd.f32 %v6605_v14, %v15424_v54  ;;  %v6613_v32 = vadd.f32 %v6612_v60, %v15426_v7  ;;  %v8422_v14 = vld [vmem:[%s15636_s5 + $0x2fc] ss:$52 sps:$4 sm:$0xff]   ;;  %v8423_v60 = vld [vmem:[%s15636_s5 + $0x294] ss:$52 sps:$4 sm:$0xff]  }
 0xa54   : > { %v6662_v27 = vadd.f32 %v6661_v26, %v6660_v51  ;;  %v6669_v59 = vadd.f32 %v6668_v57, %v6667_v28  ;;  %v6673_v34 = vpack.c.bf16 %v6585_v24, %v6585_v24  ;;  %v6681_v3 = vpack.c.bf16 %v6641_v22, %v6641_v22  ;;  %8127 = vmatpush3.bf16.msra.mxu0 %v8422_v14  ;;  %v8430_v26 = vld [vmem:[%s15636_s5 + $0x300] ss:$52 sps:$4 sm:$0xff]   ;;  %v8431_v57 = vld [vmem:[%s15636_s5 + $0x298] ss:$52 sps:$4 sm:$0xff]   ;;  %v8432_v22 = vld [vmem:[%s15636_s5 + $0x230] ss:$52 sps:$4 sm:$0xff]  }
 0xa55   : > { %v6708_v61 = vunpack.c.l.b16 %v6670_v0  ;;  %v6709_v1 = vunpack.c.l.b16 %v6671_v5  ;;  %v6674_v4 = vpack.c.bf16 %v6592_v35, %v6592_v35  ;;  %v6675_v19 = vpack.c.bf16 %v6599_v8, %v6599_v8  ;;  %8128 = vmatprep.subr.bf16.mxu0 %v16489_v42  ;;  %v8424_v24 = vld [vmem:[%s15636_s5 + $0x22c] ss:$52 sps:$4 sm:$0xff]   ;;  %v8425_v0 = vld [vmem:[%s15636_s5 + $0x1c4] ss:$52 sps:$4 sm:$0xff]   ;;  %v8433_v5 = vld [vmem:[%s15636_s5 + $0x1c8] ss:$52 sps:$4 sm:$0xff]  }
 0xa56   : > { %v6682_v62 = vpack.c.bf16 %v6648_v44, %v6648_v44  ;;  %v6710_v17 = vunpack.c.l.b16 %v6672_v37  ;;  %v6683_v16 = vpack.c.bf16 %v6655_v33, %v6655_v33  ;;  %v6716_v56 = vunpack.c.l.b16 %v6678_v15  ;;  %v8426_v35 = vld [vmem:[%s15636_s5 + $0x15c] ss:$52 sps:$4 sm:$0xff]   ;;  %v8434_v8 = vld [vmem:[%s15636_s5 + $0x160] ss:$52 sps:$4 sm:$0xff]   ;;  %v8429_v33 = vld [vmem:[%s15636_s5 + $0x24] ss:$52 sps:$4 sm:$0xff]  }
 0xa57   : > { %v6717_v45 = vunpack.c.l.b16 %v6679_v6  ;;  %v6718_v13 = vunpack.c.l.b16 %v6680_v20  ;;  %v6676_v18 = vpack.c.bf16 %v6606_v23, %v6606_v23  ;;  %v6677_v25 = vpack.c.bf16 %v6613_v32, %v6613_v32  ;;  %v8427_v44 = vld [vmem:[%s15636_s5 + $0xf4] ss:$52 sps:$4 sm:$0xff]   ;;  %v8428_v37 = vld [vmem:[%s15636_s5 + $0x8c] ss:$52 sps:$4 sm:$0xff]   ;;  %v8450_v14 = vld [vmem:[%s15636_s5 + $0x164] ss:$52 sps:$4 sm:$0xff]  }
 0xa58   : > { %v6684_v36 = vpack.c.bf16 %v6662_v27, %v6662_v27  ;;  %v6685_v54 = vpack.c.bf16 %v6669_v59, %v6669_v59  ;;  %v6711_v40 = vunpack.c.l.b16 %v6673_v34  ;;  %v6719_v7 = vunpack.c.l.b16 %v6681_v3  ;;  %8129 = vmatpush3.bf16.msra.mxu0 %v8423_v60  ;;  %v7675_v15 = vld [vmem:[%s15635_s4 + $0x8] ss:$0 sm:$0xff]  ;;  %v8455_v60 = vld [vmem:[%s15636_s5 + $0x100] ss:$52 sps:$4 sm:$0xff]  }
 0xa59   : > { %v6724_v63 = vsel %vm5595_vm0, %v6709_v1, %v6708_v61  ;;  %v6731_v58 = vsel %vm5595_vm0, %v6717_v45, %v6716_v56  ;;  %v6712_v11 = vunpack.c.l.b16 %v6674_v4  ;;  %v6720_v31 = vunpack.c.l.b16 %v6682_v62  ;;  %8130 = vmatprep.subr.bf16.mxu0 %v16489_v42 }
 0xa5a   : > { %v6725_v29 = vsel %vm5597_vm6, %v6710_v17, %v6724_v63  ;;  %v6732_v52 = vsel %vm5597_vm6, %v6718_v13, %v6731_v58  ;;  %v6713_v39 = vunpack.c.l.b16 %v6675_v19  ;;  %v6721_v12 = vunpack.c.l.b16 %v6683_v16 }
 0xa5b   : > { %v6726_v21 = vsel %vm5599_vm8, %v6711_v40, %v6725_v29  ;;  %v6733_v51 = vsel %vm5599_vm8, %v6719_v7, %v6732_v52  ;;  %v6714_v28 = vunpack.c.l.b16 %v6676_v18  ;;  %v6722_v30 = vunpack.c.l.b16 %v6684_v36  ;;  %v8436_v29 = vld [vmem:[%s15636_s5 + $0x90] ss:$52 sps:$4 sm:$0xff]   ;;  %v8437_v52 = vld [vmem:[%s15636_s5 + $0x28] ss:$52 sps:$4 sm:$0xff]  }
 0xa5c   : > { %v6727_v55 = vsel %vm5601_vm2, %v6712_v11, %v6726_v21  ;;  %v6734_v9 = vsel %vm5601_vm2, %v6720_v31, %v6733_v51  ;;  %v6715_v50 = vunpack.c.l.b16 %v6677_v25  ;;  %v6723_v2 = vunpack.c.l.b16 %v6685_v54  ;;  %8131 = vmatpush3.bf16.msra.mxu0 %v8424_v24  ;;  %v8435_v31 = vld [vmem:[%s15636_s5 + $0xf8] ss:$52 sps:$4 sm:$0xff]   ;;  %v8456_v24 = vld [vmem:[%s15636_s5 + $0x94] ss:$52 sps:$4 sm:$0xff]  }
 0xa5d   : > { %v6728_v46 = vsel %vm5603_vm1, %v6713_v39, %v6727_v55  ;;  %v6735_v38 = vsel %vm5603_vm1, %v6721_v12, %v6734_v9  ;;  %8132 = vmatprep.subr.bf16.mxu0 %v16489_v42  ;;  %v7686_v39 = vld [vmem:[%s15635_s4 + $0xb] ss:$0 sm:$0xff] }
 0xa5e   : > { %v6729_v43 = vsel %vm5605_vm11, %v6714_v28, %v6728_v46  ;;  %v6736_v53 = vsel %vm5605_vm11, %v6722_v30, %v6735_v38  ;;  %v8438_v46 = vld [vmem:[%s15636_s5 + $0x304] ss:$52 sps:$4 sm:$0xff]   ;;  %v8440_v38 = vld [vmem:[%s15636_s5 + $0x308] ss:$52 sps:$4 sm:$0xff]  }
 0xa5f   : > { %v6730_v47 = vsel %vm5607_vm12, %v6715_v50, %v6729_v43  ;;  %v6737_v49 = vsel %vm5607_vm12, %v6723_v2, %v6736_v53  ;;  %v8443_v43 = vld [vmem:[%s15636_s5 + $0x2a0] ss:$52 sps:$4 sm:$0xff]  }
 0xa60   : > { %v6738_v10 = vpack.c.b16 %v6737_v49, %v6730_v47  ;;  %8133 = vmatpush3.bf16.msra.mxu0 %v8425_v0  ;;  %v8444_v53 = vld [vmem:[%s15636_s5 + $0x234] ss:$52 sps:$4 sm:$0xff]   ;;  %v8449_v47 = vld [vmem:[%s15636_s5 + $0x1d0] ss:$52 sps:$4 sm:$0xff]   ;;  %v8447_v49 = vld [vmem:[%s15636_s5 + $0x1cc] ss:$52 sps:$4 sm:$0xff]  }
 0xa61   : > { %8134 = vmatprep.subr.bf16.mxu0 %v16489_v42  ;;  %v8459_v0 = vld [vmem:[%s15636_s5 + $0x2c] ss:$52 sps:$4 sm:$0xff]  }
 0xa62   : > { %8123 = vmatmul.mubr.bf16.vlgmr.msra.gmra.mxu1 %v6738_v10  ;;  %v8452_v10 = vld [vmem:[%s15636_s5 + $0x168] ss:$52 sps:$4 sm:$0xff]  }
 0xa63   : > { %8162 = vmatprep.mubr.msk.bf16.mxu1 %vm8952_vm10, %v16489_v42  ;;  %8147 = vmatpush3.bf16.msra.mxu1 %v8430_v26  ;;  %v8453_v26 = vld [vmem:[%s15636_s5 + $0xfc] ss:$52 sps:$4 sm:$0xff]   ;;  %vm7233_vm10 = vcmask 130048  }
 0xa64   : > { %8148 = vmatprep.subr.bf16.mxu1 %v16489_v42  ;;  %8135 = vmatpush3.bf16.msra.mxu0 %v8426_v35 }
 0xa65   : > { %8136 = vmatprep.subr.bf16.mxu0 %v16489_v42 }
 0xa67   : > { %8149 = vmatpush3.bf16.msra.mxu1 %v8431_v57  ;;  %v8458_v57 = vld [vmem:[%s15636_s5 + $0x98] ss:$52 sps:$4 sm:$0xff]  }
 0xa68   : > { %8150 = vmatprep.subr.bf16.mxu1 %v16489_v42  ;;  %8137 = vmatpush3.bf16.msra.mxu0 %v8427_v44 }
 0xa69   : > { %8138 = vmatprep.subr.bf16.mxu0 %v16489_v42 }
 0xa6b   : > { %8151 = vmatpush3.bf16.msra.mxu1 %v8432_v22  ;;  %v8461_v22 = vld [vmem:[%s15636_s5 + $0x30] ss:$52 sps:$4 sm:$0xff]  }
 0xa6c   : > { %8152 = vmatprep.subr.bf16.mxu1 %v16489_v42  ;;  %8139 = vmatpush3.bf16.msra.mxu0 %v8428_v37 }
 0xa6d   : > { %8140 = vmatprep.subr.bf16.mxu0 %v16489_v42 }
 0xa6f   : > { %8153 = vmatpush3.bf16.msra.mxu1 %v8433_v5  ;;  %v7695_v5 = vld [vmem:[%s15635_s4 + $0x3] ss:$0 sm:$0xff] }
 0xa70   : > { %8154 = vmatprep.subr.bf16.mxu1 %v16489_v42  ;;  %8141 = vmatpush3.bf16.msra.mxu0 %v8429_v33 }
 0xa71   : > { %7189 = vmatprep.subr.bf16.mxu0 %v8440_v38 }
 0xa73   : > { %8155 = vmatpush3.bf16.msra.mxu1 %v8434_v8 }
 0xa74   : > { %8156 = vmatprep.subr.bf16.mxu1 %v16489_v42 }
 0xa77   : > { %8157 = vmatpush3.bf16.msra.mxu1 %v8435_v31  ;;  %v6980_v31 = vld [vmem:[%s15635_s4 + $0x4] sm:$0x3] }
 0xa78   : > { %8158 = vmatprep.subr.bf16.mxu1 %v16489_v42 }
 0xa7b   : > { %8159 = vmatpush3.bf16.msra.mxu1 %v8436_v29 }
 0xa7c   : > { %8160 = vmatprep.subr.bf16.mxu1 %v16489_v42 }
 0xa7f   : > { %8161 = vmatpush3.bf16.msra.mxu1 %v8437_v52 }
 0xb22   : > { %v6822_v6 = vpop.f32.mrf.mxu1 }
 0xb23   : > { %v6823_v20 = vadd.f32 %v7675_v15, %v6822_v6 }
 0xb24   : > { %v8124_v23 = vpop.f32.mrf.mxu1 }
 0xb25   : > { %v6831_v32 = vand.u32 2147483647, %v6823_v20  ;;  %v6829_v18 = vmax.f32 %v6823_v20, 0.0 }
 0xb26   : > { %v6825_v27 = vpop.f32.mrf.mxu1 }
 0xb27   : > { %v6833_v59 = vsub.f32 0.0, %v6831_v32  ;;  %v6826_v34 = vadd.f32 %v7675_v15, %v6825_v27 }
 0xb28   : > { %v8125_v3 = vpop.f32.mrf.mxu1 }
 0xb29   : > { %v6835_v61 = vmul.f32 1.442695, %v6833_v59  ;;  %v6832_v1 = vand.u32 2147483647, %v6826_v34  ;;  %v6830_v54 = vmax.f32 %v6826_v34, 0.0 }
 0xb2b   : > { %8862 = vpow2.f32 %v6835_v61  ;;  %v6834_v4 = vsub.f32 0.0, %v6832_v1 }
 0xb2d   : > { %v6837_v19 = vmul.f32 1.442695, %v6834_v4 }
 0xb2f   : > { %8864 = vpow2.f32 %v6837_v19 }
 0xb38   : > { %v8863_v62 = vpop.eup %8862 }
 0xb39   : > { %v6839_v17 = vadd.f32 1.0, %v8863_v62 }
 0xb3b   : > { %8866 = vlog2.f32 %v6839_v17 }
 0xb3c   : > { %v8865_v16 = vpop.eup %8864 }
 0xb3d   : > { %v6840_v56 = vadd.f32 1.0, %v8865_v16 }
 0xb3f   : > { %8868 = vlog2.f32 %v6840_v56 }
 0xb48   : > { %v8867_v45 = vpop.eup %8866 }
 0xb49   : > { %v6842_v13 = vmul.f32 0.6931472, %v8867_v45 }
 0xb4b   : > { %v6845_v36 = vadd.f32 %v6842_v13, %v6829_v18 }
 0xb4c   : > { %v8869_v25 = vpop.eup %8868 }
 0xb4d   : > { %v6844_v40 = vmul.f32 0.6931472, %v8869_v25  ;;  %v7684_v63 = vadd.f32 -0.6931472, %v6845_v36 }
 0xb4f   : > { %v6846_v7 = vadd.f32 %v6844_v40, %v6830_v54  ;;  %v7099_v54 = vlaneseq }
 0xb51   : > { %v7685_v58 = vadd.f32 -0.6931472, %v6846_v7  ;;  %v7100_v40 = vshrl.u32 %v7099_v54, 7 }
 0xb53   : > { %v6849_v11 = vpack.c.bf16 %v7685_v58, %v7684_v63  ;;  %v7105_v63 = vsub.s32 1, %v7100_v40  ;;  %v7101_v58 = vsub.s32 0, %v7100_v40 }
 0xb55   : > { %8143 = vmatmul.mubr.bf16.vlgmr.msra.gmra.mxu0 %v6849_v11  ;;  %v7106_v52 = vrot.slane %v6980_v31, %v7105_v63 }
 0xb56   : > { %7190 = vmatpush1.bf16.msra.mxu0 %v8438_v46 }
 0xb57   : > { %7191 = vmatprep.subr.bf16.mxu0 %v8443_v43 }
 0xc15   : > { %v6938_v12 = vpop.f32.mrf.mxu0 }
 0xc16   : > { %v6939_v51 = vadd.f32 %v7686_v39, %v6938_v12 }
 0xc17   : > { %v8144_v21 = vpop.f32.mrf.mxu0 }
 0xc18   : > { %v6945_v9 = vadd.f32 %v6939_v51, %v15327_v41  ;;  %v8441_v41 = vld [vmem:[%s15636_s5 + $0x29c] ss:$52 sps:$4 sm:$0xff]  }
 0xc19   : > { %v6941_v28 = vpop.f32.mrf.mxu0  ;;  %7192 = vmatpush1.bf16.msra.mxu0 %v8441_v41 }
 0xc1a   : > { %v6942_v30 = vadd.f32 %v7686_v39, %v6941_v28  ;;  %v7102_v39 = vrot.slane %v6980_v31, %v7101_v58 }
 0xc1b   : > { %v8145_v55 = vpop.f32.mrf.mxu0 }
 0xc1c   : > { %v6946_v50 = vadd.f32 %v6942_v30, %v15330_v48  ;;  %v8953_v48 = vmov 0   ;;  %v7232_v55 = vld [vmem:[%s333_s8] sm:$0xff] }
 0xc1d   : > { %7221 = vmatprep.mubr.bf16.mxu0 %v8953_v48 }
 0xc1e   : > { %v6981_v2 = vpack.c.bf16 %v6946_v50, %v6945_v9 }
 0xc20   : > { %8163 = vmatmul.mubr.bf16.vlgmr.msra.gmra.mxu1 %v6981_v2 }
 0xc21   : > { %7301 = vmatprep.mubr.f32.mxu1 %v16489_v42  ;;  %v8446_v42 = vld [vmem:[%s15636_s5 + $0x238] ss:$52 sps:$4 sm:$0xff]  }
 0xc22   : > { %7193 = vmatprep.subr.bf16.mxu0 %v8446_v42 }
 0xc23   : > { %7194 = vmatpush1.bf16.msra.mxu0 %v8444_v53 }
 0xc24   : > { %7195 = vmatprep.subr.bf16.mxu0 %v8449_v47 }
 0xc27   : > { %7196 = vmatpush1.bf16.msra.mxu0 %v8447_v49 }
 0xc28   : > { %7197 = vmatprep.subr.bf16.mxu0 %v8452_v10 }
 0xc2b   : > { %7198 = vmatpush1.bf16.msra.mxu0 %v8450_v14 }
 0xc2c   : > { %7199 = vmatprep.subr.bf16.mxu0 %v8455_v60 }
 0xc2f   : > { %7200 = vmatpush1.bf16.msra.mxu0 %v8453_v26 }
 0xc30   : > { %7201 = vmatprep.subr.bf16.mxu0 %v8458_v57 }
 0xc33   : > { %7202 = vmatpush1.bf16.msra.mxu0 %v8456_v24 }
 0xc34   : > { %7203 = vmatprep.subr.bf16.mxu0 %v8461_v22 }
 0xc37   : > { %7204 = vmatpush1.bf16.msra.mxu0 %v8459_v0 }
 0xce0   : > { %v7070_v35 = vpop.f32.mrf.mxu1 }
 0xce1   : > { %v7071_v8 = vadd.f32 %v7695_v5, %v7070_v35 }
 0xce2   : > { %v8164_v44 = vpop.f32.mrf.mxu1 }
 0xce3   : > { %v7079_v37 = vand.u32 2147483647, %v7071_v8  ;;  %v7077_v62 = vmax.f32 %v7071_v8, 0.0 }
 0xce4   : > { %v7073_v33 = vpop.f32.mrf.mxu1 }
 0xce5   : > { %v7081_v15 = vsub.f32 0.0, %v7079_v37  ;;  %v7074_v6 = vadd.f32 %v7695_v5, %v7073_v33 }
 0xce6   : > { %v8165_v20 = vpop.f32.mrf.mxu1 }
 0xce7   : > { %v7083_v23 = vmul.f32 1.442695, %v7081_v15  ;;  %v7080_v32 = vand.u32 2147483647, %v7074_v6  ;;  %v7078_v56 = vmax.f32 %v7074_v6, 0.0 }
 0xce9   : > { %8870 = vpow2.f32 %v7083_v23  ;;  %v7082_v27 = vsub.f32 0.0, %v7080_v32 }
 0xceb   : > { %v7085_v59 = vmul.f32 1.442695, %v7082_v27 }
 0xced   : > { %8872 = vpow2.f32 %v7085_v59 }
 0xcf6   : > { %v8871_v34 = vpop.eup %8870 }
 0xcf7   : > { %v7087_v3 = vadd.f32 1.0, %v8871_v34 }
 0xcf9   : > { %8874 = vlog2.f32 %v7087_v3 }
 0xcfa   : > { %v8873_v61 = vpop.eup %8872 }
 0xcfb   : > { %v7088_v1 = vadd.f32 1.0, %v8873_v61 }
 0xcfd   : > { %8876 = vlog2.f32 %v7088_v1 }
 0xd06   : > { %v8875_v4 = vpop.eup %8874 }
 0xd07   : > { %v7090_v19 = vmul.f32 0.6931472, %v8875_v4 }
 0xd09   : > { %v7093_v16 = vadd.f32 %v7090_v19, %v7077_v62 }
 0xd0a   : > { %v8877_v17 = vpop.eup %8876 }
 0xd0b   : > { %v7092_v45 = vmul.f32 0.6931472, %v8877_v17  ;;  %v7704_v18 = vadd.f32 -0.6931472, %v7093_v16 }
 0xd0d   : > { %v7094_v13 = vadd.f32 %v7092_v45, %v7078_v56 }
 0xd0f   : > { %v7705_v25 = vadd.f32 -0.6931472, %v7094_v13 }
 0xd11   : > { %v7097_v36 = vpack.c.bf16 %v7705_v25, %v7704_v18 }
 0xd13   : > { %7222 = vmatmul.mubr.bf16.vlgmr.msra.gmra.mxu0 %v7097_v36 }
 0xdd3   : > { %v7223_v7 = vpop.f32.mrf.mxu0 }
 0xdd4   : > { %v7224_v30 = vadd.f32 %v7223_v7, %v7102_v39 }
 0xdd5   : > { %v7225_v11 = vpop.f32.mrf.mxu0 }
 0xdd6   : > { %v7226_v28 = vadd.f32 %v7225_v11, %v7106_v52 }
 0xdd7   : > { %v7227_v29 = vpop.f32.mrf.mxu0 }
 0xdd8   : > { %v7228_v51 = vadd.f32 %v7227_v29, %v7102_v39 }
 0xdd9   : > { %v7229_v12 = vpop.f32.mrf.mxu0 }
 0xdda   : > { %v7230_v21 = vadd.f32 %v7229_v12, %v7106_v52 }
 0xddc   : > { %7265 = vmatprep.subr.mxu1 %v7230_v21 }
 0xddd   : > { %7266 = vmatpush1.msra.mxu1 %v7228_v51 }
 0xdde   : > { %7267 = vmatprep.subr.mxu1 %v7226_v28 }
 0xddf   : > { %7268 = vmatpush1.msra.mxu1 %v7224_v30 }
 0xde0   : > { %7722 = vmatmul.mubr.msk.f32.vlgmr.msra.gmra.mxu1 %vm7233_vm10, %v7232_v55 }
 0xea0   : > { %v7303_v9 = vpop.f32.mrf.mxu1 }
 0xea1   : > { %7308 = vst [vmem:[%s314_s14] sm:$0xff] %v7303_v9 }
 0xea2   : > { %v7305_v50 = vpop.f32.mrf.mxu1 }
 0xea3   : > { %7309 = vst [vmem:[%s314_s14 + $0x8] sm:$0xff] %v7305_v50 }
 0xea4   : > { %8896 = shalt.err (!%p8893_p3)
}
 0xea5   : > { %s8897_s29 = scalar_lea.hbm %s7323_s18, 256  ;;  %s8901_s9 = scalar_lea.hbm %s15638_s7, 512 }
 0xea6   : > { %p8898_p4 = scmp.ne.s32.totalorder %s7323_s18, %s8897_s29  ;;  %p8902_p9 = scmp.lt.s32.totalorder %s7323_s18, %s15638_s7 }
 0xea7   : > { %p8903_p10 = scmp.lt.s32.totalorder %s8901_s9, %s8897_s29 }
 0xea8   : > { %p8899_p7 = pnand %p8898_p4, %p9033_p5 }
 0xea9   : > { %p8904_p11 = por %p8903_p10, %p8902_p9 }
 0xeaa   : > { %p8900_p8 = pneg %p8899_p7 }
 0xeac   : > { %p8905_p12 = pnand %p8904_p11, %p8900_p8 }
 0xeae   : > { %8908 = shalt.err (!%p8905_p12)
}
 0xeaf   : > { %8294 = dma.vmem_to_hbm [thread:$0]  (%p9033_p5), %s15593_s15, 256, %s7323_s18, %s7311_s19  }
 0xeb0 PF: > { %p8300_p13 = scmp.ge.s32.totalorder %s8943_s27, 2  ;;  %s7337_s16 = sand.u32 1, %s8931_s24  }
 0xeb1   : > { %s7338_s17 = scalar_lea.sflag [#allocation3], %s7337_s16 }
 0xeb2   : > { %p8297_p0 = pnand %p8300_p13, %p9037_p6 }
 0xeb4   : > { %p8298_p1 = pneg %p8297_p0 }
 0xeb6   : > { %8926 = dma.done.wait (%p8298_p1), %s7338_s17, 256  }
 0xeb7   : > { %8928 = vsyncadd (%p8298_p1), %s7338_s17, 4294967040  ;;  %p17_p2 = scmp.ge.s32.totalorder %s9020_s30, 4   ;;  %s16596_s24 = smov %s8935_s25 }
 0xeb8   : > { %s16597_s25 = smov %s8939_s26  ;;  %s16598_s26 = smov %s9031_s10 }
 0xeb9   : > { %s16599_s27 = smov %s9020_s30  ;;  %19 = sbr.rel (!%p17_p2) target bundleno = 3 (0x3), region = 92 }
 0xebe   :  { %7343 = vsyncpa [#allocation3], 1 }
 0xebf   :  { %7345 = vsyncpa [#allocation3 + $0x1], 1 }

</bundles_post_ra>
